<compile_context>
chip_gen: v7x
topology: tpu7x:2x2x1
jax: 0.10.0
libtpu: 0.0.40
codegen_flags: <defaults>
</compile_context>

<pallas_src>
import functools

import jax
import jax.numpy as jnp
from jax.experimental import pallas as pl
from jax.experimental.pallas import tpu as pltpu


def _round_up(x, m):
    return (x + m - 1) // m * m


# ----------------------------------------------------------------------------
# Pallas kernels
# ----------------------------------------------------------------------------
def _matmul_bias_kernel(x_ref, w_ref, b_ref, o_ref, *, relu):
    """o = relu(x @ w + b); bf16 operands, f32 accumulate, f32 epilogue."""
    acc = jnp.dot(x_ref[...], w_ref[...], preferred_element_type=jnp.float32)
    acc = acc + b_ref[...]                     # (1, N) f32 bias broadcasts
    if relu:
        acc = jnp.maximum(acc, 0.0)
    o_ref[...] = acc.astype(o_ref.dtype)


def _head_kernel(x_ref, wc_ref, bc_ref, w1_ref, b1_ref, w2_ref, b2_ref,
                 w3_ref, b3_ref, o_ref):
    """Fused conv3(as GEMM) -> ReLU -> fc1 -> ReLU -> fc2 -> ReLU -> fc3."""
    h = jnp.dot(x_ref[...], wc_ref[...], preferred_element_type=jnp.float32)
    h = jnp.maximum(h + bc_ref[...], 0.0)
    h = jnp.dot(h.astype(jnp.bfloat16), w1_ref[...],
                preferred_element_type=jnp.float32)
    h = jnp.maximum(h + b1_ref[...], 0.0)
    h = jnp.dot(h.astype(jnp.bfloat16), w2_ref[...],
                preferred_element_type=jnp.float32)
    h = jnp.maximum(h + b2_ref[...], 0.0)
    h = jnp.dot(h.astype(jnp.bfloat16), w3_ref[...],
                preferred_element_type=jnp.float32)
    o_ref[...] = (h + b3_ref[...]).astype(o_ref.dtype)


# ----------------------------------------------------------------------------
# GEMM wrapper (M-tiled, parallel grid, padded lane dims)
# ----------------------------------------------------------------------------
def matmul_bias(x, w, b, *, relu, n_valid, bm=256):
    """x: (M, K); w: (Kp, Np) bf16 (pre-padded); b: (1, Np) f32 -> (M, n_valid) f32."""
    M, K = x.shape
    Kp, Np = w.shape
    if x.dtype != jnp.bfloat16:
        x = x.astype(jnp.bfloat16)
    if Kp > K:
        x = jnp.pad(x, ((0, 0), (0, Kp - K)))
    # Tile M (parallel axis -> both TCs on v7x); small M = single aligned block.
    bm_eff = bm if M > bm else _round_up(M, 8)
    Mp = _round_up(M, bm_eff)
    if Mp > M:
        x = jnp.pad(x, ((0, Mp - M), (0, 0)))
    kernel = functools.partial(_matmul_bias_kernel, relu=relu)
    out = pl.pallas_call(
        kernel,
        out_shape=jax.ShapeDtypeStruct((Mp, Np), jnp.float32),
        grid=(Mp // bm_eff,),
        in_specs=[
            pl.BlockSpec((bm_eff, Kp), lambda i: (i, 0)),
            pl.BlockSpec((Kp, Np), lambda i: (0, 0)),   # weight resident
            pl.BlockSpec((1, Np), lambda i: (0, 0)),    # bias resident
        ],
        out_specs=pl.BlockSpec((bm_eff, Np), lambda i: (i, 0)),
        compiler_params=pltpu.CompilerParams(
            dimension_semantics=("parallel",)),
    )(x, w, b)
    return out[:M, :n_valid]


# ----------------------------------------------------------------------------
# Conv2d (valid, no padding) as patches + Pallas GEMM, NHWC throughout
# ----------------------------------------------------------------------------
def conv2d_nhwc(x, w_mat, b_row, *, ksize, stride, n_valid):
    """x: (B, H, W, C) -> (B, OH, OW, n_valid), fused conv+bias+ReLU."""
    B, H, W, C = x.shape
    OH = (H - ksize) // stride + 1
    OW = (W - ksize) // stride + 1
    x = x.astype(jnp.bfloat16)
    # Single XLA op for im2col.  Feature ordering is c*(KH*KW) + kh*KW + kw,
    # which matches PyTorch's (Cout, Cin*KH*KW) weight flatten.
    patches = jax.lax.conv_general_dilated_patches(
        x, (ksize, ksize), (stride, stride), padding="VALID",
        dimension_numbers=("NHWC", "HWIO", "NHWC"))
    p = patches.reshape(B * OH * OW, C * ksize * ksize)
    y = matmul_bias(p, w_mat, b_row, relu=True, n_valid=n_valid)
    return y.reshape(B, OH, OW, n_valid)


def maxpool2d_nhwc(x, ksize, stride):
    """Valid max-pool (PyTorch MaxPool2d semantics), NHWC, pairwise max tree."""
    B, H, W, C = x.shape
    OH = (H - ksize) // stride + 1
    OW = (W - ksize) // stride + 1
    out = None
    for di in range(ksize):
        for dj in range(ksize):
            sl = x[:, di:di + stride * (OH - 1) + 1:stride,
                   dj:dj + stride * (OW - 1) + 1:stride, :]
            out = sl if out is None else jnp.maximum(out, sl)
    return out


# ----------------------------------------------------------------------------
# Fused conv3 + FC head
# ----------------------------------------------------------------------------
def head(x, p):
    """x: (M, 2304) flattened 3x3x256 window (kh, kw, c order) -> (M, 2) f32."""
    M, K = x.shape
    Mp = _round_up(M, 8)
    xb = x.astype(jnp.bfloat16)
    if Mp > M:
        xb = jnp.pad(xb, ((0, Mp - M), (0, 0)))
    wc, bc = p["conv3_w"], p["conv3_b"]
    w1, b1 = p["fc1_w"], p["fc1_b"]
    w2, b2 = p["fc2_w"], p["fc2_b"]
    w3, b3 = p["fc3_w"], p["fc3_b"]
    Np = w3.shape[1]
    out = pl.pallas_call(
        _head_kernel,
        out_shape=jax.ShapeDtypeStruct((Mp, Np), jnp.float32),
        grid=(1,),
        in_specs=[
            pl.BlockSpec((Mp, K), lambda i: (0, 0)),
            pl.BlockSpec(wc.shape, lambda i: (0, 0)),
            pl.BlockSpec(bc.shape, lambda i: (0, 0)),
            pl.BlockSpec(w1.shape, lambda i: (0, 0)),
            pl.BlockSpec(b1.shape, lambda i: (0, 0)),
            pl.BlockSpec(w2.shape, lambda i: (0, 0)),
            pl.BlockSpec(b2.shape, lambda i: (0, 0)),
            pl.BlockSpec(w3.shape, lambda i: (0, 0)),
            pl.BlockSpec(b3.shape, lambda i: (0, 0)),
        ],
        out_specs=pl.BlockSpec((Mp, Np), lambda i: (0, 0)),
        compiler_params=pltpu.CompilerParams(
            dimension_semantics=("arbitrary",)),
    )(xb, wc, bc, w1, b1, w2, b2, w3, b3)
    return out[:M, :2]


# ----------------------------------------------------------------------------
# Parameters
# ----------------------------------------------------------------------------
def init_params(key):
    """Deterministic synthetic parameters with the PyTorch module's shapes."""
    ks = jax.random.split(key, 12)

    def w(k, shape, fan_in):
        return jax.random.normal(k, shape, jnp.float32) / jnp.sqrt(fan_in)

    return {
        "conv1_w": w(ks[0], (96, 1, 11, 11), 1 * 11 * 11),
        "conv1_b": w(ks[1], (96,), 121),
        "conv2_w": w(ks[2], (256, 96, 5, 5), 96 * 5 * 5),
        "conv2_b": w(ks[3], (256,), 2400),
        "conv3_w": w(ks[4], (384, 256, 3, 3), 256 * 3 * 3),
        "conv3_b": w(ks[5], (384,), 2304),
        # Linear weights stored as (in, out) for the GEMM kernels.
        "fc1_w": w(ks[6], (384, 1024), 384),
        "fc1_b": w(ks[7], (1024,), 384),
        "fc2_w": w(ks[8], (1024, 256), 1024),
        "fc2_b": w(ks[9], (256,), 1024),
        "fc3_w": w(ks[10], (256, 2), 256),
        "fc3_b": w(ks[11], (2,), 256),
    }


def _prep_gemm(w_kn, b_n):
    """Pad (K, N) weight / (N,) bias to 128 multiples; weight -> bf16, bias -> (1, Np) f32."""
    K, N = w_kn.shape
    Kp, Np = _round_up(K, 128), _round_up(N, 128)
    w = jnp.zeros((Kp, Np), jnp.bfloat16).at[:K, :N].set(
        w_kn.astype(jnp.bfloat16))
    b = jnp.zeros((1, Np), jnp.float32).at[0, :N].set(b_n.astype(jnp.float32))
    return w, b


def prepare_params(params):
    """One-time (outside the jitted forward) weight reshape / pad / bf16 cast."""
    prep = {}
    for name in ("conv1", "conv2"):
        w = params[name + "_w"]
        cout = w.shape[0]
        w_mat = w.reshape(cout, -1).T          # (Cin*KH*KW, Cout) -> matches dilated_patches
        prep[name + "_w"], prep[name + "_b"] = _prep_gemm(
            w_mat, params[name + "_b"])
    # conv3 consumes the pooled NHWC tensor flattened directly -> (kh, kw, cin)
    # feature ordering, so re-lay-out the weight once here.
    w3 = params["conv3_w"]                     # (Cout, Cin, KH, KW)
    w3_mat = jnp.transpose(w3, (2, 3, 1, 0)).reshape(-1, w3.shape[0])
    prep["conv3_w"], prep["conv3_b"] = _prep_gemm(w3_mat, params["conv3_b"])
    for name in ("fc1", "fc2", "fc3"):
        prep[name + "_w"], prep[name + "_b"] = _prep_gemm(
            params[name + "_w"], params[name + "_b"])
    return prep


# ----------------------------------------------------------------------------
# SiameseNetwork forward
# ----------------------------------------------------------------------------
def forward_once(x_nchw, p):
    B, C, H, W = x_nchw.shape
    # Cin == 1 for this module: NCHW -> NHWC is a free reshape.
    x = (x_nchw.reshape(B, H, W, C) if C == 1
         else jnp.transpose(x_nchw, (0, 2, 3, 1)))                 # (2B,100,100,1)
    x = conv2d_nhwc(x, p["conv1_w"], p["conv1_b"],
                    ksize=11, stride=4, n_valid=96)                # (2B,23,23,96)
    x = maxpool2d_nhwc(x, 3, 2)                                    # (2B,11,11,96)
    x = conv2d_nhwc(x, p["conv2_w"], p["conv2_b"],
                    ksize=5, stride=1, n_valid=256)                # (2B,7,7,256)
    x = maxpool2d_nhwc(x, 2, 2)                                    # (2B,3,3,256)
    # conv3 (3x3 kernel on a 3x3 field -> 1x1) is a pure GEMM on the flattened
    # window; it is fused with fc1/fc2/fc3 in a single Pallas kernel.
    x = x.reshape(x.shape[0], -1)                                  # (2B, 2304)
    return head(x, p)                                              # (2B, 2)


@jax.jit
def siamese_forward(input1, input2, prep):
    # Batch both siamese branches into a single pass: one set of kernel
    # launches, weights loaded once, doubled GEMM rows.
    B = input1.shape[0]
    x = jnp.concatenate([input1, input2], axis=0)
    out = forward_once(x, prep)
    return out[:B], out[B:]


if __name__ == "__main__":
    key = jax.random.PRNGKey(0)
    k_p, k_x1, k_x2 = jax.random.split(key, 3)

    params = init_params(k_p)
    prep = prepare_params(params)

    # Smallest "natural" shape for this architecture (100x100 -> 1x1 spatial).
    B = 2
    x1 = jax.random.normal(k_x1, (B, 1, 100, 100), jnp.float32)
    x2 = jax.random.normal(k_x2, (B, 1, 100, 100), jnp.float32)

    out1, out2 = siamese_forward(x1, x2, prep)
    jax.block_until_ready((out1, out2))

    assert out1.shape == (B, 2) and out2.shape == (B, 2)
    assert out1.dtype == jnp.float32 and out2.dtype == jnp.float32
    assert bool(jnp.all(jnp.isfinite(out1))) and bool(jnp.all(jnp.isfinite(out2)))
    print("KERNEL_OK")
</pallas_src>

<mosaic_0001>
module attributes {stable_mosaic.version = 11 : i64} {
  func.func @_matmul_bias_kernel(%arg0: i32, %arg1: memref<256x128xbf16, #tpu.memory_space<vmem>>, %arg2: memref<128x128xbf16, #tpu.memory_space<vmem>>, %arg3: memref<1x128xf32, #tpu.memory_space<vmem>>, %arg4: memref<256x128xf32, #tpu.memory_space<vmem>>) attributes {dimension_semantics = [#tpu.dimension_semantics<parallel>], iteration_bounds = array<i64: 9>, scalar_prefetch = 0 : i64, scratch_operands = 0 : i64, tpu.core_type = #tpu.core_type<tc>, window_params = [{transform_indices = @transform_0, window_bounds = array<i64: 256, 128>}, {pipeline_mode = #tpu.pipeline_mode<synchronous>, transform_indices = @transform_1, window_bounds = array<i64: 128, 128>}, {pipeline_mode = #tpu.pipeline_mode<synchronous>, transform_indices = @transform_2, window_bounds = array<i64: 1, 128>}, {transform_indices = @transform_3, window_bounds = array<i64: 256, 128>}]} {
    %c0 = arith.constant 0 : index
    %c0_0 = arith.constant 0 : index
    %0 = vector.load %arg1[%c0, %c0_0] : memref<256x128xbf16, #tpu.memory_space<vmem>>, vector<256x128xbf16>
    %c0_1 = arith.constant 0 : index
    %c0_2 = arith.constant 0 : index
    %1 = vector.load %arg2[%c0_1, %c0_2] : memref<128x128xbf16, #tpu.memory_space<vmem>>, vector<128x128xbf16>
    %cst = arith.constant dense<0.000000e+00> : vector<256x128xf32>
    %2 = tpu.matmul %0, %1, %cst {dimension_numbers = #tpu.dot_dimension_numbers<[1], [0], [0], [1], [0, 0, 1, 1], [], []>} : vector<256x128xbf16>, vector<128x128xbf16>, vector<256x128xf32> -> vector<256x128xf32>
    %c0_3 = arith.constant 0 : index
    %c0_4 = arith.constant 0 : index
    %3 = vector.load %arg3[%c0_3, %c0_4] : memref<1x128xf32, #tpu.memory_space<vmem>>, vector<1x128xf32>
    %4 = vector.broadcast %3 : vector<1x128xf32> to vector<256x128xf32>
    %5 = arith.addf %2, %4 : vector<256x128xf32>
    %cst_5 = arith.constant 0.000000e+00 : f32
    %6 = vector.broadcast %cst_5 : f32 to vector<256x128xf32>
    %7 = arith.maximumf %5, %6 : vector<256x128xf32>
    %c0_6 = arith.constant 0 : index
    %c0_7 = arith.constant 0 : index
    %8 = vector.load %arg4[%c0_6, %c0_7] : memref<256x128xf32, #tpu.memory_space<vmem>>, vector<256x128xf32>
    tpu.vector_store %arg4[%c0_6, %c0_7], %7 {strides = array<i32>} : memref<256x128xf32, #tpu.memory_space<vmem>>, vector<256x128xf32>,
    return
  }
  func.func @transform_0(%arg0: i32) -> (i32, i32) {
    %c0_i32 = arith.constant 0 : i32
    %c0_i32_0 = arith.constant 0 : i32
    return %arg0, %c0_i32 : i32, i32
  }
  func.func @transform_1(%arg0: i32) -> (i32, i32) {
    %c0_i32 = arith.constant 0 : i32
    %c0_i32_0 = arith.constant 0 : i32
    %c0_i32_1 = arith.constant 0 : i32
    return %c0_i32, %c0_i32_0 : i32, i32
  }
  func.func @transform_2(%arg0: i32) -> (i32, i32) {
    %c0_i32 = arith.constant 0 : i32
    %c0_i32_0 = arith.constant 0 : i32
    %c0_i32_1 = arith.constant 0 : i32
    return %c0_i32, %c0_i32_0 : i32, i32
  }
  func.func @transform_3(%arg0: i32) -> (i32, i32) {
    %c0_i32 = arith.constant 0 : i32
    %c0_i32_0 = arith.constant 0 : i32
    return %arg0, %c0_i32 : i32, i32
  }
}

module attributes {stable_mosaic.version = 11 : i64} {
  func.func @_matmul_bias_kernel(%arg0: i32, %arg1: memref<200x2432xbf16, #tpu.memory_space<vmem>>, %arg2: memref<2432x256xbf16, #tpu.memory_space<vmem>>, %arg3: memref<1x256xf32, #tpu.memory_space<vmem>>, %arg4: memref<200x256xf32, #tpu.memory_space<vmem>>) attributes {dimension_semantics = [#tpu.dimension_semantics<parallel>], iteration_bounds = array<i64: 1>, scalar_prefetch = 0 : i64, scratch_operands = 0 : i64, tpu.core_type = #tpu.core_type<tc>, window_params = [{transform_indices = @transform_0, window_bounds = array<i64: 200, 2432>}, {pipeline_mode = #tpu.pipeline_mode<synchronous>, transform_indices = @transform_1, window_bounds = array<i64: 2432, 256>}, {pipeline_mode = #tpu.pipeline_mode<synchronous>, transform_indices = @transform_2, window_bounds = array<i64: 1, 256>}, {transform_indices = @transform_3, window_bounds = array<i64: 200, 256>}]} {
    %c0 = arith.constant 0 : index
    %c0_0 = arith.constant 0 : index
    %0 = vector.load %arg1[%c0, %c0_0] : memref<200x2432xbf16, #tpu.memory_space<vmem>>, vector<200x2432xbf16>
    %c0_1 = arith.constant 0 : index
    %c0_2 = arith.constant 0 : index
    %1 = vector.load %arg2[%c0_1, %c0_2] : memref<2432x256xbf16, #tpu.memory_space<vmem>>, vector<2432x256xbf16>
    %cst = arith.constant dense<0.000000e+00> : vector<200x256xf32>
    %2 = tpu.matmul %0, %1, %cst {dimension_numbers = #tpu.dot_dimension_numbers<[1], [0], [0], [1], [0, 0, 1, 1], [], []>} : vector<200x2432xbf16>, vector<2432x256xbf16>, vector<200x256xf32> -> vector<200x256xf32>
    %c0_3 = arith.constant 0 : index
    %c0_4 = arith.constant 0 : index
    %3 = vector.load %arg3[%c0_3, %c0_4] : memref<1x256xf32, #tpu.memory_space<vmem>>, vector<1x256xf32>
    %4 = vector.broadcast %3 : vector<1x256xf32> to vector<200x256xf32>
    %5 = arith.addf %2, %4 : vector<200x256xf32>
    %cst_5 = arith.constant 0.000000e+00 : f32
    %6 = vector.broadcast %cst_5 : f32 to vector<200x256xf32>
    %7 = arith.maximumf %5, %6 : vector<200x256xf32>
    %c0_6 = arith.constant 0 : index
    %c0_7 = arith.constant 0 : index
    %8 = vector.load %arg4[%c0_6, %c0_7] : memref<200x256xf32, #tpu.memory_space<vmem>>, vector<200x256xf32>
    tpu.vector_store %arg4[%c0_6, %c0_7], %7 {strides = array<i32>} : memref<200x256xf32, #tpu.memory_space<vmem>>, vector<200x256xf32>,
    return
  }
  func.func @transform_0(%arg0: i32) -> (i32, i32) {
    %c0_i32 = arith.constant 0 : i32
    %c0_i32_0 = arith.constant 0 : i32
    return %arg0, %c0_i32 : i32, i32
  }
  func.func @transform_1(%arg0: i32) -> (i32, i32) {
    %c0_i32 = arith.constant 0 : i32
    %c0_i32_0 = arith.constant 0 : i32
    %c0_i32_1 = arith.constant 0 : i32
    return %c0_i32, %c0_i32_0 : i32, i32
  }
  func.func @transform_2(%arg0: i32) -> (i32, i32) {
    %c0_i32 = arith.constant 0 : i32
    %c0_i32_0 = arith.constant 0 : i32
    %c0_i32_1 = arith.constant 0 : i32
    return %c0_i32, %c0_i32_0 : i32, i32
  }
  func.func @transform_3(%arg0: i32) -> (i32, i32) {
    %c0_i32 = arith.constant 0 : i32
    %c0_i32_0 = arith.constant 0 : i32
    return %arg0, %c0_i32 : i32, i32
  }
}

module attributes {stable_mosaic.version = 11 : i64} {
  func.func @_head_kernel(%arg0: i32, %arg1: memref<8x2304xbf16, #tpu.memory_space<vmem>>, %arg2: memref<2304x384xbf16, #tpu.memory_space<vmem>>, %arg3: memref<1x384xf32, #tpu.memory_space<vmem>>, %arg4: memref<384x1024xbf16, #tpu.memory_space<vmem>>, %arg5: memref<1x1024xf32, #tpu.memory_space<vmem>>, %arg6: memref<1024x256xbf16, #tpu.memory_space<vmem>>, %arg7: memref<1x256xf32, #tpu.memory_space<vmem>>, %arg8: memref<256x128xbf16, #tpu.memory_space<vmem>>, %arg9: memref<1x128xf32, #tpu.memory_space<vmem>>, %arg10: memref<8x128xf32, #tpu.memory_space<vmem>>) attributes {dimension_semantics = [#tpu.dimension_semantics<arbitrary>], iteration_bounds = array<i64: 1>, scalar_prefetch = 0 : i64, scratch_operands = 0 : i64, tpu.core_type = #tpu.core_type<tc>, window_params = [{pipeline_mode = #tpu.pipeline_mode<synchronous>, transform_indices = @transform_0, window_bounds = array<i64: 8, 2304>}, {pipeline_mode = #tpu.pipeline_mode<synchronous>, transform_indices = @transform_1, window_bounds = array<i64: 2304, 384>}, {pipeline_mode = #tpu.pipeline_mode<synchronous>, transform_indices = @transform_2, window_bounds = array<i64: 1, 384>}, {pipeline_mode = #tpu.pipeline_mode<synchronous>, transform_indices = @transform_3, window_bounds = array<i64: 384, 1024>}, {pipeline_mode = #tpu.pipeline_mode<synchronous>, transform_indices = @transform_4, window_bounds = array<i64: 1, 1024>}, {pipeline_mode = #tpu.pipeline_mode<synchronous>, transform_indices = @transform_5, window_bounds = array<i64: 1024, 256>}, {pipeline_mode = #tpu.pipeline_mode<synchronous>, transform_indices = @transform_6, window_bounds = array<i64: 1, 256>}, {pipeline_mode = #tpu.pipeline_mode<synchronous>, transform_indices = @transform_7, window_bounds = array<i64: 256, 128>}, {pipeline_mode = #tpu.pipeline_mode<synchronous>, transform_indices = @transform_8, window_bounds = array<i64: 1, 128>}, {pipeline_mode = #tpu.pipeline_mode<synchronous>, transform_indices = @transform_9, window_bounds = array<i64: 8, 128>}]} {
    %c0 = arith.constant 0 : index
    %c0_0 = arith.constant 0 : index
    %0 = vector.load %arg1[%c0, %c0_0] : memref<8x2304xbf16, #tpu.memory_space<vmem>>, vector<8x2304xbf16>
    %c0_1 = arith.constant 0 : index
    %c0_2 = arith.constant 0 : index
    %1 = vector.load %arg2[%c0_1, %c0_2] : memref<2304x384xbf16, #tpu.memory_space<vmem>>, vector<2304x384xbf16>
    %cst = arith.constant dense<0.000000e+00> : vector<8x384xf32>
    %2 = tpu.matmul %0, %1, %cst {dimension_numbers = #tpu.dot_dimension_numbers<[1], [0], [0], [1], [0, 0, 1, 1], [], []>} : vector<8x2304xbf16>, vector<2304x384xbf16>, vector<8x384xf32> -> vector<8x384xf32>
    %c0_3 = arith.constant 0 : index
    %c0_4 = arith.constant 0 : index
    %3 = vector.load %arg3[%c0_3, %c0_4] : memref<1x384xf32, #tpu.memory_space<vmem>>, vector<1x384xf32>
    %4 = vector.broadcast %3 : vector<1x384xf32> to vector<8x384xf32>
    %5 = arith.addf %2, %4 : vector<8x384xf32>
    %cst_5 = arith.constant 0.000000e+00 : f32
    %6 = vector.broadcast %cst_5 : f32 to vector<8x384xf32>
    %7 = arith.maximumf %5, %6 : vector<8x384xf32>
    %8 = arith.truncf %7 : vector<8x384xf32> to vector<8x384xbf16>
    %c0_6 = arith.constant 0 : index
    %c0_7 = arith.constant 0 : index
    %9 = vector.load %arg4[%c0_6, %c0_7] : memref<384x1024xbf16, #tpu.memory_space<vmem>>, vector<384x1024xbf16>
    %cst_8 = arith.constant dense<0.000000e+00> : vector<8x1024xf32>
    %10 = tpu.matmul %8, %9, %cst_8 {dimension_numbers = #tpu.dot_dimension_numbers<[1], [0], [0], [1], [0, 0, 1, 1], [], []>} : vector<8x384xbf16>, vector<384x1024xbf16>, vector<8x1024xf32> -> vector<8x1024xf32>
    %c0_9 = arith.constant 0 : index
    %c0_10 = arith.constant 0 : index
    %11 = vector.load %arg5[%c0_9, %c0_10] : memref<1x1024xf32, #tpu.memory_space<vmem>>, vector<1x1024xf32>
    %12 = vector.broadcast %11 : vector<1x1024xf32> to vector<8x1024xf32>
    %13 = arith.addf %10, %12 : vector<8x1024xf32>
    %cst_11 = arith.constant 0.000000e+00 : f32
    %14 = vector.broadcast %cst_11 : f32 to vector<8x1024xf32>
    %15 = arith.maximumf %13, %14 : vector<8x1024xf32>
    %16 = arith.truncf %15 : vector<8x1024xf32> to vector<8x1024xbf16>
    %c0_12 = arith.constant 0 : index
    %c0_13 = arith.constant 0 : index
    %17 = vector.load %arg6[%c0_12, %c0_13] : memref<1024x256xbf16, #tpu.memory_space<vmem>>, vector<1024x256xbf16>
    %cst_14 = arith.constant dense<0.000000e+00> : vector<8x256xf32>
    %18 = tpu.matmul %16, %17, %cst_14 {dimension_numbers = #tpu.dot_dimension_numbers<[1], [0], [0], [1], [0, 0, 1, 1], [], []>} : vector<8x1024xbf16>, vector<1024x256xbf16>, vector<8x256xf32> -> vector<8x256xf32>
    %c0_15 = arith.constant 0 : index
    %c0_16 = arith.constant 0 : index
    %19 = vector.load %arg7[%c0_15, %c0_16] : memref<1x256xf32, #tpu.memory_space<vmem>>, vector<1x256xf32>
    %20 = vector.broadcast %19 : vector<1x256xf32> to vector<8x256xf32>
    %21 = arith.addf %18, %20 : vector<8x256xf32>
    %cst_17 = arith.constant 0.000000e+00 : f32
    %22 = vector.broadcast %cst_17 : f32 to vector<8x256xf32>
    %23 = arith.maximumf %21, %22 : vector<8x256xf32>
    %24 = arith.truncf %23 : vector<8x256xf32> to vector<8x256xbf16>
    %c0_18 = arith.constant 0 : index
    %c0_19 = arith.constant 0 : index
    %25 = vector.load %arg8[%c0_18, %c0_19] : memref<256x128xbf16, #tpu.memory_space<vmem>>, vector<256x128xbf16>
    %cst_20 = arith.constant dense<0.000000e+00> : vector<8x128xf32>
    %26 = tpu.matmul %24, %25, %cst_20 {dimension_numbers = #tpu.dot_dimension_numbers<[1], [0], [0], [1], [0, 0, 1, 1], [], []>} : vector<8x256xbf16>, vector<256x128xbf16>, vector<8x128xf32> -> vector<8x128xf32>
    %c0_21 = arith.constant 0 : index
    %c0_22 = arith.constant 0 : index
    %27 = vector.load %arg9[%c0_21, %c0_22] : memref<1x128xf32, #tpu.memory_space<vmem>>, vector<1x128xf32>
    %28 = vector.broadcast %27 : vector<1x128xf32> to vector<8x128xf32>
    %29 = arith.addf %26, %28 : vector<8x128xf32>
    %c0_23 = arith.constant 0 : index
    %c0_24 = arith.constant 0 : index
    %30 = vector.load %arg10[%c0_23, %c0_24] : memref<8x128xf32, #tpu.memory_space<vmem>>, vector<8x128xf32>
    tpu.vector_store %arg10[%c0_23, %c0_24], %29 {strides = array<i32>} : memref<8x128xf32, #tpu.memory_space<vmem>>, vector<8x128xf32>,
    return
  }
  func.func @transform_0(%arg0: i32) -> (i32, i32) {
    %c0_i32 = arith.constant 0 : i32
    %c0_i32_0 = arith.constant 0 : i32
    %c0_i32_1 = arith.constant 0 : i32
    return %c0_i32, %c0_i32_0 : i32, i32
  }
  func.func @transform_1(%arg0: i32) -> (i32, i32) {
    %c0_i32 = arith.constant 0 : i32
    %c0_i32_0 = arith.constant 0 : i32
    %c0_i32_1 = arith.constant 0 : i32
    return %c0_i32, %c0_i32_0 : i32, i32
  }
  func.func @transform_2(%arg0: i32) -> (i32, i32) {
    %c0_i32 = arith.constant 0 : i32
    %c0_i32_0 = arith.constant 0 : i32
    %c0_i32_1 = arith.constant 0 : i32
    return %c0_i32, %c0_i32_0 : i32, i32
  }
  func.func @transform_3(%arg0: i32) -> (i32, i32) {
    %c0_i32 = arith.constant 0 : i32
    %c0_i32_0 = arith.constant 0 : i32
    %c0_i32_1 = arith.constant 0 : i32
    return %c0_i32, %c0_i32_0 : i32, i32
  }
  func.func @transform_4(%arg0: i32) -> (i32, i32) {
    %c0_i32 = arith.constant 0 : i32
    %c0_i32_0 = arith.constant 0 : i32
    %c0_i32_1 = arith.constant 0 : i32
    return %c0_i32, %c0_i32_0 : i32, i32
  }
  func.func @transform_5(%arg0: i32) -> (i32, i32) {
    %c0_i32 = arith.constant 0 : i32
    %c0_i32_0 = arith.constant 0 : i32
    %c0_i32_1 = arith.constant 0 : i32
    return %c0_i32, %c0_i32_0 : i32, i32
  }
  func.func @transform_6(%arg0: i32) -> (i32, i32) {
    %c0_i32 = arith.constant 0 : i32
    %c0_i32_0 = arith.constant 0 : i32
    %c0_i32_1 = arith.constant 0 : i32
    return %c0_i32, %c0_i32_0 : i32, i32
  }
  func.func @transform_7(%arg0: i32) -> (i32, i32) {
    %c0_i32 = arith.constant 0 : i32
    %c0_i32_0 = arith.constant 0 : i32
    %c0_i32_1 = arith.constant 0 : i32
    return %c0_i32, %c0_i32_0 : i32, i32
  }
  func.func @transform_8(%arg0: i32) -> (i32, i32) {
    %c0_i32 = arith.constant 0 : i32
    %c0_i32_0 = arith.constant 0 : i32
    %c0_i32_1 = arith.constant 0 : i32
    return %c0_i32, %c0_i32_0 : i32, i32
  }
  func.func @transform_9(%arg0: i32) -> (i32, i32) {
    %c0_i32 = arith.constant 0 : i32
    %c0_i32_0 = arith.constant 0 : i32
    %c0_i32_1 = arith.constant 0 : i32
    return %c0_i32, %c0_i32_0 : i32, i32
  }
}

</mosaic_0001>

<bundles_post_ra>
// kernel: siamese_forward.3
= control target key start
LH: loop header
LB: loop body
LE: loop exit
PB: predicated region body
PF: predicated region fallthrough
CT: control target
= control target key end

     0   :  { %s839_s12 = smov 0   ;;  %s973_s0 = inlined_call_operand.vmem [shape: bf16[2304,128], index: 0, kind: input, shape index: {}]   ;;  %s974_s1 = inlined_call_operand.vmem [shape: bf16[128,128], index: 1, kind: input, shape index: {}]   ;;  %s975_s2 = inlined_call_operand.vmem [shape: f32[1,128], index: 2, kind: input, shape index: {}]   ;;  %s976_s3 = inlined_call_operand.vmem [shape: f32[2304,128], index: 3, kind: output, shape index: {}]  }
   0x1 LB: > { %s655_s13 = sadd.s32 4294967295, %s817_s12   ;;  %p659_p0 = scmp.ge.s32.totalorder %s817_s12, 1  ;;  %s817_s12 = sphi %s839_s12, %s13_s12  }
   0x2   : > { %p138_p1 = scmp.lt.s32.totalorder %s817_s12, 10 }
   0x4   : > { %p139_p2 = pnand %p659_p0, %p138_p1 }
   0x5   : > { %v787_v0 = vld [vmem:[%s974_s1] sm:$0xff] (!%p139_p2)   ;;  %s660_s16 = sshll.u32 (!%p139_p2), %s655_s13, 5  ;;  %v788_v1 = vld [vmem:[%s974_s1 + $0x8] sm:$0xff] (!%p139_p2)   ;;  %v789_v2 = vld [vmem:[%s974_s1 + $0x10] sm:$0xff] (!%p139_p2)  }
   0x6   : > { %142 = sbr.rel (%p139_p2) target bundleno = 282 (0x11a), region = 32  ;;  %p163_p3 = scmp.lt.s32.totalorder (!%p139_p2), %s660_s16, 287  ;;  %715 = vmatprep.subr.bf16.mxu0 (!%p139_p2), %v787_v0  ;;  %763 = vmatprep.subr.bf16.mxu1 (!%p139_p2), %v787_v0  ;;  %v790_v3 = vld [vmem:[%s974_s1 + $0x18] sm:$0xff] (!%p139_p2)   ;;  %v791_v6 = vld [vmem:[%s974_s1 + $0x20] sm:$0xff] (!%p139_p2)   ;;  %v792_v7 = vld [vmem:[%s974_s1 + $0x28] sm:$0xff] (!%p139_p2)  }
   0x7   : > { %716 = vmatpush3.bf16.msra.mxu0 (!%p139_p2), %v787_v0  ;;  %771 = vmatpush3.bf16.msra.mxu1 (!%p139_p2), %v787_v0  ;;  %v793_v8 = vld [vmem:[%s974_s1 + $0x30] sm:$0xff] (!%p139_p2)   ;;  %v794_v9 = vld [vmem:[%s974_s1 + $0x38] sm:$0xff] (!%p139_p2)   ;;  %v898_v24 = vld [vmem:[%s975_s2] ss:$0 sm:$0xff] (!%p139_p2) }
   0x8   : > { %717 = vmatprep.subr.bf16.mxu0 (!%p139_p2), %v788_v1  ;;  %764 = vmatprep.subr.bf16.mxu1 (!%p139_p2), %v788_v1 }
   0xb   : > { %718 = vmatpush3.bf16.msra.mxu0 (!%p139_p2), %v788_v1  ;;  %772 = vmatpush3.bf16.msra.mxu1 (!%p139_p2), %v788_v1 }
   0xc   : > { %719 = vmatprep.subr.bf16.mxu0 (!%p139_p2), %v789_v2  ;;  %765 = vmatprep.subr.bf16.mxu1 (!%p139_p2), %v789_v2 }
   0xd   : > { %s978_s16 = smov (!%p163_p3, %s660_s16), 287 }
   0xe   : > { %s661_s21 = sshll.u32 %s978_s16, 2  ;;  %s663_s10 = sshll.u32 %s978_s16, 3 }
   0xf   : > { %s862_s24 = scalar_lea.vmem %s973_s0, %s661_s21  ;;  %720 = vmatpush3.bf16.msra.mxu0 %v789_v2  ;;  %773 = vmatpush3.bf16.msra.mxu1 %v789_v2  ;;  %s906_s14 = scalar_lea.vmem %s976_s3, %s663_s10 }
  0x10   : > { %v795_v4 = vld [vmem:[%s862_s24] sm:$0xff]   ;;  %721 = vmatprep.subr.bf16.mxu0 %v790_v3  ;;  %766 = vmatprep.subr.bf16.mxu1 %v790_v3  ;;  %v797_v10 = vld [vmem:[%s862_s24 + $0x8] sm:$0xff]   ;;  %v799_v12 = vld [vmem:[%s862_s24 + $0x10] sm:$0xff]  }
  0x11   : > { %v796_v5 = vld [vmem:[%s862_s24 + $0x40] sm:$0xff]   ;;  %731 = vmatprep.mubr.bf16.mxu0 %v795_v4  ;;  %v798_v11 = vld [vmem:[%s862_s24 + $0x48] sm:$0xff]   ;;  %v800_v13 = vld [vmem:[%s862_s24 + $0x50] sm:$0xff]  }
  0x12   : > { %747 = vmatprep.mubr.bf16.mxu1 %v796_v5  ;;  %v801_v14 = vld [vmem:[%s862_s24 + $0x18] sm:$0xff]   ;;  %v803_v16 = vld [vmem:[%s862_s24 + $0x20] sm:$0xff]   ;;  %v805_v18 = vld [vmem:[%s862_s24 + $0x28] sm:$0xff]  }
  0x13   : > { %722 = vmatpush3.bf16.msra.mxu0 %v790_v3  ;;  %774 = vmatpush3.bf16.msra.mxu1 %v790_v3  ;;  %v802_v15 = vld [vmem:[%s862_s24 + $0x58] sm:$0xff]   ;;  %v804_v17 = vld [vmem:[%s862_s24 + $0x60] sm:$0xff]   ;;  %v806_v19 = vld [vmem:[%s862_s24 + $0x68] sm:$0xff]  }
  0x14   : > { %723 = vmatprep.subr.bf16.mxu0 %v791_v6  ;;  %767 = vmatprep.subr.bf16.mxu1 %v791_v6  ;;  %v807_v20 = vld [vmem:[%s862_s24 + $0x30] sm:$0xff]   ;;  %v809_v22 = vld [vmem:[%s862_s24 + $0x38] sm:$0xff]  }
  0x15   : > { %v808_v21 = vld [vmem:[%s862_s24 + $0x70] sm:$0xff]   ;;  %v810_v23 = vld [vmem:[%s862_s24 + $0x78] sm:$0xff]  }
  0x17   : > { %724 = vmatpush3.bf16.msra.mxu0 %v791_v6  ;;  %775 = vmatpush3.bf16.msra.mxu1 %v791_v6 }
  0x18   : > { %725 = vmatprep.subr.bf16.mxu0 %v792_v7  ;;  %768 = vmatprep.subr.bf16.mxu1 %v792_v7 }
  0x1b   : > { %726 = vmatpush3.bf16.msra.mxu0 %v792_v7  ;;  %776 = vmatpush3.bf16.msra.mxu1 %v792_v7 }
  0x1c   : > { %727 = vmatprep.subr.bf16.mxu0 %v793_v8  ;;  %769 = vmatprep.subr.bf16.mxu1 %v793_v8 }
  0x1f   : > { %728 = vmatpush3.bf16.msra.mxu0 %v793_v8  ;;  %777 = vmatpush3.bf16.msra.mxu1 %v793_v8 }
  0x20   : > { %729 = vmatprep.subr.bf16.mxu0 %v794_v9  ;;  %770 = vmatprep.subr.bf16.mxu1 %v794_v9 }
  0x23   : > { %730 = vmatpush3.bf16.msra.mxu0 %v794_v9  ;;  %778 = vmatpush3.bf16.msra.mxu1 %v794_v9 }
  0x26   : > { %732 = vmatmul.mubr.bf16.vlgmr.msra.gmra.mrb[0].mxu0 %v797_v10  ;;  %748 = vmatmul.mubr.bf16.vlgmr.msra.gmra.mrb[0].mxu1 %v798_v11 }
  0x27   : > { %735 = vmatprep.mubr.bf16.mxu0 %v799_v12  ;;  %751 = vmatprep.mubr.bf16.mxu1 %v800_v13 }
  0x2e   : > { %736 = vmatmul.mubr.bf16.gmra.mrb[4].mxu0 %v801_v14  ;;  %752 = vmatmul.mubr.bf16.gmra.mrb[4].mxu1 %v802_v15 }
  0x2f   : > { %739 = vmatprep.mubr.bf16.mxu0 %v803_v16  ;;  %755 = vmatprep.mubr.bf16.mxu1 %v804_v17 }
  0x36   : > { %740 = vmatmul.mubr.bf16.gmra.mrb[8].mxu0 %v805_v18  ;;  %756 = vmatmul.mubr.bf16.gmra.mrb[8].mxu1 %v806_v19 }
  0x37   : > { %743 = vmatprep.mubr.bf16.mxu0 %v807_v20  ;;  %759 = vmatprep.mubr.bf16.mxu1 %v808_v21 }
  0x3e   : > { %744 = vmatmul.mubr.bf16.gmra.mrb[12].mxu0 %v809_v22  ;;  %760 = vmatmul.mubr.bf16.gmra.mrb[12].mxu1 %v810_v23 }
  0xf9   : > { %v733_v25 = vpop.f32.mrb[0].mxu0  ;;  %v749_v26 = vpop.f32.mrb[0].mxu1 }
  0xfa   : > { %v417_v27 = vadd.f32 %v733_v25, %v898_v24  ;;  %v481_v28 = vadd.f32 %v749_v26, %v898_v24  ;;  %v408_v29 = vpop.f32.mrb[1].mxu0  ;;  %v472_v30 = vpop.f32.mrb[1].mxu1 }
  0xfb   : > { %v409_v31 = vadd.f32 %v898_v24, %v408_v29  ;;  %v473_v32 = vadd.f32 %v898_v24, %v472_v30  ;;  %v734_v33 = vpop.f32.mrb[2].mxu0  ;;  %v750_v34 = vpop.f32.mrb[2].mxu1 }
  0xfc   : > { %v537_v35 = vmax.f32 %v417_v27, 0.0  ;;  %v553_v36 = vmax.f32 %v481_v28, 0.0  ;;  %v420_v37 = vadd.f32 %v734_v33, %v898_v24  ;;  %v484_v38 = vadd.f32 %v750_v34, %v898_v24  ;;  %v411_v39 = vpop.f32.mrb[3].mxu0  ;;  %v475_v40 = vpop.f32.mrb[3].mxu1 }
  0xfd   : > { %v535_v41 = vmax.f32 %v409_v31, 0.0  ;;  %v551_v42 = vmax.f32 %v473_v32, 0.0  ;;  %v412_v43 = vadd.f32 %v898_v24, %v411_v39  ;;  %v476_v44 = vadd.f32 %v898_v24, %v475_v40 }
  0xfe   : > { %569 = vst [vmem:[%s906_s14 + $0x10] sm:$0xff] %v537_v35  ;;  %585 = vst [vmem:[%s906_s14 + $0x90] sm:$0xff] %v553_v36  ;;  %v538_v45 = vmax.f32 %v420_v37, 0.0  ;;  %v554_v46 = vmax.f32 %v484_v38, 0.0 }
  0xff   : > { %567 = vst [vmem:[%s906_s14] sm:$0xff] %v535_v41  ;;  %583 = vst [vmem:[%s906_s14 + $0x80] sm:$0xff] %v551_v42  ;;  %v536_v47 = vmax.f32 %v412_v43, 0.0  ;;  %v552_v48 = vmax.f32 %v476_v44, 0.0 }
 0x100   : > { %570 = vst [vmem:[%s906_s14 + $0x18] sm:$0xff] %v538_v45  ;;  %586 = vst [vmem:[%s906_s14 + $0x98] sm:$0xff] %v554_v46 }
 0x101   : > { %568 = vst [vmem:[%s906_s14 + $0x8] sm:$0xff] %v536_v47  ;;  %584 = vst [vmem:[%s906_s14 + $0x88] sm:$0xff] %v552_v48  ;;  %v737_v49 = vpop.f32.mrb[4].mxu0  ;;  %v753_v50 = vpop.f32.mrb[4].mxu1 }
 0x102   : > { %v433_v51 = vadd.f32 %v737_v49, %v898_v24  ;;  %v497_v52 = vadd.f32 %v753_v50, %v898_v24  ;;  %v424_v53 = vpop.f32.mrb[5].mxu0  ;;  %v488_v54 = vpop.f32.mrb[5].mxu1 }
 0x103   : > { %v425_v55 = vadd.f32 %v898_v24, %v424_v53  ;;  %v489_v56 = vadd.f32 %v898_v24, %v488_v54  ;;  %v738_v57 = vpop.f32.mrb[6].mxu0  ;;  %v754_v58 = vpop.f32.mrb[6].mxu1 }
 0x104   : > { %v541_v59 = vmax.f32 %v433_v51, 0.0  ;;  %v557_v60 = vmax.f32 %v497_v52, 0.0  ;;  %v436_v61 = vadd.f32 %v738_v57, %v898_v24  ;;  %v500_v62 = vadd.f32 %v754_v58, %v898_v24  ;;  %v427_v63 = vpop.f32.mrb[7].mxu0  ;;  %v491_v0 = vpop.f32.mrb[7].mxu1 }
 0x105   : > { %v539_v1 = vmax.f32 %v425_v55, 0.0  ;;  %v555_v2 = vmax.f32 %v489_v56, 0.0  ;;  %v428_v3 = vadd.f32 %v898_v24, %v427_v63  ;;  %v492_v4 = vadd.f32 %v898_v24, %v491_v0 }
 0x106   : > { %573 = vst [vmem:[%s906_s14 + $0x30] sm:$0xff] %v541_v59  ;;  %589 = vst [vmem:[%s906_s14 + $0xb0] sm:$0xff] %v557_v60  ;;  %v542_v5 = vmax.f32 %v436_v61, 0.0  ;;  %v558_v6 = vmax.f32 %v500_v62, 0.0 }
 0x107   : > { %571 = vst [vmem:[%s906_s14 + $0x20] sm:$0xff] %v539_v1  ;;  %587 = vst [vmem:[%s906_s14 + $0xa0] sm:$0xff] %v555_v2  ;;  %v540_v7 = vmax.f32 %v428_v3, 0.0  ;;  %v556_v8 = vmax.f32 %v492_v4, 0.0 }
 0x108   : > { %574 = vst [vmem:[%s906_s14 + $0x38] sm:$0xff] %v542_v5  ;;  %590 = vst [vmem:[%s906_s14 + $0xb8] sm:$0xff] %v558_v6 }
 0x109   : > { %572 = vst [vmem:[%s906_s14 + $0x28] sm:$0xff] %v540_v7  ;;  %588 = vst [vmem:[%s906_s14 + $0xa8] sm:$0xff] %v556_v8  ;;  %v741_v9 = vpop.f32.mrb[8].mxu0  ;;  %v757_v10 = vpop.f32.mrb[8].mxu1 }
 0x10a   : > { %v449_v11 = vadd.f32 %v741_v9, %v898_v24  ;;  %v513_v12 = vadd.f32 %v757_v10, %v898_v24  ;;  %v440_v13 = vpop.f32.mrb[9].mxu0  ;;  %v504_v14 = vpop.f32.mrb[9].mxu1 }
 0x10b   : > { %v441_v15 = vadd.f32 %v898_v24, %v440_v13  ;;  %v505_v16 = vadd.f32 %v898_v24, %v504_v14  ;;  %v742_v17 = vpop.f32.mrb[10].mxu0  ;;  %v758_v18 = vpop.f32.mrb[10].mxu1 }
 0x10c   : > { %v545_v19 = vmax.f32 %v449_v11, 0.0  ;;  %v561_v20 = vmax.f32 %v513_v12, 0.0  ;;  %v452_v21 = vadd.f32 %v742_v17, %v898_v24  ;;  %v516_v22 = vadd.f32 %v758_v18, %v898_v24  ;;  %v443_v23 = vpop.f32.mrb[11].mxu0  ;;  %v507_v25 = vpop.f32.mrb[11].mxu1 }
 0x10d   : > { %v543_v26 = vmax.f32 %v441_v15, 0.0  ;;  %v559_v27 = vmax.f32 %v505_v16, 0.0  ;;  %v444_v28 = vadd.f32 %v898_v24, %v443_v23  ;;  %v508_v29 = vadd.f32 %v898_v24, %v507_v25 }
 0x10e   : > { %577 = vst [vmem:[%s906_s14 + $0x50] sm:$0xff] %v545_v19  ;;  %593 = vst [vmem:[%s906_s14 + $0xd0] sm:$0xff] %v561_v20  ;;  %v546_v30 = vmax.f32 %v452_v21, 0.0  ;;  %v562_v31 = vmax.f32 %v516_v22, 0.0 }
 0x10f   : > { %575 = vst [vmem:[%s906_s14 + $0x40] sm:$0xff] %v543_v26  ;;  %591 = vst [vmem:[%s906_s14 + $0xc0] sm:$0xff] %v559_v27  ;;  %v544_v32 = vmax.f32 %v444_v28, 0.0  ;;  %v560_v33 = vmax.f32 %v508_v29, 0.0 }
 0x110   : > { %578 = vst [vmem:[%s906_s14 + $0x58] sm:$0xff] %v546_v30  ;;  %594 = vst [vmem:[%s906_s14 + $0xd8] sm:$0xff] %v562_v31 }
 0x111   : > { %576 = vst [vmem:[%s906_s14 + $0x48] sm:$0xff] %v544_v32  ;;  %592 = vst [vmem:[%s906_s14 + $0xc8] sm:$0xff] %v560_v33  ;;  %v745_v34 = vpop.f32.mrb[12].mxu0  ;;  %v761_v35 = vpop.f32.mrb[12].mxu1 }
 0x112   : > { %v465_v36 = vadd.f32 %v745_v34, %v898_v24  ;;  %v529_v37 = vadd.f32 %v761_v35, %v898_v24  ;;  %v456_v38 = vpop.f32.mrb[13].mxu0  ;;  %v520_v39 = vpop.f32.mrb[13].mxu1 }
 0x113   : > { %v457_v40 = vadd.f32 %v898_v24, %v456_v38  ;;  %v521_v41 = vadd.f32 %v898_v24, %v520_v39  ;;  %v746_v42 = vpop.f32.mrb[14].mxu0  ;;  %v762_v43 = vpop.f32.mrb[14].mxu1 }
 0x114   : > { %v549_v44 = vmax.f32 %v465_v36, 0.0  ;;  %v565_v45 = vmax.f32 %v529_v37, 0.0  ;;  %v468_v46 = vadd.f32 %v746_v42, %v898_v24  ;;  %v532_v47 = vadd.f32 %v762_v43, %v898_v24  ;;  %v459_v48 = vpop.f32.mrb[15].mxu0  ;;  %v523_v49 = vpop.f32.mrb[15].mxu1 }
 0x115   : > { %v547_v50 = vmax.f32 %v457_v40, 0.0  ;;  %v563_v51 = vmax.f32 %v521_v41, 0.0  ;;  %v460_v52 = vadd.f32 %v898_v24, %v459_v48  ;;  %v524_v53 = vadd.f32 %v898_v24, %v523_v49 }
 0x116   : > { %581 = vst [vmem:[%s906_s14 + $0x70] sm:$0xff] %v549_v44  ;;  %597 = vst [vmem:[%s906_s14 + $0xf0] sm:$0xff] %v565_v45  ;;  %v550_v54 = vmax.f32 %v468_v46, 0.0  ;;  %v566_v55 = vmax.f32 %v532_v47, 0.0 }
 0x117   : > { %579 = vst [vmem:[%s906_s14 + $0x60] sm:$0xff] %v547_v50  ;;  %595 = vst [vmem:[%s906_s14 + $0xe0] sm:$0xff] %v563_v51  ;;  %v548_v56 = vmax.f32 %v460_v52, 0.0  ;;  %v564_v57 = vmax.f32 %v524_v53, 0.0 }
 0x118   : > { %582 = vst [vmem:[%s906_s14 + $0x78] sm:$0xff] %v550_v54  ;;  %598 = vst [vmem:[%s906_s14 + $0xf8] sm:$0xff] %v566_v55 }
 0x119   : > { %580 = vst [vmem:[%s906_s14 + $0x68] sm:$0xff] %v548_v56  ;;  %596 = vst [vmem:[%s906_s14 + $0xe8] sm:$0xff] %v564_v57 }
 0x11a PF: > { %s13_s12 = sadd.s32 1, %s817_s12  }
 0x11b   : > { %p10_p4 = scmp.ge.s32.totalorder %s13_s12, 11  }
 0x11d   :  { %12 = sbr.rel (!%p10_p4) target bundleno = 1 (0x1), region = 62 }

// kernel: siamese_forward.4
= control target key start
LH: loop header
LB: loop body
LE: loop exit
PB: predicated region body
PF: predicated region fallthrough
CT: control target
= control target key end

     0   :  { %s8780_s1 = inlined_call_operand.vmem [shape: bf16[2432,256], index: 1, kind: input, shape index: {}]   ;;  %s8781_s0 = inlined_call_operand.vmem [shape: bf16[200,2432], index: 0, kind: input, shape index: {}]   ;;  %s8782_s2 = inlined_call_operand.vmem [shape: f32[1,256], index: 2, kind: input, shape index: {}]   ;;  %s8783_s3 = inlined_call_operand.vmem [shape: f32[200,256], index: 3, kind: output, shape index: {}]  }
   0x1   :  { %v6102_v0 = vld [vmem:[%s8780_s1 + $0x4] ss:$8 sps:$4 sm:$0xff]   ;;  %v6106_v2 = vld [vmem:[%s8780_s1] ss:$8 sps:$4 sm:$0xff]   ;;  %v6108_v4 = vld [vmem:[%s8780_s1 + $0x14] ss:$8 sps:$4 sm:$0xff]  }
   0x2   :  { %v6104_v1 = vld [vmem:[%s8780_s1 + $0x504] ss:$8 sps:$4 sm:$0xff]   ;;  %3320 = vmatprep.subr.bf16.mxu1 %v6102_v0  ;;  %v6107_v3 = vld [vmem:[%s8780_s1 + $0x500] ss:$8 sps:$4 sm:$0xff]   ;;  %v6110_v5 = vld [vmem:[%s8780_s1 + $0x514] ss:$8 sps:$4 sm:$0xff]  }
   0x3   :  { %4125 = vmatprep.subr.bf16.mxu0 %v6104_v1  ;;  %3321 = vmatpush1.bf16.msra.mxu1 %v6106_v2  ;;  %v6112_v6 = vld [vmem:[%s8780_s1 + $0x10] ss:$8 sps:$4 sm:$0xff]   ;;  %v6114_v8 = vld [vmem:[%s8780_s1 + $0x24] ss:$8 sps:$4 sm:$0xff]   ;;  %v6118_v10 = vld [vmem:[%s8780_s1 + $0x20] ss:$8 sps:$4 sm:$0xff]  }
   0x4   :  { %4126 = vmatpush1.bf16.msra.mxu0 %v6107_v3  ;;  %3322 = vmatprep.subr.bf16.mxu1 %v6108_v4  ;;  %v6113_v7 = vld [vmem:[%s8780_s1 + $0x510] ss:$8 sps:$4 sm:$0xff]   ;;  %v6116_v9 = vld [vmem:[%s8780_s1 + $0x524] ss:$8 sps:$4 sm:$0xff]   ;;  %v6119_v11 = vld [vmem:[%s8780_s1 + $0x520] ss:$8 sps:$4 sm:$0xff]  }
   0x5   :  { %4127 = vmatprep.subr.bf16.mxu0 %v6110_v5  ;;  %v6120_v12 = vld [vmem:[%s8780_s1 + $0x34] ss:$8 sps:$4 sm:$0xff]   ;;  %v6124_v14 = vld [vmem:[%s8780_s1 + $0x30] ss:$8 sps:$4 sm:$0xff]   ;;  %v6126_v16 = vld [vmem:[%s8780_s1 + $0x44] ss:$8 sps:$4 sm:$0xff]  }
   0x6   :  { %v6122_v13 = vld [vmem:[%s8780_s1 + $0x534] ss:$8 sps:$4 sm:$0xff]   ;;  %v6125_v15 = vld [vmem:[%s8780_s1 + $0x530] ss:$8 sps:$4 sm:$0xff]   ;;  %v6128_v17 = vld [vmem:[%s8780_s1 + $0x544] ss:$8 sps:$4 sm:$0xff]  }
   0x7   :  { %3323 = vmatpush1.bf16.msra.mxu1 %v6112_v6  ;;  %v6130_v18 = vld [vmem:[%s8780_s1 + $0x40] ss:$8 sps:$4 sm:$0xff]   ;;  %v6132_v20 = vld [vmem:[%s8780_s1 + $0x54] ss:$8 sps:$4 sm:$0xff]   ;;  %v6136_v22 = vld [vmem:[%s8780_s1 + $0x50] ss:$8 sps:$4 sm:$0xff]  }
   0x8   :  { %4128 = vmatpush1.bf16.msra.mxu0 %v6113_v7  ;;  %3324 = vmatprep.subr.bf16.mxu1 %v6114_v8  ;;  %v6131_v19 = vld [vmem:[%s8780_s1 + $0x540] ss:$8 sps:$4 sm:$0xff]   ;;  %v6134_v21 = vld [vmem:[%s8780_s1 + $0x554] ss:$8 sps:$4 sm:$0xff]   ;;  %v6137_v23 = vld [vmem:[%s8780_s1 + $0x550] ss:$8 sps:$4 sm:$0xff]  }
   0x9   :  { %4129 = vmatprep.subr.bf16.mxu0 %v6116_v9  ;;  %v6138_v24 = vld [vmem:[%s8780_s1 + $0x64] ss:$8 sps:$4 sm:$0xff]   ;;  %v6142_v26 = vld [vmem:[%s8780_s1 + $0x60] ss:$8 sps:$4 sm:$0xff]   ;;  %v6144_v28 = vld [vmem:[%s8780_s1 + $0x74] ss:$8 sps:$4 sm:$0xff]  }
   0xa   :  { %v6140_v25 = vld [vmem:[%s8780_s1 + $0x564] ss:$8 sps:$4 sm:$0xff]   ;;  %v6143_v27 = vld [vmem:[%s8780_s1 + $0x560] ss:$8 sps:$4 sm:$0xff]   ;;  %v6146_v29 = vld [vmem:[%s8780_s1 + $0x574] ss:$8 sps:$4 sm:$0xff]  }
   0xb   :  { %3325 = vmatpush1.bf16.msra.mxu1 %v6118_v10  ;;  %v6148_v30 = vld [vmem:[%s8780_s1 + $0x70] ss:$8 sps:$4 sm:$0xff]   ;;  %v6150_v32 = vld [vmem:[%s8780_s1 + $0x84] ss:$8 sps:$4 sm:$0xff]   ;;  %v6154_v34 = vld [vmem:[%s8780_s1 + $0x80] ss:$8 sps:$4 sm:$0xff]  }
   0xc   :  { %4130 = vmatpush1.bf16.msra.mxu0 %v6119_v11  ;;  %3326 = vmatprep.subr.bf16.mxu1 %v6120_v12  ;;  %v6149_v31 = vld [vmem:[%s8780_s1 + $0x570] ss:$8 sps:$4 sm:$0xff]   ;;  %v6152_v33 = vld [vmem:[%s8780_s1 + $0x584] ss:$8 sps:$4 sm:$0xff]   ;;  %v6155_v35 = vld [vmem:[%s8780_s1 + $0x580] ss:$8 sps:$4 sm:$0xff]  }
   0xd   :  { %4131 = vmatprep.subr.bf16.mxu0 %v6122_v13  ;;  %v6156_v36 = vld [vmem:[%s8780_s1 + $0x94] ss:$8 sps:$4 sm:$0xff]   ;;  %v6160_v38 = vld [vmem:[%s8780_s1 + $0x90] ss:$8 sps:$4 sm:$0xff]   ;;  %v6162_v40 = vld [vmem:[%s8780_s1 + $0xa4] ss:$8 sps:$4 sm:$0xff]  }
   0xe   :  { %v6158_v37 = vld [vmem:[%s8780_s1 + $0x594] ss:$8 sps:$4 sm:$0xff]   ;;  %v6161_v39 = vld [vmem:[%s8780_s1 + $0x590] ss:$8 sps:$4 sm:$0xff]   ;;  %v6164_v41 = vld [vmem:[%s8780_s1 + $0x5a4] ss:$8 sps:$4 sm:$0xff]  }
   0xf   :  { %3327 = vmatpush1.bf16.msra.mxu1 %v6124_v14  ;;  %v6166_v42 = vld [vmem:[%s8780_s1 + $0xa0] ss:$8 sps:$4 sm:$0xff]   ;;  %v6168_v44 = vld [vmem:[%s8780_s1 + $0xb4] ss:$8 sps:$4 sm:$0xff]   ;;  %v6172_v46 = vld [vmem:[%s8780_s1 + $0xb0] ss:$8 sps:$4 sm:$0xff]  }
  0x10   :  { %4132 = vmatpush1.bf16.msra.mxu0 %v6125_v15  ;;  %3328 = vmatprep.subr.bf16.mxu1 %v6126_v16  ;;  %v6167_v43 = vld [vmem:[%s8780_s1 + $0x5a0] ss:$8 sps:$4 sm:$0xff]   ;;  %v6170_v45 = vld [vmem:[%s8780_s1 + $0x5b4] ss:$8 sps:$4 sm:$0xff]   ;;  %v6173_v47 = vld [vmem:[%s8780_s1 + $0x5b0] ss:$8 sps:$4 sm:$0xff]  }
  0x11   :  { %4133 = vmatprep.subr.bf16.mxu0 %v6128_v17  ;;  %v6174_v48 = vld [vmem:[%s8780_s1 + $0xc4] ss:$8 sps:$4 sm:$0xff]   ;;  %v6178_v52 = vld [vmem:[%s8780_s1 + $0xc0] ss:$8 sps:$4 sm:$0xff]   ;;  %v6180_v54 = vld [vmem:[%s8780_s1 + $0xd4] ss:$8 sps:$4 sm:$0xff]  }
  0x12   :  { %v6200_v49 = vld [vmem:[%s8781_s0 + $0x4] ss:$76 sps:$4 sm:$0xff]   ;;  %v6203_v51 = vld [vmem:[%s8781_s0 + $0x2c] ss:$76 sps:$4 sm:$0xff]   ;;  %v6179_v53 = vld [vmem:[%s8780_s1 + $0x5c0] ss:$8 sps:$4 sm:$0xff]  }
  0x13   :  { %3329 = vmatpush1.bf16.msra.mxu1 %v6130_v18  ;;  %v6176_v50 = vld [vmem:[%s8780_s1 + $0x5c4] ss:$8 sps:$4 sm:$0xff]   ;;  %3352 = vmatprep.mubr.bf16.mxu1 %v6200_v49  ;;  %v6182_v55 = vld [vmem:[%s8780_s1 + $0x5d4] ss:$8 sps:$4 sm:$0xff]   ;;  %v6184_v56 = vld [vmem:[%s8780_s1 + $0xd0] ss:$8 sps:$4 sm:$0xff]  }
  0x14   :  { %4134 = vmatpush1.bf16.msra.mxu0 %v6131_v19  ;;  %3330 = vmatprep.subr.bf16.mxu1 %v6132_v20  ;;  %v6185_v57 = vld [vmem:[%s8780_s1 + $0x5d0] ss:$8 sps:$4 sm:$0xff]   ;;  %v6186_v58 = vld [vmem:[%s8780_s1 + $0xe4] ss:$8 sps:$4 sm:$0xff]   ;;  %v6190_v60 = vld [vmem:[%s8780_s1 + $0xe0] ss:$8 sps:$4 sm:$0xff]  }
  0x15   :  { %4135 = vmatprep.subr.bf16.mxu0 %v6134_v21  ;;  %4157 = vmatprep.mubr.bf16.mxu0 %v6203_v51  ;;  %v6188_v59 = vld [vmem:[%s8780_s1 + $0x5e4] ss:$8 sps:$4 sm:$0xff]   ;;  %v6191_v61 = vld [vmem:[%s8780_s1 + $0x5e0] ss:$8 sps:$4 sm:$0xff]   ;;  %v6192_v62 = vld [vmem:[%s8780_s1 + $0xf4] ss:$8 sps:$4 sm:$0xff]  }
  0x16   :  { %v6194_v63 = vld [vmem:[%s8780_s1 + $0x5f4] ss:$8 sps:$4 sm:$0xff]   ;;  %v6196_v0 = vld [vmem:[%s8780_s1 + $0xf0] ss:$8 sps:$4 sm:$0xff]   ;;  %v6206_v2 = vld [vmem:[%s8780_s1 + $0x104] ss:$8 sps:$4 sm:$0xff]  }
  0x17   :  { %3331 = vmatpush1.bf16.msra.mxu1 %v6136_v22  ;;  %v6197_v1 = vld [vmem:[%s8780_s1 + $0x5f0] ss:$8 sps:$4 sm:$0xff]   ;;  %v6209_v3 = vld [vmem:[%s8780_s1 + $0x604] ss:$8 sps:$4 sm:$0xff]   ;;  %v6201_v5 = vld [vmem:[%s8781_s0 + $0x28] ss:$76 sps:$4 sm:$0xff]  }
  0x18   :  { %4136 = vmatpush1.bf16.msra.mxu0 %v6137_v23  ;;  %3332 = vmatprep.subr.bf16.mxu1 %v6138_v24  ;;  %v6198_v4 = vld [vmem:[%s8781_s0] ss:$76 sps:$4 sm:$0xff]   ;;  %v6210_v8 = vld [vmem:[%s8781_s0 + $0x9c] ss:$76 sps:$4 sm:$0xff]   ;;  %v6215_v10 = vld [vmem:[%s8781_s0 + $0xc4] ss:$76 sps:$4 sm:$0xff]  }
  0x19   :  { %4137 = vmatprep.subr.bf16.mxu0 %v6140_v25  ;;  %v6204_v6 = vld [vmem:[%s8780_s1 + $0x100] ss:$8 sps:$4 sm:$0xff]   ;;  %v6214_v9 = vld [vmem:[%s8780_s1 + $0x114] ss:$8 sps:$4 sm:$0xff]   ;;  %v6212_v12 = vld [vmem:[%s8780_s1 + $0x110] ss:$8 sps:$4 sm:$0xff]  }
  0x1a   :  { %v6207_v7 = vld [vmem:[%s8780_s1 + $0x600] ss:$8 sps:$4 sm:$0xff]   ;;  %v6221_v11 = vld [vmem:[%s8780_s1 + $0x614] ss:$8 sps:$4 sm:$0xff]   ;;  %v6219_v13 = vld [vmem:[%s8780_s1 + $0x610] ss:$8 sps:$4 sm:$0xff]  }
  0x1b   :  { %3333 = vmatpush1.bf16.msra.mxu1 %v6142_v26  ;;  %v6224_v14 = vld [vmem:[%s8780_s1 + $0x124] ss:$8 sps:$4 sm:$0xff]   ;;  %v6222_v18 = vld [vmem:[%s8780_s1 + $0x120] ss:$8 sps:$4 sm:$0xff]   ;;  %v6236_v22 = vld [vmem:[%s8780_s1 + $0x134] ss:$8 sps:$4 sm:$0xff]  }
  0x1c   :  { %4138 = vmatpush1.bf16.msra.mxu0 %v6143_v27  ;;  %3334 = vmatprep.subr.bf16.mxu1 %v6144_v28  ;;  %v6217_v15 = vld [vmem:[%s8781_s0 + $0x98] ss:$76 sps:$4 sm:$0xff]   ;;  %v6218_v17 = vld [vmem:[%s8781_s0 + $0xc0] ss:$76 sps:$4 sm:$0xff]   ;;  %v6227_v20 = vld [vmem:[%s8781_s0 + $0x15c] ss:$76 sps:$4 sm:$0xff]  }
  0x1d   :  { %4139 = vmatprep.subr.bf16.mxu0 %v6146_v29  ;;  %v6231_v16 = vld [vmem:[%s8780_s1 + $0x624] ss:$8 sps:$4 sm:$0xff]   ;;  %v6225_v19 = vld [vmem:[%s8781_s0 + $0x134] ss:$76 sps:$4 sm:$0xff]   ;;  %v6234_v24 = vld [vmem:[%s8780_s1 + $0x130] ss:$8 sps:$4 sm:$0xff]  }
  0x1e   :  { %v6229_v21 = vld [vmem:[%s8780_s1 + $0x620] ss:$8 sps:$4 sm:$0xff]   ;;  %v6239_v23 = vld [vmem:[%s8780_s1 + $0x634] ss:$8 sps:$4 sm:$0xff]   ;;  %v6237_v25 = vld [vmem:[%s8780_s1 + $0x630] ss:$8 sps:$4 sm:$0xff]  }
  0x1f   :  { %3335 = vmatpush1.bf16.msra.mxu1 %v6148_v30  ;;  %v6232_v26 = vld [vmem:[%s8781_s0 + $0x130] ss:$76 sps:$4 sm:$0xff]   ;;  %v6248_v27 = vld [vmem:[%s8780_s1 + $0x144] ss:$8 sps:$4 sm:$0xff]  }
  0x20   :  { %4140 = vmatpush1.bf16.msra.mxu0 %v6149_v31  ;;  %3336 = vmatprep.subr.bf16.mxu1 %v6150_v32  ;;  %v6233_v28 = vld [vmem:[%s8781_s0 + $0x158] ss:$76 sps:$4 sm:$0xff]   ;;  %v6242_v31 = vld [vmem:[%s8781_s0 + $0x1f4] ss:$76 sps:$4 sm:$0xff]  }
  0x21   :  { %4141 = vmatprep.subr.bf16.mxu0 %v6152_v33  ;;  %v6251_v29 = vld [vmem:[%s8780_s1 + $0x644] ss:$8 sps:$4 sm:$0xff]   ;;  %v6246_v32 = vld [vmem:[%s8780_s1 + $0x140] ss:$8 sps:$4 sm:$0xff]   ;;  %v6285_v51 = vld [vmem:[%s8780_s1 + $0x670] ss:$8 sps:$4 sm:$0xff]  }
  0x22   :  { %v6240_v30 = vld [vmem:[%s8781_s0 + $0x1cc] ss:$76 sps:$4 sm:$0xff]   ;;  %v6249_v33 = vld [vmem:[%s8780_s1 + $0x640] ss:$8 sps:$4 sm:$0xff]  }
  0x23   :  { %3337 = vmatpush1.bf16.msra.mxu1 %v6154_v34  ;;  %v6260_v34 = vld [vmem:[%s8780_s1 + $0x154] ss:$8 sps:$4 sm:$0xff]   ;;  %v6256_v49 = vld [vmem:[%s8781_s0 + $0x260] ss:$76 sps:$4 sm:$0xff]  }
  0x24   :  { %4142 = vmatpush1.bf16.msra.mxu0 %v6155_v35  ;;  %3338 = vmatprep.subr.bf16.mxu1 %v6156_v36  ;;  %v6263_v35 = vld [vmem:[%s8780_s1 + $0x654] ss:$8 sps:$4 sm:$0xff]   ;;  %v6258_v36 = vld [vmem:[%s8780_s1 + $0x150] ss:$8 sps:$4 sm:$0xff]  }
  0x25   :  { %4143 = vmatprep.subr.bf16.mxu0 %v6158_v37  ;;  %v6261_v37 = vld [vmem:[%s8780_s1 + $0x650] ss:$8 sps:$4 sm:$0xff]  }
  0x27   :  { %3339 = vmatpush1.bf16.msra.mxu1 %v6160_v38  ;;  %v6244_v38 = vld [vmem:[%s8781_s0 + $0x1c8] ss:$76 sps:$4 sm:$0xff]  }
  0x28   :  { %4144 = vmatpush1.bf16.msra.mxu0 %v6161_v39  ;;  %3340 = vmatprep.subr.bf16.mxu1 %v6162_v40  ;;  %v6268_v39 = vld [vmem:[%s8780_s1 + $0x164] ss:$8 sps:$4 sm:$0xff]  }
  0x29   :  { %4145 = vmatprep.subr.bf16.mxu0 %v6164_v41  ;;  %v6275_v40 = vld [vmem:[%s8780_s1 + $0x664] ss:$8 sps:$4 sm:$0xff]   ;;  %v6245_v41 = vld [vmem:[%s8781_s0 + $0x1f0] ss:$76 sps:$4 sm:$0xff]  }
  0x2b   :  { %3341 = vmatpush1.bf16.msra.mxu1 %v6166_v42  ;;  %v6252_v42 = vld [vmem:[%s8781_s0 + $0x264] ss:$76 sps:$4 sm:$0xff]  }
  0x2c   :  { %4146 = vmatpush1.bf16.msra.mxu0 %v6167_v43  ;;  %3342 = vmatprep.subr.bf16.mxu1 %v6168_v44  ;;  %v6254_v43 = vld [vmem:[%s8781_s0 + $0x28c] ss:$76 sps:$4 sm:$0xff]   ;;  %v6266_v44 = vld [vmem:[%s8780_s1 + $0x160] ss:$8 sps:$4 sm:$0xff]  }
  0x2d   :  { %4147 = vmatprep.subr.bf16.mxu0 %v6170_v45  ;;  %v6273_v45 = vld [vmem:[%s8780_s1 + $0x660] ss:$8 sps:$4 sm:$0xff]  }
  0x2f   :  { %3343 = vmatpush1.bf16.msra.mxu1 %v6172_v46  ;;  %v6278_v46 = vld [vmem:[%s8780_s1 + $0x174] ss:$8 sps:$4 sm:$0xff]  }
  0x30   :  { %4148 = vmatpush1.bf16.msra.mxu0 %v6173_v47  ;;  %3344 = vmatprep.subr.bf16.mxu1 %v6174_v48  ;;  %v6287_v47 = vld [vmem:[%s8780_s1 + $0x674] ss:$8 sps:$4 sm:$0xff]   ;;  %v6276_v48 = vld [vmem:[%s8780_s1 + $0x170] ss:$8 sps:$4 sm:$0xff]  }
  0x31   :  { %4149 = vmatprep.subr.bf16.mxu0 %v6176_v50  ;;  %v6257_v50 = vld [vmem:[%s8781_s0 + $0x288] ss:$76 sps:$4 sm:$0xff]  }
  0x33   :  { %3345 = vmatpush1.bf16.msra.mxu1 %v6178_v52  ;;  %v6264_v52 = vld [vmem:[%s8781_s0 + $0x2fc] ss:$76 sps:$4 sm:$0xff]  }
  0x34   :  { %4150 = vmatpush1.bf16.msra.mxu0 %v6179_v53  ;;  %3346 = vmatprep.subr.bf16.mxu1 %v6180_v54  ;;  %v6290_v53 = vld [vmem:[%s8780_s1 + $0x184] ss:$8 sps:$4 sm:$0xff]  }
  0x35   :  { %4151 = vmatprep.subr.bf16.mxu0 %v6182_v55  ;;  %v6293_v54 = vld [vmem:[%s8780_s1 + $0x684] ss:$8 sps:$4 sm:$0xff]  }
  0x36   :  { %v6269_v55 = vld [vmem:[%s8781_s0 + $0x324] ss:$76 sps:$4 sm:$0xff]  }
  0x37   :  { %3347 = vmatpush1.bf16.msra.mxu1 %v6184_v56  ;;  %v6288_v56 = vld [vmem:[%s8780_s1 + $0x180] ss:$8 sps:$4 sm:$0xff]  }
  0x38   :  { %4152 = vmatpush1.bf16.msra.mxu0 %v6185_v57  ;;  %3348 = vmatprep.subr.bf16.mxu1 %v6186_v58  ;;  %v6291_v57 = vld [vmem:[%s8780_s1 + $0x680] ss:$8 sps:$4 sm:$0xff]   ;;  %v6302_v58 = vld [vmem:[%s8780_s1 + $0x194] ss:$8 sps:$4 sm:$0xff]  }
  0x39   :  { %4153 = vmatprep.subr.bf16.mxu0 %v6188_v59  ;;  %v6305_v59 = vld [vmem:[%s8780_s1 + $0x694] ss:$8 sps:$4 sm:$0xff]  }
  0x3b   :  { %3349 = vmatpush1.bf16.msra.mxu1 %v6190_v60  ;;  %v6300_v60 = vld [vmem:[%s8780_s1 + $0x190] ss:$8 sps:$4 sm:$0xff]  }
  0x3c   :  { %4154 = vmatpush1.bf16.msra.mxu0 %v6191_v61  ;;  %3350 = vmatprep.subr.bf16.mxu1 %v6192_v62  ;;  %v6271_v61 = vld [vmem:[%s8781_s0 + $0x2f8] ss:$76 sps:$4 sm:$0xff]   ;;  %v6272_v62 = vld [vmem:[%s8781_s0 + $0x320] ss:$76 sps:$4 sm:$0xff]  }
  0x3d   :  { %4155 = vmatprep.subr.bf16.mxu0 %v6194_v63  ;;  %v6303_v63 = vld [vmem:[%s8780_s1 + $0x690] ss:$8 sps:$4 sm:$0xff]  }
  0x3f   :  { %3351 = vmatpush1.bf16.msra.mxu1 %v6196_v0  ;;  %v6314_v0 = vld [vmem:[%s8780_s1 + $0x1a4] ss:$8 sps:$4 sm:$0xff]  }
  0x40   :  { %4156 = vmatpush1.bf16.msra.mxu0 %v6197_v1  ;;  %3481 = vmatprep.subr.bf16.mxu1 %v6206_v2  ;;  %v6317_v1 = vld [vmem:[%s8780_s1 + $0x6a4] ss:$8 sps:$4 sm:$0xff]   ;;  %v6279_v2 = vld [vmem:[%s8781_s0 + $0x394] ss:$76 sps:$4 sm:$0xff]  }
  0x41   :  { %4286 = vmatprep.subr.bf16.mxu0 %v6209_v3  ;;  %v6281_v3 = vld [vmem:[%s8781_s0 + $0x3bc] ss:$76 sps:$4 sm:$0xff]  }
  0x42   :  { %3353 = vmatmul.mubr.bf16.vlgmr.msra.gmra.mrb[0].mxu1 %v6198_v4  ;;  %v6312_v4 = vld [vmem:[%s8780_s1 + $0x1a0] ss:$8 sps:$4 sm:$0xff]  }
  0x43   :  { %4158 = vmatmul.mubr.bf16.vlgmr.msra.gmra.mrb[0].mxu0 %v6201_v5  ;;  %3482 = vmatpush1.bf16.msra.mxu1 %v6204_v6  ;;  %v6315_v5 = vld [vmem:[%s8780_s1 + $0x6a0] ss:$8 sps:$4 sm:$0xff]   ;;  %v6325_v6 = vld [vmem:[%s8780_s1 + $0x1b4] ss:$8 sps:$4 sm:$0xff]  }
  0x44   :  { %4287 = vmatpush1.bf16.msra.mxu0 %v6207_v7  ;;  %3362 = vmatprep.mubr.bf16.mxu1 %v6210_v8  ;;  %v6329_v7 = vld [vmem:[%s8780_s1 + $0x6b4] ss:$8 sps:$4 sm:$0xff]   ;;  %v6323_v8 = vld [vmem:[%s8780_s1 + $0x1b0] ss:$8 sps:$4 sm:$0xff]  }
  0x45   :  { %3483 = vmatprep.subr.bf16.mxu1 %v6214_v9  ;;  %4167 = vmatprep.mubr.bf16.mxu0 %v6215_v10  ;;  %v6327_v9 = vld [vmem:[%s8780_s1 + $0x6b0] ss:$8 sps:$4 sm:$0xff]  }
  0x46   :  { %4288 = vmatprep.subr.bf16.mxu0 %v6221_v11  ;;  %v6283_v10 = vld [vmem:[%s8781_s0 + $0x390] ss:$76 sps:$4 sm:$0xff]   ;;  %v6332_v11 = vld [vmem:[%s8780_s1 + $0x1c4] ss:$8 sps:$4 sm:$0xff]  }
  0x47   :  { %3484 = vmatpush1.bf16.msra.mxu1 %v6212_v12  ;;  %v6341_v12 = vld [vmem:[%s8780_s1 + $0x6c4] ss:$8 sps:$4 sm:$0xff]  }
  0x48   :  { %4289 = vmatpush1.bf16.msra.mxu0 %v6219_v13  ;;  %3485 = vmatprep.subr.bf16.mxu1 %v6224_v14  ;;  %v6284_v13 = vld [vmem:[%s8781_s0 + $0x3b8] ss:$76 sps:$4 sm:$0xff]  }
  0x49   :  { %4290 = vmatprep.subr.bf16.mxu0 %v6231_v16  ;;  %v6294_v14 = vld [vmem:[%s8781_s0 + $0x42c] ss:$76 sps:$4 sm:$0xff]   ;;  %v6330_v16 = vld [vmem:[%s8780_s1 + $0x1c0] ss:$8 sps:$4 sm:$0xff]  }
  0x4a   :  { %3363 = vmatmul.mubr.bf16.gmra.mrb[4].mxu1 %v6217_v15  ;;  %v6296_v15 = vld [vmem:[%s8781_s0 + $0x454] ss:$76 sps:$4 sm:$0xff]  }
  0x4b   :  { %4168 = vmatmul.mubr.bf16.gmra.mrb[4].mxu0 %v6218_v17  ;;  %3486 = vmatpush1.bf16.msra.mxu1 %v6222_v18  ;;  %v6339_v17 = vld [vmem:[%s8780_s1 + $0x6c0] ss:$8 sps:$4 sm:$0xff]   ;;  %v6344_v18 = vld [vmem:[%s8780_s1 + $0x1d4] ss:$8 sps:$4 sm:$0xff]  }
  0x4c   :  { %3372 = vmatprep.mubr.bf16.mxu1 %v6225_v19  ;;  %4177 = vmatprep.mubr.bf16.mxu0 %v6227_v20  ;;  %v6351_v19 = vld [vmem:[%s8780_s1 + $0x6d4] ss:$8 sps:$4 sm:$0xff]   ;;  %v6342_v20 = vld [vmem:[%s8780_s1 + $0x1d0] ss:$8 sps:$4 sm:$0xff]  }
  0x4d   :  { %4291 = vmatpush1.bf16.msra.mxu0 %v6229_v21  ;;  %3487 = vmatprep.subr.bf16.mxu1 %v6236_v22  ;;  %v6298_v21 = vld [vmem:[%s8781_s0 + $0x428] ss:$76 sps:$4 sm:$0xff]   ;;  %v6299_v22 = vld [vmem:[%s8781_s0 + $0x450] ss:$76 sps:$4 sm:$0xff]  }
  0x4e   :  { %4292 = vmatprep.subr.bf16.mxu0 %v6239_v23  ;;  %v6349_v23 = vld [vmem:[%s8780_s1 + $0x6d0] ss:$8 sps:$4 sm:$0xff]  }
  0x4f   :  { %3488 = vmatpush1.bf16.msra.mxu1 %v6234_v24  ;;  %v6356_v24 = vld [vmem:[%s8780_s1 + $0x1e4] ss:$8 sps:$4 sm:$0xff]  }
  0x50   :  { %3489 = vmatprep.subr.bf16.mxu1 %v6248_v27  ;;  %v6308_v27 = vld [vmem:[%s8781_s0 + $0x4ec] ss:$76 sps:$4 sm:$0xff]  }
  0x51   :  { %4293 = vmatpush1.bf16.msra.mxu0 %v6237_v25  ;;  %v6359_v25 = vld [vmem:[%s8780_s1 + $0x6e4] ss:$8 sps:$4 sm:$0xff]  }
  0x52   :  { %4294 = vmatprep.subr.bf16.mxu0 %v6251_v29  ;;  %3373 = vmatmul.mubr.bf16.gmra.mrb[8].mxu1 %v6232_v26  ;;  %v6306_v26 = vld [vmem:[%s8781_s0 + $0x4c4] ss:$76 sps:$4 sm:$0xff]   ;;  %v6357_v29 = vld [vmem:[%s8780_s1 + $0x6e0] ss:$8 sps:$4 sm:$0xff]  }
  0x53   :  { %4178 = vmatmul.mubr.bf16.gmra.mrb[8].mxu0 %v6233_v28  ;;  %3382 = vmatprep.mubr.bf16.mxu1 %v6240_v30  ;;  %v6354_v28 = vld [vmem:[%s8780_s1 + $0x1e0] ss:$8 sps:$4 sm:$0xff]   ;;  %v6366_v30 = vld [vmem:[%s8780_s1 + $0x1f4] ss:$8 sps:$4 sm:$0xff]  }
  0x54   :  { %4187 = vmatprep.mubr.bf16.mxu0 %v6242_v31  ;;  %3490 = vmatpush1.bf16.msra.mxu1 %v6246_v32  ;;  %v6369_v31 = vld [vmem:[%s8780_s1 + $0x6f4] ss:$8 sps:$4 sm:$0xff]   ;;  %v6310_v32 = vld [vmem:[%s8781_s0 + $0x4c0] ss:$76 sps:$4 sm:$0xff]  }
  0x55   :  { %4295 = vmatpush1.bf16.msra.mxu0 %v6249_v33  ;;  %3491 = vmatprep.subr.bf16.mxu1 %v6260_v34  ;;  %v6364_v33 = vld [vmem:[%s8780_s1 + $0x1f0] ss:$8 sps:$4 sm:$0xff]  }
  0x56   :  { %4296 = vmatprep.subr.bf16.mxu0 %v6263_v35  ;;  %v6367_v34 = vld [vmem:[%s8780_s1 + $0x6f0] ss:$8 sps:$4 sm:$0xff]   ;;  %v6378_v35 = vld [vmem:[%s8780_s1 + $0x204] ss:$8 sps:$4 sm:$0xff]  }
  0x58   :  { %3492 = vmatpush1.bf16.msra.mxu1 %v6258_v36  ;;  %v6381_v36 = vld [vmem:[%s8780_s1 + $0x704] ss:$8 sps:$4 sm:$0xff]  }
  0x59   :  { %4297 = vmatpush1.bf16.msra.mxu0 %v6261_v37  ;;  %3493 = vmatprep.subr.bf16.mxu1 %v6268_v39  ;;  %v6311_v37 = vld [vmem:[%s8781_s0 + $0x4e8] ss:$76 sps:$4 sm:$0xff]   ;;  %v6320_v39 = vld [vmem:[%s8781_s0 + $0x584] ss:$76 sps:$4 sm:$0xff]  }
  0x5a   :  { %4298 = vmatprep.subr.bf16.mxu0 %v6275_v40  ;;  %3383 = vmatmul.mubr.bf16.gmra.mrb[12].mxu1 %v6244_v38  ;;  %v6318_v38 = vld [vmem:[%s8781_s0 + $0x55c] ss:$76 sps:$4 sm:$0xff]   ;;  %v6322_v40 = vld [vmem:[%s8781_s0 + $0x558] ss:$76 sps:$4 sm:$0xff]  }
  0x5b   :  { %4188 = vmatmul.mubr.bf16.gmra.mrb[12].mxu0 %v6245_v41  ;;  %3392 = vmatprep.mubr.bf16.mxu1 %v6252_v42  ;;  %v6326_v41 = vld [vmem:[%s8781_s0 + $0x580] ss:$76 sps:$4 sm:$0xff]  }
  0x5c   :  { %4197 = vmatprep.mubr.bf16.mxu0 %v6254_v43  ;;  %3494 = vmatpush1.bf16.msra.mxu1 %v6266_v44  ;;  %v6333_v42 = vld [vmem:[%s8781_s0 + $0x5f4] ss:$76 sps:$4 sm:$0xff]   ;;  %v6335_v43 = vld [vmem:[%s8781_s0 + $0x61c] ss:$76 sps:$4 sm:$0xff]  }
  0x5d   :  { %4299 = vmatpush1.bf16.msra.mxu0 %v6273_v45  ;;  %3495 = vmatprep.subr.bf16.mxu1 %v6278_v46  ;;  %v6337_v44 = vld [vmem:[%s8781_s0 + $0x5f0] ss:$76 sps:$4 sm:$0xff]   ;;  %v6338_v45 = vld [vmem:[%s8781_s0 + $0x618] ss:$76 sps:$4 sm:$0xff]  }
  0x5e   :  { %4300 = vmatprep.subr.bf16.mxu0 %v6287_v47  ;;  %v6345_v46 = vld [vmem:[%s8781_s0 + $0x68c] ss:$76 sps:$4 sm:$0xff]   ;;  %v6347_v47 = vld [vmem:[%s8781_s0 + $0x6b4] ss:$76 sps:$4 sm:$0xff]  }
  0x60   :  { %3496 = vmatpush1.bf16.msra.mxu1 %v6276_v48  ;;  %v255_v48 = vld [vmem:[%s8781_s0 + $0x720] sm:$0xff] }
  0x61   :  { %4301 = vmatpush1.bf16.msra.mxu0 %v6285_v51  ;;  %3497 = vmatprep.subr.bf16.mxu1 %v6290_v53  ;;  %v6353_v51 = vld [vmem:[%s8781_s0 + $0x6b0] ss:$76 sps:$4 sm:$0xff]  }
  0x62   :  { %4302 = vmatprep.subr.bf16.mxu0 %v6293_v54  ;;  %3393 = vmatmul.mubr.bf16.gmra.mrb[16].mxu1 %v6256_v49  ;;  %v260_v49 = vld [vmem:[%s8781_s0 + $0x748] sm:$0xff]  ;;  %v5262_v54 = vcombine.low %v255_v48, %v255_v48 }
  0x63   :  { %4198 = vmatmul.mubr.bf16.gmra.mrb[16].mxu0 %v6257_v50  ;;  %3402 = vmatprep.mubr.bf16.mxu1 %v6264_v52  ;;  %v6352_v50 = vld [vmem:[%s8781_s0 + $0x688] ss:$76 sps:$4 sm:$0xff]   ;;  %v5263_v52 = vcombine.high %v255_v48, %v255_v48  ;;  %v5273_v53 = vcombine.high %v260_v49, %v260_v49 }
  0x64   :  { %4207 = vmatprep.mubr.bf16.mxu0 %v6269_v55  ;;  %3498 = vmatpush1.bf16.msra.mxu1 %v6288_v56  ;;  %v5272_v55 = vcombine.low %v260_v49, %v260_v49  ;;  %v6372_v56 = vld [vmem:[%s8781_s0 + $0xc] ss:$76 sps:$4 sm:$0xff]   ;;  %v6474_v48 = vld [vmem:[%s8780_s1 + $0x294] ss:$8 sps:$4 sm:$0xff]  }
  0x65   :  { %4303 = vmatpush1.bf16.msra.mxu0 %v6291_v57  ;;  %3499 = vmatprep.subr.bf16.mxu1 %v6302_v58  ;;  %v6375_v57 = vld [vmem:[%s8781_s0 + $0x34] ss:$76 sps:$4 sm:$0xff]  }
  0x66   :  { %4304 = vmatprep.subr.bf16.mxu0 %v6305_v59  ;;  %v6370_v58 = vld [vmem:[%s8781_s0 + $0x8] ss:$76 sps:$4 sm:$0xff]   ;;  %v6373_v59 = vld [vmem:[%s8781_s0 + $0x30] ss:$76 sps:$4 sm:$0xff]  }
  0x67   :  { %v6477_v49 = vld [vmem:[%s8780_s1 + $0x794] ss:$8 sps:$4 sm:$0xff]  }
  0x68   :  { %3500 = vmatpush1.bf16.msra.mxu1 %v6300_v60  ;;  %v6376_v60 = vld [vmem:[%s8780_s1 + $0x200] ss:$8 sps:$4 sm:$0xff]  }
  0x69   :  { %4305 = vmatpush1.bf16.msra.mxu0 %v6303_v63  ;;  %3501 = vmatprep.subr.bf16.mxu1 %v6314_v0  ;;  %v6386_v63 = vld [vmem:[%s8780_s1 + $0x214] ss:$8 sps:$4 sm:$0xff]   ;;  %v6387_v0 = vld [vmem:[%s8781_s0 + $0xcc] ss:$76 sps:$4 sm:$0xff]  }
  0x6a   :  { %4306 = vmatprep.subr.bf16.mxu0 %v6317_v1  ;;  %3403 = vmatmul.mubr.bf16.gmra.mrb[20].mxu1 %v6271_v61  ;;  %v6379_v61 = vld [vmem:[%s8780_s1 + $0x700] ss:$8 sps:$4 sm:$0xff]   ;;  %v6393_v1 = vld [vmem:[%s8780_s1 + $0x714] ss:$8 sps:$4 sm:$0xff]  }
  0x6b   :  { %4208 = vmatmul.mubr.bf16.gmra.mrb[20].mxu0 %v6272_v62  ;;  %3412 = vmatprep.mubr.bf16.mxu1 %v6279_v2  ;;  %v6382_v62 = vld [vmem:[%s8781_s0 + $0xa4] ss:$76 sps:$4 sm:$0xff]  }
  0x6c   :  { %4217 = vmatprep.mubr.bf16.mxu0 %v6281_v3  ;;  %3502 = vmatpush1.bf16.msra.mxu1 %v6312_v4  ;;  %v6384_v2 = vld [vmem:[%s8780_s1 + $0x210] ss:$8 sps:$4 sm:$0xff]   ;;  %v6396_v4 = vld [vmem:[%s8780_s1 + $0x224] ss:$8 sps:$4 sm:$0xff]  }
  0x6d   :  { %4307 = vmatpush1.bf16.msra.mxu0 %v6315_v5  ;;  %3503 = vmatprep.subr.bf16.mxu1 %v6325_v6  ;;  %v6391_v3 = vld [vmem:[%s8780_s1 + $0x710] ss:$8 sps:$4 sm:$0xff]   ;;  %v6403_v5 = vld [vmem:[%s8780_s1 + $0x724] ss:$8 sps:$4 sm:$0xff]  }
  0x6e   :  { %4308 = vmatprep.subr.bf16.mxu0 %v6329_v7  ;;  %v6389_v6 = vld [vmem:[%s8781_s0 + $0xa0] ss:$76 sps:$4 sm:$0xff]   ;;  %v6390_v7 = vld [vmem:[%s8781_s0 + $0xc8] ss:$76 sps:$4 sm:$0xff]  }
  0x70   :  { %3504 = vmatpush1.bf16.msra.mxu1 %v6323_v8  ;;  %v6394_v8 = vld [vmem:[%s8780_s1 + $0x220] ss:$8 sps:$4 sm:$0xff]  }
  0x71   :  { %4309 = vmatpush1.bf16.msra.mxu0 %v6327_v9  ;;  %3505 = vmatprep.subr.bf16.mxu1 %v6332_v11  ;;  %v6397_v9 = vld [vmem:[%s8781_s0 + $0x13c] ss:$76 sps:$4 sm:$0xff]  }
  0x72   :  { %4310 = vmatprep.subr.bf16.mxu0 %v6341_v12  ;;  %3413 = vmatmul.mubr.bf16.gmra.mrb[24].mxu1 %v6283_v10  ;;  %v6399_v10 = vld [vmem:[%s8781_s0 + $0x164] ss:$76 sps:$4 sm:$0xff]   ;;  %v6401_v11 = vld [vmem:[%s8780_s1 + $0x720] ss:$8 sps:$4 sm:$0xff]   ;;  %v6408_v12 = vld [vmem:[%s8780_s1 + $0x234] ss:$8 sps:$4 sm:$0xff]  }
  0x73   :  { %4218 = vmatmul.mubr.bf16.gmra.mrb[24].mxu0 %v6284_v13  ;;  %3422 = vmatprep.mubr.bf16.mxu1 %v6294_v14  ;;  %v6411_v13 = vld [vmem:[%s8780_s1 + $0x734] ss:$8 sps:$4 sm:$0xff]   ;;  %v6406_v14 = vld [vmem:[%s8780_s1 + $0x230] ss:$8 sps:$4 sm:$0xff]  }
  0x74   :  { %4227 = vmatprep.mubr.bf16.mxu0 %v6296_v15  ;;  %3506 = vmatpush1.bf16.msra.mxu1 %v6330_v16  ;;  %v6404_v15 = vld [vmem:[%s8781_s0 + $0x138] ss:$76 sps:$4 sm:$0xff]   ;;  %v6405_v16 = vld [vmem:[%s8781_s0 + $0x160] ss:$76 sps:$4 sm:$0xff]  }
  0x75   :  { %4311 = vmatpush1.bf16.msra.mxu0 %v6339_v17  ;;  %3507 = vmatprep.subr.bf16.mxu1 %v6344_v18  ;;  %v6409_v17 = vld [vmem:[%s8780_s1 + $0x730] ss:$8 sps:$4 sm:$0xff]   ;;  %v6420_v18 = vld [vmem:[%s8780_s1 + $0x244] ss:$8 sps:$4 sm:$0xff]  }
  0x76   :  { %4312 = vmatprep.subr.bf16.mxu0 %v6351_v19  ;;  %v6412_v19 = vld [vmem:[%s8781_s0 + $0x1d4] ss:$76 sps:$4 sm:$0xff]  }
  0x78   :  { %3508 = vmatpush1.bf16.msra.mxu1 %v6342_v20  ;;  %v6423_v20 = vld [vmem:[%s8780_s1 + $0x744] ss:$8 sps:$4 sm:$0xff]  }
  0x79   :  { %4313 = vmatpush1.bf16.msra.mxu0 %v6349_v23  ;;  %3509 = vmatprep.subr.bf16.mxu1 %v6356_v24  ;;  %v6421_v23 = vld [vmem:[%s8780_s1 + $0x740] ss:$8 sps:$4 sm:$0xff]   ;;  %v6432_v24 = vld [vmem:[%s8780_s1 + $0x254] ss:$8 sps:$4 sm:$0xff]  }
  0x7a   :  { %4314 = vmatprep.subr.bf16.mxu0 %v6359_v25  ;;  %3423 = vmatmul.mubr.bf16.gmra.mrb[28].mxu1 %v6298_v21  ;;  %v6414_v21 = vld [vmem:[%s8781_s0 + $0x1fc] ss:$76 sps:$4 sm:$0xff]  }
  0x7b   :  { %4228 = vmatmul.mubr.bf16.gmra.mrb[28].mxu0 %v6299_v22  ;;  %3432 = vmatprep.mubr.bf16.mxu1 %v6306_v26  ;;  %v6418_v22 = vld [vmem:[%s8780_s1 + $0x240] ss:$8 sps:$4 sm:$0xff]   ;;  %v6435_v25 = vld [vmem:[%s8780_s1 + $0x754] ss:$8 sps:$4 sm:$0xff]  }
  0x7c   :  { %4237 = vmatprep.mubr.bf16.mxu0 %v6308_v27  ;;  %3510 = vmatpush1.bf16.msra.mxu1 %v6354_v28  ;;  %v6416_v26 = vld [vmem:[%s8781_s0 + $0x1d0] ss:$76 sps:$4 sm:$0xff]   ;;  %v6417_v27 = vld [vmem:[%s8781_s0 + $0x1f8] ss:$76 sps:$4 sm:$0xff]  }
  0x7d   :  { %4315 = vmatpush1.bf16.msra.mxu0 %v6357_v29  ;;  %3511 = vmatprep.subr.bf16.mxu1 %v6366_v30  ;;  %v6430_v28 = vld [vmem:[%s8780_s1 + $0x250] ss:$8 sps:$4 sm:$0xff]   ;;  %v6440_v30 = vld [vmem:[%s8780_s1 + $0x264] ss:$8 sps:$4 sm:$0xff]  }
  0x7e   :  { %4316 = vmatprep.subr.bf16.mxu0 %v6369_v31  ;;  %v6433_v29 = vld [vmem:[%s8780_s1 + $0x750] ss:$8 sps:$4 sm:$0xff]   ;;  %v6447_v31 = vld [vmem:[%s8780_s1 + $0x764] ss:$8 sps:$4 sm:$0xff]  }
  0x80   :  { %3512 = vmatpush1.bf16.msra.mxu1 %v6364_v33  ;;  %v6426_v33 = vld [vmem:[%s8781_s0 + $0x294] ss:$76 sps:$4 sm:$0xff]  }
  0x81   :  { %4317 = vmatpush1.bf16.msra.mxu0 %v6367_v34  ;;  %3642 = vmatprep.subr.bf16.mxu1 %v6378_v35  ;;  %v6438_v34 = vld [vmem:[%s8780_s1 + $0x260] ss:$8 sps:$4 sm:$0xff]  }
  0x82   :  { %4447 = vmatprep.subr.bf16.mxu0 %v6381_v36  ;;  %3433 = vmatmul.mubr.bf16.gmra.mrb[32].mxu1 %v6310_v32  ;;  %v6424_v32 = vld [vmem:[%s8781_s0 + $0x26c] ss:$76 sps:$4 sm:$0xff]   ;;  %v6445_v35 = vld [vmem:[%s8780_s1 + $0x760] ss:$8 sps:$4 sm:$0xff]   ;;  %v6450_v36 = vld [vmem:[%s8780_s1 + $0x274] ss:$8 sps:$4 sm:$0xff]  }
  0x83   :  { %4238 = vmatmul.mubr.bf16.gmra.mrb[32].mxu0 %v6311_v37  ;;  %3442 = vmatprep.mubr.bf16.mxu1 %v6318_v38  ;;  %v6459_v37 = vld [vmem:[%s8780_s1 + $0x774] ss:$8 sps:$4 sm:$0xff]   ;;  %v6448_v38 = vld [vmem:[%s8780_s1 + $0x270] ss:$8 sps:$4 sm:$0xff]  }
  0x84   :  { %4247 = vmatprep.mubr.bf16.mxu0 %v6320_v39  ;;  %v6428_v39 = vld [vmem:[%s8781_s0 + $0x268] ss:$76 sps:$4 sm:$0xff]  }
  0x8a   :  { %3443 = vmatmul.mubr.bf16.gmra.mrb[36].mxu1 %v6322_v40  ;;  %v6429_v40 = vld [vmem:[%s8781_s0 + $0x290] ss:$76 sps:$4 sm:$0xff]  }
  0x8b   :  { %4248 = vmatmul.mubr.bf16.gmra.mrb[36].mxu0 %v6326_v41  ;;  %3452 = vmatprep.mubr.bf16.mxu1 %v6333_v42  ;;  %v6457_v41 = vld [vmem:[%s8780_s1 + $0x770] ss:$8 sps:$4 sm:$0xff]   ;;  %v6462_v42 = vld [vmem:[%s8780_s1 + $0x284] ss:$8 sps:$4 sm:$0xff]  }
  0x8c   :  { %4257 = vmatprep.mubr.bf16.mxu0 %v6335_v43  ;;  %v6465_v43 = vld [vmem:[%s8780_s1 + $0x784] ss:$8 sps:$4 sm:$0xff]  }
  0x92   :  { %3453 = vmatmul.mubr.bf16.gmra.mrb[40].mxu1 %v6337_v44  ;;  %v6436_v44 = vld [vmem:[%s8781_s0 + $0x304] ss:$76 sps:$4 sm:$0xff]  }
  0x93   :  { %4258 = vmatmul.mubr.bf16.gmra.mrb[40].mxu0 %v6338_v45  ;;  %3462 = vmatprep.mubr.bf16.mxu1 %v6345_v46  ;;  %v6441_v45 = vld [vmem:[%s8781_s0 + $0x32c] ss:$76 sps:$4 sm:$0xff]   ;;  %v6460_v46 = vld [vmem:[%s8780_s1 + $0x280] ss:$8 sps:$4 sm:$0xff]  }
  0x94   :  { %4267 = vmatprep.mubr.bf16.mxu0 %v6347_v47  ;;  %v6463_v47 = vld [vmem:[%s8780_s1 + $0x780] ss:$8 sps:$4 sm:$0xff]  }
  0x9a   :  { %3463 = vmatmul.mubr.bf16.gmra.mrb[44].mxu1 %v6352_v50  ;;  %v6472_v50 = vld [vmem:[%s8780_s1 + $0x290] ss:$8 sps:$4 sm:$0xff]  }
  0x9b   :  { %4268 = vmatmul.mubr.bf16.gmra.mrb[44].mxu0 %v6353_v51  ;;  %3472 = vmatprep.mubr.bf16.mxu1 %v5263_v52  ;;  %v6475_v51 = vld [vmem:[%s8780_s1 + $0x790] ss:$8 sps:$4 sm:$0xff]   ;;  %v6443_v52 = vld [vmem:[%s8781_s0 + $0x300] ss:$76 sps:$4 sm:$0xff]  }
  0x9c   :  { %4277 = vmatprep.mubr.bf16.mxu0 %v5273_v53  ;;  %v6486_v53 = vld [vmem:[%s8780_s1 + $0x2a4] ss:$8 sps:$4 sm:$0xff]  }
  0xa2   :  { %3473 = vmatmul.mubr.bf16.gmra.mrb[48].mxu1 %v5262_v54  ;;  %v6489_v54 = vld [vmem:[%s8780_s1 + $0x7a4] ss:$8 sps:$4 sm:$0xff]  }
  0xa3   :  { %4278 = vmatmul.mubr.bf16.gmra.mrb[48].mxu0 %v5272_v55  ;;  %3513 = vmatprep.mubr.bf16.mxu1 %v6372_v56  ;;  %v6444_v55 = vld [vmem:[%s8781_s0 + $0x328] ss:$76 sps:$4 sm:$0xff]  }
  0xa4   :  { %4318 = vmatprep.mubr.bf16.mxu0 %v6375_v57  ;;  %v6451_v56 = vld [vmem:[%s8781_s0 + $0x39c] ss:$76 sps:$4 sm:$0xff]   ;;  %v6453_v57 = vld [vmem:[%s8781_s0 + $0x3c4] ss:$76 sps:$4 sm:$0xff]  }
  0xaa   :  { %3514 = vmatmul.mubr.bf16.vlgmr.msra.gmra.mrb[0].mxu1 %v6370_v58  ;;  %v6484_v58 = vld [vmem:[%s8780_s1 + $0x2a0] ss:$8 sps:$4 sm:$0xff]  }
  0xab   :  { %4319 = vmatmul.mubr.bf16.vlgmr.msra.gmra.mrb[0].mxu0 %v6373_v59  ;;  %3643 = vmatpush1.bf16.msra.mxu1 %v6376_v60  ;;  %v6487_v59 = vld [vmem:[%s8780_s1 + $0x7a0] ss:$8 sps:$4 sm:$0xff]   ;;  %v6497_v60 = vld [vmem:[%s8780_s1 + $0x2b4] ss:$8 sps:$4 sm:$0xff]  }
  0xac   :  { %4448 = vmatpush1.bf16.msra.mxu0 %v6379_v61  ;;  %3523 = vmatprep.mubr.bf16.mxu1 %v6382_v62  ;;  %v6501_v61 = vld [vmem:[%s8780_s1 + $0x7b4] ss:$8 sps:$4 sm:$0xff]   ;;  %v6495_v62 = vld [vmem:[%s8780_s1 + $0x2b0] ss:$8 sps:$4 sm:$0xff]  }
  0xad   :  { %3644 = vmatprep.subr.bf16.mxu1 %v6386_v63  ;;  %4328 = vmatprep.mubr.bf16.mxu0 %v6387_v0  ;;  %v6455_v63 = vld [vmem:[%s8781_s0 + $0x398] ss:$76 sps:$4 sm:$0xff]   ;;  %v6456_v0 = vld [vmem:[%s8781_s0 + $0x3c0] ss:$76 sps:$4 sm:$0xff]  }
  0xae   :  { %4449 = vmatprep.subr.bf16.mxu0 %v6393_v1  ;;  %v6499_v1 = vld [vmem:[%s8780_s1 + $0x7b0] ss:$8 sps:$4 sm:$0xff]  }
  0xaf   :  { %3645 = vmatpush1.bf16.msra.mxu1 %v6384_v2  ;;  %v6466_v2 = vld [vmem:[%s8781_s0 + $0x434] ss:$76 sps:$4 sm:$0xff]  }
  0xb0   :  { %4450 = vmatpush1.bf16.msra.mxu0 %v6391_v3  ;;  %3646 = vmatprep.subr.bf16.mxu1 %v6396_v4  ;;  %v6504_v3 = vld [vmem:[%s8780_s1 + $0x2c4] ss:$8 sps:$4 sm:$0xff]  }
  0xb1   :  { %4451 = vmatprep.subr.bf16.mxu0 %v6403_v5  ;;  %v6513_v4 = vld [vmem:[%s8780_s1 + $0x7c4] ss:$8 sps:$4 sm:$0xff]   ;;  %v6468_v5 = vld [vmem:[%s8781_s0 + $0x45c] ss:$76 sps:$4 sm:$0xff]  }
  0xb2   :  { %3524 = vmatmul.mubr.bf16.gmra.mrb[4].mxu1 %v6389_v6  ;;  %v6502_v6 = vld [vmem:[%s8780_s1 + $0x2c0] ss:$8 sps:$4 sm:$0xff]  }
  0xb3   :  { %4329 = vmatmul.mubr.bf16.gmra.mrb[4].mxu0 %v6390_v7  ;;  %3647 = vmatpush1.bf16.msra.mxu1 %v6394_v8  ;;  %v6511_v7 = vld [vmem:[%s8780_s1 + $0x7c0] ss:$8 sps:$4 sm:$0xff]   ;;  %v6516_v8 = vld [vmem:[%s8780_s1 + $0x2d4] ss:$8 sps:$4 sm:$0xff]  }
  0xb4   :  { %3533 = vmatprep.mubr.bf16.mxu1 %v6397_v9  ;;  %4338 = vmatprep.mubr.bf16.mxu0 %v6399_v10  ;;  %v6523_v9 = vld [vmem:[%s8780_s1 + $0x7d4] ss:$8 sps:$4 sm:$0xff]   ;;  %v6514_v10 = vld [vmem:[%s8780_s1 + $0x2d0] ss:$8 sps:$4 sm:$0xff]  }
  0xb5   :  { %4452 = vmatpush1.bf16.msra.mxu0 %v6401_v11  ;;  %3648 = vmatprep.subr.bf16.mxu1 %v6408_v12  ;;  %v6470_v11 = vld [vmem:[%s8781_s0 + $0x430] ss:$76 sps:$4 sm:$0xff]   ;;  %v6471_v12 = vld [vmem:[%s8781_s0 + $0x458] ss:$76 sps:$4 sm:$0xff]  }
  0xb6   :  { %4453 = vmatprep.subr.bf16.mxu0 %v6411_v13  ;;  %v6521_v13 = vld [vmem:[%s8780_s1 + $0x7d0] ss:$8 sps:$4 sm:$0xff]  }
  0xb7   :  { %3649 = vmatpush1.bf16.msra.mxu1 %v6406_v14  ;;  %v6528_v14 = vld [vmem:[%s8780_s1 + $0x2e4] ss:$8 sps:$4 sm:$0xff]  }
  0xb8   :  { %3650 = vmatprep.subr.bf16.mxu1 %v6420_v18  ;;  %v6526_v18 = vld [vmem:[%s8780_s1 + $0x2e0] ss:$8 sps:$4 sm:$0xff]  }
  0xb9   :  { %4454 = vmatpush1.bf16.msra.mxu0 %v6409_v17  ;;  %v6480_v17 = vld [vmem:[%s8781_s0 + $0x4f4] ss:$76 sps:$4 sm:$0xff]  }
  0xba   :  { %4455 = vmatprep.subr.bf16.mxu0 %v6423_v20  ;;  %3534 = vmatmul.mubr.bf16.gmra.mrb[8].mxu1 %v6404_v15  ;;  %v6531_v15 = vld [vmem:[%s8780_s1 + $0x7e4] ss:$8 sps:$4 sm:$0xff]   ;;  %v6538_v20 = vld [vmem:[%s8780_s1 + $0x2f4] ss:$8 sps:$4 sm:$0xff]  }
  0xbb   :  { %4339 = vmatmul.mubr.bf16.gmra.mrb[8].mxu0 %v6405_v16  ;;  %3543 = vmatprep.mubr.bf16.mxu1 %v6412_v19  ;;  %v6478_v16 = vld [vmem:[%s8781_s0 + $0x4cc] ss:$76 sps:$4 sm:$0xff]   ;;  %v6529_v19 = vld [vmem:[%s8780_s1 + $0x7e0] ss:$8 sps:$4 sm:$0xff]  }
  0xbc   :  { %4348 = vmatprep.mubr.bf16.mxu0 %v6414_v21  ;;  %3651 = vmatpush1.bf16.msra.mxu1 %v6418_v22  ;;  %v6541_v21 = vld [vmem:[%s8780_s1 + $0x7f4] ss:$8 sps:$4 sm:$0xff]   ;;  %v6536_v22 = vld [vmem:[%s8780_s1 + $0x2f0] ss:$8 sps:$4 sm:$0xff]  }
  0xbd   :  { %4456 = vmatpush1.bf16.msra.mxu0 %v6421_v23  ;;  %3652 = vmatprep.subr.bf16.mxu1 %v6432_v24  ;;  %v6539_v23 = vld [vmem:[%s8780_s1 + $0x7f0] ss:$8 sps:$4 sm:$0xff]   ;;  %v6550_v24 = vld [vmem:[%s8780_s1 + $0x304] ss:$8 sps:$4 sm:$0xff]  }
  0xbe   :  { %4457 = vmatprep.subr.bf16.mxu0 %v6435_v25  ;;  %v6553_v25 = vld [vmem:[%s8780_s1 + $0x804] ss:$8 sps:$4 sm:$0xff]  }
  0xc0   :  { %3653 = vmatpush1.bf16.msra.mxu1 %v6430_v28  ;;  %v6490_v28 = vld [vmem:[%s8781_s0 + $0x564] ss:$76 sps:$4 sm:$0xff]  }
  0xc1   :  { %4458 = vmatpush1.bf16.msra.mxu0 %v6433_v29  ;;  %3654 = vmatprep.subr.bf16.mxu1 %v6440_v30  ;;  %v6492_v29 = vld [vmem:[%s8781_s0 + $0x58c] ss:$76 sps:$4 sm:$0xff]  }
  0xc2   :  { %4459 = vmatprep.subr.bf16.mxu0 %v6447_v31  ;;  %3544 = vmatmul.mubr.bf16.gmra.mrb[12].mxu1 %v6416_v26  ;;  %v6482_v26 = vld [vmem:[%s8781_s0 + $0x4c8] ss:$76 sps:$4 sm:$0xff]   ;;  %v6494_v30 = vld [vmem:[%s8781_s0 + $0x560] ss:$76 sps:$4 sm:$0xff]  }
  0xc3   :  { %4349 = vmatmul.mubr.bf16.gmra.mrb[12].mxu0 %v6417_v27  ;;  %3553 = vmatprep.mubr.bf16.mxu1 %v6424_v32  ;;  %v6483_v27 = vld [vmem:[%s8781_s0 + $0x4f0] ss:$76 sps:$4 sm:$0xff]   ;;  %v6498_v31 = vld [vmem:[%s8781_s0 + $0x588] ss:$76 sps:$4 sm:$0xff]  }
  0xc4   :  { %4358 = vmatprep.mubr.bf16.mxu0 %v6426_v33  ;;  %3655 = vmatpush1.bf16.msra.mxu1 %v6438_v34  ;;  %v6505_v32 = vld [vmem:[%s8781_s0 + $0x5fc] ss:$76 sps:$4 sm:$0xff]   ;;  %v6507_v33 = vld [vmem:[%s8781_s0 + $0x624] ss:$76 sps:$4 sm:$0xff]  }
  0xc5   :  { %4460 = vmatpush1.bf16.msra.mxu0 %v6445_v35  ;;  %3656 = vmatprep.subr.bf16.mxu1 %v6450_v36  ;;  %v6509_v34 = vld [vmem:[%s8781_s0 + $0x5f8] ss:$76 sps:$4 sm:$0xff]   ;;  %v6510_v35 = vld [vmem:[%s8781_s0 + $0x620] ss:$76 sps:$4 sm:$0xff]  }
  0xc6   :  { %4461 = vmatprep.subr.bf16.mxu0 %v6459_v37  ;;  %v6517_v36 = vld [vmem:[%s8781_s0 + $0x694] ss:$76 sps:$4 sm:$0xff]   ;;  %v6519_v37 = vld [vmem:[%s8781_s0 + $0x6bc] ss:$76 sps:$4 sm:$0xff]  }
  0xc8   :  { %3657 = vmatpush1.bf16.msra.mxu1 %v6448_v38  ;;  %v256_v38 = vld [vmem:[%s8781_s0 + $0x728] sm:$0xff] }
  0xc9   :  { %4462 = vmatpush1.bf16.msra.mxu0 %v6457_v41  ;;  %3658 = vmatprep.subr.bf16.mxu1 %v6462_v42  ;;  %v6525_v41 = vld [vmem:[%s8781_s0 + $0x6b8] ss:$76 sps:$4 sm:$0xff]   ;;  %v5265_v42 = vcombine.high %v256_v38, %v256_v38 }
  0xca   :  { %4463 = vmatprep.subr.bf16.mxu0 %v6465_v43  ;;  %3554 = vmatmul.mubr.bf16.gmra.mrb[16].mxu1 %v6428_v39  ;;  %v261_v39 = vld [vmem:[%s8781_s0 + $0x750] sm:$0xff] }
  0xcb   :  { %4359 = vmatmul.mubr.bf16.gmra.mrb[16].mxu0 %v6429_v40  ;;  %3563 = vmatprep.mubr.bf16.mxu1 %v6436_v44  ;;  %v6524_v40 = vld [vmem:[%s8781_s0 + $0x690] ss:$76 sps:$4 sm:$0xff]   ;;  %v5275_v43 = vcombine.high %v261_v39, %v261_v39  ;;  %v5264_v44 = vcombine.low %v256_v38, %v256_v38 }
  0xcc   :  { %4368 = vmatprep.mubr.bf16.mxu0 %v6441_v45  ;;  %3659 = vmatpush1.bf16.msra.mxu1 %v6460_v46  ;;  %v5274_v45 = vcombine.low %v261_v39, %v261_v39  ;;  %v6544_v46 = vld [vmem:[%s8781_s0 + $0x14] ss:$76 sps:$4 sm:$0xff]  }
  0xcd   :  { %4464 = vmatpush1.bf16.msra.mxu0 %v6463_v47  ;;  %3660 = vmatprep.subr.bf16.mxu1 %v6474_v48  ;;  %v6547_v47 = vld [vmem:[%s8781_s0 + $0x3c] ss:$76 sps:$4 sm:$0xff]  }
  0xce   :  { %4465 = vmatprep.subr.bf16.mxu0 %v6477_v49  ;;  %v6542_v48 = vld [vmem:[%s8781_s0 + $0x10] ss:$76 sps:$4 sm:$0xff]   ;;  %v6545_v49 = vld [vmem:[%s8781_s0 + $0x38] ss:$76 sps:$4 sm:$0xff]  }
  0xcf   :  { %v6646_v38 = vld [vmem:[%s8780_s1 + $0x394] ss:$8 sps:$4 sm:$0xff]  }
  0xd0   :  { %3661 = vmatpush1.bf16.msra.mxu1 %v6472_v50  ;;  %v6548_v50 = vld [vmem:[%s8780_s1 + $0x300] ss:$8 sps:$4 sm:$0xff]   ;;  %v6649_v39 = vld [vmem:[%s8780_s1 + $0x894] ss:$8 sps:$4 sm:$0xff]  }
  0xd1   :  { %4466 = vmatpush1.bf16.msra.mxu0 %v6475_v51  ;;  %3662 = vmatprep.subr.bf16.mxu1 %v6486_v53  ;;  %v6551_v51 = vld [vmem:[%s8780_s1 + $0x800] ss:$8 sps:$4 sm:$0xff]   ;;  %v6558_v53 = vld [vmem:[%s8780_s1 + $0x314] ss:$8 sps:$4 sm:$0xff]  }
  0xd2   :  { %4467 = vmatprep.subr.bf16.mxu0 %v6489_v54  ;;  %3564 = vmatmul.mubr.bf16.gmra.mrb[20].mxu1 %v6443_v52  ;;  %v6554_v52 = vld [vmem:[%s8781_s0 + $0xac] ss:$76 sps:$4 sm:$0xff]   ;;  %v6559_v54 = vld [vmem:[%s8781_s0 + $0xd4] ss:$76 sps:$4 sm:$0xff]  }
  0xd3   :  { %4369 = vmatmul.mubr.bf16.gmra.mrb[20].mxu0 %v6444_v55  ;;  %3573 = vmatprep.mubr.bf16.mxu1 %v6451_v56  ;;  %v6565_v55 = vld [vmem:[%s8780_s1 + $0x814] ss:$8 sps:$4 sm:$0xff]   ;;  %v6556_v56 = vld [vmem:[%s8780_s1 + $0x310] ss:$8 sps:$4 sm:$0xff]  }
  0xd4   :  { %4378 = vmatprep.mubr.bf16.mxu0 %v6453_v57  ;;  %3663 = vmatpush1.bf16.msra.mxu1 %v6484_v58  ;;  %v6563_v57 = vld [vmem:[%s8780_s1 + $0x810] ss:$8 sps:$4 sm:$0xff]   ;;  %v6561_v58 = vld [vmem:[%s8781_s0 + $0xa8] ss:$76 sps:$4 sm:$0xff]  }
  0xd5   :  { %4468 = vmatpush1.bf16.msra.mxu0 %v6487_v59  ;;  %3664 = vmatprep.subr.bf16.mxu1 %v6497_v60  ;;  %v6562_v59 = vld [vmem:[%s8781_s0 + $0xd0] ss:$76 sps:$4 sm:$0xff]   ;;  %v6568_v60 = vld [vmem:[%s8780_s1 + $0x324] ss:$8 sps:$4 sm:$0xff]  }
  0xd6   :  { %4469 = vmatprep.subr.bf16.mxu0 %v6501_v61  ;;  %v6575_v61 = vld [vmem:[%s8780_s1 + $0x824] ss:$8 sps:$4 sm:$0xff]  }
  0xd8   :  { %3665 = vmatpush1.bf16.msra.mxu1 %v6495_v62  ;;  %v6566_v62 = vld [vmem:[%s8780_s1 + $0x320] ss:$8 sps:$4 sm:$0xff]  }
  0xd9   :  { %4470 = vmatpush1.bf16.msra.mxu0 %v6499_v1  ;;  %3666 = vmatprep.subr.bf16.mxu1 %v6504_v3  ;;  %v6573_v1 = vld [vmem:[%s8780_s1 + $0x820] ss:$8 sps:$4 sm:$0xff]   ;;  %v6583_v3 = vld [vmem:[%s8780_s1 + $0x834] ss:$8 sps:$4 sm:$0xff]  }
  0xda   :  { %4471 = vmatprep.subr.bf16.mxu0 %v6513_v4  ;;  %3574 = vmatmul.mubr.bf16.gmra.mrb[24].mxu1 %v6455_v63  ;;  %v6569_v63 = vld [vmem:[%s8781_s0 + $0x144] ss:$76 sps:$4 sm:$0xff]  }
  0xdb   :  { %4379 = vmatmul.mubr.bf16.gmra.mrb[24].mxu0 %v6456_v0  ;;  %3583 = vmatprep.mubr.bf16.mxu1 %v6466_v2  ;;  %v6571_v0 = vld [vmem:[%s8781_s0 + $0x16c] ss:$76 sps:$4 sm:$0xff]   ;;  %v6580_v2 = vld [vmem:[%s8780_s1 + $0x334] ss:$8 sps:$4 sm:$0xff]  }
  0xdc   :  { %4388 = vmatprep.mubr.bf16.mxu0 %v6468_v5  ;;  %3667 = vmatpush1.bf16.msra.mxu1 %v6502_v6  ;;  %v6578_v4 = vld [vmem:[%s8780_s1 + $0x330] ss:$8 sps:$4 sm:$0xff]   ;;  %v6576_v6 = vld [vmem:[%s8781_s0 + $0x140] ss:$76 sps:$4 sm:$0xff]  }
  0xdd   :  { %4472 = vmatpush1.bf16.msra.mxu0 %v6511_v7  ;;  %3668 = vmatprep.subr.bf16.mxu1 %v6516_v8  ;;  %v6581_v5 = vld [vmem:[%s8780_s1 + $0x830] ss:$8 sps:$4 sm:$0xff]   ;;  %v6592_v7 = vld [vmem:[%s8780_s1 + $0x344] ss:$8 sps:$4 sm:$0xff]   ;;  %v6577_v8 = vld [vmem:[%s8781_s0 + $0x168] ss:$76 sps:$4 sm:$0xff]  }
  0xde   :  { %4473 = vmatprep.subr.bf16.mxu0 %v6523_v9  ;;  %v6595_v9 = vld [vmem:[%s8780_s1 + $0x844] ss:$8 sps:$4 sm:$0xff]  }
  0xe0   :  { %3669 = vmatpush1.bf16.msra.mxu1 %v6514_v10  ;;  %v6584_v10 = vld [vmem:[%s8781_s0 + $0x1dc] ss:$76 sps:$4 sm:$0xff]  }
  0xe1   :  { %4474 = vmatpush1.bf16.msra.mxu0 %v6521_v13  ;;  %3670 = vmatprep.subr.bf16.mxu1 %v6528_v14  ;;  %v6593_v13 = vld [vmem:[%s8780_s1 + $0x840] ss:$8 sps:$4 sm:$0xff]   ;;  %v6604_v14 = vld [vmem:[%s8780_s1 + $0x354] ss:$8 sps:$4 sm:$0xff]  }
  0xe2   :  { %4475 = vmatprep.subr.bf16.mxu0 %v6531_v15  ;;  %3584 = vmatmul.mubr.bf16.gmra.mrb[28].mxu1 %v6470_v11  ;;  %v6586_v11 = vld [vmem:[%s8781_s0 + $0x204] ss:$76 sps:$4 sm:$0xff]   ;;  %v6607_v15 = vld [vmem:[%s8780_s1 + $0x854] ss:$8 sps:$4 sm:$0xff]  }
  0xe3   :  { %4389 = vmatmul.mubr.bf16.gmra.mrb[28].mxu0 %v6471_v12  ;;  %3593 = vmatprep.mubr.bf16.mxu1 %v6478_v16  ;;  %v6590_v12 = vld [vmem:[%s8780_s1 + $0x340] ss:$8 sps:$4 sm:$0xff]   ;;  %v6602_v16 = vld [vmem:[%s8780_s1 + $0x350] ss:$8 sps:$4 sm:$0xff]  }
  0xe4   :  { %4398 = vmatprep.mubr.bf16.mxu0 %v6480_v17  ;;  %3671 = vmatpush1.bf16.msra.mxu1 %v6526_v18  ;;  %v6588_v17 = vld [vmem:[%s8781_s0 + $0x1d8] ss:$76 sps:$4 sm:$0xff]   ;;  %v6589_v18 = vld [vmem:[%s8781_s0 + $0x200] ss:$76 sps:$4 sm:$0xff]  }
  0xe5   :  { %4476 = vmatpush1.bf16.msra.mxu0 %v6529_v19  ;;  %3672 = vmatprep.subr.bf16.mxu1 %v6538_v20  ;;  %v6605_v19 = vld [vmem:[%s8780_s1 + $0x850] ss:$8 sps:$4 sm:$0xff]   ;;  %v6612_v20 = vld [vmem:[%s8780_s1 + $0x364] ss:$8 sps:$4 sm:$0xff]  }
  0xe6   :  { %4477 = vmatprep.subr.bf16.mxu0 %v6541_v21  ;;  %v6619_v21 = vld [vmem:[%s8780_s1 + $0x864] ss:$8 sps:$4 sm:$0xff]  }
  0xe8   :  { %3673 = vmatpush1.bf16.msra.mxu1 %v6536_v22  ;;  %v6596_v22 = vld [vmem:[%s8781_s0 + $0x274] ss:$76 sps:$4 sm:$0xff]  }
  0xe9   :  { %4478 = vmatpush1.bf16.msra.mxu0 %v6539_v23  ;;  %3803 = vmatprep.subr.bf16.mxu1 %v6550_v24  ;;  %v6598_v23 = vld [vmem:[%s8781_s0 + $0x29c] ss:$76 sps:$4 sm:$0xff]  }
  0xea   :  { %4608 = vmatprep.subr.bf16.mxu0 %v6553_v25  ;;  %3594 = vmatmul.mubr.bf16.gmra.mrb[32].mxu1 %v6482_v26  ;;  %v6610_v24 = vld [vmem:[%s8780_s1 + $0x360] ss:$8 sps:$4 sm:$0xff]   ;;  %v6622_v26 = vld [vmem:[%s8780_s1 + $0x374] ss:$8 sps:$4 sm:$0xff]  }
  0xeb   :  { %4399 = vmatmul.mubr.bf16.gmra.mrb[32].mxu0 %v6483_v27  ;;  %3603 = vmatprep.mubr.bf16.mxu1 %v6490_v28  ;;  %v6617_v25 = vld [vmem:[%s8780_s1 + $0x860] ss:$8 sps:$4 sm:$0xff]   ;;  %v6631_v27 = vld [vmem:[%s8780_s1 + $0x874] ss:$8 sps:$4 sm:$0xff]   ;;  %v6620_v28 = vld [vmem:[%s8780_s1 + $0x370] ss:$8 sps:$4 sm:$0xff]  }
  0xec   :  { %4408 = vmatprep.mubr.bf16.mxu0 %v6492_v29  ;;  %v6600_v29 = vld [vmem:[%s8781_s0 + $0x270] ss:$76 sps:$4 sm:$0xff]  }
  0xf2   :  { %3604 = vmatmul.mubr.bf16.gmra.mrb[36].mxu1 %v6494_v30  ;;  %v6601_v30 = vld [vmem:[%s8781_s0 + $0x298] ss:$76 sps:$4 sm:$0xff]  }
  0xf3   :  { %4409 = vmatmul.mubr.bf16.gmra.mrb[36].mxu0 %v6498_v31  ;;  %3613 = vmatprep.mubr.bf16.mxu1 %v6505_v32  ;;  %v6629_v31 = vld [vmem:[%s8780_s1 + $0x870] ss:$8 sps:$4 sm:$0xff]   ;;  %v6634_v32 = vld [vmem:[%s8780_s1 + $0x384] ss:$8 sps:$4 sm:$0xff]  }
  0xf4   :  { %4418 = vmatprep.mubr.bf16.mxu0 %v6507_v33  ;;  %v6637_v33 = vld [vmem:[%s8780_s1 + $0x884] ss:$8 sps:$4 sm:$0xff]  }
  0xfa   :  { %3614 = vmatmul.mubr.bf16.gmra.mrb[40].mxu1 %v6509_v34  ;;  %v6608_v34 = vld [vmem:[%s8781_s0 + $0x30c] ss:$76 sps:$4 sm:$0xff]  }
  0xfb   :  { %4419 = vmatmul.mubr.bf16.gmra.mrb[40].mxu0 %v6510_v35  ;;  %3623 = vmatprep.mubr.bf16.mxu1 %v6517_v36  ;;  %v6613_v35 = vld [vmem:[%s8781_s0 + $0x334] ss:$76 sps:$4 sm:$0xff]  }
  0xfc   :  { %4428 = vmatprep.mubr.bf16.mxu0 %v6519_v37  ;;  %v6632_v36 = vld [vmem:[%s8780_s1 + $0x380] ss:$8 sps:$4 sm:$0xff]  }
  0xfd   :  { %v6635_v37 = vld [vmem:[%s8780_s1 + $0x880] ss:$8 sps:$4 sm:$0xff]  }
 0x102   :  { %3624 = vmatmul.mubr.bf16.gmra.mrb[44].mxu1 %v6524_v40  ;;  %v6644_v40 = vld [vmem:[%s8780_s1 + $0x390] ss:$8 sps:$4 sm:$0xff]  }
 0x103   :  { %4429 = vmatmul.mubr.bf16.gmra.mrb[44].mxu0 %v6525_v41  ;;  %3633 = vmatprep.mubr.bf16.mxu1 %v5265_v42  ;;  %v6615_v41 = vld [vmem:[%s8781_s0 + $0x308] ss:$76 sps:$4 sm:$0xff]   ;;  %v6616_v42 = vld [vmem:[%s8781_s0 + $0x330] ss:$76 sps:$4 sm:$0xff]  }
 0x104   :  { %4438 = vmatprep.mubr.bf16.mxu0 %v5275_v43  ;;  %v6647_v43 = vld [vmem:[%s8780_s1 + $0x890] ss:$8 sps:$4 sm:$0xff]  }
 0x10a   :  { %3634 = vmatmul.mubr.bf16.gmra.mrb[48].mxu1 %v5264_v44  ;;  %v6658_v44 = vld [vmem:[%s8780_s1 + $0x3a4] ss:$8 sps:$4 sm:$0xff]  }
 0x10b   :  { %4439 = vmatmul.mubr.bf16.gmra.mrb[48].mxu0 %v5274_v45  ;;  %3674 = vmatprep.mubr.bf16.mxu1 %v6544_v46  ;;  %v6623_v45 = vld [vmem:[%s8781_s0 + $0x3a4] ss:$76 sps:$4 sm:$0xff]   ;;  %v6625_v46 = vld [vmem:[%s8781_s0 + $0x3cc] ss:$76 sps:$4 sm:$0xff]  }
 0x10c   :  { %4479 = vmatprep.mubr.bf16.mxu0 %v6547_v47  ;;  %v6661_v47 = vld [vmem:[%s8780_s1 + $0x8a4] ss:$8 sps:$4 sm:$0xff]  }
 0x112   :  { %3675 = vmatmul.mubr.bf16.vlgmr.msra.gmra.mrb[0].mxu1 %v6542_v48  ;;  %v6656_v48 = vld [vmem:[%s8780_s1 + $0x3a0] ss:$8 sps:$4 sm:$0xff]  }
 0x113   :  { %4480 = vmatmul.mubr.bf16.vlgmr.msra.gmra.mrb[0].mxu0 %v6545_v49  ;;  %3804 = vmatpush1.bf16.msra.mxu1 %v6548_v50  ;;  %v6659_v49 = vld [vmem:[%s8780_s1 + $0x8a0] ss:$8 sps:$4 sm:$0xff]   ;;  %v6669_v50 = vld [vmem:[%s8780_s1 + $0x3b4] ss:$8 sps:$4 sm:$0xff]  }
 0x114   :  { %4609 = vmatpush1.bf16.msra.mxu0 %v6551_v51  ;;  %3684 = vmatprep.mubr.bf16.mxu1 %v6554_v52  ;;  %v6673_v51 = vld [vmem:[%s8780_s1 + $0x8b4] ss:$8 sps:$4 sm:$0xff]   ;;  %v6667_v52 = vld [vmem:[%s8780_s1 + $0x3b0] ss:$8 sps:$4 sm:$0xff]  }
 0x115   :  { %3805 = vmatprep.subr.bf16.mxu1 %v6558_v53  ;;  %4489 = vmatprep.mubr.bf16.mxu0 %v6559_v54  ;;  %v6671_v53 = vld [vmem:[%s8780_s1 + $0x8b0] ss:$8 sps:$4 sm:$0xff]   ;;  %v6627_v54 = vld [vmem:[%s8781_s0 + $0x3a0] ss:$76 sps:$4 sm:$0xff]  }
 0x116   :  { %4610 = vmatprep.subr.bf16.mxu0 %v6565_v55  ;;  %v6628_v55 = vld [vmem:[%s8781_s0 + $0x3c8] ss:$76 sps:$4 sm:$0xff]  }
 0x117   :  { %3806 = vmatpush1.bf16.msra.mxu1 %v6556_v56  ;;  %v6676_v56 = vld [vmem:[%s8780_s1 + $0x3c4] ss:$8 sps:$4 sm:$0xff]  }
 0x118   :  { %4611 = vmatpush1.bf16.msra.mxu0 %v6563_v57  ;;  %3807 = vmatprep.subr.bf16.mxu1 %v6568_v60  ;;  %v6685_v57 = vld [vmem:[%s8780_s1 + $0x8c4] ss:$8 sps:$4 sm:$0xff]   ;;  %v6674_v60 = vld [vmem:[%s8780_s1 + $0x3c0] ss:$8 sps:$4 sm:$0xff]  }
 0x119   :  { %4612 = vmatprep.subr.bf16.mxu0 %v6575_v61  ;;  %v6683_v61 = vld [vmem:[%s8780_s1 + $0x8c0] ss:$8 sps:$4 sm:$0xff]  }
 0x11a   :  { %3685 = vmatmul.mubr.bf16.gmra.mrb[4].mxu1 %v6561_v58  ;;  %v6638_v58 = vld [vmem:[%s8781_s0 + $0x43c] ss:$76 sps:$4 sm:$0xff]  }
 0x11b   :  { %4490 = vmatmul.mubr.bf16.gmra.mrb[4].mxu0 %v6562_v59  ;;  %3808 = vmatpush1.bf16.msra.mxu1 %v6566_v62  ;;  %v6640_v59 = vld [vmem:[%s8781_s0 + $0x464] ss:$76 sps:$4 sm:$0xff]   ;;  %v6688_v62 = vld [vmem:[%s8780_s1 + $0x3d4] ss:$8 sps:$4 sm:$0xff]  }
 0x11c   :  { %3694 = vmatprep.mubr.bf16.mxu1 %v6569_v63  ;;  %4499 = vmatprep.mubr.bf16.mxu0 %v6571_v0  ;;  %v6695_v63 = vld [vmem:[%s8780_s1 + $0x8d4] ss:$8 sps:$4 sm:$0xff]   ;;  %v6686_v0 = vld [vmem:[%s8780_s1 + $0x3d0] ss:$8 sps:$4 sm:$0xff]  }
 0x11d   :  { %4613 = vmatpush1.bf16.msra.mxu0 %v6573_v1  ;;  %3809 = vmatprep.subr.bf16.mxu1 %v6580_v2  ;;  %v6693_v1 = vld [vmem:[%s8780_s1 + $0x8d0] ss:$8 sps:$4 sm:$0xff]   ;;  %v6700_v2 = vld [vmem:[%s8780_s1 + $0x3e4] ss:$8 sps:$4 sm:$0xff]  }
 0x11e   :  { %4614 = vmatprep.subr.bf16.mxu0 %v6583_v3  ;;  %v6642_v3 = vld [vmem:[%s8781_s0 + $0x438] ss:$76 sps:$4 sm:$0xff]  }
 0x11f   :  { %3810 = vmatpush1.bf16.msra.mxu1 %v6578_v4  ;;  %v6643_v4 = vld [vmem:[%s8781_s0 + $0x460] ss:$76 sps:$4 sm:$0xff]  }
 0x120   :  { %3811 = vmatprep.subr.bf16.mxu1 %v6592_v7  ;;  %v6652_v7 = vld [vmem:[%s8781_s0 + $0x4fc] ss:$76 sps:$4 sm:$0xff]  }
 0x121   :  { %4615 = vmatpush1.bf16.msra.mxu0 %v6581_v5  ;;  %v6703_v5 = vld [vmem:[%s8780_s1 + $0x8e4] ss:$8 sps:$4 sm:$0xff]  }
 0x122   :  { %4616 = vmatprep.subr.bf16.mxu0 %v6595_v9  ;;  %3695 = vmatmul.mubr.bf16.gmra.mrb[8].mxu1 %v6576_v6  ;;  %v6650_v6 = vld [vmem:[%s8781_s0 + $0x4d4] ss:$76 sps:$4 sm:$0xff]  }
 0x123   :  { %4500 = vmatmul.mubr.bf16.gmra.mrb[8].mxu0 %v6577_v8  ;;  %3704 = vmatprep.mubr.bf16.mxu1 %v6584_v10  ;;  %v6698_v8 = vld [vmem:[%s8780_s1 + $0x3e0] ss:$8 sps:$4 sm:$0xff]   ;;  %v6710_v10 = vld [vmem:[%s8780_s1 + $0x3f4] ss:$8 sps:$4 sm:$0xff]  }
 0x124   :  { %4509 = vmatprep.mubr.bf16.mxu0 %v6586_v11  ;;  %3812 = vmatpush1.bf16.msra.mxu1 %v6590_v12  ;;  %v6701_v9 = vld [vmem:[%s8780_s1 + $0x8e0] ss:$8 sps:$4 sm:$0xff]   ;;  %v6713_v11 = vld [vmem:[%s8780_s1 + $0x8f4] ss:$8 sps:$4 sm:$0xff]   ;;  %v6708_v12 = vld [vmem:[%s8780_s1 + $0x3f0] ss:$8 sps:$4 sm:$0xff]  }
 0x125   :  { %4617 = vmatpush1.bf16.msra.mxu0 %v6593_v13  ;;  %3813 = vmatprep.subr.bf16.mxu1 %v6604_v14  ;;  %v6711_v13 = vld [vmem:[%s8780_s1 + $0x8f0] ss:$8 sps:$4 sm:$0xff]   ;;  %v6722_v14 = vld [vmem:[%s8780_s1 + $0x404] ss:$8 sps:$4 sm:$0xff]  }
 0x126   :  { %4618 = vmatprep.subr.bf16.mxu0 %v6607_v15  ;;  %v6654_v15 = vld [vmem:[%s8781_s0 + $0x4d0] ss:$76 sps:$4 sm:$0xff]  }
 0x128   :  { %3814 = vmatpush1.bf16.msra.mxu1 %v6602_v16  ;;  %v6655_v16 = vld [vmem:[%s8781_s0 + $0x4f8] ss:$76 sps:$4 sm:$0xff]  }
 0x129   :  { %4619 = vmatpush1.bf16.msra.mxu0 %v6605_v19  ;;  %3815 = vmatprep.subr.bf16.mxu1 %v6612_v20  ;;  %v6664_v19 = vld [vmem:[%s8781_s0 + $0x594] ss:$76 sps:$4 sm:$0xff]  }
 0x12a   :  { %4620 = vmatprep.subr.bf16.mxu0 %v6619_v21  ;;  %3705 = vmatmul.mubr.bf16.gmra.mrb[12].mxu1 %v6588_v17  ;;  %v6725_v17 = vld [vmem:[%s8780_s1 + $0x904] ss:$8 sps:$4 sm:$0xff]   ;;  %v6666_v20 = vld [vmem:[%s8781_s0 + $0x568] ss:$76 sps:$4 sm:$0xff]   ;;  %v6670_v21 = vld [vmem:[%s8781_s0 + $0x590] ss:$76 sps:$4 sm:$0xff]  }
 0x12b   :  { %4510 = vmatmul.mubr.bf16.gmra.mrb[12].mxu0 %v6589_v18  ;;  %3714 = vmatprep.mubr.bf16.mxu1 %v6596_v22  ;;  %v6662_v18 = vld [vmem:[%s8781_s0 + $0x56c] ss:$76 sps:$4 sm:$0xff]   ;;  %v6677_v22 = vld [vmem:[%s8781_s0 + $0x604] ss:$76 sps:$4 sm:$0xff]  }
 0x12c   :  { %4519 = vmatprep.mubr.bf16.mxu0 %v6598_v23  ;;  %3816 = vmatpush1.bf16.msra.mxu1 %v6610_v24  ;;  %v6679_v23 = vld [vmem:[%s8781_s0 + $0x62c] ss:$76 sps:$4 sm:$0xff]  }
 0x12d   :  { %4621 = vmatpush1.bf16.msra.mxu0 %v6617_v25  ;;  %3817 = vmatprep.subr.bf16.mxu1 %v6622_v26  ;;  %v6681_v24 = vld [vmem:[%s8781_s0 + $0x600] ss:$76 sps:$4 sm:$0xff]   ;;  %v6682_v25 = vld [vmem:[%s8781_s0 + $0x628] ss:$76 sps:$4 sm:$0xff]  }
 0x12e   :  { %4622 = vmatprep.subr.bf16.mxu0 %v6631_v27  ;;  %v6689_v26 = vld [vmem:[%s8781_s0 + $0x69c] ss:$76 sps:$4 sm:$0xff]   ;;  %v6691_v27 = vld [vmem:[%s8781_s0 + $0x6c4] ss:$76 sps:$4 sm:$0xff]  }
 0x130   :  { %3818 = vmatpush1.bf16.msra.mxu1 %v6620_v28  ;;  %v257_v28 = vld [vmem:[%s8781_s0 + $0x730] sm:$0xff] }
 0x131   :  { %4623 = vmatpush1.bf16.msra.mxu0 %v6629_v31  ;;  %3819 = vmatprep.subr.bf16.mxu1 %v6634_v32  ;;  %v6697_v31 = vld [vmem:[%s8781_s0 + $0x6c0] ss:$76 sps:$4 sm:$0xff]   ;;  %v5267_v32 = vcombine.high %v257_v28, %v257_v28 }
 0x132   :  { %4624 = vmatprep.subr.bf16.mxu0 %v6637_v33  ;;  %3715 = vmatmul.mubr.bf16.gmra.mrb[16].mxu1 %v6600_v29  ;;  %v262_v29 = vld [vmem:[%s8781_s0 + $0x758] sm:$0xff] }
 0x133   :  { %4520 = vmatmul.mubr.bf16.gmra.mrb[16].mxu0 %v6601_v30  ;;  %3724 = vmatprep.mubr.bf16.mxu1 %v6608_v34  ;;  %v6696_v30 = vld [vmem:[%s8781_s0 + $0x698] ss:$76 sps:$4 sm:$0xff]   ;;  %v5277_v33 = vcombine.high %v262_v29, %v262_v29  ;;  %v5266_v34 = vcombine.low %v257_v28, %v257_v28 }
 0x134   :  { %4529 = vmatprep.mubr.bf16.mxu0 %v6613_v35  ;;  %3820 = vmatpush1.bf16.msra.mxu1 %v6632_v36  ;;  %v5276_v35 = vcombine.low %v262_v29, %v262_v29  ;;  %v6716_v36 = vld [vmem:[%s8781_s0 + $0x1c] ss:$76 sps:$4 sm:$0xff]   ;;  %v6815_v28 = vld [vmem:[%s8780_s1 + $0x4a4] ss:$8 sps:$4 sm:$0xff]  }
 0x135   :  { %4625 = vmatpush1.bf16.msra.mxu0 %v6635_v37  ;;  %3821 = vmatprep.subr.bf16.mxu1 %v6646_v38  ;;  %v6719_v37 = vld [vmem:[%s8781_s0 + $0x44] ss:$76 sps:$4 sm:$0xff]  }
 0x136   :  { %4626 = vmatprep.subr.bf16.mxu0 %v6649_v39  ;;  %v6714_v38 = vld [vmem:[%s8781_s0 + $0x18] ss:$76 sps:$4 sm:$0xff]   ;;  %v6717_v39 = vld [vmem:[%s8781_s0 + $0x40] ss:$76 sps:$4 sm:$0xff]   ;;  %v6778_v29 = vld [vmem:[%s8781_s0 + $0x310] ss:$76 sps:$4 sm:$0xff]  }
 0x138   :  { %3822 = vmatpush1.bf16.msra.mxu1 %v6644_v40  ;;  %v6720_v40 = vld [vmem:[%s8780_s1 + $0x400] ss:$8 sps:$4 sm:$0xff]  }
 0x139   :  { %4627 = vmatpush1.bf16.msra.mxu0 %v6647_v43  ;;  %3823 = vmatprep.subr.bf16.mxu1 %v6658_v44  ;;  %v6730_v43 = vld [vmem:[%s8780_s1 + $0x414] ss:$8 sps:$4 sm:$0xff]  }
 0x13a   :  { %4628 = vmatprep.subr.bf16.mxu0 %v6661_v47  ;;  %3725 = vmatmul.mubr.bf16.gmra.mrb[20].mxu1 %v6615_v41  ;;  %v6723_v41 = vld [vmem:[%s8780_s1 + $0x900] ss:$8 sps:$4 sm:$0xff]   ;;  %v6742_v47 = vld [vmem:[%s8780_s1 + $0x910] ss:$8 sps:$4 sm:$0xff]  }
 0x13b   :  { %4530 = vmatmul.mubr.bf16.gmra.mrb[20].mxu0 %v6616_v42  ;;  %3734 = vmatprep.mubr.bf16.mxu1 %v6623_v45  ;;  %v6726_v42 = vld [vmem:[%s8781_s0 + $0xb4] ss:$76 sps:$4 sm:$0xff]   ;;  %v6731_v44 = vld [vmem:[%s8781_s0 + $0xdc] ss:$76 sps:$4 sm:$0xff]  }
 0x13c   :  { %4539 = vmatprep.mubr.bf16.mxu0 %v6625_v46  ;;  %3824 = vmatpush1.bf16.msra.mxu1 %v6656_v48  ;;  %v6744_v45 = vld [vmem:[%s8780_s1 + $0x914] ss:$8 sps:$4 sm:$0xff]   ;;  %v6728_v46 = vld [vmem:[%s8780_s1 + $0x410] ss:$8 sps:$4 sm:$0xff]   ;;  %v6737_v48 = vld [vmem:[%s8780_s1 + $0x424] ss:$8 sps:$4 sm:$0xff]  }
 0x13d   :  { %4629 = vmatpush1.bf16.msra.mxu0 %v6659_v49  ;;  %3825 = vmatprep.subr.bf16.mxu1 %v6669_v50  ;;  %v6761_v49 = vld [vmem:[%s8780_s1 + $0x924] ss:$8 sps:$4 sm:$0xff]   ;;  %v6733_v50 = vld [vmem:[%s8781_s0 + $0xb0] ss:$76 sps:$4 sm:$0xff]  }
 0x13e   :  { %4630 = vmatprep.subr.bf16.mxu0 %v6673_v51  ;;  %v6734_v51 = vld [vmem:[%s8781_s0 + $0xd8] ss:$76 sps:$4 sm:$0xff]  }
 0x140   :  { %3826 = vmatpush1.bf16.msra.mxu1 %v6667_v52  ;;  %v6735_v52 = vld [vmem:[%s8780_s1 + $0x420] ss:$8 sps:$4 sm:$0xff]  }
 0x141   :  { %4631 = vmatpush1.bf16.msra.mxu0 %v6671_v53  ;;  %3827 = vmatprep.subr.bf16.mxu1 %v6676_v56  ;;  %v6738_v53 = vld [vmem:[%s8781_s0 + $0x14c] ss:$76 sps:$4 sm:$0xff]   ;;  %v6759_v56 = vld [vmem:[%s8780_s1 + $0x920] ss:$8 sps:$4 sm:$0xff]  }
 0x142   :  { %4632 = vmatprep.subr.bf16.mxu0 %v6685_v57  ;;  %3735 = vmatmul.mubr.bf16.gmra.mrb[24].mxu1 %v6627_v54  ;;  %v6740_v54 = vld [vmem:[%s8781_s0 + $0x174] ss:$76 sps:$4 sm:$0xff]  }
 0x143   :  { %4540 = vmatmul.mubr.bf16.gmra.mrb[24].mxu0 %v6628_v55  ;;  %3744 = vmatprep.mubr.bf16.mxu1 %v6638_v58  ;;  %v6749_v55 = vld [vmem:[%s8780_s1 + $0x434] ss:$8 sps:$4 sm:$0xff]   ;;  %v6747_v58 = vld [vmem:[%s8780_s1 + $0x430] ss:$8 sps:$4 sm:$0xff]  }
 0x144   :  { %4549 = vmatprep.mubr.bf16.mxu0 %v6640_v59  ;;  %3828 = vmatpush1.bf16.msra.mxu1 %v6674_v60  ;;  %v6782_v57 = vld [vmem:[%s8780_s1 + $0x934] ss:$8 sps:$4 sm:$0xff]   ;;  %v6758_v59 = vld [vmem:[%s8780_s1 + $0x444] ss:$8 sps:$4 sm:$0xff]   ;;  %v6780_v60 = vld [vmem:[%s8780_s1 + $0x930] ss:$8 sps:$4 sm:$0xff]  }
 0x145   :  { %4633 = vmatpush1.bf16.msra.mxu0 %v6683_v61  ;;  %3829 = vmatprep.subr.bf16.mxu1 %v6688_v62  ;;  %v6745_v61 = vld [vmem:[%s8781_s0 + $0x148] ss:$76 sps:$4 sm:$0xff]   ;;  %v6746_v62 = vld [vmem:[%s8781_s0 + $0x170] ss:$76 sps:$4 sm:$0xff]  }
 0x146   :  { %4634 = vmatprep.subr.bf16.mxu0 %v6695_v63  ;;  %v6750_v63 = vld [vmem:[%s8781_s0 + $0x1e4] ss:$76 sps:$4 sm:$0xff]  }
 0x148   :  { %3830 = vmatpush1.bf16.msra.mxu1 %v6686_v0  ;;  %v6752_v0 = vld [vmem:[%s8781_s0 + $0x20c] ss:$76 sps:$4 sm:$0xff]  }
 0x149   :  { %4635 = vmatpush1.bf16.msra.mxu0 %v6693_v1  ;;  %3831 = vmatprep.subr.bf16.mxu1 %v6700_v2  ;;  %v6756_v1 = vld [vmem:[%s8780_s1 + $0x440] ss:$8 sps:$4 sm:$0xff]   ;;  %v6797_v2 = vld [vmem:[%s8780_s1 + $0x944] ss:$8 sps:$4 sm:$0xff]  }
 0x14a   :  { %4636 = vmatprep.subr.bf16.mxu0 %v6703_v5  ;;  %3745 = vmatmul.mubr.bf16.gmra.mrb[28].mxu1 %v6642_v3  ;;  %v6770_v3 = vld [vmem:[%s8780_s1 + $0x454] ss:$8 sps:$4 sm:$0xff]  }
 0x14b   :  { %4550 = vmatmul.mubr.bf16.gmra.mrb[28].mxu0 %v6643_v4  ;;  %3754 = vmatprep.mubr.bf16.mxu1 %v6650_v6  ;;  %v6795_v4 = vld [vmem:[%s8780_s1 + $0x940] ss:$8 sps:$4 sm:$0xff]   ;;  %v6818_v5 = vld [vmem:[%s8780_s1 + $0x954] ss:$8 sps:$4 sm:$0xff]   ;;  %v6768_v6 = vld [vmem:[%s8780_s1 + $0x450] ss:$8 sps:$4 sm:$0xff]  }
 0x14c   :  { %4559 = vmatprep.mubr.bf16.mxu0 %v6652_v7  ;;  %3832 = vmatpush1.bf16.msra.mxu1 %v6698_v8  ;;  %v6775_v7 = vld [vmem:[%s8780_s1 + $0x464] ss:$8 sps:$4 sm:$0xff]   ;;  %v6816_v8 = vld [vmem:[%s8780_s1 + $0x950] ss:$8 sps:$4 sm:$0xff]  }
 0x14d   :  { %4637 = vmatpush1.bf16.msra.mxu0 %v6701_v9  ;;  %3833 = vmatprep.subr.bf16.mxu1 %v6710_v10  ;;  %v6754_v9 = vld [vmem:[%s8781_s0 + $0x1e0] ss:$76 sps:$4 sm:$0xff]   ;;  %v6755_v10 = vld [vmem:[%s8781_s0 + $0x208] ss:$76 sps:$4 sm:$0xff]  }
 0x14e   :  { %4638 = vmatprep.subr.bf16.mxu0 %v6713_v11  ;;  %v6762_v11 = vld [vmem:[%s8781_s0 + $0x27c] ss:$76 sps:$4 sm:$0xff]  }
 0x150   :  { %3834 = vmatpush1.bf16.msra.mxu1 %v6708_v12  ;;  %v6764_v12 = vld [vmem:[%s8781_s0 + $0x2a4] ss:$76 sps:$4 sm:$0xff]  }
 0x151   :  { %4639 = vmatpush1.bf16.msra.mxu0 %v6711_v13  ;;  %3964 = vmatprep.subr.bf16.mxu1 %v6722_v14  ;;  %v6773_v13 = vld [vmem:[%s8780_s1 + $0x460] ss:$8 sps:$4 sm:$0xff]   ;;  %v6839_v14 = vld [vmem:[%s8780_s1 + $0x964] ss:$8 sps:$4 sm:$0xff]  }
 0x152   :  { %4769 = vmatprep.subr.bf16.mxu0 %v6725_v17  ;;  %3755 = vmatmul.mubr.bf16.gmra.mrb[32].mxu1 %v6654_v15  ;;  %v6785_v15 = vld [vmem:[%s8780_s1 + $0x474] ss:$8 sps:$4 sm:$0xff]  }
 0x153   :  { %4560 = vmatmul.mubr.bf16.gmra.mrb[32].mxu0 %v6655_v16  ;;  %3764 = vmatprep.mubr.bf16.mxu1 %v6662_v18  ;;  %v6837_v16 = vld [vmem:[%s8780_s1 + $0x960] ss:$8 sps:$4 sm:$0xff]   ;;  %v6854_v17 = vld [vmem:[%s8780_s1 + $0x974] ss:$8 sps:$4 sm:$0xff]   ;;  %v6783_v18 = vld [vmem:[%s8780_s1 + $0x470] ss:$8 sps:$4 sm:$0xff]  }
 0x154   :  { %4569 = vmatprep.mubr.bf16.mxu0 %v6664_v19  ;;  %v6794_v19 = vld [vmem:[%s8780_s1 + $0x484] ss:$8 sps:$4 sm:$0xff]  }
 0x15a   :  { %3765 = vmatmul.mubr.bf16.gmra.mrb[36].mxu1 %v6666_v20  ;;  %v6852_v20 = vld [vmem:[%s8780_s1 + $0x970] ss:$8 sps:$4 sm:$0xff]  }
 0x15b   :  { %4570 = vmatmul.mubr.bf16.gmra.mrb[36].mxu0 %v6670_v21  ;;  %3774 = vmatprep.mubr.bf16.mxu1 %v6677_v22  ;;  %v6766_v21 = vld [vmem:[%s8781_s0 + $0x278] ss:$76 sps:$4 sm:$0xff]   ;;  %v6767_v22 = vld [vmem:[%s8781_s0 + $0x2a0] ss:$76 sps:$4 sm:$0xff]  }
 0x15c   :  { %4579 = vmatprep.mubr.bf16.mxu0 %v6679_v23  ;;  %v6771_v23 = vld [vmem:[%s8781_s0 + $0x314] ss:$76 sps:$4 sm:$0xff]  }
 0x162   :  { %3775 = vmatmul.mubr.bf16.gmra.mrb[40].mxu1 %v6681_v24  ;;  %v6776_v24 = vld [vmem:[%s8781_s0 + $0x33c] ss:$76 sps:$4 sm:$0xff]  }
 0x163   :  { %4580 = vmatmul.mubr.bf16.gmra.mrb[40].mxu0 %v6682_v25  ;;  %3784 = vmatprep.mubr.bf16.mxu1 %v6689_v26  ;;  %v6792_v25 = vld [vmem:[%s8780_s1 + $0x480] ss:$8 sps:$4 sm:$0xff]   ;;  %v6806_v26 = vld [vmem:[%s8780_s1 + $0x494] ss:$8 sps:$4 sm:$0xff]  }
 0x164   :  { %4589 = vmatprep.mubr.bf16.mxu0 %v6691_v27  ;;  %v6804_v27 = vld [vmem:[%s8780_s1 + $0x490] ss:$8 sps:$4 sm:$0xff]  }
 0x16a   :  { %3785 = vmatmul.mubr.bf16.gmra.mrb[44].mxu1 %v6696_v30  ;;  %v6779_v30 = vld [vmem:[%s8781_s0 + $0x338] ss:$76 sps:$4 sm:$0xff]  }
 0x16b   :  { %4590 = vmatmul.mubr.bf16.gmra.mrb[44].mxu0 %v6697_v31  ;;  %3794 = vmatprep.mubr.bf16.mxu1 %v5267_v32  ;;  %v6786_v31 = vld [vmem:[%s8781_s0 + $0x3ac] ss:$76 sps:$4 sm:$0xff]   ;;  %v6788_v32 = vld [vmem:[%s8781_s0 + $0x3d4] ss:$76 sps:$4 sm:$0xff]  }
 0x16c   :  { %4599 = vmatprep.mubr.bf16.mxu0 %v5277_v33  ;;  %v6813_v33 = vld [vmem:[%s8780_s1 + $0x4a0] ss:$8 sps:$4 sm:$0xff]  }
 0x172   :  { %3795 = vmatmul.mubr.bf16.gmra.mrb[48].mxu1 %v5266_v34  ;;  %v6826_v34 = vld [vmem:[%s8780_s1 + $0x4b4] ss:$8 sps:$4 sm:$0xff]  }
 0x173   :  { %4600 = vmatmul.mubr.bf16.gmra.mrb[48].mxu0 %v5276_v35  ;;  %3835 = vmatprep.mubr.bf16.mxu1 %v6716_v36  ;;  %v6824_v35 = vld [vmem:[%s8780_s1 + $0x4b0] ss:$8 sps:$4 sm:$0xff]   ;;  %v6830_v36 = vld [vmem:[%s8780_s1 + $0x4c4] ss:$8 sps:$4 sm:$0xff]  }
 0x174   :  { %4640 = vmatprep.mubr.bf16.mxu0 %v6719_v37  ;;  %v6790_v37 = vld [vmem:[%s8781_s0 + $0x3a8] ss:$76 sps:$4 sm:$0xff]  }
 0x17a   :  { %3836 = vmatmul.mubr.bf16.vlgmr.msra.gmra.mrb[0].mxu1 %v6714_v38  ;;  %v6791_v38 = vld [vmem:[%s8781_s0 + $0x3d0] ss:$76 sps:$4 sm:$0xff]  }
 0x17b   :  { %4641 = vmatmul.mubr.bf16.vlgmr.msra.gmra.mrb[0].mxu0 %v6717_v39  ;;  %3965 = vmatpush1.bf16.msra.mxu1 %v6720_v40  ;;  %v6798_v39 = vld [vmem:[%s8781_s0 + $0x444] ss:$76 sps:$4 sm:$0xff]   ;;  %v6800_v40 = vld [vmem:[%s8781_s0 + $0x46c] ss:$76 sps:$4 sm:$0xff]  }
 0x17c   :  { %4770 = vmatpush1.bf16.msra.mxu0 %v6723_v41  ;;  %3845 = vmatprep.mubr.bf16.mxu1 %v6726_v42  ;;  %v6828_v41 = vld [vmem:[%s8780_s1 + $0x4c0] ss:$8 sps:$4 sm:$0xff]   ;;  %v6842_v42 = vld [vmem:[%s8780_s1 + $0x4d4] ss:$8 sps:$4 sm:$0xff]  }
 0x17d   :  { %3966 = vmatprep.subr.bf16.mxu1 %v6730_v43  ;;  %4650 = vmatprep.mubr.bf16.mxu0 %v6731_v44  ;;  %v6840_v43 = vld [vmem:[%s8780_s1 + $0x4d0] ss:$8 sps:$4 sm:$0xff]   ;;  %v6851_v44 = vld [vmem:[%s8780_s1 + $0x4e4] ss:$8 sps:$4 sm:$0xff]  }
 0x17e   :  { %4771 = vmatprep.subr.bf16.mxu0 %v6744_v45  ;;  %v6802_v45 = vld [vmem:[%s8781_s0 + $0x440] ss:$76 sps:$4 sm:$0xff]  }
 0x17f   :  { %3967 = vmatpush1.bf16.msra.mxu1 %v6728_v46  ;;  %v6803_v46 = vld [vmem:[%s8781_s0 + $0x468] ss:$76 sps:$4 sm:$0xff]  }
 0x180   :  { %4772 = vmatpush1.bf16.msra.mxu0 %v6742_v47  ;;  %3968 = vmatprep.subr.bf16.mxu1 %v6737_v48  ;;  %v6807_v47 = vld [vmem:[%s8781_s0 + $0x4dc] ss:$76 sps:$4 sm:$0xff]   ;;  %v6809_v48 = vld [vmem:[%s8781_s0 + $0x504] ss:$76 sps:$4 sm:$0xff]  }
 0x181   :  { %4773 = vmatprep.subr.bf16.mxu0 %v6761_v49  ;;  %v6849_v49 = vld [vmem:[%s8780_s1 + $0x4e0] ss:$8 sps:$4 sm:$0xff]  }
 0x182   :  { %3846 = vmatmul.mubr.bf16.gmra.mrb[4].mxu1 %v6733_v50  ;;  %v6861_v50 = vld [vmem:[%s8780_s1 + $0x4f4] ss:$8 sps:$4 sm:$0xff]  }
 0x183   :  { %4651 = vmatmul.mubr.bf16.gmra.mrb[4].mxu0 %v6734_v51  ;;  %3969 = vmatpush1.bf16.msra.mxu1 %v6735_v52  ;;  %v6859_v51 = vld [vmem:[%s8780_s1 + $0x4f0] ss:$8 sps:$4 sm:$0xff]  }
 0x184   :  { %3855 = vmatprep.mubr.bf16.mxu1 %v6738_v53  ;;  %4660 = vmatprep.mubr.bf16.mxu0 %v6740_v54  ;;  %v6811_v52 = vld [vmem:[%s8781_s0 + $0x4d8] ss:$76 sps:$4 sm:$0xff]   ;;  %v6812_v53 = vld [vmem:[%s8781_s0 + $0x500] ss:$76 sps:$4 sm:$0xff]  }
 0x185   :  { %3970 = vmatprep.subr.bf16.mxu1 %v6749_v55  ;;  %4774 = vmatpush1.bf16.msra.mxu0 %v6759_v56  ;;  %v6819_v54 = vld [vmem:[%s8781_s0 + $0x574] ss:$76 sps:$4 sm:$0xff]   ;;  %v6821_v55 = vld [vmem:[%s8781_s0 + $0x59c] ss:$76 sps:$4 sm:$0xff]  }
 0x186   :  { %4775 = vmatprep.subr.bf16.mxu0 %v6782_v57  ;;  %v6823_v56 = vld [vmem:[%s8781_s0 + $0x570] ss:$76 sps:$4 sm:$0xff]   ;;  %v6827_v57 = vld [vmem:[%s8781_s0 + $0x598] ss:$76 sps:$4 sm:$0xff]  }
 0x187   :  { %3971 = vmatpush1.bf16.msra.mxu1 %v6747_v58  ;;  %v6831_v58 = vld [vmem:[%s8781_s0 + $0x60c] ss:$76 sps:$4 sm:$0xff]  }
 0x188   :  { %3972 = vmatprep.subr.bf16.mxu1 %v6758_v59  ;;  %v6833_v59 = vld [vmem:[%s8781_s0 + $0x634] ss:$76 sps:$4 sm:$0xff]  }
 0x189   :  { %4776 = vmatpush1.bf16.msra.mxu0 %v6780_v60  ;;  %v6835_v60 = vld [vmem:[%s8781_s0 + $0x608] ss:$76 sps:$4 sm:$0xff]  }
 0x18a   :  { %3856 = vmatmul.mubr.bf16.gmra.mrb[8].mxu1 %v6745_v61  ;;  %4777 = vmatprep.subr.bf16.mxu0 %v6797_v2  ;;  %v6836_v61 = vld [vmem:[%s8781_s0 + $0x630] ss:$76 sps:$4 sm:$0xff]   ;;  %v6847_v2 = vld [vmem:[%s8781_s0 + $0x6a0] ss:$76 sps:$4 sm:$0xff]  }
 0x18b   :  { %4661 = vmatmul.mubr.bf16.gmra.mrb[8].mxu0 %v6746_v62  ;;  %3865 = vmatprep.mubr.bf16.mxu1 %v6750_v63  ;;  %v6843_v62 = vld [vmem:[%s8781_s0 + $0x6a4] ss:$76 sps:$4 sm:$0xff]   ;;  %v6845_v63 = vld [vmem:[%s8781_s0 + $0x6cc] ss:$76 sps:$4 sm:$0xff]  }
 0x18c   :  { %4670 = vmatprep.mubr.bf16.mxu0 %v6752_v0  ;;  %3973 = vmatpush1.bf16.msra.mxu1 %v6756_v1  ;;  %v258_v0 = vld [vmem:[%s8781_s0 + $0x738] sm:$0xff]  ;;  %v263_v1 = vld [vmem:[%s8781_s0 + $0x760] sm:$0xff] }
 0x18d   :  { %3974 = vmatprep.subr.bf16.mxu1 %v6770_v3  ;;  %4778 = vmatpush1.bf16.msra.mxu0 %v6795_v4  ;;  %v6848_v3 = vld [vmem:[%s8781_s0 + $0x6c8] ss:$76 sps:$4 sm:$0xff]   ;;  %v5269_v4 = vcombine.high %v258_v0, %v258_v0 }
 0x18e   :  { %4779 = vmatprep.subr.bf16.mxu0 %v6818_v5  ;;  %v5279_v5 = vcombine.high %v263_v1, %v263_v1 }
 0x190   :  { %3975 = vmatpush1.bf16.msra.mxu1 %v6768_v6  ;;  %v5268_v6 = vcombine.low %v258_v0, %v258_v0 }
 0x191   :  { %3976 = vmatprep.subr.bf16.mxu1 %v6775_v7  ;;  %4780 = vmatpush1.bf16.msra.mxu0 %v6816_v8  ;;  %v5278_v7 = vcombine.low %v263_v1, %v263_v1  ;;  %v6864_v8 = vld [vmem:[%s8781_s0 + $0x24] ss:$76 sps:$4 sm:$0xff]  }
 0x192   :  { %3866 = vmatmul.mubr.bf16.gmra.mrb[12].mxu1 %v6754_v9  ;;  %4781 = vmatprep.subr.bf16.mxu0 %v6839_v14  ;;  %v6913_v9 = vmov 0   ;;  %v6869_v14 = vld [vmem:[%s8781_s0 + $0xe0] ss:$76 sps:$4 sm:$0xff]  }
 0x193   :  { %4671 = vmatmul.mubr.bf16.gmra.mrb[12].mxu0 %v6755_v10  ;;  %3875 = vmatprep.mubr.bf16.mxu1 %v6762_v11  ;;  %v6862_v10 = vld [vmem:[%s8781_s0 + $0x20] ss:$76 sps:$4 sm:$0xff]   ;;  %v6865_v11 = vld [vmem:[%s8781_s0 + $0x48] ss:$76 sps:$4 sm:$0xff]  }
 0x194   :  { %4680 = vmatprep.mubr.bf16.mxu0 %v6764_v12  ;;  %3977 = vmatpush1.bf16.msra.mxu1 %v6773_v13  ;;  %v6866_v12 = vld [vmem:[%s8781_s0 + $0xbc] ss:$76 sps:$4 sm:$0xff]   ;;  %v6868_v13 = vld [vmem:[%s8781_s0 + $0xb8] ss:$76 sps:$4 sm:$0xff]  }
 0x195   :  { %3978 = vmatprep.subr.bf16.mxu1 %v6785_v15  ;;  %4782 = vmatpush1.bf16.msra.mxu0 %v6837_v16  ;;  %v6870_v15 = vld [vmem:[%s8781_s0 + $0x154] ss:$76 sps:$4 sm:$0xff]   ;;  %v6872_v16 = vld [vmem:[%s8781_s0 + $0x150] ss:$76 sps:$4 sm:$0xff]  }
 0x196   :  { %4783 = vmatprep.subr.bf16.mxu0 %v6854_v17  ;;  %v6873_v17 = vld [vmem:[%s8781_s0 + $0x178] ss:$76 sps:$4 sm:$0xff]  }
 0x198   :  { %3979 = vmatpush1.bf16.msra.mxu1 %v6783_v18  ;;  %v6874_v18 = vld [vmem:[%s8781_s0 + $0x1ec] ss:$76 sps:$4 sm:$0xff]  }
 0x199   :  { %3980 = vmatprep.subr.bf16.mxu1 %v6794_v19  ;;  %4784 = vmatpush1.bf16.msra.mxu0 %v6852_v20  ;;  %v6876_v19 = vld [vmem:[%s8781_s0 + $0x1e8] ss:$76 sps:$4 sm:$0xff]   ;;  %v6877_v20 = vld [vmem:[%s8781_s0 + $0x210] ss:$76 sps:$4 sm:$0xff]  }
 0x19a   :  { %3876 = vmatmul.mubr.bf16.gmra.mrb[16].mxu1 %v6766_v21  ;;  %v6878_v21 = vld [vmem:[%s8781_s0 + $0x284] ss:$76 sps:$4 sm:$0xff]  }
 0x19b   :  { %4681 = vmatmul.mubr.bf16.gmra.mrb[16].mxu0 %v6767_v22  ;;  %3885 = vmatprep.mubr.bf16.mxu1 %v6771_v23  ;;  %v6880_v22 = vld [vmem:[%s8781_s0 + $0x280] ss:$76 sps:$4 sm:$0xff]   ;;  %v6881_v23 = vld [vmem:[%s8781_s0 + $0x2a8] ss:$76 sps:$4 sm:$0xff]  }
 0x19c   :  { %4690 = vmatprep.mubr.bf16.mxu0 %v6776_v24  ;;  %3981 = vmatpush1.bf16.msra.mxu1 %v6792_v25  ;;  %v6882_v24 = vld [vmem:[%s8781_s0 + $0x31c] ss:$76 sps:$4 sm:$0xff]   ;;  %v6884_v25 = vld [vmem:[%s8781_s0 + $0x318] ss:$76 sps:$4 sm:$0xff]  }
 0x19d   :  { %3982 = vmatprep.subr.bf16.mxu1 %v6806_v26  ;;  %v6885_v26 = vld [vmem:[%s8781_s0 + $0x340] ss:$76 sps:$4 sm:$0xff]  }
 0x1a0   :  { %3983 = vmatpush1.bf16.msra.mxu1 %v6804_v27  ;;  %v6886_v27 = vld [vmem:[%s8781_s0 + $0x3b4] ss:$76 sps:$4 sm:$0xff]  }
 0x1a1   :  { %3984 = vmatprep.subr.bf16.mxu1 %v6815_v28  ;;  %v6888_v28 = vld [vmem:[%s8781_s0 + $0x3b0] ss:$76 sps:$4 sm:$0xff]  }
 0x1a2   :  { %3886 = vmatmul.mubr.bf16.gmra.mrb[20].mxu1 %v6778_v29  ;;  %v6889_v29 = vld [vmem:[%s8781_s0 + $0x3d8] ss:$76 sps:$4 sm:$0xff]  }
 0x1a3   :  { %4691 = vmatmul.mubr.bf16.gmra.mrb[20].mxu0 %v6779_v30  ;;  %3895 = vmatprep.mubr.bf16.mxu1 %v6786_v31  ;;  %v6890_v30 = vld [vmem:[%s8781_s0 + $0x44c] ss:$76 sps:$4 sm:$0xff]   ;;  %v6892_v31 = vld [vmem:[%s8781_s0 + $0x448] ss:$76 sps:$4 sm:$0xff]  }
 0x1a4   :  { %4700 = vmatprep.mubr.bf16.mxu0 %v6788_v32  ;;  %3985 = vmatpush1.bf16.msra.mxu1 %v6813_v33  ;;  %v6893_v32 = vld [vmem:[%s8781_s0 + $0x470] ss:$76 sps:$4 sm:$0xff]  }
 0x1a5   :  { %3986 = vmatprep.subr.bf16.mxu1 %v6826_v34  ;;  %v6894_v33 = vld [vmem:[%s8781_s0 + $0x4e4] ss:$76 sps:$4 sm:$0xff]   ;;  %v6896_v34 = vld [vmem:[%s8781_s0 + $0x4e0] ss:$76 sps:$4 sm:$0xff]  }
 0x1a8   :  { %3987 = vmatpush1.bf16.msra.mxu1 %v6824_v35  ;;  %v6897_v35 = vld [vmem:[%s8781_s0 + $0x508] ss:$76 sps:$4 sm:$0xff]  }
 0x1a9   :  { %3988 = vmatprep.subr.bf16.mxu1 %v6830_v36  ;;  %v6898_v36 = vld [vmem:[%s8781_s0 + $0x57c] ss:$76 sps:$4 sm:$0xff]  }
 0x1aa   :  { %3896 = vmatmul.mubr.bf16.gmra.mrb[24].mxu1 %v6790_v37  ;;  %v6900_v37 = vld [vmem:[%s8781_s0 + $0x578] ss:$76 sps:$4 sm:$0xff]  }
 0x1ab   :  { %4701 = vmatmul.mubr.bf16.gmra.mrb[24].mxu0 %v6791_v38  ;;  %3905 = vmatprep.mubr.bf16.mxu1 %v6798_v39  ;;  %v6901_v38 = vld [vmem:[%s8781_s0 + $0x5a0] ss:$76 sps:$4 sm:$0xff]  }
 0x1ac   :  { %4710 = vmatprep.mubr.bf16.mxu0 %v6800_v40  ;;  %3989 = vmatpush1.bf16.msra.mxu1 %v6828_v41  ;;  %v6902_v39 = vld [vmem:[%s8781_s0 + $0x614] ss:$76 sps:$4 sm:$0xff]   ;;  %v6904_v40 = vld [vmem:[%s8781_s0 + $0x610] ss:$76 sps:$4 sm:$0xff]   ;;  %v6905_v41 = vld [vmem:[%s8781_s0 + $0x638] ss:$76 sps:$4 sm:$0xff]  }
 0x1ad   :  { %3990 = vmatprep.subr.bf16.mxu1 %v6842_v42  ;;  %v6906_v42 = vld [vmem:[%s8781_s0 + $0x6ac] ss:$76 sps:$4 sm:$0xff]  }
 0x1b0   :  { %3991 = vmatpush1.bf16.msra.mxu1 %v6840_v43  ;;  %v259_v43 = vld [vmem:[%s8781_s0 + $0x740] sm:$0xff] }
 0x1b1   :  { %3992 = vmatprep.subr.bf16.mxu1 %v6851_v44  ;;  %v6908_v44 = vld [vmem:[%s8781_s0 + $0x6a8] ss:$76 sps:$4 sm:$0xff]  }
 0x1b2   :  { %3906 = vmatmul.mubr.bf16.gmra.mrb[28].mxu1 %v6802_v45  ;;  %v6909_v45 = vld [vmem:[%s8781_s0 + $0x6d0] ss:$76 sps:$4 sm:$0xff]  }
 0x1b3   :  { %4711 = vmatmul.mubr.bf16.gmra.mrb[28].mxu0 %v6803_v46  ;;  %3915 = vmatprep.mubr.bf16.mxu1 %v6807_v47  ;;  %v5271_v46 = vcombine.high %v259_v43, %v259_v43  ;;  %v5270_v47 = vcombine.low %v259_v43, %v259_v43 }
 0x1b4   :  { %4720 = vmatprep.mubr.bf16.mxu0 %v6809_v48  ;;  %3993 = vmatpush1.bf16.msra.mxu1 %v6849_v49  ;;  %v6912_v48 = vld [vmem:[%s8781_s0 + $0x768] ss:$0 sps:$4 sm:$0xff]   ;;  %v571_v49 = vlaneseq }
 0x1b5   :  { %3994 = vmatprep.subr.bf16.mxu1 %v6861_v50 }
 0x1b6   :  { %v572_v50 = vshrl.u32 %v571_v49, 7 }
 0x1b8   :  { %3995 = vmatpush1.bf16.msra.mxu1 %v6859_v51  ;;  %v573_v51 = vsub.s32 0, %v572_v50 }
 0x1ba   :  { %3916 = vmatmul.mubr.bf16.gmra.mrb[32].mxu1 %v6811_v52  ;;  %v569_v52 = vld [vmem:[%s8782_s2] sm:$0x3] }
 0x1bb   :  { %4721 = vmatmul.mubr.bf16.gmra.mrb[32].mxu0 %v6812_v53  ;;  %3925 = vmatprep.mubr.bf16.mxu1 %v6819_v54  ;;  %v577_v53 = vsub.s32 1, %v572_v50  ;;  %v8576_v54 = vrot.slane %v569_v52, %v573_v51 }
 0x1bc   :  { %4730 = vmatprep.mubr.bf16.mxu0 %v6821_v55 }
 0x1bd   :  { %v8578_v55 = vrot.slane %v569_v52, %v577_v53 }
 0x1c2   :  { %3926 = vmatmul.mubr.bf16.gmra.mrb[36].mxu1 %v6823_v56 }
 0x1c3   :  { %4731 = vmatmul.mubr.bf16.gmra.mrb[36].mxu0 %v6827_v57  ;;  %3935 = vmatprep.mubr.bf16.mxu1 %v6831_v58 }
 0x1c4   :  { %4740 = vmatprep.mubr.bf16.mxu0 %v6833_v59 }
 0x1ca   :  { %3936 = vmatmul.mubr.bf16.gmra.mrb[40].mxu1 %v6835_v60 }
 0x1cb   :  { %4741 = vmatmul.mubr.bf16.gmra.mrb[40].mxu0 %v6836_v61  ;;  %3945 = vmatprep.mubr.bf16.mxu1 %v6843_v62 }
 0x1cc   :  { %4750 = vmatprep.mubr.bf16.mxu0 %v6845_v63 }
 0x1d2   :  { %3946 = vmatmul.mubr.bf16.gmra.mrb[44].mxu1 %v6847_v2 }
 0x1d3   :  { %4751 = vmatmul.mubr.bf16.gmra.mrb[44].mxu0 %v6848_v3  ;;  %3955 = vmatprep.mubr.bf16.mxu1 %v5269_v4 }
 0x1d4   :  { %4760 = vmatprep.mubr.bf16.mxu0 %v5279_v5 }
 0x1da   :  { %3956 = vmatmul.mubr.bf16.gmra.mrb[48].mxu1 %v5268_v6 }
 0x1db   :  { %4761 = vmatmul.mubr.bf16.gmra.mrb[48].mxu0 %v5278_v7  ;;  %3996 = vmatprep.mubr.bf16.mxu1 %v6864_v8 }
 0x1dc   :  { %4801 = vmatprep.mubr.bf16.mxu0 %v6913_v9 }
 0x1e2   :  { %3997 = vmatmul.mubr.bf16.vlgmr.msra.gmra.mrb[0].mxu1 %v6862_v10 }
 0x1e3   :  { %4802 = vmatmul.mubr.bf16.vlgmr.msra.gmra.mrb[0].mxu0 %v6865_v11  ;;  %4006 = vmatprep.mubr.bf16.mxu1 %v6866_v12 }
 0x1e4   :  { %4811 = vmatprep.mubr.bf16.mxu0 %v6913_v9 }
 0x1ea   :  { %4007 = vmatmul.mubr.bf16.gmra.mrb[4].mxu1 %v6868_v13 }
 0x1eb   :  { %4812 = vmatmul.mubr.bf16.gmra.mrb[4].mxu0 %v6869_v14  ;;  %4016 = vmatprep.mubr.bf16.mxu1 %v6870_v15 }
 0x1ec   :  { %4821 = vmatprep.mubr.bf16.mxu0 %v6913_v9 }
 0x1f2   :  { %4017 = vmatmul.mubr.bf16.gmra.mrb[8].mxu1 %v6872_v16 }
 0x1f3   :  { %4822 = vmatmul.mubr.bf16.gmra.mrb[8].mxu0 %v6873_v17  ;;  %4026 = vmatprep.mubr.bf16.mxu1 %v6874_v18 }
 0x1f4   :  { %4831 = vmatprep.mubr.bf16.mxu0 %v6913_v9 }
 0x1fa   :  { %4027 = vmatmul.mubr.bf16.gmra.mrb[12].mxu1 %v6876_v19 }
 0x1fb   :  { %4832 = vmatmul.mubr.bf16.gmra.mrb[12].mxu0 %v6877_v20  ;;  %4036 = vmatprep.mubr.bf16.mxu1 %v6878_v21 }
 0x1fc   :  { %4841 = vmatprep.mubr.bf16.mxu0 %v6913_v9 }
 0x202   :  { %4037 = vmatmul.mubr.bf16.gmra.mrb[16].mxu1 %v6880_v22 }
 0x203   :  { %4842 = vmatmul.mubr.bf16.gmra.mrb[16].mxu0 %v6881_v23  ;;  %4046 = vmatprep.mubr.bf16.mxu1 %v6882_v24 }
 0x204   :  { %4851 = vmatprep.mubr.bf16.mxu0 %v6913_v9 }
 0x20a   :  { %4047 = vmatmul.mubr.bf16.gmra.mrb[20].mxu1 %v6884_v25 }
 0x20b   :  { %4852 = vmatmul.mubr.bf16.gmra.mrb[20].mxu0 %v6885_v26  ;;  %4056 = vmatprep.mubr.bf16.mxu1 %v6886_v27 }
 0x20c   :  { %4861 = vmatprep.mubr.bf16.mxu0 %v6913_v9 }
 0x212   :  { %4057 = vmatmul.mubr.bf16.gmra.mrb[24].mxu1 %v6888_v28 }
 0x213   :  { %4862 = vmatmul.mubr.bf16.gmra.mrb[24].mxu0 %v6889_v29  ;;  %4066 = vmatprep.mubr.bf16.mxu1 %v6890_v30 }
 0x214   :  { %4871 = vmatprep.mubr.bf16.mxu0 %v6913_v9 }
 0x21a   :  { %4067 = vmatmul.mubr.bf16.gmra.mrb[28].mxu1 %v6892_v31 }
 0x21b   :  { %4872 = vmatmul.mubr.bf16.gmra.mrb[28].mxu0 %v6893_v32  ;;  %4076 = vmatprep.mubr.bf16.mxu1 %v6894_v33 }
 0x21c   :  { %4881 = vmatprep.mubr.bf16.mxu0 %v6913_v9 }
 0x222   :  { %4077 = vmatmul.mubr.bf16.gmra.mrb[32].mxu1 %v6896_v34 }
 0x223   :  { %4882 = vmatmul.mubr.bf16.gmra.mrb[32].mxu0 %v6897_v35  ;;  %4086 = vmatprep.mubr.bf16.mxu1 %v6898_v36 }
 0x224   :  { %4891 = vmatprep.mubr.bf16.mxu0 %v6913_v9 }
 0x22a   :  { %4087 = vmatmul.mubr.bf16.gmra.mrb[36].mxu1 %v6900_v37 }
 0x22b   :  { %4892 = vmatmul.mubr.bf16.gmra.mrb[36].mxu0 %v6901_v38  ;;  %4096 = vmatprep.mubr.bf16.mxu1 %v6902_v39 }
 0x22c   :  { %4901 = vmatprep.mubr.bf16.mxu0 %v6913_v9 }
 0x232   :  { %4097 = vmatmul.mubr.bf16.gmra.mrb[40].mxu1 %v6904_v40 }
 0x233   :  { %4902 = vmatmul.mubr.bf16.gmra.mrb[40].mxu0 %v6905_v41  ;;  %4106 = vmatprep.mubr.bf16.mxu1 %v6906_v42 }
 0x234   :  { %4911 = vmatprep.mubr.bf16.mxu0 %v6913_v9 }
 0x23a   :  { %4107 = vmatmul.mubr.bf16.gmra.mrb[44].mxu1 %v6908_v44 }
 0x23b   :  { %4912 = vmatmul.mubr.bf16.gmra.mrb[44].mxu0 %v6909_v45  ;;  %4116 = vmatprep.mubr.bf16.mxu1 %v5271_v46 }
 0x23c   :  { %4921 = vmatprep.mubr.bf16.mxu0 %v6913_v9 }
 0x242   :  { %4117 = vmatmul.mubr.bf16.gmra.mrb[48].mxu1 %v5270_v47 }
 0x243   :  { %4922 = vmatmul.mubr.bf16.gmra.mrb[48].mxu0 %v6912_v48 }
 0x2b5   :  { %v3998_v56 = vpop.f32.mrb[0].mxu1 }
 0x2b6   :  { %v4803_v57 = vpop.f32.mrb[0].mxu0  ;;  %v5585_v58 = vadd.f32 %v3998_v56, %v8576_v54  ;;  %v4000_v59 = vpop.f32.mrb[1].mxu1 }
 0x2b7   :  { %v4805_v60 = vpop.f32.mrb[1].mxu0  ;;  %v5587_v61 = vadd.f32 %v4000_v59, %v8578_v55  ;;  %v4002_v62 = vpop.f32.mrb[2].mxu1 }
 0x2b8   :  { %v4807_v63 = vpop.f32.mrb[2].mxu0  ;;  %v5586_v0 = vadd.f32 %v5585_v58, %v4803_v57  ;;  %v5589_v1 = vadd.f32 %v4002_v62, %v8576_v54  ;;  %v4004_v2 = vpop.f32.mrb[3].mxu1 }
 0x2b9   :  { %v4809_v3 = vpop.f32.mrb[3].mxu0  ;;  %v5588_v4 = vadd.f32 %v5587_v61, %v4805_v60  ;;  %v5591_v5 = vadd.f32 %v4004_v2, %v8578_v55 }
 0x2ba   :  { %v4930_v6 = vmax.f32 %v5586_v0, 0.0  ;;  %v5590_v7 = vadd.f32 %v5589_v1, %v4807_v63 }
 0x2bb   :  { %v4931_v8 = vmax.f32 %v5588_v4, 0.0  ;;  %v5592_v9 = vadd.f32 %v5591_v5, %v4809_v3 }
 0x2bc   :  { %4980 = vst [vmem:[%s8783_s3] sm:$0xff] %v4930_v6  ;;  %v4932_v10 = vmax.f32 %v5590_v7, 0.0 }
 0x2bd   :  { %4981 = vst [vmem:[%s8783_s3 + $0x8] sm:$0xff] %v4931_v8  ;;  %v4933_v11 = vmax.f32 %v5592_v9, 0.0  ;;  %v4008_v12 = vpop.f32.mrb[4].mxu1 }
 0x2be   :  { %v4813_v13 = vpop.f32.mrb[4].mxu0  ;;  %4982 = vst [vmem:[%s8783_s3 + $0x10] sm:$0xff] %v4932_v10  ;;  %v5593_v14 = vadd.f32 %v4008_v12, %v8576_v54  ;;  %v4010_v15 = vpop.f32.mrb[5].mxu1 }
 0x2bf   :  { %v4815_v16 = vpop.f32.mrb[5].mxu0  ;;  %4983 = vst [vmem:[%s8783_s3 + $0x18] sm:$0xff] %v4933_v11  ;;  %v5595_v17 = vadd.f32 %v4010_v15, %v8578_v55  ;;  %v4012_v18 = vpop.f32.mrb[6].mxu1 }
 0x2c0   :  { %v4817_v19 = vpop.f32.mrb[6].mxu0  ;;  %v5594_v20 = vadd.f32 %v5593_v14, %v4813_v13  ;;  %v5597_v21 = vadd.f32 %v4012_v18, %v8576_v54  ;;  %v4014_v22 = vpop.f32.mrb[7].mxu1 }
 0x2c1   :  { %v4819_v23 = vpop.f32.mrb[7].mxu0  ;;  %v5596_v24 = vadd.f32 %v5595_v17, %v4815_v16  ;;  %v5599_v25 = vadd.f32 %v4014_v22, %v8578_v55 }
 0x2c2   :  { %v4934_v26 = vmax.f32 %v5594_v20, 0.0  ;;  %v5598_v27 = vadd.f32 %v5597_v21, %v4817_v19 }
 0x2c3   :  { %v4935_v28 = vmax.f32 %v5596_v24, 0.0  ;;  %v5600_v29 = vadd.f32 %v5599_v25, %v4819_v23 }
 0x2c4   :  { %4984 = vst [vmem:[%s8783_s3 + $0x20] sm:$0xff] %v4934_v26  ;;  %v4936_v30 = vmax.f32 %v5598_v27, 0.0 }
 0x2c5   :  { %4985 = vst [vmem:[%s8783_s3 + $0x28] sm:$0xff] %v4935_v28  ;;  %v4937_v31 = vmax.f32 %v5600_v29, 0.0  ;;  %v4018_v32 = vpop.f32.mrb[8].mxu1 }
 0x2c6   :  { %v4823_v33 = vpop.f32.mrb[8].mxu0  ;;  %4986 = vst [vmem:[%s8783_s3 + $0x30] sm:$0xff] %v4936_v30  ;;  %v5601_v34 = vadd.f32 %v4018_v32, %v8576_v54  ;;  %v4020_v35 = vpop.f32.mrb[9].mxu1 }
 0x2c7   :  { %v4825_v36 = vpop.f32.mrb[9].mxu0  ;;  %4987 = vst [vmem:[%s8783_s3 + $0x38] sm:$0xff] %v4937_v31  ;;  %v5603_v37 = vadd.f32 %v4020_v35, %v8578_v55  ;;  %v4022_v38 = vpop.f32.mrb[10].mxu1 }
 0x2c8   :  { %v4827_v39 = vpop.f32.mrb[10].mxu0  ;;  %v5602_v40 = vadd.f32 %v5601_v34, %v4823_v33  ;;  %v5605_v41 = vadd.f32 %v4022_v38, %v8576_v54  ;;  %v4024_v42 = vpop.f32.mrb[11].mxu1 }
 0x2c9   :  { %v4829_v43 = vpop.f32.mrb[11].mxu0  ;;  %v5604_v44 = vadd.f32 %v5603_v37, %v4825_v36  ;;  %v5607_v45 = vadd.f32 %v4024_v42, %v8578_v55 }
 0x2ca   :  { %v4938_v46 = vmax.f32 %v5602_v40, 0.0  ;;  %v5606_v47 = vadd.f32 %v5605_v41, %v4827_v39 }
 0x2cb   :  { %v4939_v48 = vmax.f32 %v5604_v44, 0.0  ;;  %v5608_v49 = vadd.f32 %v5607_v45, %v4829_v43 }
 0x2cc   :  { %4988 = vst [vmem:[%s8783_s3 + $0x40] sm:$0xff] %v4938_v46  ;;  %v4940_v50 = vmax.f32 %v5606_v47, 0.0 }
 0x2cd   :  { %4989 = vst [vmem:[%s8783_s3 + $0x48] sm:$0xff] %v4939_v48  ;;  %v4941_v51 = vmax.f32 %v5608_v49, 0.0  ;;  %v4028_v52 = vpop.f32.mrb[12].mxu1 }
 0x2ce   :  { %v4833_v53 = vpop.f32.mrb[12].mxu0  ;;  %4990 = vst [vmem:[%s8783_s3 + $0x50] sm:$0xff] %v4940_v50  ;;  %v5609_v56 = vadd.f32 %v4028_v52, %v8576_v54  ;;  %v4030_v57 = vpop.f32.mrb[13].mxu1 }
 0x2cf   :  { %v4835_v58 = vpop.f32.mrb[13].mxu0  ;;  %4991 = vst [vmem:[%s8783_s3 + $0x58] sm:$0xff] %v4941_v51  ;;  %v5611_v59 = vadd.f32 %v4030_v57, %v8578_v55  ;;  %v4032_v60 = vpop.f32.mrb[14].mxu1 }
 0x2d0   :  { %v4837_v61 = vpop.f32.mrb[14].mxu0  ;;  %v5610_v62 = vadd.f32 %v5609_v56, %v4833_v53  ;;  %v5613_v63 = vadd.f32 %v4032_v60, %v8576_v54  ;;  %v4034_v0 = vpop.f32.mrb[15].mxu1 }
 0x2d1   :  { %v4839_v1 = vpop.f32.mrb[15].mxu0  ;;  %v5612_v2 = vadd.f32 %v5611_v59, %v4835_v58  ;;  %v5615_v3 = vadd.f32 %v4034_v0, %v8578_v55 }
 0x2d2   :  { %v4942_v4 = vmax.f32 %v5610_v62, 0.0  ;;  %v5614_v5 = vadd.f32 %v5613_v63, %v4837_v61 }
 0x2d3   :  { %v4943_v6 = vmax.f32 %v5612_v2, 0.0  ;;  %v5616_v7 = vadd.f32 %v5615_v3, %v4839_v1 }
 0x2d4   :  { %4992 = vst [vmem:[%s8783_s3 + $0x60] sm:$0xff] %v4942_v4  ;;  %v4944_v8 = vmax.f32 %v5614_v5, 0.0 }
 0x2d5   :  { %4993 = vst [vmem:[%s8783_s3 + $0x68] sm:$0xff] %v4943_v6  ;;  %v4945_v9 = vmax.f32 %v5616_v7, 0.0  ;;  %v4038_v10 = vpop.f32.mrb[16].mxu1 }
 0x2d6   :  { %v4843_v11 = vpop.f32.mrb[16].mxu0  ;;  %4994 = vst [vmem:[%s8783_s3 + $0x70] sm:$0xff] %v4944_v8  ;;  %v5617_v12 = vadd.f32 %v4038_v10, %v8576_v54  ;;  %v4040_v13 = vpop.f32.mrb[17].mxu1 }
 0x2d7   :  { %v4845_v14 = vpop.f32.mrb[17].mxu0  ;;  %4995 = vst [vmem:[%s8783_s3 + $0x78] sm:$0xff] %v4945_v9  ;;  %v5619_v15 = vadd.f32 %v4040_v13, %v8578_v55  ;;  %v4042_v16 = vpop.f32.mrb[18].mxu1 }
 0x2d8   :  { %v4847_v17 = vpop.f32.mrb[18].mxu0  ;;  %v5618_v18 = vadd.f32 %v5617_v12, %v4843_v11  ;;  %v5621_v19 = vadd.f32 %v4042_v16, %v8576_v54  ;;  %v4044_v20 = vpop.f32.mrb[19].mxu1 }
 0x2d9   :  { %v4849_v21 = vpop.f32.mrb[19].mxu0  ;;  %v5620_v22 = vadd.f32 %v5619_v15, %v4845_v14  ;;  %v5623_v23 = vadd.f32 %v4044_v20, %v8578_v55 }
 0x2da   :  { %v4946_v24 = vmax.f32 %v5618_v18, 0.0  ;;  %v5622_v25 = vadd.f32 %v5621_v19, %v4847_v17 }
 0x2db   :  { %v4947_v26 = vmax.f32 %v5620_v22, 0.0  ;;  %v5624_v27 = vadd.f32 %v5623_v23, %v4849_v21 }
 0x2dc   :  { %4996 = vst [vmem:[%s8783_s3 + $0x80] sm:$0xff] %v4946_v24  ;;  %v4948_v28 = vmax.f32 %v5622_v25, 0.0 }
 0x2dd   :  { %4997 = vst [vmem:[%s8783_s3 + $0x88] sm:$0xff] %v4947_v26  ;;  %v4949_v29 = vmax.f32 %v5624_v27, 0.0  ;;  %v4048_v30 = vpop.f32.mrb[20].mxu1 }
 0x2de   :  { %v4853_v31 = vpop.f32.mrb[20].mxu0  ;;  %4998 = vst [vmem:[%s8783_s3 + $0x90] sm:$0xff] %v4948_v28  ;;  %v5625_v32 = vadd.f32 %v4048_v30, %v8576_v54  ;;  %v4050_v33 = vpop.f32.mrb[21].mxu1 }
 0x2df   :  { %v4855_v34 = vpop.f32.mrb[21].mxu0  ;;  %4999 = vst [vmem:[%s8783_s3 + $0x98] sm:$0xff] %v4949_v29  ;;  %v5627_v35 = vadd.f32 %v4050_v33, %v8578_v55  ;;  %v4052_v36 = vpop.f32.mrb[22].mxu1 }
 0x2e0   :  { %v4857_v37 = vpop.f32.mrb[22].mxu0  ;;  %v5626_v38 = vadd.f32 %v5625_v32, %v4853_v31  ;;  %v5629_v39 = vadd.f32 %v4052_v36, %v8576_v54  ;;  %v4054_v40 = vpop.f32.mrb[23].mxu1 }
 0x2e1   :  { %v4859_v41 = vpop.f32.mrb[23].mxu0  ;;  %v5628_v42 = vadd.f32 %v5627_v35, %v4855_v34  ;;  %v5631_v43 = vadd.f32 %v4054_v40, %v8578_v55 }
 0x2e2   :  { %v4950_v44 = vmax.f32 %v5626_v38, 0.0  ;;  %v5630_v45 = vadd.f32 %v5629_v39, %v4857_v37 }
 0x2e3   :  { %v4951_v46 = vmax.f32 %v5628_v42, 0.0  ;;  %v5632_v47 = vadd.f32 %v5631_v43, %v4859_v41 }
 0x2e4   :  { %5000 = vst [vmem:[%s8783_s3 + $0xa0] sm:$0xff] %v4950_v44  ;;  %v4952_v48 = vmax.f32 %v5630_v45, 0.0 }
 0x2e5   :  { %5001 = vst [vmem:[%s8783_s3 + $0xa8] sm:$0xff] %v4951_v46  ;;  %v4953_v49 = vmax.f32 %v5632_v47, 0.0  ;;  %v4058_v50 = vpop.f32.mrb[24].mxu1 }
 0x2e6   :  { %v4863_v51 = vpop.f32.mrb[24].mxu0  ;;  %5002 = vst [vmem:[%s8783_s3 + $0xb0] sm:$0xff] %v4952_v48  ;;  %v5633_v52 = vadd.f32 %v4058_v50, %v8576_v54  ;;  %v4060_v53 = vpop.f32.mrb[25].mxu1 }
 0x2e7   :  { %v4865_v56 = vpop.f32.mrb[25].mxu0  ;;  %5003 = vst [vmem:[%s8783_s3 + $0xb8] sm:$0xff] %v4953_v49  ;;  %v5635_v57 = vadd.f32 %v4060_v53, %v8578_v55  ;;  %v4062_v58 = vpop.f32.mrb[26].mxu1 }
 0x2e8   :  { %v4867_v59 = vpop.f32.mrb[26].mxu0  ;;  %v5634_v60 = vadd.f32 %v5633_v52, %v4863_v51  ;;  %v5637_v61 = vadd.f32 %v4062_v58, %v8576_v54  ;;  %v4064_v62 = vpop.f32.mrb[27].mxu1 }
 0x2e9   :  { %v4869_v63 = vpop.f32.mrb[27].mxu0  ;;  %v5636_v0 = vadd.f32 %v5635_v57, %v4865_v56  ;;  %v5639_v1 = vadd.f32 %v4064_v62, %v8578_v55 }
 0x2ea   :  { %v4954_v2 = vmax.f32 %v5634_v60, 0.0  ;;  %v5638_v3 = vadd.f32 %v5637_v61, %v4867_v59 }
 0x2eb   :  { %v4955_v4 = vmax.f32 %v5636_v0, 0.0  ;;  %v5640_v5 = vadd.f32 %v5639_v1, %v4869_v63 }
 0x2ec   :  { %5004 = vst [vmem:[%s8783_s3 + $0xc0] sm:$0xff] %v4954_v2  ;;  %v4956_v6 = vmax.f32 %v5638_v3, 0.0 }
 0x2ed   :  { %5005 = vst [vmem:[%s8783_s3 + $0xc8] sm:$0xff] %v4955_v4  ;;  %v4957_v7 = vmax.f32 %v5640_v5, 0.0  ;;  %v4068_v8 = vpop.f32.mrb[28].mxu1 }
 0x2ee   :  { %v4873_v9 = vpop.f32.mrb[28].mxu0  ;;  %5006 = vst [vmem:[%s8783_s3 + $0xd0] sm:$0xff] %v4956_v6  ;;  %v5641_v10 = vadd.f32 %v4068_v8, %v8576_v54  ;;  %v4070_v11 = vpop.f32.mrb[29].mxu1 }
 0x2ef   :  { %v4875_v12 = vpop.f32.mrb[29].mxu0  ;;  %5007 = vst [vmem:[%s8783_s3 + $0xd8] sm:$0xff] %v4957_v7  ;;  %v5643_v13 = vadd.f32 %v4070_v11, %v8578_v55  ;;  %v4072_v14 = vpop.f32.mrb[30].mxu1 }
 0x2f0   :  { %v4877_v15 = vpop.f32.mrb[30].mxu0  ;;  %v5642_v16 = vadd.f32 %v5641_v10, %v4873_v9  ;;  %v5645_v17 = vadd.f32 %v4072_v14, %v8576_v54  ;;  %v4074_v18 = vpop.f32.mrb[31].mxu1 }
 0x2f1   :  { %v4879_v19 = vpop.f32.mrb[31].mxu0  ;;  %v5644_v20 = vadd.f32 %v5643_v13, %v4875_v12  ;;  %v5647_v21 = vadd.f32 %v4074_v18, %v8578_v55 }
 0x2f2   :  { %v4958_v22 = vmax.f32 %v5642_v16, 0.0  ;;  %v5646_v23 = vadd.f32 %v5645_v17, %v4877_v15 }
 0x2f3   :  { %v4959_v24 = vmax.f32 %v5644_v20, 0.0  ;;  %v5648_v25 = vadd.f32 %v5647_v21, %v4879_v19 }
 0x2f4   :  { %5008 = vst [vmem:[%s8783_s3 + $0xe0] sm:$0xff] %v4958_v22  ;;  %v4960_v26 = vmax.f32 %v5646_v23, 0.0 }
 0x2f5   :  { %5009 = vst [vmem:[%s8783_s3 + $0xe8] sm:$0xff] %v4959_v24  ;;  %v4961_v27 = vmax.f32 %v5648_v25, 0.0  ;;  %v4078_v28 = vpop.f32.mrb[32].mxu1 }
 0x2f6   :  { %v4883_v29 = vpop.f32.mrb[32].mxu0  ;;  %5010 = vst [vmem:[%s8783_s3 + $0xf0] sm:$0xff] %v4960_v26  ;;  %v5649_v30 = vadd.f32 %v4078_v28, %v8576_v54  ;;  %v4080_v31 = vpop.f32.mrb[33].mxu1 }
 0x2f7   :  { %v4885_v32 = vpop.f32.mrb[33].mxu0  ;;  %5011 = vst [vmem:[%s8783_s3 + $0xf8] sm:$0xff] %v4961_v27  ;;  %v5651_v33 = vadd.f32 %v4080_v31, %v8578_v55  ;;  %v4082_v34 = vpop.f32.mrb[34].mxu1 }
 0x2f8   :  { %v4887_v35 = vpop.f32.mrb[34].mxu0  ;;  %v5650_v36 = vadd.f32 %v5649_v30, %v4883_v29  ;;  %v5653_v37 = vadd.f32 %v4082_v34, %v8576_v54  ;;  %v4084_v38 = vpop.f32.mrb[35].mxu1 }
 0x2f9   :  { %v4889_v39 = vpop.f32.mrb[35].mxu0  ;;  %v5652_v40 = vadd.f32 %v5651_v33, %v4885_v32  ;;  %v5655_v41 = vadd.f32 %v4084_v38, %v8578_v55 }
 0x2fa   :  { %v4962_v42 = vmax.f32 %v5650_v36, 0.0  ;;  %v5654_v43 = vadd.f32 %v5653_v37, %v4887_v35 }
 0x2fb   :  { %v4963_v44 = vmax.f32 %v5652_v40, 0.0  ;;  %v5656_v45 = vadd.f32 %v5655_v41, %v4889_v39 }
 0x2fc   :  { %5012 = vst [vmem:[%s8783_s3 + $0x100] sm:$0xff] %v4962_v42  ;;  %v4964_v46 = vmax.f32 %v5654_v43, 0.0 }
 0x2fd   :  { %5013 = vst [vmem:[%s8783_s3 + $0x108] sm:$0xff] %v4963_v44  ;;  %v4965_v47 = vmax.f32 %v5656_v45, 0.0  ;;  %v4088_v48 = vpop.f32.mrb[36].mxu1 }
 0x2fe   :  { %v4893_v49 = vpop.f32.mrb[36].mxu0  ;;  %5014 = vst [vmem:[%s8783_s3 + $0x110] sm:$0xff] %v4964_v46  ;;  %v5657_v50 = vadd.f32 %v4088_v48, %v8576_v54  ;;  %v4090_v51 = vpop.f32.mrb[37].mxu1 }
 0x2ff   :  { %v4895_v52 = vpop.f32.mrb[37].mxu0  ;;  %5015 = vst [vmem:[%s8783_s3 + $0x118] sm:$0xff] %v4965_v47  ;;  %v5659_v53 = vadd.f32 %v4090_v51, %v8578_v55  ;;  %v4092_v56 = vpop.f32.mrb[38].mxu1 }
 0x300   :  { %v4897_v57 = vpop.f32.mrb[38].mxu0  ;;  %v5658_v58 = vadd.f32 %v5657_v50, %v4893_v49  ;;  %v5661_v59 = vadd.f32 %v4092_v56, %v8576_v54  ;;  %v4094_v60 = vpop.f32.mrb[39].mxu1 }
 0x301   :  { %v4899_v61 = vpop.f32.mrb[39].mxu0  ;;  %v5660_v62 = vadd.f32 %v5659_v53, %v4895_v52  ;;  %v5663_v63 = vadd.f32 %v4094_v60, %v8578_v55 }
 0x302   :  { %v4966_v0 = vmax.f32 %v5658_v58, 0.0  ;;  %v5662_v1 = vadd.f32 %v5661_v59, %v4897_v57 }
 0x303   :  { %v4967_v2 = vmax.f32 %v5660_v62, 0.0  ;;  %v5664_v3 = vadd.f32 %v5663_v63, %v4899_v61 }
 0x304   :  { %5016 = vst [vmem:[%s8783_s3 + $0x120] sm:$0xff] %v4966_v0  ;;  %v4968_v4 = vmax.f32 %v5662_v1, 0.0 }
 0x305   :  { %5017 = vst [vmem:[%s8783_s3 + $0x128] sm:$0xff] %v4967_v2  ;;  %v4969_v5 = vmax.f32 %v5664_v3, 0.0  ;;  %v4098_v6 = vpop.f32.mrb[40].mxu1 }
 0x306   :  { %v4903_v7 = vpop.f32.mrb[40].mxu0  ;;  %5018 = vst [vmem:[%s8783_s3 + $0x130] sm:$0xff] %v4968_v4  ;;  %v5665_v8 = vadd.f32 %v4098_v6, %v8576_v54  ;;  %v4100_v9 = vpop.f32.mrb[41].mxu1 }
 0x307   :  { %v4905_v10 = vpop.f32.mrb[41].mxu0  ;;  %5019 = vst [vmem:[%s8783_s3 + $0x138] sm:$0xff] %v4969_v5  ;;  %v5667_v11 = vadd.f32 %v4100_v9, %v8578_v55  ;;  %v4102_v12 = vpop.f32.mrb[42].mxu1 }
 0x308   :  { %v4907_v13 = vpop.f32.mrb[42].mxu0  ;;  %v5666_v14 = vadd.f32 %v5665_v8, %v4903_v7  ;;  %v5669_v15 = vadd.f32 %v4102_v12, %v8576_v54  ;;  %v4104_v16 = vpop.f32.mrb[43].mxu1 }
 0x309   :  { %v4909_v17 = vpop.f32.mrb[43].mxu0  ;;  %v5668_v18 = vadd.f32 %v5667_v11, %v4905_v10  ;;  %v5671_v19 = vadd.f32 %v4104_v16, %v8578_v55 }
 0x30a   :  { %v4970_v20 = vmax.f32 %v5666_v14, 0.0  ;;  %v5670_v21 = vadd.f32 %v5669_v15, %v4907_v13 }
 0x30b   :  { %v4971_v22 = vmax.f32 %v5668_v18, 0.0  ;;  %v5672_v23 = vadd.f32 %v5671_v19, %v4909_v17 }
 0x30c   :  { %5020 = vst [vmem:[%s8783_s3 + $0x140] sm:$0xff] %v4970_v20  ;;  %v4972_v24 = vmax.f32 %v5670_v21, 0.0 }
 0x30d   :  { %5021 = vst [vmem:[%s8783_s3 + $0x148] sm:$0xff] %v4971_v22  ;;  %v4973_v25 = vmax.f32 %v5672_v23, 0.0  ;;  %v4108_v26 = vpop.f32.mrb[44].mxu1 }
 0x30e   :  { %v4913_v27 = vpop.f32.mrb[44].mxu0  ;;  %5022 = vst [vmem:[%s8783_s3 + $0x150] sm:$0xff] %v4972_v24  ;;  %v5673_v28 = vadd.f32 %v4108_v26, %v8576_v54  ;;  %v4110_v29 = vpop.f32.mrb[45].mxu1 }
 0x30f   :  { %v4915_v30 = vpop.f32.mrb[45].mxu0  ;;  %5023 = vst [vmem:[%s8783_s3 + $0x158] sm:$0xff] %v4973_v25  ;;  %v5675_v31 = vadd.f32 %v4110_v29, %v8578_v55  ;;  %v4112_v32 = vpop.f32.mrb[46].mxu1 }
 0x310   :  { %v4917_v33 = vpop.f32.mrb[46].mxu0  ;;  %v5674_v34 = vadd.f32 %v5673_v28, %v4913_v27  ;;  %v5677_v35 = vadd.f32 %v4112_v32, %v8576_v54  ;;  %v4114_v36 = vpop.f32.mrb[47].mxu1 }
 0x311   :  { %v4919_v37 = vpop.f32.mrb[47].mxu0  ;;  %v5676_v38 = vadd.f32 %v5675_v31, %v4915_v30  ;;  %v5679_v39 = vadd.f32 %v4114_v36, %v8578_v55 }
 0x312   :  { %v4974_v40 = vmax.f32 %v5674_v34, 0.0  ;;  %v5678_v41 = vadd.f32 %v5677_v35, %v4917_v33 }
 0x313   :  { %v4975_v42 = vmax.f32 %v5676_v38, 0.0  ;;  %v5680_v43 = vadd.f32 %v5679_v39, %v4919_v37 }
 0x314   :  { %5024 = vst [vmem:[%s8783_s3 + $0x160] sm:$0xff] %v4974_v40  ;;  %v4976_v44 = vmax.f32 %v5678_v41, 0.0 }
 0x315   :  { %5025 = vst [vmem:[%s8783_s3 + $0x168] sm:$0xff] %v4975_v42  ;;  %v4977_v45 = vmax.f32 %v5680_v43, 0.0  ;;  %v4118_v46 = vpop.f32.mrb[48].mxu1 }
 0x316   :  { %v4923_v47 = vpop.f32.mrb[48].mxu0  ;;  %5026 = vst [vmem:[%s8783_s3 + $0x170] sm:$0xff] %v4976_v44  ;;  %v5681_v48 = vadd.f32 %v4118_v46, %v8576_v54  ;;  %v4120_v49 = vpop.f32.mrb[49].mxu1 }
 0x317   :  { %v4925_v50 = vpop.f32.mrb[49].mxu0  ;;  %5027 = vst [vmem:[%s8783_s3 + $0x178] sm:$0xff] %v4977_v45  ;;  %v5683_v51 = vadd.f32 %v4120_v49, %v8578_v55  ;;  %v4122_v52 = vpop.f32.mrb[50].mxu1 }
 0x318   :  { %v4927_v53 = vpop.f32.mrb[50].mxu0  ;;  %v5682_v56 = vadd.f32 %v5681_v48, %v4923_v47  ;;  %v4123_v57 = vpop.f32.mrb[51].mxu1 }
 0x319   :  { %v4928_v58 = vpop.f32.mrb[51].mxu0  ;;  %v5684_v59 = vadd.f32 %v5683_v51, %v4925_v50 }
 0x31a   :  { %v4978_v60 = vmax.f32 %v5682_v56, 0.0 }
 0x31b   :  { %v4979_v61 = vmax.f32 %v5684_v59, 0.0 }
 0x31c   :  { %5028 = vst [vmem:[%s8783_s3 + $0x180] sm:$0xff] %v4978_v60 }
 0x31d   :  { %5029 = vst [vmem:[%s8783_s3 + $0x188] sm:$0xff] %v4979_v61 }

// kernel: siamese_forward.5
= control target key start
LH: loop header
LB: loop body
LE: loop exit
PB: predicated region body
PF: predicated region fallthrough
CT: control target
= control target key end

     0   :  { %s10834_s1 = inlined_call_operand.vmem [shape: bf16[2304,384], index: 1, kind: input, shape index: {}]   ;;  %s10835_s0 = inlined_call_operand.vmem [shape: bf16[8,2304], index: 0, kind: input, shape index: {}]   ;;  %s10836_s2 = inlined_call_operand.vmem [shape: f32[1,384], index: 2, kind: input, shape index: {}]   ;;  %s10837_s3 = inlined_call_operand.vmem [shape: bf16[384,1024], index: 3, kind: input, shape index: {}]   ;;  %s10838_s5 = inlined_call_operand.vmem [shape: bf16[1024,256], index: 5, kind: input, shape index: {}]   ;;  %s10839_s4 = inlined_call_operand.vmem [shape: f32[1,1024], index: 4, kind: input, shape index: {}]   ;;  %s10840_s7 = inlined_call_operand.vmem [shape: bf16[256,128], index: 7, kind: input, shape index: {}]   ;;  %s10841_s6 = inlined_call_operand.vmem [shape: f32[1,256], index: 6, kind: input, shape index: {}]   ;;  %s10842_s8 = inlined_call_operand.vmem [shape: f32[1,128], index: 8, kind: input, shape index: {}]   ;;  %s10843_s9 = inlined_call_operand.vmem [shape: f32[8,128], index: 9, kind: output, shape index: {}]  }
   0x1   :  { %v7481_v0 = vld [vmem:[%s10834_s1 + $0x4] ss:$12 sps:$4 sm:$0xff]   ;;  %v7483_v1 = vld [vmem:[%s10834_s1 + $0xc8] ss:$12 sps:$4 sm:$0xff]   ;;  %v7484_v2 = vld [vmem:[%s10834_s1] ss:$12 sps:$4 sm:$0xff]  }
   0x2   :  { %3002 = vmatprep.subr.bf16.mxu0 %v7481_v0  ;;  %7190 = vmatprep.subr.bf16.mxu1 %v7483_v1  ;;  %v7485_v3 = vld [vmem:[%s10834_s1 + $0x8] ss:$12 sps:$4 sm:$0xff]   ;;  %v7488_v5 = vld [vmem:[%s10834_s1 + $0xe0] ss:$12 sps:$4 sm:$0xff]   ;;  %v7489_v6 = vld [vmem:[%s10834_s1 + $0x18] ss:$12 sps:$4 sm:$0xff]  }
   0x3   :  { %3003 = vmatpush1.bf16.msra.mxu0 %v7484_v2  ;;  %v7486_v4 = vld [vmem:[%s10834_s1 + $0x1c] ss:$12 sps:$4 sm:$0xff]   ;;  %7191 = vmatpush3.bf16.msra.mxu1 %v7485_v3  ;;  %v7490_v7 = vld [vmem:[%s10834_s1 + $0x20] ss:$12 sps:$4 sm:$0xff]   ;;  %v7493_v9 = vld [vmem:[%s10834_s1 + $0xf8] ss:$12 sps:$4 sm:$0xff]  }
   0x4   :  { %3004 = vmatprep.subr.bf16.mxu0 %v7486_v4  ;;  %7192 = vmatprep.subr.bf16.mxu1 %v7488_v5  ;;  %v7491_v8 = vld [vmem:[%s10834_s1 + $0x34] ss:$12 sps:$4 sm:$0xff]   ;;  %v7494_v10 = vld [vmem:[%s10834_s1 + $0x30] ss:$12 sps:$4 sm:$0xff]   ;;  %v7495_v11 = vld [vmem:[%s10834_s1 + $0x38] ss:$12 sps:$4 sm:$0xff]  }
   0x5   :  { %v7496_v12 = vld [vmem:[%s10834_s1 + $0x4c] ss:$12 sps:$4 sm:$0xff]   ;;  %v7498_v13 = vld [vmem:[%s10834_s1 + $0x110] ss:$12 sps:$4 sm:$0xff]   ;;  %v7499_v14 = vld [vmem:[%s10834_s1 + $0x48] ss:$12 sps:$4 sm:$0xff]  }
   0x6   :  { %v7500_v15 = vld [vmem:[%s10834_s1 + $0x50] ss:$12 sps:$4 sm:$0xff]   ;;  %v7503_v17 = vld [vmem:[%s10834_s1 + $0x128] ss:$12 sps:$4 sm:$0xff]   ;;  %v7504_v18 = vld [vmem:[%s10834_s1 + $0x60] ss:$12 sps:$4 sm:$0xff]  }
   0x7   :  { %3005 = vmatpush1.bf16.msra.mxu0 %v7489_v6  ;;  %7193 = vmatpush3.bf16.msra.mxu1 %v7490_v7  ;;  %v7501_v16 = vld [vmem:[%s10834_s1 + $0x64] ss:$12 sps:$4 sm:$0xff]   ;;  %v7505_v19 = vld [vmem:[%s10834_s1 + $0x68] ss:$12 sps:$4 sm:$0xff]   ;;  %v7508_v21 = vld [vmem:[%s10834_s1 + $0x140] ss:$12 sps:$4 sm:$0xff]  }
   0x8   :  { %3006 = vmatprep.subr.bf16.mxu0 %v7491_v8  ;;  %7194 = vmatprep.subr.bf16.mxu1 %v7493_v9  ;;  %v7506_v20 = vld [vmem:[%s10834_s1 + $0x7c] ss:$12 sps:$4 sm:$0xff]   ;;  %v7509_v22 = vld [vmem:[%s10834_s1 + $0x78] ss:$12 sps:$4 sm:$0xff]   ;;  %v7510_v23 = vld [vmem:[%s10834_s1 + $0x80] ss:$12 sps:$4 sm:$0xff]  }
   0x9   :  { %v7511_v24 = vld [vmem:[%s10834_s1 + $0x94] ss:$12 sps:$4 sm:$0xff]   ;;  %v7513_v25 = vld [vmem:[%s10834_s1 + $0x158] ss:$12 sps:$4 sm:$0xff]   ;;  %v7514_v26 = vld [vmem:[%s10834_s1 + $0x90] ss:$12 sps:$4 sm:$0xff]  }
   0xa   :  { %v7515_v27 = vld [vmem:[%s10834_s1 + $0x98] ss:$12 sps:$4 sm:$0xff]   ;;  %v7518_v29 = vld [vmem:[%s10834_s1 + $0x170] ss:$12 sps:$4 sm:$0xff]   ;;  %v7519_v30 = vld [vmem:[%s10834_s1 + $0xa8] ss:$12 sps:$4 sm:$0xff]  }
   0xb   :  { %3007 = vmatpush1.bf16.msra.mxu0 %v7494_v10  ;;  %7195 = vmatpush3.bf16.msra.mxu1 %v7495_v11  ;;  %v7516_v28 = vld [vmem:[%s10834_s1 + $0xac] ss:$12 sps:$4 sm:$0xff]   ;;  %v33_v31 = vld [vmem:[%s10835_s0] sm:$0xff]  ;;  %v7520_v32 = vld [vmem:[%s10834_s1 + $0xb0] ss:$12 sps:$4 sm:$0xff]  }
   0xc   :  { %3008 = vmatprep.subr.bf16.mxu0 %v7496_v12  ;;  %7196 = vmatprep.subr.bf16.mxu1 %v7498_v13  ;;  %v6404_v33 = vcombine.high %v33_v31, %v33_v31  ;;  %v7521_v34 = vld [vmem:[%s10834_s1 + $0xc4] ss:$12 sps:$4 sm:$0xff]   ;;  %v7525_v35 = vld [vmem:[%s10834_s1 + $0x248] ss:$12 sps:$4 sm:$0xff]   ;;  %v8440_v36 = vcombine.low %v33_v31, %v33_v31  ;;  %v7526_v37 = vld [vmem:[%s10834_s1 + $0xc0] ss:$12 sps:$4 sm:$0xff]  }
   0xd   :  { %v7527_v38 = vld [vmem:[%s10834_s1 + $0x188] ss:$12 sps:$4 sm:$0xff]   ;;  %v7530_v40 = vld [vmem:[%s10834_s1 + $0x260] ss:$12 sps:$4 sm:$0xff]   ;;  %v7531_v41 = vld [vmem:[%s10834_s1 + $0xd8] ss:$12 sps:$4 sm:$0xff]  }
   0xe   :  { %3403 = vmatprep.mubr.bf16.mxu1 %v6404_v33  ;;  %3034 = vmatprep.mubr.bf16.mxu0 %v6404_v33  ;;  %v7528_v39 = vld [vmem:[%s10834_s1 + $0xdc] ss:$12 sps:$4 sm:$0xff]   ;;  %v7532_v42 = vld [vmem:[%s10834_s1 + $0x1a0] ss:$12 sps:$4 sm:$0xff]   ;;  %v7535_v44 = vld [vmem:[%s10834_s1 + $0x278] ss:$12 sps:$4 sm:$0xff]  }
   0xf   :  { %3009 = vmatpush1.bf16.msra.mxu0 %v7499_v14  ;;  %7197 = vmatpush3.bf16.msra.mxu1 %v7500_v15  ;;  %v7533_v43 = vld [vmem:[%s10834_s1 + $0xf4] ss:$12 sps:$4 sm:$0xff]   ;;  %v7536_v45 = vld [vmem:[%s10834_s1 + $0xf0] ss:$12 sps:$4 sm:$0xff]   ;;  %v7537_v46 = vld [vmem:[%s10834_s1 + $0x1b8] ss:$12 sps:$4 sm:$0xff]  }
  0x10   :  { %3010 = vmatprep.subr.bf16.mxu0 %v7501_v16  ;;  %7198 = vmatprep.subr.bf16.mxu1 %v7503_v17  ;;  %v7538_v47 = vld [vmem:[%s10834_s1 + $0x10c] ss:$12 sps:$4 sm:$0xff]   ;;  %v7540_v48 = vld [vmem:[%s10834_s1 + $0x290] ss:$12 sps:$4 sm:$0xff]   ;;  %v7541_v49 = vld [vmem:[%s10834_s1 + $0x108] ss:$12 sps:$4 sm:$0xff]  }
  0x11   :  { %v7542_v50 = vld [vmem:[%s10834_s1 + $0x1d0] ss:$12 sps:$4 sm:$0xff]   ;;  %v7545_v52 = vld [vmem:[%s10834_s1 + $0x2a8] ss:$12 sps:$4 sm:$0xff]   ;;  %v7546_v53 = vld [vmem:[%s10834_s1 + $0x120] ss:$12 sps:$4 sm:$0xff]  }
  0x12   :  { %v7543_v51 = vld [vmem:[%s10834_s1 + $0x124] ss:$12 sps:$4 sm:$0xff]   ;;  %v7547_v54 = vld [vmem:[%s10834_s1 + $0x1e8] ss:$12 sps:$4 sm:$0xff]   ;;  %v7550_v56 = vld [vmem:[%s10834_s1 + $0x2c0] ss:$12 sps:$4 sm:$0xff]  }
  0x13   :  { %3011 = vmatpush1.bf16.msra.mxu0 %v7504_v18  ;;  %7199 = vmatpush3.bf16.msra.mxu1 %v7505_v19  ;;  %v7548_v55 = vld [vmem:[%s10834_s1 + $0x13c] ss:$12 sps:$4 sm:$0xff]   ;;  %v7551_v57 = vld [vmem:[%s10834_s1 + $0x138] ss:$12 sps:$4 sm:$0xff]   ;;  %v7552_v58 = vld [vmem:[%s10834_s1 + $0x200] ss:$12 sps:$4 sm:$0xff]  }
  0x14   :  { %3012 = vmatprep.subr.bf16.mxu0 %v7506_v20  ;;  %7200 = vmatprep.subr.bf16.mxu1 %v7508_v21  ;;  %v7553_v59 = vld [vmem:[%s10834_s1 + $0x154] ss:$12 sps:$4 sm:$0xff]   ;;  %v7555_v60 = vld [vmem:[%s10834_s1 + $0x2d8] ss:$12 sps:$4 sm:$0xff]   ;;  %v7556_v61 = vld [vmem:[%s10834_s1 + $0x150] ss:$12 sps:$4 sm:$0xff]  }
  0x15   :  { %v34_v62 = vld [vmem:[%s10835_s0 + $0x8] sm:$0xff]  ;;  %v7557_v63 = vld [vmem:[%s10834_s1 + $0x218] ss:$12 sps:$4 sm:$0xff]   ;;  %v7560_v2 = vld [vmem:[%s10834_s1 + $0x2f0] ss:$12 sps:$4 sm:$0xff]  }
  0x16   :  { %v6406_v0 = vcombine.high %v34_v62, %v34_v62  ;;  %v7558_v1 = vld [vmem:[%s10834_s1 + $0x16c] ss:$12 sps:$4 sm:$0xff]   ;;  %v7561_v3 = vld [vmem:[%s10834_s1 + $0x168] ss:$12 sps:$4 sm:$0xff]   ;;  %v7562_v4 = vld [vmem:[%s10834_s1 + $0x230] ss:$12 sps:$4 sm:$0xff]   ;;  %v8545_v8 = vcombine.low %v34_v62, %v34_v62 }
  0x17   :  { %3013 = vmatpush1.bf16.msra.mxu0 %v7509_v22  ;;  %7201 = vmatpush3.bf16.msra.mxu1 %v7510_v23  ;;  %v7565_v5 = vld [vmem:[%s10834_s1 + $0x184] ss:$12 sps:$4 sm:$0xff]   ;;  %v7568_v6 = vld [vmem:[%s10834_s1 + $0x3c8] ss:$12 sps:$4 sm:$0xff]   ;;  %v7563_v7 = vld [vmem:[%s10834_s1 + $0x180] ss:$12 sps:$4 sm:$0xff]  }
  0x18   :  { %3014 = vmatprep.subr.bf16.mxu0 %v7511_v24  ;;  %7202 = vmatprep.subr.bf16.mxu1 %v7513_v25  ;;  %v7569_v9 = vld [vmem:[%s10834_s1 + $0x308] ss:$12 sps:$4 sm:$0xff]   ;;  %v7573_v11 = vld [vmem:[%s10834_s1 + $0x3e0] ss:$12 sps:$4 sm:$0xff]   ;;  %v7570_v12 = vld [vmem:[%s10834_s1 + $0x198] ss:$12 sps:$4 sm:$0xff]  }
  0x19   :  { %v7572_v10 = vld [vmem:[%s10834_s1 + $0x19c] ss:$12 sps:$4 sm:$0xff]   ;;  %v7574_v13 = vld [vmem:[%s10834_s1 + $0x320] ss:$12 sps:$4 sm:$0xff]   ;;  %v7578_v15 = vld [vmem:[%s10834_s1 + $0x3f8] ss:$12 sps:$4 sm:$0xff]  }
  0x1a   :  { %v7577_v14 = vld [vmem:[%s10834_s1 + $0x1b4] ss:$12 sps:$4 sm:$0xff]   ;;  %v7575_v16 = vld [vmem:[%s10834_s1 + $0x1b0] ss:$12 sps:$4 sm:$0xff]   ;;  %v7579_v17 = vld [vmem:[%s10834_s1 + $0x338] ss:$12 sps:$4 sm:$0xff]  }
  0x1b   :  { %3015 = vmatpush1.bf16.msra.mxu0 %v7514_v26  ;;  %7203 = vmatpush3.bf16.msra.mxu1 %v7515_v27  ;;  %v7582_v18 = vld [vmem:[%s10834_s1 + $0x1cc] ss:$12 sps:$4 sm:$0xff]   ;;  %v7583_v19 = vld [vmem:[%s10834_s1 + $0x410] ss:$12 sps:$4 sm:$0xff]   ;;  %v7580_v20 = vld [vmem:[%s10834_s1 + $0x1c8] ss:$12 sps:$4 sm:$0xff]  }
  0x1c   :  { %3016 = vmatprep.subr.bf16.mxu0 %v7516_v28  ;;  %7204 = vmatprep.subr.bf16.mxu1 %v7518_v29  ;;  %v7584_v21 = vld [vmem:[%s10834_s1 + $0x350] ss:$12 sps:$4 sm:$0xff]   ;;  %v7588_v23 = vld [vmem:[%s10834_s1 + $0x428] ss:$12 sps:$4 sm:$0xff]   ;;  %v7585_v24 = vld [vmem:[%s10834_s1 + $0x1e0] ss:$12 sps:$4 sm:$0xff]  }
  0x1d   :  { %v7587_v22 = vld [vmem:[%s10834_s1 + $0x1e4] ss:$12 sps:$4 sm:$0xff]   ;;  %v7589_v25 = vld [vmem:[%s10834_s1 + $0x368] ss:$12 sps:$4 sm:$0xff]   ;;  %v7593_v27 = vld [vmem:[%s10834_s1 + $0x440] ss:$12 sps:$4 sm:$0xff]  }
  0x1e   :  { %v7592_v26 = vld [vmem:[%s10834_s1 + $0x1fc] ss:$12 sps:$4 sm:$0xff]   ;;  %v35_v28 = vld [vmem:[%s10835_s0 + $0x10] sm:$0xff]  ;;  %v7594_v31 = vld [vmem:[%s10834_s1 + $0x380] ss:$12 sps:$4 sm:$0xff]  }
  0x1f   :  { %3017 = vmatpush1.bf16.msra.mxu0 %v7519_v30  ;;  %7205 = vmatpush3.bf16.msra.mxu1 %v7520_v32  ;;  %v8609_v29 = vcombine.high %v35_v28, %v35_v28  ;;  %v7590_v30 = vld [vmem:[%s10834_s1 + $0x1f8] ss:$12 sps:$4 sm:$0xff]   ;;  %v7597_v32 = vld [vmem:[%s10834_s1 + $0x214] ss:$12 sps:$4 sm:$0xff]  }
  0x20   :  { %3018 = vmatprep.subr.bf16.mxu0 %v7521_v34  ;;  %7212 = vmatprep.subr.bf16.mxu1 %v7525_v35  ;;  %v7598_v33 = vld [vmem:[%s10834_s1 + $0x458] ss:$12 sps:$4 sm:$0xff]   ;;  %v7595_v34 = vld [vmem:[%s10834_s1 + $0x210] ss:$12 sps:$4 sm:$0xff]   ;;  %v7631_v62 = vld [vmem:[%s10834_s1 + $0x4e8] ss:$12 sps:$4 sm:$0xff]  }
  0x21   :  { %v7599_v35 = vld [vmem:[%s10834_s1 + $0x398] ss:$12 sps:$4 sm:$0xff]  }
  0x22   :  { %3404 = vmatmul.mubr.bf16.vlgmr.msra.gmra.mrb[0].mxu1 %v8440_v36 }
  0x23   :  { %3019 = vmatpush1.bf16.msra.mxu0 %v7526_v37  ;;  %7213 = vmatpush3.bf16.msra.mxu1 %v7527_v38  ;;  %v7603_v37 = vld [vmem:[%s10834_s1 + $0x470] ss:$12 sps:$4 sm:$0xff]   ;;  %v7600_v38 = vld [vmem:[%s10834_s1 + $0x228] ss:$12 sps:$4 sm:$0xff]  }
  0x24   :  { %3020 = vmatprep.subr.bf16.mxu0 %v7528_v39  ;;  %7214 = vmatprep.subr.bf16.mxu1 %v7530_v40  ;;  %v7604_v39 = vld [vmem:[%s10834_s1 + $0x3b0] ss:$12 sps:$4 sm:$0xff]  }
  0x25   :  { %3443 = vmatprep.mubr.bf16.mxu1 %v6406_v0  ;;  %v7607_v40 = vld [vmem:[%s10834_s1 + $0x244] ss:$12 sps:$4 sm:$0xff]  }
  0x27   :  { %3021 = vmatpush1.bf16.msra.mxu0 %v7531_v41  ;;  %7215 = vmatpush3.bf16.msra.mxu1 %v7532_v42  ;;  %v7610_v41 = vld [vmem:[%s10834_s1 + $0x548] ss:$12 sps:$4 sm:$0xff]   ;;  %v7605_v42 = vld [vmem:[%s10834_s1 + $0x240] ss:$12 sps:$4 sm:$0xff]  }
  0x28   :  { %3022 = vmatprep.subr.bf16.mxu0 %v7533_v43  ;;  %7216 = vmatprep.subr.bf16.mxu1 %v7535_v44  ;;  %v8651_v43 = vcombine.low %v35_v28, %v35_v28  ;;  %v7611_v44 = vld [vmem:[%s10834_s1 + $0x488] ss:$12 sps:$4 sm:$0xff]  }
  0x29   :  { %v7664_v28 = vld [vmem:[%s10834_s1 + $0x348] ss:$12 sps:$4 sm:$0xff]  }
  0x2b   :  { %3023 = vmatpush1.bf16.msra.mxu0 %v7536_v45  ;;  %7217 = vmatpush3.bf16.msra.mxu1 %v7537_v46  ;;  %v7614_v45 = vld [vmem:[%s10834_s1 + $0x25c] ss:$12 sps:$4 sm:$0xff]   ;;  %v7615_v46 = vld [vmem:[%s10834_s1 + $0x560] ss:$12 sps:$4 sm:$0xff]  }
  0x2c   :  { %3024 = vmatprep.subr.bf16.mxu0 %v7538_v47  ;;  %7218 = vmatprep.subr.bf16.mxu1 %v7540_v48  ;;  %v7612_v47 = vld [vmem:[%s10834_s1 + $0x258] ss:$12 sps:$4 sm:$0xff]   ;;  %v7616_v48 = vld [vmem:[%s10834_s1 + $0x4a0] ss:$12 sps:$4 sm:$0xff]  }
  0x2f   :  { %3025 = vmatpush1.bf16.msra.mxu0 %v7541_v49  ;;  %7219 = vmatpush3.bf16.msra.mxu1 %v7542_v50  ;;  %v7619_v49 = vld [vmem:[%s10834_s1 + $0x274] ss:$12 sps:$4 sm:$0xff]   ;;  %v7620_v50 = vld [vmem:[%s10834_s1 + $0x578] ss:$12 sps:$4 sm:$0xff]  }
  0x30   :  { %3026 = vmatprep.subr.bf16.mxu0 %v7543_v51  ;;  %7220 = vmatprep.subr.bf16.mxu1 %v7545_v52  ;;  %v7617_v51 = vld [vmem:[%s10834_s1 + $0x270] ss:$12 sps:$4 sm:$0xff]   ;;  %v7621_v52 = vld [vmem:[%s10834_s1 + $0x4b8] ss:$12 sps:$4 sm:$0xff]  }
  0x33   :  { %3027 = vmatpush1.bf16.msra.mxu0 %v7546_v53  ;;  %7221 = vmatpush3.bf16.msra.mxu1 %v7547_v54  ;;  %v7624_v53 = vld [vmem:[%s10834_s1 + $0x28c] ss:$12 sps:$4 sm:$0xff]   ;;  %v7625_v54 = vld [vmem:[%s10834_s1 + $0x590] ss:$12 sps:$4 sm:$0xff]  }
  0x34   :  { %3028 = vmatprep.subr.bf16.mxu0 %v7548_v55  ;;  %7222 = vmatprep.subr.bf16.mxu1 %v7550_v56  ;;  %v7622_v55 = vld [vmem:[%s10834_s1 + $0x288] ss:$12 sps:$4 sm:$0xff]   ;;  %v7626_v56 = vld [vmem:[%s10834_s1 + $0x4d0] ss:$12 sps:$4 sm:$0xff]  }
  0x37   :  { %3029 = vmatpush1.bf16.msra.mxu0 %v7551_v57  ;;  %7223 = vmatpush3.bf16.msra.mxu1 %v7552_v58  ;;  %v7629_v57 = vld [vmem:[%s10834_s1 + $0x2a4] ss:$12 sps:$4 sm:$0xff]   ;;  %v36_v58 = vld [vmem:[%s10835_s0 + $0x18] sm:$0xff] }
  0x38   :  { %3030 = vmatprep.subr.bf16.mxu0 %v7553_v59  ;;  %7224 = vmatprep.subr.bf16.mxu1 %v7555_v60  ;;  %v7630_v59 = vld [vmem:[%s10834_s1 + $0x5a8] ss:$12 sps:$4 sm:$0xff]   ;;  %v8702_v60 = vcombine.high %v36_v58, %v36_v58 }
  0x3b   :  { %3031 = vmatpush1.bf16.msra.mxu0 %v7556_v61  ;;  %7225 = vmatpush3.bf16.msra.mxu1 %v7557_v63  ;;  %v7627_v61 = vld [vmem:[%s10834_s1 + $0x2a0] ss:$12 sps:$4 sm:$0xff]   ;;  %v7634_v63 = vld [vmem:[%s10834_s1 + $0x2bc] ss:$12 sps:$4 sm:$0xff]  }
  0x3c   :  { %3032 = vmatprep.subr.bf16.mxu0 %v7558_v1  ;;  %7226 = vmatprep.subr.bf16.mxu1 %v7560_v2  ;;  %v7632_v1 = vld [vmem:[%s10834_s1 + $0x2b8] ss:$12 sps:$4 sm:$0xff]   ;;  %v7636_v2 = vld [vmem:[%s10834_s1 + $0x500] ss:$12 sps:$4 sm:$0xff]  }
  0x3f   :  { %3033 = vmatpush1.bf16.msra.mxu0 %v7561_v3  ;;  %7227 = vmatpush3.bf16.msra.mxu1 %v7562_v4  ;;  %v7639_v3 = vld [vmem:[%s10834_s1 + $0x2d4] ss:$12 sps:$4 sm:$0xff]   ;;  %v7640_v4 = vld [vmem:[%s10834_s1 + $0x5d8] ss:$12 sps:$4 sm:$0xff]  }
  0x40   :  { %3043 = vmatprep.subr.bf16.mxu0 %v7565_v5  ;;  %7234 = vmatprep.subr.bf16.mxu1 %v7568_v6  ;;  %v7637_v5 = vld [vmem:[%s10834_s1 + $0x2d0] ss:$12 sps:$4 sm:$0xff]   ;;  %v7641_v6 = vld [vmem:[%s10834_s1 + $0x518] ss:$12 sps:$4 sm:$0xff]  }
  0x42   :  { %3035 = vmatmul.mubr.bf16.vlgmr.msra.gmra.mrb[0].mxu0 %v8440_v36  ;;  %3444 = vmatmul.mubr.bf16.vlgmr.msra.gmra.mrb[4].mxu1 %v8545_v8  ;;  %v7602_v36 = vld [vmem:[%s10834_s1 + $0x22c] ss:$12 sps:$4 sm:$0xff]  }
  0x43   :  { %3044 = vmatpush1.bf16.msra.mxu0 %v7563_v7  ;;  %7235 = vmatpush3.bf16.msra.mxu1 %v7569_v9  ;;  %v7644_v7 = vld [vmem:[%s10834_s1 + $0x2ec] ss:$12 sps:$4 sm:$0xff]   ;;  %v7645_v9 = vld [vmem:[%s10834_s1 + $0x5f0] ss:$12 sps:$4 sm:$0xff]  }
  0x44   :  { %3045 = vmatprep.subr.bf16.mxu0 %v7572_v10  ;;  %7236 = vmatprep.subr.bf16.mxu1 %v7573_v11  ;;  %v7642_v10 = vld [vmem:[%s10834_s1 + $0x2e8] ss:$12 sps:$4 sm:$0xff]   ;;  %v7646_v11 = vld [vmem:[%s10834_s1 + $0x530] ss:$12 sps:$4 sm:$0xff]  }
  0x45   :  { %3075 = vmatprep.mubr.bf16.mxu0 %v6406_v0  ;;  %3483 = vmatprep.mubr.bf16.mxu1 %v8609_v29  ;;  %v7635_v0 = vld [vmem:[%s10834_s1 + $0x5c0] ss:$12 sps:$4 sm:$0xff]  }
  0x47   :  { %3046 = vmatpush1.bf16.msra.mxu0 %v7570_v12  ;;  %7237 = vmatpush3.bf16.msra.mxu1 %v7574_v13  ;;  %v7649_v12 = vld [vmem:[%s10834_s1 + $0x304] ss:$12 sps:$4 sm:$0xff]   ;;  %v7652_v13 = vld [vmem:[%s10834_s1 + $0x6c8] ss:$12 sps:$4 sm:$0xff]  }
  0x48   :  { %3047 = vmatprep.subr.bf16.mxu0 %v7577_v14  ;;  %7238 = vmatprep.subr.bf16.mxu1 %v7578_v15  ;;  %v7647_v14 = vld [vmem:[%s10834_s1 + $0x300] ss:$12 sps:$4 sm:$0xff]   ;;  %v8756_v15 = vcombine.low %v36_v58, %v36_v58 }
  0x49   :  { %v7703_v58 = vld [vmem:[%s10834_s1 + $0x3f4] ss:$12 sps:$4 sm:$0xff]  }
  0x4b   :  { %3048 = vmatpush1.bf16.msra.mxu0 %v7575_v16  ;;  %7239 = vmatpush3.bf16.msra.mxu1 %v7579_v17  ;;  %v7653_v16 = vld [vmem:[%s10834_s1 + $0x608] ss:$12 sps:$4 sm:$0xff]  }
  0x4c   :  { %3049 = vmatprep.subr.bf16.mxu0 %v7582_v18  ;;  %7240 = vmatprep.subr.bf16.mxu1 %v7583_v19  ;;  %v7656_v17 = vld [vmem:[%s10834_s1 + $0x31c] ss:$12 sps:$4 sm:$0xff]   ;;  %v7657_v18 = vld [vmem:[%s10834_s1 + $0x6e0] ss:$12 sps:$4 sm:$0xff]   ;;  %v7654_v19 = vld [vmem:[%s10834_s1 + $0x318] ss:$12 sps:$4 sm:$0xff]  }
  0x4f   :  { %3050 = vmatpush1.bf16.msra.mxu0 %v7580_v20  ;;  %7241 = vmatpush3.bf16.msra.mxu1 %v7584_v21  ;;  %v7658_v20 = vld [vmem:[%s10834_s1 + $0x620] ss:$12 sps:$4 sm:$0xff]  }
  0x50   :  { %3051 = vmatprep.subr.bf16.mxu0 %v7587_v22  ;;  %7242 = vmatprep.subr.bf16.mxu1 %v7588_v23  ;;  %v7661_v21 = vld [vmem:[%s10834_s1 + $0x334] ss:$12 sps:$4 sm:$0xff]   ;;  %v7659_v22 = vld [vmem:[%s10834_s1 + $0x330] ss:$12 sps:$4 sm:$0xff]   ;;  %v7663_v23 = vld [vmem:[%s10834_s1 + $0x638] ss:$12 sps:$4 sm:$0xff]  }
  0x53   :  { %3052 = vmatpush1.bf16.msra.mxu0 %v7585_v24  ;;  %7243 = vmatpush3.bf16.msra.mxu1 %v7589_v25  ;;  %v37_v24 = vld [vmem:[%s10835_s0 + $0x20] sm:$0xff]  ;;  %v7666_v25 = vld [vmem:[%s10834_s1 + $0x34c] ss:$12 sps:$4 sm:$0xff]  }
  0x54   :  { %3053 = vmatprep.subr.bf16.mxu0 %v7592_v26  ;;  %7244 = vmatprep.subr.bf16.mxu1 %v7593_v27  ;;  %v8794_v26 = vcombine.high %v37_v24, %v37_v24  ;;  %v7667_v27 = vld [vmem:[%s10834_s1 + $0x710] ss:$12 sps:$4 sm:$0xff]  }
  0x57   :  { %3054 = vmatpush1.bf16.msra.mxu0 %v7590_v30  ;;  %7245 = vmatpush3.bf16.msra.mxu1 %v7594_v31  ;;  %v7671_v30 = vld [vmem:[%s10834_s1 + $0x364] ss:$12 sps:$4 sm:$0xff]   ;;  %v7672_v31 = vld [vmem:[%s10834_s1 + $0x728] ss:$12 sps:$4 sm:$0xff]  }
  0x58   :  { %3055 = vmatprep.subr.bf16.mxu0 %v7597_v32  ;;  %7246 = vmatprep.subr.bf16.mxu1 %v7598_v33  ;;  %v7669_v32 = vld [vmem:[%s10834_s1 + $0x360] ss:$12 sps:$4 sm:$0xff]   ;;  %v7673_v33 = vld [vmem:[%s10834_s1 + $0x668] ss:$12 sps:$4 sm:$0xff]  }
  0x5b   :  { %3056 = vmatpush1.bf16.msra.mxu0 %v7595_v34  ;;  %7247 = vmatpush3.bf16.msra.mxu1 %v7599_v35  ;;  %v7676_v34 = vld [vmem:[%s10834_s1 + $0x37c] ss:$12 sps:$4 sm:$0xff]   ;;  %v7677_v35 = vld [vmem:[%s10834_s1 + $0x740] ss:$12 sps:$4 sm:$0xff]  }
  0x5c   :  { %3057 = vmatprep.subr.bf16.mxu0 %v7602_v36  ;;  %7248 = vmatprep.subr.bf16.mxu1 %v7603_v37  ;;  %v7674_v36 = vld [vmem:[%s10834_s1 + $0x378] ss:$12 sps:$4 sm:$0xff]   ;;  %v7678_v37 = vld [vmem:[%s10834_s1 + $0x680] ss:$12 sps:$4 sm:$0xff]  }
  0x5f   :  { %3058 = vmatpush1.bf16.msra.mxu0 %v7600_v38  ;;  %7249 = vmatpush3.bf16.msra.mxu1 %v7604_v39  ;;  %v7681_v38 = vld [vmem:[%s10834_s1 + $0x394] ss:$12 sps:$4 sm:$0xff]   ;;  %v7682_v39 = vld [vmem:[%s10834_s1 + $0x758] ss:$12 sps:$4 sm:$0xff]  }
  0x60   :  { %3059 = vmatprep.subr.bf16.mxu0 %v7607_v40  ;;  %7256 = vmatprep.subr.bf16.mxu1 %v7610_v41  ;;  %v7679_v40 = vld [vmem:[%s10834_s1 + $0x390] ss:$12 sps:$4 sm:$0xff]   ;;  %v7683_v41 = vld [vmem:[%s10834_s1 + $0x698] ss:$12 sps:$4 sm:$0xff]  }
  0x62   :  { %3484 = vmatmul.mubr.bf16.vlgmr.msra.gmra.mrb[8].mxu1 %v8651_v43 }
  0x63   :  { %3060 = vmatpush1.bf16.msra.mxu0 %v7605_v42  ;;  %7257 = vmatpush3.bf16.msra.mxu1 %v7611_v44  ;;  %v7686_v42 = vld [vmem:[%s10834_s1 + $0x3ac] ss:$12 sps:$4 sm:$0xff]   ;;  %v7687_v44 = vld [vmem:[%s10834_s1 + $0x770] ss:$12 sps:$4 sm:$0xff]  }
  0x64   :  { %3061 = vmatprep.subr.bf16.mxu0 %v7614_v45  ;;  %7258 = vmatprep.subr.bf16.mxu1 %v7615_v46  ;;  %v7684_v45 = vld [vmem:[%s10834_s1 + $0x3a8] ss:$12 sps:$4 sm:$0xff]   ;;  %v7688_v46 = vld [vmem:[%s10834_s1 + $0x6b0] ss:$12 sps:$4 sm:$0xff]  }
  0x65   :  { %3523 = vmatprep.mubr.bf16.mxu1 %v8702_v60 }
  0x67   :  { %3062 = vmatpush1.bf16.msra.mxu0 %v7612_v47  ;;  %7259 = vmatpush3.bf16.msra.mxu1 %v7616_v48  ;;  %v7691_v47 = vld [vmem:[%s10834_s1 + $0x3c4] ss:$12 sps:$4 sm:$0xff]   ;;  %v7694_v48 = vld [vmem:[%s10834_s1 + $0x848] ss:$12 sps:$4 sm:$0xff]  }
  0x68   :  { %3063 = vmatprep.subr.bf16.mxu0 %v7619_v49  ;;  %7260 = vmatprep.subr.bf16.mxu1 %v7620_v50  ;;  %v7689_v49 = vld [vmem:[%s10834_s1 + $0x3c0] ss:$12 sps:$4 sm:$0xff]   ;;  %v8863_v50 = vcombine.low %v37_v24, %v37_v24 }
  0x6b   :  { %3064 = vmatpush1.bf16.msra.mxu0 %v7617_v51  ;;  %7261 = vmatpush3.bf16.msra.mxu1 %v7621_v52  ;;  %v7695_v51 = vld [vmem:[%s10834_s1 + $0x788] ss:$12 sps:$4 sm:$0xff]  }
  0x6c   :  { %3065 = vmatprep.subr.bf16.mxu0 %v7624_v53  ;;  %7262 = vmatprep.subr.bf16.mxu1 %v7625_v54  ;;  %v7698_v52 = vld [vmem:[%s10834_s1 + $0x3dc] ss:$12 sps:$4 sm:$0xff]   ;;  %v7696_v53 = vld [vmem:[%s10834_s1 + $0x3d8] ss:$12 sps:$4 sm:$0xff]   ;;  %v7699_v54 = vld [vmem:[%s10834_s1 + $0x860] ss:$12 sps:$4 sm:$0xff]  }
  0x6f   :  { %3066 = vmatpush1.bf16.msra.mxu0 %v7622_v55  ;;  %7263 = vmatpush3.bf16.msra.mxu1 %v7626_v56  ;;  %v38_v55 = vld [vmem:[%s10835_s0 + $0x28] sm:$0xff] }
  0x70   :  { %3067 = vmatprep.subr.bf16.mxu0 %v7629_v57  ;;  %7264 = vmatprep.subr.bf16.mxu1 %v7630_v59  ;;  %v7700_v56 = vld [vmem:[%s10834_s1 + $0x7a0] ss:$12 sps:$4 sm:$0xff]   ;;  %v8884_v57 = vcombine.high %v38_v55, %v38_v55  ;;  %v7704_v59 = vld [vmem:[%s10834_s1 + $0x878] ss:$12 sps:$4 sm:$0xff]   ;;  %v8973_v24 = vcombine.low %v38_v55, %v38_v55  ;;  %v7772_v55 = vld [vmem:[%s10834_s1 + $0x9b0] ss:$12 sps:$4 sm:$0xff]  }
  0x73   :  { %3068 = vmatpush1.bf16.msra.mxu0 %v7627_v61  ;;  %7265 = vmatpush3.bf16.msra.mxu1 %v7631_v62  ;;  %v7701_v61 = vld [vmem:[%s10834_s1 + $0x3f0] ss:$12 sps:$4 sm:$0xff]   ;;  %v7705_v62 = vld [vmem:[%s10834_s1 + $0x7b8] ss:$12 sps:$4 sm:$0xff]  }
  0x74   :  { %3069 = vmatprep.subr.bf16.mxu0 %v7634_v63  ;;  %7266 = vmatprep.subr.bf16.mxu1 %v7635_v0  ;;  %v7708_v63 = vld [vmem:[%s10834_s1 + $0x40c] ss:$12 sps:$4 sm:$0xff]   ;;  %v7709_v0 = vld [vmem:[%s10834_s1 + $0x890] ss:$12 sps:$4 sm:$0xff]  }
  0x77   :  { %3070 = vmatpush1.bf16.msra.mxu0 %v7632_v1  ;;  %7267 = vmatpush3.bf16.msra.mxu1 %v7636_v2  ;;  %v7706_v1 = vld [vmem:[%s10834_s1 + $0x408] ss:$12 sps:$4 sm:$0xff]   ;;  %v7710_v2 = vld [vmem:[%s10834_s1 + $0x7d0] ss:$12 sps:$4 sm:$0xff]  }
  0x78   :  { %3071 = vmatprep.subr.bf16.mxu0 %v7639_v3  ;;  %7268 = vmatprep.subr.bf16.mxu1 %v7640_v4  ;;  %v7713_v3 = vld [vmem:[%s10834_s1 + $0x424] ss:$12 sps:$4 sm:$0xff]   ;;  %v7714_v4 = vld [vmem:[%s10834_s1 + $0x8a8] ss:$12 sps:$4 sm:$0xff]  }
  0x7b   :  { %3072 = vmatpush1.bf16.msra.mxu0 %v7637_v5  ;;  %7269 = vmatpush3.bf16.msra.mxu1 %v7641_v6  ;;  %v7711_v5 = vld [vmem:[%s10834_s1 + $0x420] ss:$12 sps:$4 sm:$0xff]   ;;  %v7715_v6 = vld [vmem:[%s10834_s1 + $0x7e8] ss:$12 sps:$4 sm:$0xff]  }
  0x7c   :  { %3073 = vmatprep.subr.bf16.mxu0 %v7644_v7  ;;  %7270 = vmatprep.subr.bf16.mxu1 %v7645_v9  ;;  %v7718_v7 = vld [vmem:[%s10834_s1 + $0x43c] ss:$12 sps:$4 sm:$0xff]   ;;  %v7719_v9 = vld [vmem:[%s10834_s1 + $0x8c0] ss:$12 sps:$4 sm:$0xff]  }
  0x7f   :  { %3074 = vmatpush1.bf16.msra.mxu0 %v7642_v10  ;;  %7271 = vmatpush3.bf16.msra.mxu1 %v7646_v11  ;;  %v7716_v10 = vld [vmem:[%s10834_s1 + $0x438] ss:$12 sps:$4 sm:$0xff]   ;;  %v7720_v11 = vld [vmem:[%s10834_s1 + $0x800] ss:$12 sps:$4 sm:$0xff]  }
  0x80   :  { %3084 = vmatprep.subr.bf16.mxu0 %v7649_v12  ;;  %7278 = vmatprep.subr.bf16.mxu1 %v7652_v13  ;;  %v7723_v12 = vld [vmem:[%s10834_s1 + $0x454] ss:$12 sps:$4 sm:$0xff]   ;;  %v7724_v13 = vld [vmem:[%s10834_s1 + $0x8d8] ss:$12 sps:$4 sm:$0xff]  }
  0x82   :  { %3076 = vmatmul.mubr.bf16.vlgmr.msra.gmra.mrb[0].mxu0 %v8545_v8  ;;  %3524 = vmatmul.mubr.bf16.vlgmr.msra.gmra.mrb[12].mxu1 %v8756_v15  ;;  %v7662_v8 = vld [vmem:[%s10834_s1 + $0x6f8] ss:$12 sps:$4 sm:$0xff]  }
  0x83   :  { %3085 = vmatpush1.bf16.msra.mxu0 %v7647_v14  ;;  %7279 = vmatpush3.bf16.msra.mxu1 %v7653_v16  ;;  %v7721_v14 = vld [vmem:[%s10834_s1 + $0x450] ss:$12 sps:$4 sm:$0xff]   ;;  %v7725_v16 = vld [vmem:[%s10834_s1 + $0x818] ss:$12 sps:$4 sm:$0xff]  }
  0x84   :  { %3086 = vmatprep.subr.bf16.mxu0 %v7656_v17  ;;  %7280 = vmatprep.subr.bf16.mxu1 %v7657_v18  ;;  %v7728_v17 = vld [vmem:[%s10834_s1 + $0x46c] ss:$12 sps:$4 sm:$0xff]   ;;  %v7729_v18 = vld [vmem:[%s10834_s1 + $0x8f0] ss:$12 sps:$4 sm:$0xff]  }
  0x85   :  { %3116 = vmatprep.mubr.bf16.mxu0 %v8609_v29  ;;  %3563 = vmatprep.mubr.bf16.mxu1 %v8794_v26  ;;  %v7668_v29 = vld [vmem:[%s10834_s1 + $0x650] ss:$12 sps:$4 sm:$0xff]  }
  0x87   :  { %3087 = vmatpush1.bf16.msra.mxu0 %v7654_v19  ;;  %7281 = vmatpush3.bf16.msra.mxu1 %v7658_v20  ;;  %v7726_v19 = vld [vmem:[%s10834_s1 + $0x468] ss:$12 sps:$4 sm:$0xff]   ;;  %v7730_v20 = vld [vmem:[%s10834_s1 + $0x830] ss:$12 sps:$4 sm:$0xff]  }
  0x88   :  { %3088 = vmatprep.subr.bf16.mxu0 %v7661_v21  ;;  %7282 = vmatprep.subr.bf16.mxu1 %v7662_v8  ;;  %v7733_v21 = vld [vmem:[%s10834_s1 + $0x484] ss:$12 sps:$4 sm:$0xff]   ;;  %v7736_v8 = vld [vmem:[%s10834_s1 + $0x9c8] ss:$12 sps:$4 sm:$0xff]  }
  0x8b   :  { %3089 = vmatpush1.bf16.msra.mxu0 %v7659_v22  ;;  %7283 = vmatpush3.bf16.msra.mxu1 %v7663_v23  ;;  %v8968_v22 = vld [vmem:[%s10835_s0 + $0x30] sm:$0xff]  ;;  %v7731_v23 = vld [vmem:[%s10834_s1 + $0x480] ss:$12 sps:$4 sm:$0xff]  }
  0x8c   :  { %3090 = vmatprep.subr.bf16.mxu0 %v7666_v25  ;;  %7284 = vmatprep.subr.bf16.mxu1 %v7667_v27  ;;  %v7737_v25 = vld [vmem:[%s10834_s1 + $0x908] ss:$12 sps:$4 sm:$0xff]  }
  0x8d   :  { %v7740_v27 = vld [vmem:[%s10834_s1 + $0x49c] ss:$12 sps:$4 sm:$0xff]  }
  0x8f   :  { %3091 = vmatpush1.bf16.msra.mxu0 %v7664_v28  ;;  %7285 = vmatpush3.bf16.msra.mxu1 %v7668_v29  ;;  %v7741_v28 = vld [vmem:[%s10834_s1 + $0x9e0] ss:$12 sps:$4 sm:$0xff]   ;;  %v8986_v29 = vcombine.high %v8968_v22, %v8968_v22 }
  0x90   :  { %3092 = vmatprep.subr.bf16.mxu0 %v7671_v30  ;;  %7286 = vmatprep.subr.bf16.mxu1 %v7672_v31  ;;  %v7738_v30 = vld [vmem:[%s10834_s1 + $0x498] ss:$12 sps:$4 sm:$0xff]   ;;  %v7742_v31 = vld [vmem:[%s10834_s1 + $0x920] ss:$12 sps:$4 sm:$0xff]  }
  0x93   :  { %3093 = vmatpush1.bf16.msra.mxu0 %v7669_v32  ;;  %7287 = vmatpush3.bf16.msra.mxu1 %v7673_v33  ;;  %v7745_v32 = vld [vmem:[%s10834_s1 + $0x4b4] ss:$12 sps:$4 sm:$0xff]   ;;  %v7743_v33 = vld [vmem:[%s10834_s1 + $0x4b0] ss:$12 sps:$4 sm:$0xff]  }
  0x94   :  { %3094 = vmatprep.subr.bf16.mxu0 %v7676_v34  ;;  %7288 = vmatprep.subr.bf16.mxu1 %v7677_v35  ;;  %v7747_v34 = vld [vmem:[%s10834_s1 + $0x938] ss:$12 sps:$4 sm:$0xff]  }
  0x95   :  { %v7750_v35 = vld [vmem:[%s10834_s1 + $0x4cc] ss:$12 sps:$4 sm:$0xff]  }
  0x97   :  { %3095 = vmatpush1.bf16.msra.mxu0 %v7674_v36  ;;  %7289 = vmatpush3.bf16.msra.mxu1 %v7678_v37  ;;  %v7751_v36 = vld [vmem:[%s10834_s1 + $0xa10] ss:$12 sps:$4 sm:$0xff]  }
  0x98   :  { %3096 = vmatprep.subr.bf16.mxu0 %v7681_v38  ;;  %7290 = vmatprep.subr.bf16.mxu1 %v7682_v39  ;;  %v7752_v37 = vld [vmem:[%s10834_s1 + $0x950] ss:$12 sps:$4 sm:$0xff]   ;;  %v7756_v39 = vld [vmem:[%s10834_s1 + $0xa28] ss:$12 sps:$4 sm:$0xff]  }
  0x99   :  { %v7755_v38 = vld [vmem:[%s10834_s1 + $0x4e4] ss:$12 sps:$4 sm:$0xff]  }
  0x9b   :  { %3097 = vmatpush1.bf16.msra.mxu0 %v7679_v40  ;;  %7291 = vmatpush3.bf16.msra.mxu1 %v7683_v41  ;;  %v7753_v40 = vld [vmem:[%s10834_s1 + $0x4e0] ss:$12 sps:$4 sm:$0xff]   ;;  %v7757_v41 = vld [vmem:[%s10834_s1 + $0x968] ss:$12 sps:$4 sm:$0xff]  }
  0x9c   :  { %3098 = vmatprep.subr.bf16.mxu0 %v7686_v42  ;;  %7292 = vmatprep.subr.bf16.mxu1 %v7687_v44  ;;  %v7760_v42 = vld [vmem:[%s10834_s1 + $0x4fc] ss:$12 sps:$4 sm:$0xff]   ;;  %v7761_v44 = vld [vmem:[%s10834_s1 + $0xa40] ss:$12 sps:$4 sm:$0xff]  }
  0x9f   :  { %3099 = vmatpush1.bf16.msra.mxu0 %v7684_v45  ;;  %7293 = vmatpush3.bf16.msra.mxu1 %v7688_v46  ;;  %v7758_v45 = vld [vmem:[%s10834_s1 + $0x4f8] ss:$12 sps:$4 sm:$0xff]   ;;  %v7762_v46 = vld [vmem:[%s10834_s1 + $0x980] ss:$12 sps:$4 sm:$0xff]  }
  0xa0   :  { %3100 = vmatprep.subr.bf16.mxu0 %v7691_v47  ;;  %7300 = vmatprep.subr.bf16.mxu1 %v7694_v48  ;;  %v7765_v47 = vld [vmem:[%s10834_s1 + $0x514] ss:$12 sps:$4 sm:$0xff]   ;;  %v7766_v48 = vld [vmem:[%s10834_s1 + $0xa58] ss:$12 sps:$4 sm:$0xff]  }
  0xa2   :  { %3564 = vmatmul.mubr.bf16.vlgmr.msra.gmra.mrb[16].mxu1 %v8863_v50 }
  0xa3   :  { %3101 = vmatpush1.bf16.msra.mxu0 %v7689_v49  ;;  %7301 = vmatpush3.bf16.msra.mxu1 %v7695_v51  ;;  %v7763_v49 = vld [vmem:[%s10834_s1 + $0x510] ss:$12 sps:$4 sm:$0xff]   ;;  %v7767_v51 = vld [vmem:[%s10834_s1 + $0x998] ss:$12 sps:$4 sm:$0xff]  }
  0xa4   :  { %3102 = vmatprep.subr.bf16.mxu0 %v7698_v52  ;;  %7302 = vmatprep.subr.bf16.mxu1 %v7699_v54  ;;  %v7770_v52 = vld [vmem:[%s10834_s1 + $0x52c] ss:$12 sps:$4 sm:$0xff]   ;;  %v7768_v54 = vld [vmem:[%s10834_s1 + $0x528] ss:$12 sps:$4 sm:$0xff]  }
  0xa5   :  { %3603 = vmatprep.mubr.bf16.mxu1 %v8884_v57 }
  0xa7   :  { %3103 = vmatpush1.bf16.msra.mxu0 %v7696_v53  ;;  %7303 = vmatpush3.bf16.msra.mxu1 %v7700_v56  ;;  %v7771_v53 = vld [vmem:[%s10834_s1 + $0xa70] ss:$12 sps:$4 sm:$0xff]  }
  0xa8   :  { %3104 = vmatprep.subr.bf16.mxu0 %v7703_v58  ;;  %7304 = vmatprep.subr.bf16.mxu1 %v7704_v59  ;;  %v7775_v56 = vld [vmem:[%s10834_s1 + $0x544] ss:$12 sps:$4 sm:$0xff]   ;;  %v7778_v58 = vld [vmem:[%s10834_s1 + $0xb48] ss:$12 sps:$4 sm:$0xff]   ;;  %v7773_v59 = vld [vmem:[%s10834_s1 + $0x540] ss:$12 sps:$4 sm:$0xff]  }
  0xab   :  { %3105 = vmatpush1.bf16.msra.mxu0 %v7701_v61  ;;  %7305 = vmatpush3.bf16.msra.mxu1 %v7705_v62  ;;  %v9082_v61 = vld [vmem:[%s10835_s0 + $0x38] sm:$0xff]  ;;  %v9086_v62 = vcombine.low %v8968_v22, %v8968_v22  ;;  %v7807_v22 = vld [vmem:[%s10834_s1 + $0x5d4] ss:$12 sps:$4 sm:$0xff]  }
  0xac   :  { %3106 = vmatprep.subr.bf16.mxu0 %v7708_v63  ;;  %7306 = vmatprep.subr.bf16.mxu1 %v7709_v0  ;;  %v7779_v63 = vld [vmem:[%s10834_s1 + $0xa88] ss:$12 sps:$4 sm:$0xff]  }
  0xad   :  { %v7782_v0 = vld [vmem:[%s10834_s1 + $0x55c] ss:$12 sps:$4 sm:$0xff]  }
  0xaf   :  { %3107 = vmatpush1.bf16.msra.mxu0 %v7706_v1  ;;  %7307 = vmatpush3.bf16.msra.mxu1 %v7710_v2  ;;  %v7783_v1 = vld [vmem:[%s10834_s1 + $0xb60] ss:$12 sps:$4 sm:$0xff]   ;;  %v9099_v2 = vcombine.high %v9082_v61, %v9082_v61 }
  0xb0   :  { %3108 = vmatprep.subr.bf16.mxu0 %v7713_v3  ;;  %7308 = vmatprep.subr.bf16.mxu1 %v7714_v4  ;;  %v7780_v3 = vld [vmem:[%s10834_s1 + $0x558] ss:$12 sps:$4 sm:$0xff]   ;;  %v7784_v4 = vld [vmem:[%s10834_s1 + $0xaa0] ss:$12 sps:$4 sm:$0xff]  }
  0xb3   :  { %3109 = vmatpush1.bf16.msra.mxu0 %v7711_v5  ;;  %7309 = vmatpush3.bf16.msra.mxu1 %v7715_v6  ;;  %v7787_v5 = vld [vmem:[%s10834_s1 + $0x574] ss:$12 sps:$4 sm:$0xff]   ;;  %v7788_v6 = vld [vmem:[%s10834_s1 + $0xb78] ss:$12 sps:$4 sm:$0xff]  }
  0xb4   :  { %3110 = vmatprep.subr.bf16.mxu0 %v7718_v7  ;;  %7310 = vmatprep.subr.bf16.mxu1 %v7719_v9  ;;  %v7785_v7 = vld [vmem:[%s10834_s1 + $0x570] ss:$12 sps:$4 sm:$0xff]   ;;  %v7789_v9 = vld [vmem:[%s10834_s1 + $0xab8] ss:$12 sps:$4 sm:$0xff]  }
  0xb7   :  { %3111 = vmatpush1.bf16.msra.mxu0 %v7716_v10  ;;  %7311 = vmatpush3.bf16.msra.mxu1 %v7720_v11  ;;  %v7792_v10 = vld [vmem:[%s10834_s1 + $0x58c] ss:$12 sps:$4 sm:$0xff]   ;;  %v7793_v11 = vld [vmem:[%s10834_s1 + $0xb90] ss:$12 sps:$4 sm:$0xff]  }
  0xb8   :  { %3112 = vmatprep.subr.bf16.mxu0 %v7723_v12  ;;  %7312 = vmatprep.subr.bf16.mxu1 %v7724_v13  ;;  %v7790_v12 = vld [vmem:[%s10834_s1 + $0x588] ss:$12 sps:$4 sm:$0xff]   ;;  %v7794_v13 = vld [vmem:[%s10834_s1 + $0xad0] ss:$12 sps:$4 sm:$0xff]  }
  0xbb   :  { %3113 = vmatpush1.bf16.msra.mxu0 %v7721_v14  ;;  %7313 = vmatpush3.bf16.msra.mxu1 %v7725_v16  ;;  %v7797_v14 = vld [vmem:[%s10834_s1 + $0x5a4] ss:$12 sps:$4 sm:$0xff]   ;;  %v7798_v16 = vld [vmem:[%s10834_s1 + $0xba8] ss:$12 sps:$4 sm:$0xff]  }
  0xbc   :  { %3114 = vmatprep.subr.bf16.mxu0 %v7728_v17  ;;  %7314 = vmatprep.subr.bf16.mxu1 %v7729_v18  ;;  %v7795_v17 = vld [vmem:[%s10834_s1 + $0x5a0] ss:$12 sps:$4 sm:$0xff]   ;;  %v7799_v18 = vld [vmem:[%s10834_s1 + $0xae8] ss:$12 sps:$4 sm:$0xff]  }
  0xbf   :  { %3115 = vmatpush1.bf16.msra.mxu0 %v7726_v19  ;;  %7315 = vmatpush3.bf16.msra.mxu1 %v7730_v20  ;;  %v7802_v19 = vld [vmem:[%s10834_s1 + $0x5bc] ss:$12 sps:$4 sm:$0xff]   ;;  %v7803_v20 = vld [vmem:[%s10834_s1 + $0xbc0] ss:$12 sps:$4 sm:$0xff]  }
  0xc0   :  { %3125 = vmatprep.subr.bf16.mxu0 %v7733_v21  ;;  %7322 = vmatprep.subr.bf16.mxu1 %v7736_v8  ;;  %v7800_v21 = vld [vmem:[%s10834_s1 + $0x5b8] ss:$12 sps:$4 sm:$0xff]   ;;  %v7804_v8 = vld [vmem:[%s10834_s1 + $0xb00] ss:$12 sps:$4 sm:$0xff]  }
  0xc2   :  { %3117 = vmatmul.mubr.bf16.vlgmr.msra.gmra.mrb[0].mxu0 %v8651_v43  ;;  %3604 = vmatmul.mubr.bf16.vlgmr.msra.gmra.mrb[20].mxu1 %v8973_v24  ;;  %v7746_v43 = vld [vmem:[%s10834_s1 + $0x9f8] ss:$12 sps:$4 sm:$0xff]  }
  0xc3   :  { %3126 = vmatpush1.bf16.msra.mxu0 %v7731_v23  ;;  %7323 = vmatpush3.bf16.msra.mxu1 %v7737_v25  ;;  %v7808_v23 = vld [vmem:[%s10834_s1 + $0xbd8] ss:$12 sps:$4 sm:$0xff]   ;;  %v7805_v25 = vld [vmem:[%s10834_s1 + $0x5d0] ss:$12 sps:$4 sm:$0xff]  }
  0xc4   :  { %3127 = vmatprep.subr.bf16.mxu0 %v7740_v27  ;;  %7324 = vmatprep.subr.bf16.mxu1 %v7741_v28  ;;  %v7809_v27 = vld [vmem:[%s10834_s1 + $0xb18] ss:$12 sps:$4 sm:$0xff]  }
  0xc5   :  { %3643 = vmatprep.mubr.bf16.mxu1 %v8986_v29  ;;  %3157 = vmatprep.mubr.bf16.mxu0 %v8702_v60  ;;  %v7748_v60 = vld [vmem:[%s10834_s1 + $0x4c8] ss:$12 sps:$4 sm:$0xff]   ;;  %v7812_v28 = vld [vmem:[%s10834_s1 + $0x5ec] ss:$12 sps:$4 sm:$0xff]  }
  0xc7   :  { %3128 = vmatpush1.bf16.msra.mxu0 %v7738_v30  ;;  %7325 = vmatpush3.bf16.msra.mxu1 %v7742_v31  ;;  %v7813_v30 = vld [vmem:[%s10834_s1 + $0xbf0] ss:$12 sps:$4 sm:$0xff]   ;;  %v7810_v31 = vld [vmem:[%s10834_s1 + $0x5e8] ss:$12 sps:$4 sm:$0xff]  }
  0xc8   :  { %3129 = vmatprep.subr.bf16.mxu0 %v7745_v32  ;;  %7326 = vmatprep.subr.bf16.mxu1 %v7746_v43  ;;  %v7814_v32 = vld [vmem:[%s10834_s1 + $0xb30] ss:$12 sps:$4 sm:$0xff]  }
  0xc9   :  { %v7817_v43 = vld [vmem:[%s10834_s1 + $0x604] ss:$12 sps:$4 sm:$0xff]  }
  0xcb   :  { %3130 = vmatpush1.bf16.msra.mxu0 %v7743_v33  ;;  %7327 = vmatpush3.bf16.msra.mxu1 %v7747_v34  ;;  %v7820_v33 = vld [vmem:[%s10834_s1 + $0xcc8] ss:$12 sps:$4 sm:$0xff]   ;;  %v9190_v34 = vld [vmem:[%s10835_s0 + $0x40] sm:$0xff] }
  0xcc   :  { %3131 = vmatprep.subr.bf16.mxu0 %v7750_v35  ;;  %7328 = vmatprep.subr.bf16.mxu1 %v7751_v36  ;;  %v7815_v35 = vld [vmem:[%s10834_s1 + $0x600] ss:$12 sps:$4 sm:$0xff]   ;;  %v9197_v36 = vcombine.low %v9082_v61, %v9082_v61  ;;  %v7850_v61 = vld [vmem:[%s10834_s1 + $0xd58] ss:$12 sps:$4 sm:$0xff]  }
  0xcf   :  { %3132 = vmatpush1.bf16.msra.mxu0 %v7748_v60  ;;  %7329 = vmatpush3.bf16.msra.mxu1 %v7752_v37  ;;  %v7821_v60 = vld [vmem:[%s10834_s1 + $0xc08] ss:$12 sps:$4 sm:$0xff]  }
  0xd0   :  { %3133 = vmatprep.subr.bf16.mxu0 %v7755_v38  ;;  %7330 = vmatprep.subr.bf16.mxu1 %v7756_v39  ;;  %v7824_v37 = vld [vmem:[%s10834_s1 + $0x61c] ss:$12 sps:$4 sm:$0xff]   ;;  %v7825_v38 = vld [vmem:[%s10834_s1 + $0xce0] ss:$12 sps:$4 sm:$0xff]   ;;  %v9210_v39 = vcombine.high %v9190_v34, %v9190_v34 }
  0xd3   :  { %3134 = vmatpush1.bf16.msra.mxu0 %v7753_v40  ;;  %7331 = vmatpush3.bf16.msra.mxu1 %v7757_v41  ;;  %v7822_v40 = vld [vmem:[%s10834_s1 + $0x618] ss:$12 sps:$4 sm:$0xff]   ;;  %v7826_v41 = vld [vmem:[%s10834_s1 + $0xc20] ss:$12 sps:$4 sm:$0xff]  }
  0xd4   :  { %3135 = vmatprep.subr.bf16.mxu0 %v7760_v42  ;;  %7332 = vmatprep.subr.bf16.mxu1 %v7761_v44  ;;  %v7829_v42 = vld [vmem:[%s10834_s1 + $0x634] ss:$12 sps:$4 sm:$0xff]   ;;  %v7827_v44 = vld [vmem:[%s10834_s1 + $0x630] ss:$12 sps:$4 sm:$0xff]  }
  0xd7   :  { %3136 = vmatpush1.bf16.msra.mxu0 %v7758_v45  ;;  %7333 = vmatpush3.bf16.msra.mxu1 %v7762_v46  ;;  %v7831_v45 = vld [vmem:[%s10834_s1 + $0xc38] ss:$12 sps:$4 sm:$0xff]  }
  0xd8   :  { %3137 = vmatprep.subr.bf16.mxu0 %v7765_v47  ;;  %7334 = vmatprep.subr.bf16.mxu1 %v7766_v48  ;;  %v7834_v46 = vld [vmem:[%s10834_s1 + $0x64c] ss:$12 sps:$4 sm:$0xff]   ;;  %v7832_v47 = vld [vmem:[%s10834_s1 + $0x648] ss:$12 sps:$4 sm:$0xff]   ;;  %v7836_v48 = vld [vmem:[%s10834_s1 + $0xc50] ss:$12 sps:$4 sm:$0xff]  }
  0xdb   :  { %3138 = vmatpush1.bf16.msra.mxu0 %v7763_v49  ;;  %7335 = vmatpush3.bf16.msra.mxu1 %v7767_v51  ;;  %v7839_v49 = vld [vmem:[%s10834_s1 + $0x664] ss:$12 sps:$4 sm:$0xff]   ;;  %v7840_v51 = vld [vmem:[%s10834_s1 + $0xd28] ss:$12 sps:$4 sm:$0xff]  }
  0xdc   :  { %3139 = vmatprep.subr.bf16.mxu0 %v7770_v52  ;;  %7336 = vmatprep.subr.bf16.mxu1 %v7771_v53  ;;  %v7837_v52 = vld [vmem:[%s10834_s1 + $0x660] ss:$12 sps:$4 sm:$0xff]   ;;  %v7841_v53 = vld [vmem:[%s10834_s1 + $0xc68] ss:$12 sps:$4 sm:$0xff]  }
  0xdf   :  { %3140 = vmatpush1.bf16.msra.mxu0 %v7768_v54  ;;  %7337 = vmatpush3.bf16.msra.mxu1 %v7772_v55  ;;  %v7844_v54 = vld [vmem:[%s10834_s1 + $0x67c] ss:$12 sps:$4 sm:$0xff]   ;;  %v7845_v55 = vld [vmem:[%s10834_s1 + $0xd40] ss:$12 sps:$4 sm:$0xff]  }
  0xe0   :  { %3141 = vmatprep.subr.bf16.mxu0 %v7775_v56  ;;  %7344 = vmatprep.subr.bf16.mxu1 %v7778_v58  ;;  %v7842_v56 = vld [vmem:[%s10834_s1 + $0x678] ss:$12 sps:$4 sm:$0xff]   ;;  %v7846_v58 = vld [vmem:[%s10834_s1 + $0xc80] ss:$12 sps:$4 sm:$0xff]  }
  0xe2   :  { %3644 = vmatmul.mubr.bf16.vlgmr.msra.gmra.mrb[24].mxu1 %v9086_v62 }
  0xe3   :  { %3142 = vmatpush1.bf16.msra.mxu0 %v7773_v59  ;;  %7345 = vmatpush3.bf16.msra.mxu1 %v7779_v63  ;;  %v7849_v59 = vld [vmem:[%s10834_s1 + $0x694] ss:$12 sps:$4 sm:$0xff]   ;;  %v7847_v63 = vld [vmem:[%s10834_s1 + $0x690] ss:$12 sps:$4 sm:$0xff]  }
  0xe4   :  { %3143 = vmatprep.subr.bf16.mxu0 %v7782_v0  ;;  %7346 = vmatprep.subr.bf16.mxu1 %v7783_v1  ;;  %v7851_v0 = vld [vmem:[%s10834_s1 + $0xc98] ss:$12 sps:$4 sm:$0xff]  }
  0xe5   :  { %3683 = vmatprep.mubr.bf16.mxu1 %v9099_v2  ;;  %v7854_v1 = vld [vmem:[%s10834_s1 + $0x6ac] ss:$12 sps:$4 sm:$0xff]  }
  0xe7   :  { %3144 = vmatpush1.bf16.msra.mxu0 %v7780_v3  ;;  %7347 = vmatpush3.bf16.msra.mxu1 %v7784_v4  ;;  %v7855_v3 = vld [vmem:[%s10834_s1 + $0xd70] ss:$12 sps:$4 sm:$0xff]   ;;  %v7852_v4 = vld [vmem:[%s10834_s1 + $0x6a8] ss:$12 sps:$4 sm:$0xff]  }
  0xe8   :  { %3145 = vmatprep.subr.bf16.mxu0 %v7787_v5  ;;  %7348 = vmatprep.subr.bf16.mxu1 %v7788_v6  ;;  %v7856_v5 = vld [vmem:[%s10834_s1 + $0xcb0] ss:$12 sps:$4 sm:$0xff]  }
  0xe9   :  { %v7861_v6 = vld [vmem:[%s10834_s1 + $0x6c4] ss:$12 sps:$4 sm:$0xff]  }
  0xeb   :  { %3146 = vmatpush1.bf16.msra.mxu0 %v7785_v7  ;;  %7349 = vmatpush3.bf16.msra.mxu1 %v7789_v9  ;;  %v9299_v7 = vcombine.low %v9190_v34, %v9190_v34  ;;  %v7859_v9 = vld [vmem:[%s10834_s1 + $0x6c0] ss:$12 sps:$4 sm:$0xff]  }
  0xec   :  { %3147 = vmatprep.subr.bf16.mxu0 %v7792_v10  ;;  %7350 = vmatprep.subr.bf16.mxu1 %v7793_v11  ;;  %v7864_v10 = vld [vmem:[%s10834_s1 + $0x6dc] ss:$12 sps:$4 sm:$0xff]   ;;  %v7862_v11 = vld [vmem:[%s10834_s1 + $0x6d8] ss:$12 sps:$4 sm:$0xff]  }
  0xef   :  { %3148 = vmatpush1.bf16.msra.mxu0 %v7790_v12  ;;  %7351 = vmatpush3.bf16.msra.mxu1 %v7794_v13  ;;  %v7867_v12 = vld [vmem:[%s10834_s1 + $0x6f4] ss:$12 sps:$4 sm:$0xff]   ;;  %v7865_v13 = vld [vmem:[%s10834_s1 + $0x6f0] ss:$12 sps:$4 sm:$0xff]  }
  0xf0   :  { %3149 = vmatprep.subr.bf16.mxu0 %v7797_v14  ;;  %7352 = vmatprep.subr.bf16.mxu1 %v7798_v16  ;;  %v7870_v14 = vld [vmem:[%s10834_s1 + $0x70c] ss:$12 sps:$4 sm:$0xff]   ;;  %v7868_v16 = vld [vmem:[%s10834_s1 + $0x708] ss:$12 sps:$4 sm:$0xff]  }
  0xf3   :  { %3150 = vmatpush1.bf16.msra.mxu0 %v7795_v17  ;;  %7353 = vmatpush3.bf16.msra.mxu1 %v7799_v18  ;;  %v7873_v17 = vld [vmem:[%s10834_s1 + $0x724] ss:$12 sps:$4 sm:$0xff]   ;;  %v7871_v18 = vld [vmem:[%s10834_s1 + $0x720] ss:$12 sps:$4 sm:$0xff]  }
  0xf4   :  { %3151 = vmatprep.subr.bf16.mxu0 %v7802_v19  ;;  %7354 = vmatprep.subr.bf16.mxu1 %v7803_v20  ;;  %v7876_v19 = vld [vmem:[%s10834_s1 + $0x73c] ss:$12 sps:$4 sm:$0xff]   ;;  %v7874_v20 = vld [vmem:[%s10834_s1 + $0x738] ss:$12 sps:$4 sm:$0xff]  }
  0xf7   :  { %3152 = vmatpush1.bf16.msra.mxu0 %v7800_v21  ;;  %7355 = vmatpush3.bf16.msra.mxu1 %v7804_v8  ;;  %v7879_v21 = vld [vmem:[%s10834_s1 + $0x754] ss:$12 sps:$4 sm:$0xff]   ;;  %v7877_v8 = vld [vmem:[%s10834_s1 + $0x750] ss:$12 sps:$4 sm:$0xff]  }
  0xf8   :  { %3153 = vmatprep.subr.bf16.mxu0 %v7807_v22  ;;  %7356 = vmatprep.subr.bf16.mxu1 %v7808_v23  ;;  %v7882_v22 = vld [vmem:[%s10834_s1 + $0x76c] ss:$12 sps:$4 sm:$0xff]   ;;  %v7880_v23 = vld [vmem:[%s10834_s1 + $0x768] ss:$12 sps:$4 sm:$0xff]  }
  0xfb   :  { %3154 = vmatpush1.bf16.msra.mxu0 %v7805_v25  ;;  %7357 = vmatpush3.bf16.msra.mxu1 %v7809_v27  ;;  %v7885_v25 = vld [vmem:[%s10834_s1 + $0x784] ss:$12 sps:$4 sm:$0xff]   ;;  %v7883_v27 = vld [vmem:[%s10834_s1 + $0x780] ss:$12 sps:$4 sm:$0xff]  }
  0xfc   :  { %3155 = vmatprep.subr.bf16.mxu0 %v7812_v28  ;;  %7358 = vmatprep.subr.bf16.mxu1 %v7813_v30  ;;  %v7888_v28 = vld [vmem:[%s10834_s1 + $0x79c] ss:$12 sps:$4 sm:$0xff]   ;;  %v7886_v30 = vld [vmem:[%s10834_s1 + $0x798] ss:$12 sps:$4 sm:$0xff]  }
  0xff   :  { %3156 = vmatpush1.bf16.msra.mxu0 %v7810_v31  ;;  %7359 = vmatpush3.bf16.msra.mxu1 %v7814_v32  ;;  %v7891_v31 = vld [vmem:[%s10834_s1 + $0x7b4] ss:$12 sps:$4 sm:$0xff]   ;;  %v7889_v32 = vld [vmem:[%s10834_s1 + $0x7b0] ss:$12 sps:$4 sm:$0xff]  }
 0x100   :  { %3166 = vmatprep.subr.bf16.mxu0 %v7817_v43  ;;  %7366 = vmatprep.subr.bf16.mxu1 %v7820_v33  ;;  %v7206_v43 = vpop.f32.mrb[0].mxu1  ;;  %v620_v33 = vlaneseq }
 0x101   :  { %v7207_v34 = vpop.f32.mrb[1].mxu1 }
 0x102   :  { %3158 = vmatmul.mubr.bf16.vlgmr.msra.gmra.mrb[0].mxu0 %v8756_v15  ;;  %3684 = vmatmul.mubr.bf16.vlgmr.msra.gmra.mrb[28].mxu1 %v9197_v36  ;;  %v7830_v15 = vld [vmem:[%s10834_s1 + $0xcf8] ss:$12 sps:$4 sm:$0xff]  }
 0x103   :  { %3167 = vmatpush1.bf16.msra.mxu0 %v7815_v35  ;;  %7367 = vmatpush3.bf16.msra.mxu1 %v7821_v60  ;;  %v7208_v35 = vadd.f32 %v7207_v34, %v7206_v43  ;;  %v9370_v60 = vshrl.u32 %v620_v33, 7  ;;  %v7918_v43 = vld [vmem:[%s10834_s1 + $0x88c] ss:$12 sps:$4 sm:$0xff]   ;;  %v3893_v33 = vld [vmem:[%s10837_s3 + $0x4e0] sm:$0xff] }
 0x104   :  { %3168 = vmatprep.subr.bf16.mxu0 %v7824_v37  ;;  %7368 = vmatprep.subr.bf16.mxu1 %v7825_v38  ;;  %v7892_v38 = vld [vmem:[%s10834_s1 + $0x7c8] ss:$12 sps:$4 sm:$0xff]  }
 0x105   :  { %3723 = vmatprep.mubr.bf16.mxu1 %v9210_v39  ;;  %3198 = vmatprep.mubr.bf16.mxu0 %v8794_v26  ;;  %v7835_v26 = vld [vmem:[%s10834_s1 + $0xd10] ss:$12 sps:$4 sm:$0xff]  }
 0x107   :  { %3169 = vmatpush1.bf16.msra.mxu0 %v7822_v40  ;;  %7369 = vmatpush3.bf16.msra.mxu1 %v7826_v41  ;;  %v618_v40 = vld [vmem:[%s10836_s2] sm:$0x7] }
 0x108   :  { %3170 = vmatprep.subr.bf16.mxu0 %v7829_v42  ;;  %7370 = vmatprep.subr.bf16.mxu1 %v7830_v15  ;;  %v7897_v42 = vld [vmem:[%s10834_s1 + $0x7e4] ss:$12 sps:$4 sm:$0xff]   ;;  %v630_v15 = vsub.s32 2, %v9370_v60 }
 0x10b   :  { %3171 = vmatpush1.bf16.msra.mxu0 %v7827_v44  ;;  %7371 = vmatpush3.bf16.msra.mxu1 %v7831_v45 }
 0x10c   :  { %3172 = vmatprep.subr.bf16.mxu0 %v7834_v46  ;;  %7372 = vmatprep.subr.bf16.mxu1 %v7835_v26  ;;  %v631_v26 = vrot.slane %v618_v40, %v630_v15  ;;  %v3901_v40 = vld [vmem:[%s10837_s3 + $0x520] sm:$0xff] }
 0x10f   :  { %3173 = vmatpush1.bf16.msra.mxu0 %v7832_v47  ;;  %7373 = vmatpush3.bf16.msra.mxu1 %v7836_v48  ;;  %v7895_v48 = vld [vmem:[%s10834_s1 + $0x7e0] ss:$12 sps:$4 sm:$0xff]  }
 0x110   :  { %3174 = vmatprep.subr.bf16.mxu0 %v7839_v49  ;;  %7374 = vmatprep.subr.bf16.mxu1 %v7840_v51  ;;  %v7900_v51 = vld [vmem:[%s10834_s1 + $0x7fc] ss:$12 sps:$4 sm:$0xff]  }
 0x113   :  { %3175 = vmatpush1.bf16.msra.mxu0 %v7837_v52  ;;  %7375 = vmatpush3.bf16.msra.mxu1 %v7841_v53  ;;  %v3406_v52 = vadd.f32 %v7208_v35, %v631_v26  ;;  %v7916_v35 = vld [vmem:[%s10834_s1 + $0x888] ss:$12 sps:$4 sm:$0xff]   ;;  %v3909_v26 = vld [vmem:[%s10837_s3 + $0x560] sm:$0xff] }
 0x114   :  { %3176 = vmatprep.subr.bf16.mxu0 %v7844_v54  ;;  %7376 = vmatprep.subr.bf16.mxu1 %v7845_v55 }
 0x117   :  { %3177 = vmatpush1.bf16.msra.mxu0 %v7842_v56  ;;  %7377 = vmatpush3.bf16.msra.mxu1 %v7846_v58 }
 0x118   :  { %3178 = vmatprep.subr.bf16.mxu0 %v7849_v59  ;;  %7378 = vmatprep.subr.bf16.mxu1 %v7850_v61  ;;  %v7898_v59 = vld [vmem:[%s10834_s1 + $0x7f8] ss:$12 sps:$4 sm:$0xff]   ;;  %v7903_v61 = vld [vmem:[%s10834_s1 + $0x814] ss:$12 sps:$4 sm:$0xff]  }
 0x11b   :  { %3179 = vmatpush1.bf16.msra.mxu0 %v7847_v63  ;;  %7379 = vmatpush3.bf16.msra.mxu1 %v7851_v0 }
 0x11c   :  { %3180 = vmatprep.subr.bf16.mxu0 %v7854_v1  ;;  %7380 = vmatprep.subr.bf16.mxu1 %v7855_v3  ;;  %v7901_v1 = vld [vmem:[%s10834_s1 + $0x810] ss:$12 sps:$4 sm:$0xff]  }
 0x11f   :  { %3181 = vmatpush1.bf16.msra.mxu0 %v7852_v4  ;;  %7381 = vmatpush3.bf16.msra.mxu1 %v7856_v5  ;;  %v7906_v4 = vld [vmem:[%s10834_s1 + $0x82c] ss:$12 sps:$4 sm:$0xff]  }
 0x120   :  { %3182 = vmatprep.subr.bf16.mxu0 %v7861_v6 }
 0x122   :  { %3724 = vmatmul.mubr.bf16.vlgmr.msra.gmra.mrb[32].mxu1 %v9299_v7 }
 0x123   :  { %3183 = vmatpush1.bf16.msra.mxu0 %v7859_v9 }
 0x124   :  { %3184 = vmatprep.subr.bf16.mxu0 %v7864_v10 }
 0x127   :  { %3185 = vmatpush1.bf16.msra.mxu0 %v7862_v11  ;;  %v7904_v11 = vld [vmem:[%s10834_s1 + $0x828] ss:$12 sps:$4 sm:$0xff]  }
 0x128   :  { %3186 = vmatprep.subr.bf16.mxu0 %v7867_v12  ;;  %v7909_v12 = vld [vmem:[%s10834_s1 + $0x844] ss:$12 sps:$4 sm:$0xff]  }
 0x12b   :  { %3187 = vmatpush1.bf16.msra.mxu0 %v7865_v13  ;;  %v3865_v13 = vld [vmem:[%s10837_s3 + $0x400] sm:$0xff] }
 0x12c   :  { %3188 = vmatprep.subr.bf16.mxu0 %v7870_v14  ;;  %v3869_v14 = vld [vmem:[%s10837_s3 + $0x420] sm:$0xff] }
 0x12f   :  { %3189 = vmatpush1.bf16.msra.mxu0 %v7868_v16  ;;  %v6982_v16 = vcombine.high %v3865_v13, %v3869_v14 }
 0x130   :  { %3190 = vmatprep.subr.bf16.mxu0 %v7873_v17  ;;  %v7907_v17 = vld [vmem:[%s10834_s1 + $0x840] ss:$12 sps:$4 sm:$0xff]  }
 0x131   :  { %4972 = vmatprep.subr.bf16.mxu1 %v6982_v16  ;;  %v7934_v16 = vld [vmem:[%s10834_s1 + $0x918] ss:$12 sps:$4 sm:$0xff]  }
 0x133   :  { %3191 = vmatpush1.bf16.msra.mxu0 %v7871_v18  ;;  %v6981_v18 = vcombine.low %v3865_v13, %v3869_v14  ;;  %v7931_v13 = vld [vmem:[%s10834_s1 + $0x900] ss:$12 sps:$4 sm:$0xff]   ;;  %v7936_v14 = vld [vmem:[%s10834_s1 + $0x91c] ss:$12 sps:$4 sm:$0xff]  }
 0x134   :  { %3192 = vmatprep.subr.bf16.mxu0 %v7876_v19  ;;  %v7912_v19 = vld [vmem:[%s10834_s1 + $0x85c] ss:$12 sps:$4 sm:$0xff]  }
 0x135   :  { %4973 = vmatpush1.bf16.msra.mxu1 %v6981_v18  ;;  %v7937_v18 = vld [vmem:[%s10834_s1 + $0x930] ss:$12 sps:$4 sm:$0xff]  }
 0x137   :  { %3193 = vmatpush1.bf16.msra.mxu0 %v7874_v20  ;;  %v3873_v20 = vld [vmem:[%s10837_s3 + $0x440] sm:$0xff] }
 0x138   :  { %3194 = vmatprep.subr.bf16.mxu0 %v7879_v21  ;;  %v3877_v21 = vld [vmem:[%s10837_s3 + $0x460] sm:$0xff] }
 0x13b   :  { %3195 = vmatpush1.bf16.msra.mxu0 %v7877_v8  ;;  %v6990_v8 = vcombine.high %v3873_v20, %v3877_v21 }
 0x13c   :  { %3196 = vmatprep.subr.bf16.mxu0 %v7882_v22  ;;  %v7910_v22 = vld [vmem:[%s10834_s1 + $0x858] ss:$12 sps:$4 sm:$0xff]  }
 0x13d   :  { %4974 = vmatprep.subr.bf16.mxu1 %v6990_v8  ;;  %v7946_v8 = vld [vmem:[%s10834_s1 + $0x978] ss:$12 sps:$4 sm:$0xff]  }
 0x13f   :  { %3197 = vmatpush1.bf16.msra.mxu0 %v7880_v23  ;;  %v6989_v23 = vcombine.low %v3873_v20, %v3877_v21  ;;  %v7943_v20 = vld [vmem:[%s10834_s1 + $0x960] ss:$12 sps:$4 sm:$0xff]   ;;  %v7948_v21 = vld [vmem:[%s10834_s1 + $0x97c] ss:$12 sps:$4 sm:$0xff]  }
 0x140   :  { %3207 = vmatprep.subr.bf16.mxu0 %v7885_v25  ;;  %v7915_v25 = vld [vmem:[%s10834_s1 + $0x874] ss:$12 sps:$4 sm:$0xff]  }
 0x141   :  { %4975 = vmatpush1.bf16.msra.mxu1 %v6989_v23 }
 0x142   :  { %3199 = vmatmul.mubr.bf16.vlgmr.msra.gmra.mrb[0].mxu0 %v8863_v50  ;;  %v7894_v50 = vld [vmem:[%s10834_s1 + $0x7cc] ss:$12 sps:$4 sm:$0xff]  }
 0x143   :  { %3208 = vmatpush1.bf16.msra.mxu0 %v7883_v27  ;;  %3239 = vmatprep.mubr.bf16.mxu0 %v8884_v57  ;;  %v7209_v57 = vpop.f32.mrb[2].mxu1  ;;  %v3881_v27 = vld [vmem:[%s10837_s3 + $0x480] sm:$0xff] }
 0x144   :  { %3209 = vmatprep.subr.bf16.mxu0 %v7888_v28  ;;  %v7210_v37 = vpop.f32.mrb[3].mxu1  ;;  %v3885_v28 = vld [vmem:[%s10837_s3 + $0x4a0] sm:$0xff] }
 0x145   :  { %v7228_v41 = vpop.f32.mrb[4].mxu1  ;;  %v7921_v37 = vld [vmem:[%s10834_s1 + $0x8a4] ss:$12 sps:$4 sm:$0xff]  }
 0x146   :  { %v7229_v44 = vpop.f32.mrb[5].mxu1 }
 0x147   :  { %3210 = vmatpush1.bf16.msra.mxu0 %v7886_v30  ;;  %v7230_v45 = vadd.f32 %v7229_v44, %v7228_v41  ;;  %v7231_v46 = vpop.f32.mrb[6].mxu1  ;;  %v6998_v30 = vcombine.high %v3881_v27, %v3885_v28 }
 0x148   :  { %3211 = vmatprep.subr.bf16.mxu0 %v7891_v31  ;;  %v7232_v47 = vpop.f32.mrb[7].mxu1  ;;  %v7913_v31 = vld [vmem:[%s10834_s1 + $0x870] ss:$12 sps:$4 sm:$0xff]   ;;  %v3905_v46 = vld [vmem:[%s10837_s3 + $0x540] sm:$0xff] }
 0x149   :  { %v7250_v49 = vpop.f32.mrb[8].mxu1  ;;  %v3446_v56 = vadd.f32 %v7230_v45, %v3406_v52  ;;  %4976 = vmatprep.subr.bf16.mxu1 %v6998_v30  ;;  %v7924_v45 = vld [vmem:[%s10834_s1 + $0x8bc] ss:$12 sps:$4 sm:$0xff]   ;;  %v7022_v47 = vcombine.high %v3905_v46, %v3909_v26  ;;  %v3913_v52 = vld [vmem:[%s10837_s3 + $0x580] sm:$0xff] }
 0x14a   :  { %v7251_v53 = vpop.f32.mrb[9].mxu1 }
 0x14b   :  { %3212 = vmatpush1.bf16.msra.mxu0 %v7889_v32  ;;  %v7252_v54 = vadd.f32 %v7251_v53, %v7250_v49  ;;  %v7253_v55 = vpop.f32.mrb[10].mxu1  ;;  %v6997_v32 = vcombine.low %v3881_v27, %v3885_v28  ;;  %v7021_v49 = vcombine.low %v3905_v46, %v3909_v26  ;;  %v3917_v53 = vld [vmem:[%s10837_s3 + $0x5a0] sm:$0xff]  ;;  %v7954_v28 = vld [vmem:[%s10834_s1 + $0x9ac] ss:$12 sps:$4 sm:$0xff]  }
 0x14c   :  { %3213 = vmatprep.subr.bf16.mxu0 %v7894_v50  ;;  %v7254_v58 = vpop.f32.mrb[11].mxu1  ;;  %v3889_v50 = vld [vmem:[%s10837_s3 + $0x4c0] sm:$0xff]  ;;  %v7030_v55 = vcombine.high %v3913_v52, %v3917_v53 }
 0x14d   :  { %v3486_v63 = vadd.f32 %v7252_v54, %v3446_v56  ;;  %4977 = vmatpush1.bf16.msra.mxu1 %v6997_v32  ;;  %v7006_v34 = vcombine.high %v3889_v50, %v3893_v33  ;;  %v7005_v57 = vcombine.low %v3889_v50, %v3893_v33  ;;  %v7925_v56 = vld [vmem:[%s10834_s1 + $0x8d0] ss:$12 sps:$4 sm:$0xff]   ;;  %v7952_v50 = vld [vmem:[%s10834_s1 + $0x9a8] ss:$12 sps:$4 sm:$0xff]   ;;  %v7970_v46 = vld [vmem:[%s10834_s1 + $0xa38] ss:$12 sps:$4 sm:$0xff]  }
 0x14e   :  { %v7957_v33 = vld [vmem:[%s10834_s1 + $0x9c4] ss:$12 sps:$4 sm:$0xff]   ;;  %v7975_v26 = vld [vmem:[%s10834_s1 + $0xa54] ss:$12 sps:$4 sm:$0xff]  }
 0x14f   :  { %3214 = vmatpush1.bf16.msra.mxu0 %v7892_v38  ;;  %4978 = vmatprep.subr.bf16.mxu1 %v7006_v34  ;;  %v3897_v38 = vld [vmem:[%s10837_s3 + $0x500] sm:$0xff] }
 0x150   :  { %3215 = vmatprep.subr.bf16.mxu0 %v7897_v42  ;;  %v7014_v41 = vcombine.high %v3897_v38, %v3901_v40  ;;  %v7919_v42 = vld [vmem:[%s10834_s1 + $0x8a0] ss:$12 sps:$4 sm:$0xff]   ;;  %v7013_v44 = vcombine.low %v3897_v38, %v3901_v40  ;;  %v7961_v38 = vld [vmem:[%s10834_s1 + $0x9f0] ss:$12 sps:$4 sm:$0xff]  }
 0x151   :  { %4979 = vmatpush1.bf16.msra.mxu1 %v7005_v57  ;;  %v7955_v34 = vld [vmem:[%s10834_s1 + $0x9c0] ss:$12 sps:$4 sm:$0xff]   ;;  %v7958_v57 = vld [vmem:[%s10834_s1 + $0x9d8] ss:$12 sps:$4 sm:$0xff]  }
 0x152   :  { %4980 = vmatprep.subr.bf16.mxu1 %v7014_v41  ;;  %v7966_v40 = vld [vmem:[%s10834_s1 + $0xa0c] ss:$12 sps:$4 sm:$0xff]   ;;  %v7964_v41 = vld [vmem:[%s10834_s1 + $0xa08] ss:$12 sps:$4 sm:$0xff]  }
 0x153   :  { %3216 = vmatpush1.bf16.msra.mxu0 %v7895_v48  ;;  %v7922_v48 = vld [vmem:[%s10834_s1 + $0x8b8] ss:$12 sps:$4 sm:$0xff]  }
 0x154   :  { %3217 = vmatprep.subr.bf16.mxu0 %v7900_v51  ;;  %v7927_v51 = vld [vmem:[%s10834_s1 + $0x8d4] ss:$12 sps:$4 sm:$0xff]  }
 0x155   :  { %v7272_v0 = vpop.f32.mrb[12].mxu1  ;;  %4981 = vmatpush1.bf16.msra.mxu1 %v7013_v44  ;;  %v7967_v44 = vld [vmem:[%s10834_s1 + $0xa20] ss:$12 sps:$4 sm:$0xff]  }
 0x156   :  { %v7273_v3 = vpop.f32.mrb[13].mxu1  ;;  %4982 = vmatprep.subr.bf16.mxu1 %v7022_v47 }
 0x157   :  { %3218 = vmatpush1.bf16.msra.mxu0 %v7898_v59  ;;  %v7274_v5 = vadd.f32 %v7273_v3, %v7272_v0  ;;  %v7275_v6 = vpop.f32.mrb[14].mxu1  ;;  %v7029_v59 = vcombine.low %v3913_v52, %v3917_v53  ;;  %v3921_v3 = vld [vmem:[%s10837_s3 + $0x5c0] sm:$0xff] }
 0x158   :  { %3219 = vmatprep.subr.bf16.mxu0 %v7903_v61  ;;  %v7276_v9 = vpop.f32.mrb[15].mxu1  ;;  %v7930_v61 = vld [vmem:[%s10834_s1 + $0x8ec] ss:$12 sps:$4 sm:$0xff]  }
 0x159   :  { %v9402_v10 = vadd.f32 %v7274_v5, %v3486_v63  ;;  %4983 = vmatpush1.bf16.msra.mxu1 %v7021_v49  ;;  %v7928_v9 = vld [vmem:[%s10834_s1 + $0x8e8] ss:$12 sps:$4 sm:$0xff]  }
 0x15a   :  { %4984 = vmatprep.subr.bf16.mxu1 %v7030_v55 }
 0x15b   :  { %3220 = vmatpush1.bf16.msra.mxu0 %v7901_v1 }
 0x15c   :  { %3221 = vmatprep.subr.bf16.mxu0 %v7906_v4  ;;  %v3925_v4 = vld [vmem:[%s10837_s3 + $0x5e0] sm:$0xff] }
 0x15d   :  { %4985 = vmatpush1.bf16.msra.mxu1 %v7029_v59  ;;  %v7038_v6 = vcombine.high %v3921_v3, %v3925_v4  ;;  %v7979_v59 = vld [vmem:[%s10834_s1 + $0xa80] ss:$12 sps:$4 sm:$0xff]  }
 0x15f   :  { %3222 = vmatpush1.bf16.msra.mxu0 %v7904_v11  ;;  %v7037_v11 = vcombine.low %v3921_v3, %v3925_v4  ;;  %4986 = vmatprep.subr.bf16.mxu1 %v7038_v6  ;;  %v7993_v3 = vld [vmem:[%s10834_s1 + $0xae4] ss:$12 sps:$4 sm:$0xff]   ;;  %v7991_v4 = vld [vmem:[%s10834_s1 + $0xae0] ss:$12 sps:$4 sm:$0xff]  }
 0x160   :  { %3223 = vmatprep.subr.bf16.mxu0 %v7909_v12  ;;  %v7933_v12 = vld [vmem:[%s10834_s1 + $0x904] ss:$12 sps:$4 sm:$0xff]  }
 0x161   :  { %4987 = vmatpush1.bf16.msra.mxu1 %v7037_v11  ;;  %v7994_v6 = vld [vmem:[%s10834_s1 + $0xaf8] ss:$12 sps:$4 sm:$0xff]  }
 0x163   :  { %3224 = vmatpush1.bf16.msra.mxu0 %v7907_v17  ;;  %v7939_v17 = vld [vmem:[%s10834_s1 + $0x934] ss:$12 sps:$4 sm:$0xff]  }
 0x164   :  { %3225 = vmatprep.subr.bf16.mxu0 %v7912_v19  ;;  %v7945_v19 = vld [vmem:[%s10834_s1 + $0x964] ss:$12 sps:$4 sm:$0xff]  }
 0x167   :  { %3226 = vmatpush1.bf16.msra.mxu0 %v7910_v22  ;;  %v7951_v22 = vld [vmem:[%s10834_s1 + $0x994] ss:$12 sps:$4 sm:$0xff]  }
 0x168   :  { %3227 = vmatprep.subr.bf16.mxu0 %v7915_v25  ;;  %v7949_v25 = vld [vmem:[%s10834_s1 + $0x990] ss:$12 sps:$4 sm:$0xff]  }
 0x16b   :  { %3228 = vmatpush1.bf16.msra.mxu0 %v7913_v31 }
 0x16c   :  { %3229 = vmatprep.subr.bf16.mxu0 %v7918_v43 }
 0x16f   :  { %3230 = vmatpush1.bf16.msra.mxu0 %v7916_v35  ;;  %v7960_v35 = vld [vmem:[%s10834_s1 + $0x9dc] ss:$12 sps:$4 sm:$0xff]  }
 0x170   :  { %3231 = vmatprep.subr.bf16.mxu0 %v7921_v37  ;;  %v7963_v37 = vld [vmem:[%s10834_s1 + $0x9f4] ss:$12 sps:$4 sm:$0xff]  }
 0x173   :  { %3232 = vmatpush1.bf16.msra.mxu0 %v7919_v42  ;;  %v7969_v42 = vld [vmem:[%s10834_s1 + $0xa24] ss:$12 sps:$4 sm:$0xff]  }
 0x174   :  { %3233 = vmatprep.subr.bf16.mxu0 %v7924_v45  ;;  %v7972_v45 = vld [vmem:[%s10834_s1 + $0xa3c] ss:$12 sps:$4 sm:$0xff]  }
 0x175   :  { %v7294_v54 = vpop.f32.mrb[16].mxu1 }
 0x176   :  { %v7295_v58 = vpop.f32.mrb[17].mxu1 }
 0x177   :  { %3234 = vmatpush1.bf16.msra.mxu0 %v7922_v48  ;;  %v7296_v63 = vadd.f32 %v7295_v58, %v7294_v54  ;;  %v7297_v0 = vpop.f32.mrb[18].mxu1  ;;  %v7973_v48 = vld [vmem:[%s10834_s1 + $0xa50] ss:$12 sps:$4 sm:$0xff]  }
 0x178   :  { %3235 = vmatprep.subr.bf16.mxu0 %v7927_v51  ;;  %v7298_v1 = vpop.f32.mrb[19].mxu1  ;;  %v7978_v51 = vld [vmem:[%s10834_s1 + $0xa6c] ss:$12 sps:$4 sm:$0xff]   ;;  %v7981_v58 = vld [vmem:[%s10834_s1 + $0xa84] ss:$12 sps:$4 sm:$0xff]  }
 0x179   :  { %v3566_v5 = vadd.f32 %v7296_v63, %v9402_v10  ;;  %v8284_v10 = vmov 0   ;;  %v7982_v63 = vld [vmem:[%s10834_s1 + $0xa98] ss:$12 sps:$4 sm:$0xff]   ;;  %v7987_v0 = vld [vmem:[%s10834_s1 + $0xab4] ss:$12 sps:$4 sm:$0xff]  }
 0x17a   :  { %5004 = vmatprep.mubr.bf16.mxu1 %v8284_v10  ;;  %v7985_v1 = vld [vmem:[%s10834_s1 + $0xab0] ss:$12 sps:$4 sm:$0xff]  }
 0x17b   :  { %3236 = vmatpush1.bf16.msra.mxu0 %v7925_v56  ;;  %v7976_v56 = vld [vmem:[%s10834_s1 + $0xa68] ss:$12 sps:$4 sm:$0xff]  }
 0x17c   :  { %3237 = vmatprep.subr.bf16.mxu0 %v7930_v61  ;;  %v7984_v61 = vld [vmem:[%s10834_s1 + $0xa9c] ss:$12 sps:$4 sm:$0xff]  }
 0x17f   :  { %3238 = vmatpush1.bf16.msra.mxu0 %v7928_v9  ;;  %v7999_v9 = vld [vmem:[%s10834_s1 + $0xb14] ss:$12 sps:$4 sm:$0xff]  }
 0x180   :  { %3248 = vmatprep.subr.bf16.mxu0 %v7933_v12  ;;  %v7997_v12 = vld [vmem:[%s10834_s1 + $0xb10] ss:$12 sps:$4 sm:$0xff]  }
 0x182   :  { %3240 = vmatmul.mubr.bf16.vlgmr.msra.gmra.mrb[0].mxu0 %v8973_v24  ;;  %v7942_v24 = vld [vmem:[%s10834_s1 + $0x94c] ss:$12 sps:$4 sm:$0xff]  }
 0x183   :  { %3249 = vmatpush1.bf16.msra.mxu0 %v7931_v13  ;;  %3280 = vmatprep.mubr.bf16.mxu0 %v8986_v29  ;;  %v7940_v29 = vld [vmem:[%s10834_s1 + $0x948] ss:$12 sps:$4 sm:$0xff]  }
 0x184   :  { %3250 = vmatprep.subr.bf16.mxu0 %v7936_v14  ;;  %v8002_v14 = vld [vmem:[%s10834_s1 + $0xb2c] ss:$12 sps:$4 sm:$0xff]  }
 0x187   :  { %3251 = vmatpush1.bf16.msra.mxu0 %v7934_v16 }
 0x188   :  { %3252 = vmatprep.subr.bf16.mxu0 %v7939_v17 }
 0x18b   :  { %3253 = vmatpush1.bf16.msra.mxu0 %v7937_v18 }
 0x18c   :  { %3254 = vmatprep.subr.bf16.mxu0 %v7942_v24 }
 0x18f   :  { %3255 = vmatpush1.bf16.msra.mxu0 %v7940_v29  ;;  %v8000_v29 = vld [vmem:[%s10834_s1 + $0xb28] ss:$12 sps:$4 sm:$0xff]  }
 0x190   :  { %3256 = vmatprep.subr.bf16.mxu0 %v7945_v19  ;;  %v8005_v19 = vld [vmem:[%s10834_s1 + $0xb44] ss:$12 sps:$4 sm:$0xff]  }
 0x193   :  { %3257 = vmatpush1.bf16.msra.mxu0 %v7943_v20  ;;  %v8003_v20 = vld [vmem:[%s10834_s1 + $0xb40] ss:$12 sps:$4 sm:$0xff]  }
 0x194   :  { %3258 = vmatprep.subr.bf16.mxu0 %v7948_v21  ;;  %v8008_v21 = vld [vmem:[%s10834_s1 + $0xb5c] ss:$12 sps:$4 sm:$0xff]  }
 0x195   :  { %v7316_v23 = vpop.f32.mrb[20].mxu1 }
 0x196   :  { %v7317_v27 = vpop.f32.mrb[21].mxu1 }
 0x197   :  { %3259 = vmatpush1.bf16.msra.mxu0 %v7946_v8  ;;  %v7318_v30 = vadd.f32 %v7317_v27, %v7316_v23  ;;  %v7319_v31 = vpop.f32.mrb[22].mxu1  ;;  %v8006_v8 = vld [vmem:[%s10834_s1 + $0xb58] ss:$12 sps:$4 sm:$0xff]   ;;  %v8009_v23 = vld [vmem:[%s10834_s1 + $0xb70] ss:$12 sps:$4 sm:$0xff]  }
 0x198   :  { %3260 = vmatprep.subr.bf16.mxu0 %v7951_v22  ;;  %v7320_v32 = vpop.f32.mrb[23].mxu1  ;;  %v8011_v22 = vld [vmem:[%s10834_s1 + $0xb74] ss:$12 sps:$4 sm:$0xff]   ;;  %v8020_v31 = vld [vmem:[%s10834_s1 + $0xbbc] ss:$12 sps:$4 sm:$0xff]  }
 0x199   :  { %v3606_v43 = vadd.f32 %v7318_v30, %v3566_v5  ;;  %v7996_v5 = vld [vmem:[%s10834_s1 + $0xafc] ss:$12 sps:$4 sm:$0xff]   ;;  %v8015_v30 = vld [vmem:[%s10834_s1 + $0xba0] ss:$12 sps:$4 sm:$0xff]   ;;  %v8018_v32 = vld [vmem:[%s10834_s1 + $0xbb8] ss:$12 sps:$4 sm:$0xff]  }
 0x19a   :  { %v8012_v27 = vld [vmem:[%s10834_s1 + $0xb88] ss:$12 sps:$4 sm:$0xff]  }
 0x19b   :  { %3261 = vmatpush1.bf16.msra.mxu0 %v7949_v25  ;;  %v8014_v25 = vld [vmem:[%s10834_s1 + $0xb8c] ss:$12 sps:$4 sm:$0xff]  }
 0x19c   :  { %3262 = vmatprep.subr.bf16.mxu0 %v7954_v28  ;;  %v8017_v28 = vld [vmem:[%s10834_s1 + $0xba4] ss:$12 sps:$4 sm:$0xff]  }
 0x19f   :  { %3263 = vmatpush1.bf16.msra.mxu0 %v7952_v50 }
 0x1a0   :  { %3264 = vmatprep.subr.bf16.mxu0 %v7957_v33 }
 0x1a3   :  { %3265 = vmatpush1.bf16.msra.mxu0 %v7955_v34  ;;  %v8021_v34 = vld [vmem:[%s10834_s1 + $0xbd0] ss:$12 sps:$4 sm:$0xff]  }
 0x1a4   :  { %3266 = vmatprep.subr.bf16.mxu0 %v7960_v35 }
 0x1a7   :  { %3267 = vmatpush1.bf16.msra.mxu0 %v7958_v57  ;;  %v8026_v57 = vld [vmem:[%s10834_s1 + $0xbec] ss:$12 sps:$4 sm:$0xff]  }
 0x1a8   :  { %3268 = vmatprep.subr.bf16.mxu0 %v7963_v37 }
 0x1ab   :  { %3269 = vmatpush1.bf16.msra.mxu0 %v7961_v38 }
 0x1ac   :  { %3270 = vmatprep.subr.bf16.mxu0 %v7966_v40 }
 0x1af   :  { %3271 = vmatpush1.bf16.msra.mxu0 %v7964_v41  ;;  %v8024_v41 = vld [vmem:[%s10834_s1 + $0xbe8] ss:$12 sps:$4 sm:$0xff]  }
 0x1b0   :  { %3272 = vmatprep.subr.bf16.mxu0 %v7969_v42 }
 0x1b3   :  { %3273 = vmatpush1.bf16.msra.mxu0 %v7967_v44  ;;  %v8029_v44 = vld [vmem:[%s10834_s1 + $0xc04] ss:$12 sps:$4 sm:$0xff]  }
 0x1b4   :  { %3274 = vmatprep.subr.bf16.mxu0 %v7972_v45 }
 0x1b5   :  { %v7338_v47 = vpop.f32.mrb[24].mxu1 }
 0x1b6   :  { %v7339_v49 = vpop.f32.mrb[25].mxu1 }
 0x1b7   :  { %3275 = vmatpush1.bf16.msra.mxu0 %v7970_v46  ;;  %v7340_v52 = vadd.f32 %v7339_v49, %v7338_v47  ;;  %v7341_v53 = vpop.f32.mrb[26].mxu1  ;;  %v8027_v46 = vld [vmem:[%s10834_s1 + $0xc00] ss:$12 sps:$4 sm:$0xff]   ;;  %v8030_v47 = vld [vmem:[%s10834_s1 + $0xc18] ss:$12 sps:$4 sm:$0xff]  }
 0x1b8   :  { %3276 = vmatprep.subr.bf16.mxu0 %v7975_v26  ;;  %v7342_v54 = vpop.f32.mrb[27].mxu1  ;;  %v8032_v26 = vld [vmem:[%s10834_s1 + $0xc1c] ss:$12 sps:$4 sm:$0xff]  }
 0x1b9   :  { %v3646_v55 = vadd.f32 %v7340_v52, %v3606_v43  ;;  %v8023_v43 = vld [vmem:[%s10834_s1 + $0xbd4] ss:$12 sps:$4 sm:$0xff]   ;;  %v8033_v49 = vld [vmem:[%s10834_s1 + $0xc30] ss:$12 sps:$4 sm:$0xff]   ;;  %v8042_v54 = vld [vmem:[%s10834_s1 + $0xc78] ss:$12 sps:$4 sm:$0xff]  }
 0x1ba   :  { %v8039_v52 = vld [vmem:[%s10834_s1 + $0xc60] ss:$12 sps:$4 sm:$0xff]   ;;  %v8044_v53 = vld [vmem:[%s10834_s1 + $0xc7c] ss:$12 sps:$4 sm:$0xff]  }
 0x1bb   :  { %3277 = vmatpush1.bf16.msra.mxu0 %v7973_v48  ;;  %v8035_v48 = vld [vmem:[%s10834_s1 + $0xc34] ss:$12 sps:$4 sm:$0xff]  }
 0x1bc   :  { %3278 = vmatprep.subr.bf16.mxu0 %v7978_v51  ;;  %v8041_v51 = vld [vmem:[%s10834_s1 + $0xc64] ss:$12 sps:$4 sm:$0xff]  }
 0x1bf   :  { %3279 = vmatpush1.bf16.msra.mxu0 %v7976_v56  ;;  %v8045_v56 = vld [vmem:[%s10834_s1 + $0xc90] ss:$12 sps:$4 sm:$0xff]  }
 0x1c0   :  { %3289 = vmatprep.subr.bf16.mxu0 %v7981_v58  ;;  %v8050_v58 = vld [vmem:[%s10834_s1 + $0xcac] ss:$12 sps:$4 sm:$0xff]  }
 0x1c2   :  { %3281 = vmatmul.mubr.bf16.vlgmr.msra.gmra.mrb[0].mxu0 %v9086_v62  ;;  %v7990_v62 = vld [vmem:[%s10834_s1 + $0xacc] ss:$12 sps:$4 sm:$0xff]  }
 0x1c3   :  { %3290 = vmatpush1.bf16.msra.mxu0 %v7979_v59  ;;  %3321 = vmatprep.mubr.bf16.mxu0 %v9099_v2  ;;  %v7988_v2 = vld [vmem:[%s10834_s1 + $0xac8] ss:$12 sps:$4 sm:$0xff]  }
 0x1c4   :  { %3291 = vmatprep.subr.bf16.mxu0 %v7984_v61  ;;  %v8048_v59 = vld [vmem:[%s10834_s1 + $0xca8] ss:$12 sps:$4 sm:$0xff]   ;;  %v8053_v61 = vld [vmem:[%s10834_s1 + $0xcc4] ss:$12 sps:$4 sm:$0xff]  }
 0x1c7   :  { %3292 = vmatpush1.bf16.msra.mxu0 %v7982_v63  ;;  %v8051_v63 = vld [vmem:[%s10834_s1 + $0xcc0] ss:$12 sps:$4 sm:$0xff]  }
 0x1c8   :  { %3293 = vmatprep.subr.bf16.mxu0 %v7987_v0  ;;  %v8056_v0 = vld [vmem:[%s10834_s1 + $0xcdc] ss:$12 sps:$4 sm:$0xff]  }
 0x1cb   :  { %3294 = vmatpush1.bf16.msra.mxu0 %v7985_v1  ;;  %v8054_v1 = vld [vmem:[%s10834_s1 + $0xcd8] ss:$12 sps:$4 sm:$0xff]  }
 0x1cc   :  { %3295 = vmatprep.subr.bf16.mxu0 %v7990_v62  ;;  %v8059_v62 = vld [vmem:[%s10834_s1 + $0xcf4] ss:$12 sps:$4 sm:$0xff]  }
 0x1cf   :  { %3296 = vmatpush1.bf16.msra.mxu0 %v7988_v2  ;;  %v8057_v2 = vld [vmem:[%s10834_s1 + $0xcf0] ss:$12 sps:$4 sm:$0xff]  }
 0x1d0   :  { %3297 = vmatprep.subr.bf16.mxu0 %v7993_v3  ;;  %v8062_v3 = vld [vmem:[%s10834_s1 + $0xd0c] ss:$12 sps:$4 sm:$0xff]  }
 0x1d3   :  { %3298 = vmatpush1.bf16.msra.mxu0 %v7991_v4  ;;  %v8060_v4 = vld [vmem:[%s10834_s1 + $0xd08] ss:$12 sps:$4 sm:$0xff]  }
 0x1d4   :  { %3299 = vmatprep.subr.bf16.mxu0 %v7996_v5  ;;  %v8065_v5 = vld [vmem:[%s10834_s1 + $0xd24] ss:$12 sps:$4 sm:$0xff]  }
 0x1d5   :  { %v7360_v11 = vpop.f32.mrb[28].mxu1 }
 0x1d6   :  { %v7361_v13 = vpop.f32.mrb[29].mxu1 }
 0x1d7   :  { %3300 = vmatpush1.bf16.msra.mxu0 %v7994_v6  ;;  %v7362_v16 = vadd.f32 %v7361_v13, %v7360_v11  ;;  %v7363_v17 = vpop.f32.mrb[30].mxu1  ;;  %v8063_v6 = vld [vmem:[%s10834_s1 + $0xd20] ss:$12 sps:$4 sm:$0xff]   ;;  %v8066_v11 = vld [vmem:[%s10834_s1 + $0xd38] ss:$12 sps:$4 sm:$0xff]  }
 0x1d8   :  { %3301 = vmatprep.subr.bf16.mxu0 %v7999_v9  ;;  %v7364_v18 = vpop.f32.mrb[31].mxu1  ;;  %v8068_v9 = vld [vmem:[%s10834_s1 + $0xd3c] ss:$12 sps:$4 sm:$0xff]   ;;  %v3737_v17 = vld [vmem:[%s10837_s3] sm:$0xff] }
 0x1d9   :  { %v3686_v24 = vadd.f32 %v7362_v16, %v3646_v55  ;;  %v8047_v55 = vld [vmem:[%s10834_s1 + $0xc94] ss:$12 sps:$4 sm:$0xff]   ;;  %v8069_v13 = vld [vmem:[%s10834_s1 + $0xd50] ss:$12 sps:$4 sm:$0xff]  }
 0x1da   :  { %v8072_v16 = vld [vmem:[%s10834_s1 + $0xd68] ss:$12 sps:$4 sm:$0xff]   ;;  %v3741_v18 = vld [vmem:[%s10837_s3 + $0x20] sm:$0xff] }
 0x1db   :  { %3302 = vmatpush1.bf16.msra.mxu0 %v7997_v12  ;;  %v8071_v12 = vld [vmem:[%s10834_s1 + $0xd54] ss:$12 sps:$4 sm:$0xff]  }
 0x1dc   :  { %3303 = vmatprep.subr.bf16.mxu0 %v8002_v14  ;;  %v8074_v14 = vld [vmem:[%s10834_s1 + $0xd6c] ss:$12 sps:$4 sm:$0xff]  }
 0x1df   :  { %3304 = vmatpush1.bf16.msra.mxu0 %v8000_v29  ;;  %v6853_v29 = vcombine.low %v3737_v17, %v3741_v18 }
 0x1e0   :  { %3305 = vmatprep.subr.bf16.mxu0 %v8005_v19  ;;  %v6854_v19 = vcombine.high %v3737_v17, %v3741_v18 }
 0x1e3   :  { %3306 = vmatpush1.bf16.msra.mxu0 %v8003_v20  ;;  %v3742_v20 = vld [vmem:[%s10837_s3 + $0x28] sm:$0xff] }
 0x1e4   :  { %3307 = vmatprep.subr.bf16.mxu0 %v8008_v21  ;;  %v3749_v21 = vld [vmem:[%s10837_s3 + $0x60] sm:$0xff] }
 0x1e7   :  { %3308 = vmatpush1.bf16.msra.mxu0 %v8006_v8 }
 0x1e8   :  { %3309 = vmatprep.subr.bf16.mxu0 %v8011_v22 }
 0x1eb   :  { %3310 = vmatpush1.bf16.msra.mxu0 %v8009_v23 }
 0x1ec   :  { %3311 = vmatprep.subr.bf16.mxu0 %v8014_v25  ;;  %v3746_v25 = vld [vmem:[%s10837_s3 + $0x48] sm:$0xff] }
 0x1ef   :  { %3312 = vmatpush1.bf16.msra.mxu0 %v8012_v27  ;;  %v3750_v27 = vld [vmem:[%s10837_s3 + $0x68] sm:$0xff] }
 0x1f0   :  { %3313 = vmatprep.subr.bf16.mxu0 %v8017_v28  ;;  %v3753_v28 = vld [vmem:[%s10837_s3 + $0x80] sm:$0xff] }
 0x1f3   :  { %3314 = vmatpush1.bf16.msra.mxu0 %v8015_v30  ;;  %v6864_v30 = vcombine.high %v3746_v25, %v3750_v27 }
 0x1f4   :  { %3315 = vmatprep.subr.bf16.mxu0 %v8020_v31  ;;  %v3757_v31 = vld [vmem:[%s10837_s3 + $0xa0] sm:$0xff] }
 0x1f5   :  { %v7382_v50 = vpop.f32.mrb[32].mxu1 }
 0x1f6   :  { %v7383_v33 = vpop.f32.mrb[33].mxu1 }
 0x1f7   :  { %3316 = vmatpush1.bf16.msra.mxu0 %v8018_v32  ;;  %v7384_v35 = vadd.f32 %v7383_v33, %v7382_v50  ;;  %v7385_v37 = vpop.f32.mrb[34].mxu1  ;;  %v3754_v32 = vld [vmem:[%s10837_s3 + $0x88] sm:$0xff]  ;;  %v6863_v33 = vcombine.low %v3746_v25, %v3750_v27  ;;  %v3813_v25 = vld [vmem:[%s10837_s3 + $0x260] sm:$0xff] }
 0x1f8   :  { %3317 = vmatprep.subr.bf16.mxu0 %v8023_v43  ;;  %v7386_v38 = vpop.f32.mrb[35].mxu1  ;;  %v3758_v43 = vld [vmem:[%s10837_s3 + $0xa8] sm:$0xff]  ;;  %v3765_v37 = vld [vmem:[%s10837_s3 + $0xe0] sm:$0xff] }
 0x1f9   :  { %v3726_v40 = vadd.f32 %v7384_v35, %v3686_v24  ;;  %v3738_v24 = vld [vmem:[%s10837_s3 + $0x8] sm:$0xff]  ;;  %v6872_v35 = vcombine.high %v3754_v32, %v3758_v43 }
 0x1fa   :  { %v6855_v8 = vcombine.low %v3738_v24, %v3742_v20  ;;  %v6856_v22 = vcombine.high %v3738_v24, %v3742_v20  ;;  %v3762_v38 = vld [vmem:[%s10837_s3 + $0xc8] sm:$0xff]  ;;  %v3801_v24 = vld [vmem:[%s10837_s3 + $0x200] sm:$0xff] }
 0x1fb   :  { %3318 = vmatpush1.bf16.msra.mxu0 %v8021_v34  ;;  %v3733_v42 = vmax.f32 %v3726_v40, 0.0  ;;  %v6870_v34 = vcombine.high %v3753_v28, %v3757_v31  ;;  %v3766_v40 = vld [vmem:[%s10837_s3 + $0xe8] sm:$0xff] }
 0x1fc   :  { %3319 = vmatprep.subr.bf16.mxu0 %v8026_v57  ;;  %5013 = vmatprep.subr.bf16.mxu1 %v6856_v22  ;;  %v3761_v57 = vld [vmem:[%s10837_s3 + $0xc0] sm:$0xff]  ;;  %v3806_v20 = vld [vmem:[%s10837_s3 + $0x228] sm:$0xff] }
 0x1fd   :  { %v9704_v45 = vpack.c.bf16 %v3733_v42, %v3733_v42  ;;  %v6871_v42 = vcombine.low %v3754_v32, %v3758_v43  ;;  %v3810_v27 = vld [vmem:[%s10837_s3 + $0x248] sm:$0xff] }
 0x1ff   :  { %3320 = vmatpush1.bf16.msra.mxu0 %v8024_v41  ;;  %5005 = vmatmul.mubr.bf16.vlgmr.msra.gmra.mrb[36].mxu1 %v9704_v45  ;;  %v6869_v41 = vcombine.low %v3753_v28, %v3757_v31  ;;  %v3814_v28 = vld [vmem:[%s10837_s3 + $0x268] sm:$0xff] }
 0x200   :  { %3330 = vmatprep.subr.bf16.mxu0 %v8029_v44  ;;  %5014 = vmatpush1.bf16.msra.mxu1 %v6855_v8  ;;  %v6878_v44 = vcombine.high %v3761_v57, %v3765_v37  ;;  %v6928_v43 = vcombine.high %v3810_v27, %v3814_v28 }
 0x201   :  { %5015 = vmatprep.subr.bf16.mxu1 %v6864_v30 }
 0x202   :  { %3322 = vmatmul.mubr.bf16.vlgmr.msra.gmra.mrb[0].mxu0 %v9197_v36  ;;  %v8038_v36 = vld [vmem:[%s10834_s1 + $0xc4c] ss:$12 sps:$4 sm:$0xff]  }
 0x203   :  { %3331 = vmatpush1.bf16.msra.mxu0 %v8027_v46  ;;  %3362 = vmatprep.mubr.bf16.mxu0 %v9210_v39  ;;  %v8036_v39 = vld [vmem:[%s10834_s1 + $0xc48] ss:$12 sps:$4 sm:$0xff]   ;;  %v6880_v46 = vcombine.high %v3762_v38, %v3766_v40 }
 0x204   :  { %3332 = vmatprep.subr.bf16.mxu0 %v8032_v26  ;;  %5016 = vmatpush1.bf16.msra.mxu1 %v6863_v33  ;;  %v3769_v26 = vld [vmem:[%s10837_s3 + $0x100] sm:$0xff] }
 0x205   :  { %5017 = vmatprep.subr.bf16.mxu1 %v6872_v35  ;;  %v3821_v33 = vld [vmem:[%s10837_s3 + $0x2a0] sm:$0xff]  ;;  %v3822_v35 = vld [vmem:[%s10837_s3 + $0x2a8] sm:$0xff] }
 0x207   :  { %3333 = vmatpush1.bf16.msra.mxu0 %v8030_v47  ;;  %v3773_v47 = vld [vmem:[%s10837_s3 + $0x120] sm:$0xff] }
 0x208   :  { %3334 = vmatprep.subr.bf16.mxu0 %v8035_v48  ;;  %v3770_v48 = vld [vmem:[%s10837_s3 + $0x108] sm:$0xff]  ;;  %5018 = vmatpush1.bf16.msra.mxu1 %v6871_v42  ;;  %v3829_v42 = vld [vmem:[%s10837_s3 + $0x2e0] sm:$0xff] }
 0x209   :  { %5019 = vmatprep.subr.bf16.mxu1 %v6880_v46  ;;  %v3830_v46 = vld [vmem:[%s10837_s3 + $0x2e8] sm:$0xff] }
 0x20b   :  { %3335 = vmatpush1.bf16.msra.mxu0 %v8033_v49  ;;  %v3774_v49 = vld [vmem:[%s10837_s3 + $0x128] sm:$0xff] }
 0x20c   :  { %3336 = vmatprep.subr.bf16.mxu0 %v8038_v36  ;;  %v6877_v36 = vcombine.low %v3761_v57, %v3765_v37  ;;  %v6927_v37 = vcombine.low %v3810_v27, %v3814_v28  ;;  %v3744_v27 = vld [vmem:[%s10837_s3 + $0x38] sm:$0xff] }
 0x20f   :  { %3337 = vmatpush1.bf16.msra.mxu0 %v8036_v39  ;;  %v6879_v39 = vcombine.low %v3762_v38, %v3766_v40 }
 0x210   :  { %3338 = vmatprep.subr.bf16.mxu0 %v8041_v51  ;;  %v6886_v51 = vcombine.high %v3769_v26, %v3773_v47 }
 0x211   :  { %5020 = vmatpush1.bf16.msra.mxu1 %v6879_v39  ;;  %v3837_v39 = vld [vmem:[%s10837_s3 + $0x320] sm:$0xff] }
 0x213   :  { %3339 = vmatpush1.bf16.msra.mxu0 %v8039_v52  ;;  %v6888_v52 = vcombine.high %v3770_v48, %v3774_v49 }
 0x214   :  { %3340 = vmatprep.subr.bf16.mxu0 %v8044_v53  ;;  %v3777_v53 = vld [vmem:[%s10837_s3 + $0x140] sm:$0xff] }
 0x215   :  { %5021 = vmatprep.subr.bf16.mxu1 %v6888_v52  ;;  %v3838_v52 = vld [vmem:[%s10837_s3 + $0x328] sm:$0xff] }
 0x217   :  { %3341 = vmatpush1.bf16.msra.mxu0 %v8042_v54  ;;  %v3781_v54 = vld [vmem:[%s10837_s3 + $0x160] sm:$0xff] }
 0x218   :  { %3342 = vmatprep.subr.bf16.mxu0 %v8047_v55  ;;  %v3778_v55 = vld [vmem:[%s10837_s3 + $0x148] sm:$0xff] }
 0x21b   :  { %3343 = vmatpush1.bf16.msra.mxu0 %v8045_v56  ;;  %v3782_v56 = vld [vmem:[%s10837_s3 + $0x168] sm:$0xff] }
 0x21c   :  { %3344 = vmatprep.subr.bf16.mxu0 %v8050_v58  ;;  %v6885_v58 = vcombine.low %v3769_v26, %v3773_v47 }
 0x21f   :  { %3345 = vmatpush1.bf16.msra.mxu0 %v8048_v59  ;;  %v6887_v59 = vcombine.low %v3770_v48, %v3774_v49 }
 0x220   :  { %3346 = vmatprep.subr.bf16.mxu0 %v8053_v61  ;;  %v6894_v61 = vcombine.high %v3777_v53, %v3781_v54 }
 0x221   :  { %5022 = vmatpush1.bf16.msra.mxu1 %v6887_v59  ;;  %v3845_v59 = vld [vmem:[%s10837_s3 + $0x360] sm:$0xff] }
 0x223   :  { %3347 = vmatpush1.bf16.msra.mxu0 %v8051_v63  ;;  %v6896_v63 = vcombine.high %v3778_v55, %v3782_v56 }
 0x224   :  { %3348 = vmatprep.subr.bf16.mxu0 %v8056_v0  ;;  %v3785_v0 = vld [vmem:[%s10837_s3 + $0x180] sm:$0xff] }
 0x225   :  { %5023 = vmatprep.subr.bf16.mxu1 %v6896_v63  ;;  %v3846_v63 = vld [vmem:[%s10837_s3 + $0x368] sm:$0xff] }
 0x227   :  { %3349 = vmatpush1.bf16.msra.mxu0 %v8054_v1  ;;  %v3789_v1 = vld [vmem:[%s10837_s3 + $0x1a0] sm:$0xff] }
 0x228   :  { %3350 = vmatprep.subr.bf16.mxu0 %v8059_v62  ;;  %v3786_v62 = vld [vmem:[%s10837_s3 + $0x188] sm:$0xff] }
 0x22b   :  { %3351 = vmatpush1.bf16.msra.mxu0 %v8057_v2  ;;  %v3790_v2 = vld [vmem:[%s10837_s3 + $0x1a8] sm:$0xff] }
 0x22c   :  { %3352 = vmatprep.subr.bf16.mxu0 %v8062_v3  ;;  %v6893_v3 = vcombine.low %v3777_v53, %v3781_v54 }
 0x22f   :  { %3353 = vmatpush1.bf16.msra.mxu0 %v8060_v4  ;;  %v6895_v4 = vcombine.low %v3778_v55, %v3782_v56 }
 0x230   :  { %3354 = vmatprep.subr.bf16.mxu0 %v8065_v5  ;;  %v6902_v5 = vcombine.high %v3785_v0, %v3789_v1 }
 0x231   :  { %5024 = vmatpush1.bf16.msra.mxu1 %v6895_v4 }
 0x233   :  { %3355 = vmatpush1.bf16.msra.mxu0 %v8063_v6  ;;  %v6904_v6 = vcombine.high %v3786_v62, %v3790_v2 }
 0x234   :  { %3356 = vmatprep.subr.bf16.mxu0 %v8068_v9  ;;  %v3793_v9 = vld [vmem:[%s10837_s3 + $0x1c0] sm:$0xff] }
 0x235   :  { %5025 = vmatprep.subr.bf16.mxu1 %v6904_v6  ;;  %v3853_v6 = vld [vmem:[%s10837_s3 + $0x3a0] sm:$0xff] }
 0x237   :  { %3357 = vmatpush1.bf16.msra.mxu0 %v8066_v11  ;;  %v3797_v11 = vld [vmem:[%s10837_s3 + $0x1e0] sm:$0xff] }
 0x238   :  { %3358 = vmatprep.subr.bf16.mxu0 %v8071_v12  ;;  %v3794_v12 = vld [vmem:[%s10837_s3 + $0x1c8] sm:$0xff]  ;;  %v6910_v17 = vcombine.high %v3793_v9, %v3797_v11 }
 0x23b   :  { %3359 = vmatpush1.bf16.msra.mxu0 %v8069_v13  ;;  %v3798_v13 = vld [vmem:[%s10837_s3 + $0x1e8] sm:$0xff] }
 0x23c   :  { %3360 = vmatprep.subr.bf16.mxu0 %v8074_v14  ;;  %v6901_v14 = vcombine.low %v3785_v0, %v3789_v1  ;;  %v6912_v18 = vcombine.high %v3794_v12, %v3798_v13 }
 0x23f   :  { %3361 = vmatpush1.bf16.msra.mxu0 %v8072_v16  ;;  %v6903_v16 = vcombine.low %v3786_v62, %v3790_v2 }
 0x240   :  { %4931 = vmatprep.subr.bf16.mxu0 %v6854_v19  ;;  %v3802_v19 = vld [vmem:[%s10837_s3 + $0x208] sm:$0xff] }
 0x241   :  { %5026 = vmatpush1.bf16.msra.mxu1 %v6903_v16  ;;  %v6920_v22 = vcombine.high %v3802_v19, %v3806_v20  ;;  %v6919_v31 = vcombine.low %v3802_v19, %v3806_v20  ;;  %v3862_v19 = vld [vmem:[%s10837_s3 + $0x3e8] sm:$0xff] }
 0x242   :  { %3363 = vmatmul.mubr.bf16.vlgmr.msra.gmra.mrb[0].mxu0 %v9299_v7  ;;  %v3745_v7 = vld [vmem:[%s10837_s3 + $0x40] sm:$0xff]  ;;  %5027 = vmatprep.subr.bf16.mxu1 %v6912_v18 }
 0x243   :  { %v6862_v23 = vcombine.high %v3745_v7, %v3749_v21  ;;  %4932 = vmatpush1.bf16.msra.mxu0 %v6853_v29  ;;  %v6861_v50 = vcombine.low %v3745_v7, %v3749_v21  ;;  %v3805_v29 = vld [vmem:[%s10837_s3 + $0x220] sm:$0xff]  ;;  %v6909_v7 = vcombine.low %v3793_v9, %v3797_v11  ;;  %v6911_v21 = vcombine.low %v3794_v12, %v3798_v13  ;;  %v3850_v9 = vld [vmem:[%s10837_s3 + $0x388] sm:$0xff] }
 0x244   :  { %v6918_v8 = vcombine.high %v3801_v24, %v3805_v29  ;;  %v6917_v30 = vcombine.low %v3801_v24, %v3805_v29  ;;  %v3854_v12 = vld [vmem:[%s10837_s3 + $0x3a8] sm:$0xff]  ;;  %v3861_v18 = vld [vmem:[%s10837_s3 + $0x3e0] sm:$0xff] }
 0x245   :  { %4933 = vmatprep.subr.bf16.mxu0 %v6862_v23  ;;  %v3809_v23 = vld [vmem:[%s10837_s3 + $0x240] sm:$0xff]  ;;  %5028 = vmatpush1.bf16.msra.mxu1 %v6911_v21  ;;  %v6968_v16 = vcombine.high %v3850_v9, %v3854_v12  ;;  %v3858_v24 = vld [vmem:[%s10837_s3 + $0x3c8] sm:$0xff] }
 0x246   :  { %v6926_v32 = vcombine.high %v3809_v23, %v3813_v25  ;;  %5029 = vmatprep.subr.bf16.mxu1 %v6920_v22  ;;  %v6925_v57 = vcombine.low %v3809_v23, %v3813_v25  ;;  %v6976_v21 = vcombine.high %v3858_v24, %v3862_v19  ;;  %v3870_v22 = vld [vmem:[%s10837_s3 + $0x428] sm:$0xff]  ;;  %v3740_v23 = vld [vmem:[%s10837_s3 + $0x18] sm:$0xff] }
 0x247   :  { %4934 = vmatpush1.bf16.msra.mxu0 %v6861_v50  ;;  %v3817_v50 = vld [vmem:[%s10837_s3 + $0x280] sm:$0xff] }
 0x248   :  { %4935 = vmatprep.subr.bf16.mxu0 %v6870_v34  ;;  %v3818_v34 = vld [vmem:[%s10837_s3 + $0x288] sm:$0xff]  ;;  %v6934_v38 = vcombine.high %v3817_v50, %v3821_v33  ;;  %v6933_v26 = vcombine.low %v3817_v50, %v3821_v33 }
 0x249   :  { %5030 = vmatpush1.bf16.msra.mxu1 %v6919_v31  ;;  %v6936_v40 = vcombine.high %v3818_v34, %v3822_v35  ;;  %v6935_v47 = vcombine.low %v3818_v34, %v3822_v35  ;;  %v6860_v31 = vcombine.high %v3740_v23, %v3744_v27  ;;  %v10012_v34 = vsub.s32 0, %v9370_v60 }
 0x24a   :  { %5031 = vmatprep.subr.bf16.mxu1 %v6928_v43  ;;  %v10015_v35 = vsub.s32 1, %v9370_v60 }
 0x24b   :  { %4936 = vmatpush1.bf16.msra.mxu0 %v6869_v41  ;;  %v3825_v41 = vld [vmem:[%s10837_s3 + $0x2c0] sm:$0xff] }
 0x24c   :  { %4937 = vmatprep.subr.bf16.mxu0 %v6878_v44  ;;  %v3826_v44 = vld [vmem:[%s10837_s3 + $0x2c8] sm:$0xff]  ;;  %v6942_v48 = vcombine.high %v3825_v41, %v3829_v42  ;;  %v6941_v53 = vcombine.low %v3825_v41, %v3829_v42 }
 0x24d   :  { %5032 = vmatpush1.bf16.msra.mxu1 %v6927_v37  ;;  %v6944_v49 = vcombine.high %v3826_v44, %v3830_v46  ;;  %v6943_v54 = vcombine.low %v3826_v44, %v3830_v46 }
 0x24e   :  { %5033 = vmatprep.subr.bf16.mxu1 %v6936_v40 }
 0x24f   :  { %4938 = vmatpush1.bf16.msra.mxu0 %v6877_v36  ;;  %v3833_v36 = vld [vmem:[%s10837_s3 + $0x300] sm:$0xff] }
 0x250   :  { %4939 = vmatprep.subr.bf16.mxu0 %v6886_v51  ;;  %v3834_v51 = vld [vmem:[%s10837_s3 + $0x308] sm:$0xff]  ;;  %v6950_v55 = vcombine.high %v3833_v36, %v3837_v39  ;;  %v6949_v0 = vcombine.low %v3833_v36, %v3837_v39  ;;  %v3748_v39 = vld [vmem:[%s10837_s3 + $0x58] sm:$0xff] }
 0x251   :  { %5034 = vmatpush1.bf16.msra.mxu1 %v6935_v47  ;;  %v6952_v56 = vcombine.high %v3834_v51, %v3838_v52  ;;  %v6951_v1 = vcombine.low %v3834_v51, %v3838_v52  ;;  %v3878_v36 = vld [vmem:[%s10837_s3 + $0x468] sm:$0xff]  ;;  %v3752_v51 = vld [vmem:[%s10837_s3 + $0x78] sm:$0xff] }
 0x252   :  { %5035 = vmatprep.subr.bf16.mxu1 %v6944_v49  ;;  %v3874_v49 = vld [vmem:[%s10837_s3 + $0x448] sm:$0xff] }
 0x253   :  { %4940 = vmatpush1.bf16.msra.mxu0 %v6885_v58  ;;  %v3841_v58 = vld [vmem:[%s10837_s3 + $0x340] sm:$0xff] }
 0x254   :  { %4941 = vmatprep.subr.bf16.mxu0 %v6894_v61  ;;  %v3842_v61 = vld [vmem:[%s10837_s3 + $0x348] sm:$0xff]  ;;  %v6958_v62 = vcombine.high %v3841_v58, %v3845_v59 }
 0x255   :  { %5036 = vmatpush1.bf16.msra.mxu1 %v6943_v54  ;;  %v6960_v2 = vcombine.high %v3842_v61, %v3846_v63  ;;  %v6959_v4 = vcombine.low %v3842_v61, %v3846_v63  ;;  %v6992_v54 = vcombine.high %v3874_v49, %v3878_v36  ;;  %v3760_v61 = vld [vmem:[%s10837_s3 + $0xb8] sm:$0xff]  ;;  %v6991_v63 = vcombine.low %v3874_v49, %v3878_v36 }
 0x256   :  { %5037 = vmatprep.subr.bf16.mxu1 %v6952_v56  ;;  %v6868_v56 = vcombine.high %v3748_v39, %v3752_v51  ;;  %v3804_v49 = vld [vmem:[%s10837_s3 + $0x218] sm:$0xff] }
 0x257   :  { %4942 = vmatpush1.bf16.msra.mxu0 %v6893_v3  ;;  %v6957_v3 = vcombine.low %v3841_v58, %v3845_v59  ;;  %v3886_v58 = vld [vmem:[%s10837_s3 + $0x4a8] sm:$0xff]  ;;  %v3756_v59 = vld [vmem:[%s10837_s3 + $0x98] sm:$0xff] }
 0x258   :  { %4943 = vmatprep.subr.bf16.mxu0 %v6902_v5  ;;  %v3849_v5 = vld [vmem:[%s10837_s3 + $0x380] sm:$0xff]  ;;  %v3808_v36 = vld [vmem:[%s10837_s3 + $0x238] sm:$0xff] }
 0x259   :  { %5038 = vmatpush1.bf16.msra.mxu1 %v6951_v1  ;;  %v6966_v11 = vcombine.high %v3849_v5, %v3853_v6  ;;  %v6965_v13 = vcombine.low %v3849_v5, %v3853_v6  ;;  %v3890_v1 = vld [vmem:[%s10837_s3 + $0x4c8] sm:$0xff]  ;;  %v3768_v5 = vld [vmem:[%s10837_s3 + $0xf8] sm:$0xff] }
 0x25a   :  { %5039 = vmatprep.subr.bf16.mxu1 %v6960_v2  ;;  %v6876_v2 = vcombine.high %v3756_v59, %v3760_v61 }
 0x25b   :  { %4944 = vmatpush1.bf16.msra.mxu0 %v6901_v14  ;;  %v6967_v14 = vcombine.low %v3850_v9, %v3854_v12  ;;  %v6875_v9 = vcombine.low %v3756_v59, %v3760_v61  ;;  %v3902_v12 = vld [vmem:[%s10837_s3 + $0x528] sm:$0xff]  ;;  %v6924_v61 = vcombine.high %v3804_v49, %v3808_v36 }
 0x25c   :  { %4945 = vmatprep.subr.bf16.mxu0 %v6910_v17  ;;  %v3857_v17 = vld [vmem:[%s10837_s3 + $0x3c0] sm:$0xff] }
 0x25d   :  { %5040 = vmatpush1.bf16.msra.mxu1 %v6959_v4  ;;  %v6974_v29 = vcombine.high %v3857_v17, %v3861_v18  ;;  %v6973_v20 = vcombine.low %v3857_v17, %v3861_v18  ;;  %v3764_v4 = vld [vmem:[%s10837_s3 + $0xd8] sm:$0xff] }
 0x25e   :  { %5041 = vmatprep.subr.bf16.mxu1 %v6968_v16  ;;  %v6884_v17 = vcombine.high %v3764_v4, %v3768_v5 }
 0x25f   :  { %4946 = vmatpush1.bf16.msra.mxu0 %v6909_v7  ;;  %v6975_v7 = vcombine.low %v3858_v24, %v3862_v19  ;;  %v6883_v24 = vcombine.low %v3764_v4, %v3768_v5  ;;  %v3910_v19 = vld [vmem:[%s10837_s3 + $0x568] sm:$0xff]  ;;  %v3820_v5 = vld [vmem:[%s10837_s3 + $0x298] sm:$0xff] }
 0x260   :  { %4947 = vmatprep.subr.bf16.mxu0 %v6918_v8  ;;  %v3866_v8 = vld [vmem:[%s10837_s3 + $0x408] sm:$0xff] }
 0x261   :  { %5042 = vmatpush1.bf16.msra.mxu1 %v6967_v14  ;;  %v6984_v25 = vcombine.high %v3866_v8, %v3870_v22  ;;  %v6983_v28 = vcombine.low %v3866_v8, %v3870_v22  ;;  %v3776_v14 = vld [vmem:[%s10837_s3 + $0x138] sm:$0xff] }
 0x262   :  { %5043 = vmatprep.subr.bf16.mxu1 %v6976_v21 }
 0x263   :  { %4948 = vmatpush1.bf16.msra.mxu0 %v6917_v30  ;;  %v6859_v30 = vcombine.low %v3740_v23, %v3744_v27  ;;  %v3918_v27 = vld [vmem:[%s10837_s3 + $0x5a8] sm:$0xff] }
 0x264   :  { %4949 = vmatprep.subr.bf16.mxu0 %v6926_v32 }
 0x265   :  { %5044 = vmatpush1.bf16.msra.mxu1 %v6975_v7  ;;  %v3784_v7 = vld [vmem:[%s10837_s3 + $0x178] sm:$0xff] }
 0x266   :  { %5054 = vmatprep.subr.bf16.mxu1 %v6984_v25  ;;  %v3914_v25 = vld [vmem:[%s10837_s3 + $0x588] sm:$0xff] }
 0x267   :  { %4950 = vmatpush1.bf16.msra.mxu0 %v6925_v57  ;;  %v8283_v57 = vld [vmem:[%s10836_s2] sm:$0x7] }
 0x268   :  { %4951 = vmatprep.subr.bf16.mxu0 %v6934_v38  ;;  %v623_v37 = vrot.slane %v8283_v57, %v10012_v34  ;;  %v627_v38 = vrot.slane %v8283_v57, %v10015_v35 }
 0x26b   :  { %4952 = vmatpush1.bf16.msra.mxu0 %v6933_v26 }
 0x26c   :  { %4953 = vmatprep.subr.bf16.mxu0 %v6942_v48 }
 0x26f   :  { %4954 = vmatpush1.bf16.msra.mxu0 %v6941_v53 }
 0x270   :  { %4955 = vmatprep.subr.bf16.mxu0 %v6950_v55  ;;  %v3882_v55 = vld [vmem:[%s10837_s3 + $0x488] sm:$0xff] }
 0x271   :  { %v6999_v6 = vcombine.low %v3882_v55, %v3886_v58 }
 0x273   :  { %4956 = vmatpush1.bf16.msra.mxu0 %v6949_v0  ;;  %v6867_v0 = vcombine.low %v3748_v39, %v3752_v51 }
 0x274   :  { %4957 = vmatprep.subr.bf16.mxu0 %v6958_v62  ;;  %v7000_v62 = vcombine.high %v3882_v55, %v3886_v58  ;;  %v3751_v58 = vld [vmem:[%s10837_s3 + $0x70] sm:$0xff] }
 0x277   :  { %4958 = vmatpush1.bf16.msra.mxu0 %v6957_v3  ;;  %v3894_v3 = vld [vmem:[%s10837_s3 + $0x4e8] sm:$0xff] }
 0x278   :  { %4959 = vmatprep.subr.bf16.mxu0 %v6966_v11  ;;  %v3898_v11 = vld [vmem:[%s10837_s3 + $0x508] sm:$0xff]  ;;  %v7008_v16 = vcombine.high %v3890_v1, %v3894_v3  ;;  %v7007_v18 = vcombine.low %v3890_v1, %v3894_v3  ;;  %v6923_v3 = vcombine.low %v3804_v49, %v3808_v36 }
 0x279   :  { %v7016_v21 = vcombine.high %v3898_v11, %v3902_v12  ;;  %v7015_v22 = vcombine.low %v3898_v11, %v3902_v12  ;;  %v3763_v12 = vld [vmem:[%s10837_s3 + $0xd0] sm:$0xff] }
 0x27b   :  { %4960 = vmatpush1.bf16.msra.mxu0 %v6965_v13  ;;  %v3772_v13 = vld [vmem:[%s10837_s3 + $0x118] sm:$0xff] }
 0x27c   :  { %4961 = vmatprep.subr.bf16.mxu0 %v6974_v29  ;;  %v3906_v29 = vld [vmem:[%s10837_s3 + $0x548] sm:$0xff]  ;;  %v6892_v8 = vcombine.high %v3772_v13, %v3776_v14  ;;  %v6891_v23 = vcombine.low %v3772_v13, %v3776_v14  ;;  %v3767_v13 = vld [vmem:[%s10837_s3 + $0xf0] sm:$0xff] }
 0x27f   :  { %4962 = vmatpush1.bf16.msra.mxu0 %v6973_v20  ;;  %v3780_v20 = vld [vmem:[%s10837_s3 + $0x158] sm:$0xff] }
 0x280   :  { %5177 = vmatprep.subr.bf16.mxu0 %v6860_v31  ;;  %v7024_v31 = vcombine.high %v3906_v29, %v3910_v19  ;;  %v6899_v57 = vcombine.low %v3780_v20, %v3784_v7 }
 0x2d2   :  { %v10007_v32 = vpop.f32.mrb[36].mxu1 }
 0x2d3   :  { %v10009_v43 = vpop.f32.mrb[37].mxu1 }
 0x2d4   :  { %v5010_v50 = vpop.f32.mrb[38].mxu1 }
 0x2d5   :  { %v5011_v33 = vpop.f32.mrb[39].mxu1  ;;  %v6900_v50 = vcombine.high %v3780_v20, %v3784_v7  ;;  %v6882_v7 = vcombine.high %v3763_v12, %v3767_v13 }
 0x2d6   :  { %v7023_v33 = vcombine.low %v3906_v29, %v3910_v19  ;;  %v3771_v29 = vld [vmem:[%s10837_s3 + $0x110] sm:$0xff] }
 0x2d7   :  { %v3775_v19 = vld [vmem:[%s10837_s3 + $0x130] sm:$0xff] }
 0x315   :  { %v3364_v40 = vpop.f32.mrb[0].mxu0 }
 0x316   :  { %v7410_v41 = vadd.f32 %v3364_v40, %v623_v37  ;;  %v3366_v42 = vpop.f32.mrb[1].mxu0  ;;  %v3922_v37 = vld [vmem:[%s10837_s3 + $0x5c8] sm:$0xff]  ;;  %v3796_v40 = vld [vmem:[%s10837_s3 + $0x1d8] sm:$0xff] }
 0x317   :  { %v7411_v44 = vadd.f32 %v3366_v42, %v627_v38  ;;  %v3368_v46 = vpop.f32.mrb[2].mxu0  ;;  %v3926_v38 = vld [vmem:[%s10837_s3 + $0x5e8] sm:$0xff]  ;;  %v7032_v42 = vcombine.high %v3914_v25, %v3918_v27 }
 0x318   :  { %v3731_v26 = vmax.f32 %v7410_v41, 0.0  ;;  %v3369_v47 = vpop.f32.mrb[3].mxu0  ;;  %v3800_v41 = vld [vmem:[%s10837_s3 + $0x1f8] sm:$0xff]  ;;  %v7031_v46 = vcombine.low %v3914_v25, %v3918_v27  ;;  %v7040_v39 = vcombine.high %v3922_v37, %v3926_v38  ;;  %v3779_v25 = vld [vmem:[%s10837_s3 + $0x150] sm:$0xff] }
 0x319   :  { %v3732_v48 = vmax.f32 %v7411_v44, 0.0  ;;  %v3739_v47 = vld [vmem:[%s10837_s3 + $0x10] sm:$0xff]  ;;  %v6916_v51 = vcombine.high %v3796_v40, %v3800_v41  ;;  %v6915_v55 = vcombine.low %v3796_v40, %v3800_v41 }
 0x31a   :  { %v10036_v53 = vpack.c.bf16 %v3731_v26, %v3731_v26  ;;  %v3783_v27 = vld [vmem:[%s10837_s3 + $0x170] sm:$0xff] }
 0x31b   :  { %v10034_v52 = vpack.c.bf16 %v3732_v48, %v3732_v48  ;;  %v3743_v48 = vld [vmem:[%s10837_s3 + $0x30] sm:$0xff]  ;;  %v6898_v41 = vcombine.high %v3779_v25, %v3783_v27 }
 0x31c   :  { %v6858_v59 = vcombine.high %v3739_v47, %v3743_v48  ;;  %v6857_v1 = vcombine.low %v3739_v47, %v3743_v48  ;;  %v3795_v47 = vld [vmem:[%s10837_s3 + $0x1d0] sm:$0xff] }
 0x31d   :  { %4963 = vmatprep.mubr.bf16.mxu0 %v10034_v52  ;;  %5045 = vmatprep.mubr.bf16.mxu1 %v10034_v52  ;;  %v3799_v48 = vld [vmem:[%s10837_s3 + $0x1f0] sm:$0xff] }
 0x31e   :  { %4964 = vmatmul.mubr.bf16.vlgmr.msra.gmra.mrb[4].mxu0 %v10036_v53  ;;  %5046 = vmatmul.mubr.bf16.vlgmr.msra.gmra.mrb[40].mxu1 %v10036_v53 }
 0x31f   :  { %5055 = vmatpush1.bf16.msra.mxu1 %v6983_v28  ;;  %5178 = vmatpush1.bf16.msra.mxu0 %v6859_v30  ;;  %v3788_v28 = vld [vmem:[%s10837_s3 + $0x198] sm:$0xff] }
 0x320   :  { %5209 = vmatprep.mubr.bf16.mxu0 %v10034_v52  ;;  %5056 = vmatprep.subr.bf16.mxu1 %v6992_v54  ;;  %v3792_v30 = vld [vmem:[%s10837_s3 + $0x1b8] sm:$0xff]  ;;  %v7039_v54 = vcombine.low %v3922_v37, %v3926_v38  ;;  %v3787_v37 = vld [vmem:[%s10837_s3 + $0x190] sm:$0xff] }
 0x321   :  { %5179 = vmatprep.subr.bf16.mxu0 %v6868_v56  ;;  %5086 = vmatprep.mubr.bf16.mxu1 %v8284_v10  ;;  %v6908_v44 = vcombine.high %v3788_v28, %v3792_v30  ;;  %v6907_v26 = vcombine.low %v3788_v28, %v3792_v30  ;;  %v3747_v56 = vld [vmem:[%s10837_s3 + $0x50] sm:$0xff]  ;;  %v6890_v30 = vcombine.high %v3771_v29, %v3775_v19 }
 0x322   :  { %v6866_v4 = vcombine.high %v3747_v56, %v3751_v58  ;;  %v6865_v11 = vcombine.low %v3747_v56, %v3751_v58  ;;  %v3791_v38 = vld [vmem:[%s10837_s3 + $0x1b0] sm:$0xff]  ;;  %v6914_v58 = vcombine.high %v3795_v47, %v3799_v48 }
 0x323   :  { %5057 = vmatpush1.bf16.msra.mxu1 %v6991_v63  ;;  %5180 = vmatpush1.bf16.msra.mxu0 %v6867_v0  ;;  %v3812_v63 = vld [vmem:[%s10837_s3 + $0x258] sm:$0xff]  ;;  %v6906_v36 = vcombine.high %v3787_v37, %v3791_v38 }
 0x324   :  { %5058 = vmatprep.subr.bf16.mxu1 %v7000_v62  ;;  %5181 = vmatprep.subr.bf16.mxu0 %v6876_v2  ;;  %v3816_v0 = vld [vmem:[%s10837_s3 + $0x278] sm:$0xff]  ;;  %v3755_v62 = vld [vmem:[%s10837_s3 + $0x90] sm:$0xff] }
 0x325   :  { %v3759_v2 = vld [vmem:[%s10837_s3 + $0xb0] sm:$0xff]  ;;  %v6931_v14 = vcombine.low %v3812_v63, %v3816_v0 }
 0x327   :  { %5059 = vmatpush1.bf16.msra.mxu1 %v6999_v6  ;;  %5182 = vmatpush1.bf16.msra.mxu0 %v6875_v9  ;;  %v3824_v6 = vld [vmem:[%s10837_s3 + $0x2b8] sm:$0xff]  ;;  %v6932_v9 = vcombine.high %v3812_v63, %v3816_v0  ;;  %v3807_v63 = vld [vmem:[%s10837_s3 + $0x230] sm:$0xff] }
 0x328   :  { %5060 = vmatprep.subr.bf16.mxu1 %v7008_v16  ;;  %5183 = vmatprep.subr.bf16.mxu0 %v6884_v17  ;;  %v6874_v16 = vcombine.high %v3755_v62, %v3759_v2  ;;  %v3828_v17 = vld [vmem:[%s10837_s3 + $0x2d8] sm:$0xff]  ;;  %v6939_v20 = vcombine.low %v3820_v5, %v3824_v6 }
 0x329   :  { %v3868_v0 = vld [vmem:[%s10837_s3 + $0x418] sm:$0xff] }
 0x32b   :  { %5061 = vmatpush1.bf16.msra.mxu1 %v7007_v18  ;;  %5184 = vmatpush1.bf16.msra.mxu0 %v6883_v24  ;;  %v6940_v18 = vcombine.high %v3820_v5, %v3824_v6  ;;  %v6873_v24 = vcombine.low %v3755_v62, %v3759_v2  ;;  %v6913_v62 = vcombine.low %v3795_v47, %v3799_v48  ;;  %v3811_v5 = vld [vmem:[%s10837_s3 + $0x250] sm:$0xff] }
 0x32c   :  { %5062 = vmatprep.subr.bf16.mxu1 %v7016_v21  ;;  %5185 = vmatprep.subr.bf16.mxu0 %v6892_v8  ;;  %v3836_v21 = vld [vmem:[%s10837_s3 + $0x318] sm:$0xff]  ;;  %v3815_v6 = vld [vmem:[%s10837_s3 + $0x270] sm:$0xff] }
 0x32d   :  { %v3840_v8 = vld [vmem:[%s10837_s3 + $0x338] sm:$0xff] }
 0x32e   :  { %v6955_v40 = vcombine.low %v3836_v21, %v3840_v8 }
 0x32f   :  { %5063 = vmatpush1.bf16.msra.mxu1 %v7015_v22  ;;  %5186 = vmatpush1.bf16.msra.mxu0 %v6891_v23  ;;  %v6881_v23 = vcombine.low %v3763_v12, %v3767_v13 }
 0x330   :  { %5064 = vmatprep.subr.bf16.mxu1 %v7024_v31  ;;  %5187 = vmatprep.subr.bf16.mxu0 %v6900_v50  ;;  %v3844_v31 = vld [vmem:[%s10837_s3 + $0x358] sm:$0xff] }
 0x331   :  { %v3848_v50 = vld [vmem:[%s10837_s3 + $0x378] sm:$0xff] }
 0x332   :  { %v6963_v49 = vcombine.low %v3844_v31, %v3848_v50 }
 0x333   :  { %5065 = vmatpush1.bf16.msra.mxu1 %v7023_v33  ;;  %5188 = vmatpush1.bf16.msra.mxu0 %v6899_v57  ;;  %v6956_v33 = vcombine.high %v3836_v21, %v3840_v8  ;;  %v6889_v57 = vcombine.low %v3771_v29, %v3775_v19  ;;  %v6929_v29 = vcombine.low %v3811_v5, %v3815_v6  ;;  %v3827_v21 = vld [vmem:[%s10837_s3 + $0x2d0] sm:$0xff] }
 0x334   :  { %5066 = vmatprep.subr.bf16.mxu1 %v7032_v42  ;;  %5189 = vmatprep.subr.bf16.mxu0 %v6908_v44  ;;  %v3852_v42 = vld [vmem:[%s10837_s3 + $0x398] sm:$0xff]  ;;  %v3831_v8 = vld [vmem:[%s10837_s3 + $0x2f0] sm:$0xff] }
 0x335   :  { %v3856_v44 = vld [vmem:[%s10837_s3 + $0x3b8] sm:$0xff] }
 0x336   :  { %v6971_v56 = vcombine.low %v3852_v42, %v3856_v44 }
 0x337   :  { %5067 = vmatpush1.bf16.msra.mxu1 %v7031_v46  ;;  %5190 = vmatpush1.bf16.msra.mxu0 %v6907_v26  ;;  %v6964_v46 = vcombine.high %v3844_v31, %v3848_v50  ;;  %v6897_v26 = vcombine.low %v3779_v25, %v3783_v27  ;;  %v3835_v31 = vld [vmem:[%s10837_s3 + $0x310] sm:$0xff] }
 0x338   :  { %5068 = vmatprep.subr.bf16.mxu1 %v7040_v39  ;;  %5191 = vmatprep.subr.bf16.mxu0 %v6916_v51  ;;  %v3860_v39 = vld [vmem:[%s10837_s3 + $0x3d8] sm:$0xff]  ;;  %v3839_v50 = vld [vmem:[%s10837_s3 + $0x330] sm:$0xff] }
 0x339   :  { %v3864_v51 = vld [vmem:[%s10837_s3 + $0x3f8] sm:$0xff]  ;;  %v6953_v47 = vcombine.low %v3835_v31, %v3839_v50 }
 0x33a   :  { %v6979_v2 = vcombine.low %v3860_v39, %v3864_v51 }
 0x33b   :  { %5069 = vmatpush1.bf16.msra.mxu1 %v7039_v54  ;;  %5192 = vmatpush1.bf16.msra.mxu0 %v6915_v55  ;;  %v6972_v54 = vcombine.high %v3852_v42, %v3856_v44  ;;  %v6905_v55 = vcombine.low %v3787_v37, %v3791_v38  ;;  %v6945_v37 = vcombine.low %v3827_v21, %v3831_v8  ;;  %v3843_v42 = vld [vmem:[%s10837_s3 + $0x350] sm:$0xff] }
 0x33c   :  { %5095 = vmatprep.subr.bf16.mxu1 %v6858_v59  ;;  %5193 = vmatprep.subr.bf16.mxu0 %v6924_v61  ;;  %v6980_v59 = vcombine.high %v3860_v39, %v3864_v51  ;;  %v3803_v61 = vld [vmem:[%s10837_s3 + $0x210] sm:$0xff] }
 0x33d   :  { %v6921_v12 = vcombine.low %v3803_v61, %v3807_v63  ;;  %v3847_v44 = vld [vmem:[%s10837_s3 + $0x370] sm:$0xff] }
 0x33e   :  { %5087 = vmatmul.mubr.bf16.vlgmr.msra.gmra.mrb[40].mxu1 %v9704_v45  ;;  %v3851_v39 = vld [vmem:[%s10837_s3 + $0x390] sm:$0xff] }
 0x33f   :  { %5096 = vmatpush1.bf16.msra.mxu1 %v6857_v1  ;;  %5127 = vmatprep.mubr.bf16.mxu1 %v10034_v52  ;;  %v3832_v52 = vld [vmem:[%s10837_s3 + $0x2f8] sm:$0xff]  ;;  %v3855_v51 = vld [vmem:[%s10837_s3 + $0x3b0] sm:$0xff] }
 0x340   :  { %5194 = vmatpush1.bf16.msra.mxu0 %v6923_v3  ;;  %5097 = vmatprep.subr.bf16.mxu1 %v6866_v4  ;;  %v6948_v22 = vcombine.high %v3828_v17, %v3832_v52  ;;  %v6947_v28 = vcombine.low %v3828_v17, %v3832_v52  ;;  %v3872_v1 = vld [vmem:[%s10837_s3 + $0x438] sm:$0xff]  ;;  %v6922_v3 = vcombine.high %v3803_v61, %v3807_v63  ;;  %v3819_v17 = vld [vmem:[%s10837_s3 + $0x290] sm:$0xff] }
 0x341   :  { %5195 = vmatprep.subr.bf16.mxu0 %v6932_v9  ;;  %v6988_v4 = vcombine.high %v3868_v0, %v3872_v1  ;;  %v3876_v9 = vld [vmem:[%s10837_s3 + $0x458] sm:$0xff]  ;;  %v6987_v13 = vcombine.low %v3868_v0, %v3872_v1  ;;  %v3823_v52 = vld [vmem:[%s10837_s3 + $0x2b0] sm:$0xff] }
 0x342   :  { %v6937_v25 = vcombine.low %v3819_v17, %v3823_v52  ;;  %v3859_v63 = vld [vmem:[%s10837_s3 + $0x3d0] sm:$0xff]  ;;  %v3924_v1 = vld [vmem:[%s10837_s3 + $0x5d8] sm:$0xff] }
 0x343   :  { %5098 = vmatpush1.bf16.msra.mxu1 %v6865_v11  ;;  %v3880_v11 = vld [vmem:[%s10837_s3 + $0x478] sm:$0xff]  ;;  %v3863_v0 = vld [vmem:[%s10837_s3 + $0x3f0] sm:$0xff] }
 0x344   :  { %5196 = vmatpush1.bf16.msra.mxu0 %v6931_v14  ;;  %5099 = vmatprep.subr.bf16.mxu1 %v6874_v16  ;;  %v6930_v14 = vcombine.high %v3811_v5, %v3815_v6  ;;  %v6996_v16 = vcombine.high %v3876_v9, %v3880_v11  ;;  %v6995_v19 = vcombine.low %v3876_v9, %v3880_v11  ;;  %v3867_v6 = vld [vmem:[%s10837_s3 + $0x410] sm:$0xff] }
 0x345   :  { %5197 = vmatprep.subr.bf16.mxu0 %v6940_v18  ;;  %v3884_v18 = vld [vmem:[%s10837_s3 + $0x498] sm:$0xff]  ;;  %v3871_v9 = vld [vmem:[%s10837_s3 + $0x430] sm:$0xff]  ;;  %v6977_v11 = vcombine.low %v3859_v63, %v3863_v0 }
 0x347   :  { %5100 = vmatpush1.bf16.msra.mxu1 %v6873_v24  ;;  %v3888_v24 = vld [vmem:[%s10837_s3 + $0x4b8] sm:$0xff] }
 0x348   :  { %5198 = vmatpush1.bf16.msra.mxu0 %v6939_v20  ;;  %5101 = vmatprep.subr.bf16.mxu1 %v6882_v7  ;;  %v6938_v20 = vcombine.high %v3819_v17, %v3823_v52  ;;  %v7004_v7 = vcombine.high %v3884_v18, %v3888_v24  ;;  %v7003_v27 = vcombine.low %v3884_v18, %v3888_v24  ;;  %v3883_v18 = vld [vmem:[%s10837_s3 + $0x490] sm:$0xff] }
 0x349   :  { %5199 = vmatprep.subr.bf16.mxu0 %v6948_v22  ;;  %v3892_v22 = vld [vmem:[%s10837_s3 + $0x4d8] sm:$0xff]  ;;  %v6985_v17 = vcombine.low %v3867_v6, %v3871_v9  ;;  %v3887_v24 = vld [vmem:[%s10837_s3 + $0x4b0] sm:$0xff] }
 0x34b   :  { %5102 = vmatpush1.bf16.msra.mxu1 %v6881_v23  ;;  %v3896_v23 = vld [vmem:[%s10837_s3 + $0x4f8] sm:$0xff] }
 0x34c   :  { %5200 = vmatpush1.bf16.msra.mxu0 %v6947_v28  ;;  %5103 = vmatprep.subr.bf16.mxu1 %v6890_v30  ;;  %v6946_v28 = vcombine.high %v3827_v21, %v3831_v8  ;;  %v7012_v30 = vcombine.high %v3892_v22, %v3896_v23  ;;  %v7011_v38 = vcombine.low %v3892_v22, %v3896_v23  ;;  %v3899_v8 = vld [vmem:[%s10837_s3 + $0x510] sm:$0xff] }
 0x34d   :  { %5201 = vmatprep.subr.bf16.mxu0 %v6956_v33  ;;  %v3900_v33 = vld [vmem:[%s10837_s3 + $0x518] sm:$0xff]  ;;  %v7001_v21 = vcombine.low %v3883_v18, %v3887_v24 }
 0x34f   :  { %5104 = vmatpush1.bf16.msra.mxu1 %v6889_v57  ;;  %v3904_v57 = vld [vmem:[%s10837_s3 + $0x538] sm:$0xff] }
 0x350   :  { %5202 = vmatpush1.bf16.msra.mxu0 %v6955_v40  ;;  %5105 = vmatprep.subr.bf16.mxu1 %v6898_v41  ;;  %v6954_v40 = vcombine.high %v3835_v31, %v3839_v50  ;;  %v7020_v41 = vcombine.high %v3900_v33, %v3904_v57  ;;  %v7019_v48 = vcombine.low %v3900_v33, %v3904_v57  ;;  %v3915_v31 = vld [vmem:[%s10837_s3 + $0x590] sm:$0xff] }
 0x351   :  { %5203 = vmatprep.subr.bf16.mxu0 %v6964_v46  ;;  %v3908_v46 = vld [vmem:[%s10837_s3 + $0x558] sm:$0xff]  ;;  %v3919_v50 = vld [vmem:[%s10837_s3 + $0x5b0] sm:$0xff] }
 0x352   :  { %v7034_v57 = vcombine.high %v3915_v31, %v3919_v50 }
 0x353   :  { %5106 = vmatpush1.bf16.msra.mxu1 %v6897_v26  ;;  %v3912_v26 = vld [vmem:[%s10837_s3 + $0x578] sm:$0xff] }
 0x354   :  { %5204 = vmatpush1.bf16.msra.mxu0 %v6963_v49  ;;  %5107 = vmatprep.subr.bf16.mxu1 %v6906_v36  ;;  %v6962_v49 = vcombine.high %v3843_v42, %v3847_v44  ;;  %v7028_v36 = vcombine.high %v3908_v46, %v3912_v26 }
 0x355   :  { %5205 = vmatprep.subr.bf16.mxu0 %v6972_v54  ;;  %v3916_v54 = vld [vmem:[%s10837_s3 + $0x598] sm:$0xff] }
 0x357   :  { %5108 = vmatpush1.bf16.msra.mxu1 %v6905_v55  ;;  %v3920_v55 = vld [vmem:[%s10837_s3 + $0x5b8] sm:$0xff] }
 0x358   :  { %5206 = vmatpush1.bf16.msra.mxu0 %v6971_v56  ;;  %5109 = vmatprep.subr.bf16.mxu1 %v6914_v58  ;;  %v6961_v56 = vcombine.low %v3843_v42, %v3847_v44  ;;  %v7027_v58 = vcombine.low %v3908_v46, %v3912_v26  ;;  %v7036_v61 = vcombine.high %v3916_v54, %v3920_v55  ;;  %v8077_v44 = vld [vmem:[%s10838_s5 + $0x4] ss:$8 sps:$4 sm:$0xff]   ;;  %v8075_v46 = vld [vmem:[%s10838_s5] ss:$8 sps:$4 sm:$0xff]   ;;  %v8080_v26 = vld [vmem:[%s10838_s5 + $0x14] ss:$8 sps:$4 sm:$0xff]  }
 0x359   :  { %5207 = vmatprep.subr.bf16.mxu0 %v6980_v59  ;;  %v6970_v59 = vcombine.high %v3851_v39, %v3855_v51 }
 0x35b   :  { %5110 = vmatpush1.bf16.msra.mxu1 %v6913_v62  ;;  %v3928_v62 = vld [vmem:[%s10837_s3 + $0x5f8] sm:$0xff] }
 0x35c   :  { %5208 = vmatpush1.bf16.msra.mxu0 %v6979_v2  ;;  %5111 = vmatprep.subr.bf16.mxu1 %v6922_v3  ;;  %v6969_v2 = vcombine.low %v3851_v39, %v3855_v51  ;;  %v7035_v3 = vcombine.low %v3916_v54, %v3920_v55  ;;  %v7044_v5 = vcombine.high %v3924_v1, %v3928_v62  ;;  %v8089_v39 = vld [vmem:[%s10838_s5 + $0x44] ss:$8 sps:$4 sm:$0xff]   ;;  %v8087_v51 = vld [vmem:[%s10838_s5 + $0x40] ss:$8 sps:$4 sm:$0xff]   ;;  %v8092_v54 = vld [vmem:[%s10838_s5 + $0x54] ss:$8 sps:$4 sm:$0xff]  }
 0x35d   :  { %5218 = vmatprep.subr.bf16.mxu0 %v6988_v4  ;;  %v6978_v4 = vcombine.high %v3859_v63, %v3863_v0  ;;  %v8090_v55 = vld [vmem:[%s10838_s5 + $0x50] ss:$8 sps:$4 sm:$0xff]   ;;  %v8101_v63 = vld [vmem:[%s10838_s5 + $0x84] ss:$8 sps:$4 sm:$0xff]   ;;  %v8099_v0 = vld [vmem:[%s10838_s5 + $0x80] ss:$8 sps:$4 sm:$0xff]  }
 0x35f   :  { %5210 = vmatmul.mubr.bf16.vlgmr.msra.gmra.mrb[8].mxu0 %v10036_v53  ;;  %5112 = vmatpush1.bf16.msra.mxu1 %v6921_v12  ;;  %v7043_v12 = vcombine.low %v3924_v1, %v3928_v62  ;;  %v8104_v1 = vld [vmem:[%s10838_s5 + $0x94] ss:$8 sps:$4 sm:$0xff]   ;;  %v8102_v62 = vld [vmem:[%s10838_s5 + $0x90] ss:$8 sps:$4 sm:$0xff]  }
 0x360   :  { %5219 = vmatpush1.bf16.msra.mxu0 %v6987_v13  ;;  %5113 = vmatprep.subr.bf16.mxu1 %v6930_v14  ;;  %v6986_v13 = vcombine.high %v3867_v6, %v3871_v9  ;;  %v3875_v14 = vld [vmem:[%s10837_s3 + $0x450] sm:$0xff]  ;;  %v8113_v6 = vld [vmem:[%s10838_s5 + $0xc4] ss:$8 sps:$4 sm:$0xff]   ;;  %v8111_v9 = vld [vmem:[%s10838_s5 + $0xc0] ss:$8 sps:$4 sm:$0xff]  }
 0x361   :  { %5220 = vmatprep.subr.bf16.mxu0 %v6996_v16  ;;  %5250 = vmatprep.mubr.bf16.mxu0 %v8284_v10  ;;  %v3879_v16 = vld [vmem:[%s10837_s3 + $0x470] sm:$0xff] }
 0x362   :  { %v6994_v52 = vcombine.high %v3875_v14, %v3879_v16 }
 0x363   :  { %5114 = vmatpush1.bf16.msra.mxu1 %v6929_v29  ;;  %v6993_v29 = vcombine.low %v3875_v14, %v3879_v16  ;;  %v8117_v14 = vld [vmem:[%s10838_s5 + $0xe0] ss:$8 sps:$4 sm:$0xff]   ;;  %v8122_v16 = vld [vmem:[%s10838_s5 + $0xf4] ss:$8 sps:$4 sm:$0xff]  }
 0x364   :  { %5221 = vmatpush1.bf16.msra.mxu0 %v6995_v19  ;;  %5115 = vmatprep.subr.bf16.mxu1 %v6938_v20  ;;  %v7002_v19 = vcombine.high %v3883_v18, %v3887_v24  ;;  %v3891_v20 = vld [vmem:[%s10837_s3 + $0x4d0] sm:$0xff]  ;;  %v10466_v18 = vld [vmem:[%s10839_s4] sm:$0xff] }
 0x365   :  { %5222 = vmatprep.subr.bf16.mxu0 %v7004_v7  ;;  %v3895_v7 = vld [vmem:[%s10837_s3 + $0x4f0] sm:$0xff]  ;;  %v3934_v24 = vrot.slane %v10466_v18, %v10012_v34 }
 0x366   :  { %v7009_v22 = vcombine.low %v3891_v20, %v3895_v7 }
 0x367   :  { %5116 = vmatpush1.bf16.msra.mxu1 %v6937_v25  ;;  %v3907_v25 = vld [vmem:[%s10837_s3 + $0x550] sm:$0xff] }
 0x368   :  { %5223 = vmatpush1.bf16.msra.mxu0 %v7003_v27  ;;  %5117 = vmatprep.subr.bf16.mxu1 %v6946_v28  ;;  %v3911_v27 = vld [vmem:[%s10837_s3 + $0x570] sm:$0xff] }
 0x369   :  { %5224 = vmatprep.subr.bf16.mxu0 %v7012_v30  ;;  %v7026_v30 = vcombine.high %v3907_v25, %v3911_v27  ;;  %v7025_v33 = vcombine.low %v3907_v25, %v3911_v27 }
 0x36b   :  { %5118 = vmatpush1.bf16.msra.mxu1 %v6945_v37  ;;  %v3923_v37 = vld [vmem:[%s10837_s3 + $0x5d0] sm:$0xff] }
 0x36c   :  { %5225 = vmatpush1.bf16.msra.mxu0 %v7011_v38  ;;  %5119 = vmatprep.subr.bf16.mxu1 %v6954_v40  ;;  %v3927_v38 = vld [vmem:[%s10837_s3 + $0x5f0] sm:$0xff]  ;;  %v7033_v40 = vcombine.low %v3915_v31, %v3919_v50  ;;  %v8129_v50 = vld [vmem:[%s10838_s5 + $0x120] ss:$8 sps:$4 sm:$0xff]  }
 0x36d   :  { %5226 = vmatprep.subr.bf16.mxu0 %v7020_v41  ;;  %v7042_v41 = vcombine.high %v3923_v37, %v3927_v38  ;;  %v7041_v42 = vcombine.low %v3923_v37, %v3927_v38  ;;  %v8128_v31 = vld [vmem:[%s10838_s5 + $0x114] ss:$8 sps:$4 sm:$0xff]   ;;  %v8137_v37 = vld [vmem:[%s10838_s5 + $0x144] ss:$8 sps:$4 sm:$0xff]   ;;  %v8135_v38 = vld [vmem:[%s10838_s5 + $0x140] ss:$8 sps:$4 sm:$0xff]  }
 0x36f   :  { %5120 = vmatpush1.bf16.msra.mxu1 %v6953_v47  ;;  %v8078_v47 = vld [vmem:[%s10838_s5 + $0x10] ss:$8 sps:$4 sm:$0xff]  }
 0x370   :  { %5227 = vmatpush1.bf16.msra.mxu0 %v7019_v48  ;;  %5121 = vmatprep.subr.bf16.mxu1 %v6962_v49  ;;  %v8083_v48 = vld [vmem:[%s10838_s5 + $0x24] ss:$8 sps:$4 sm:$0xff]   ;;  %v8081_v49 = vld [vmem:[%s10838_s5 + $0x20] ss:$8 sps:$4 sm:$0xff]  }
 0x371   :  { %5228 = vmatprep.subr.bf16.mxu0 %v7028_v36  ;;  %v8084_v36 = vld [vmem:[%s10838_s5 + $0x30] ss:$8 sps:$4 sm:$0xff]  }
 0x373   :  { %5122 = vmatpush1.bf16.msra.mxu1 %v6961_v56  ;;  %v8095_v56 = vld [vmem:[%s10838_s5 + $0x64] ss:$8 sps:$4 sm:$0xff]  }
 0x374   :  { %5229 = vmatpush1.bf16.msra.mxu0 %v7027_v58  ;;  %5123 = vmatprep.subr.bf16.mxu1 %v6970_v59  ;;  %v8093_v58 = vld [vmem:[%s10838_s5 + $0x60] ss:$8 sps:$4 sm:$0xff]   ;;  %v8098_v59 = vld [vmem:[%s10838_s5 + $0x74] ss:$8 sps:$4 sm:$0xff]  }
 0x375   :  { %5230 = vmatprep.subr.bf16.mxu0 %v7036_v61  ;;  %v8096_v61 = vld [vmem:[%s10838_s5 + $0x70] ss:$8 sps:$4 sm:$0xff]  }
 0x377   :  { %5124 = vmatpush1.bf16.msra.mxu1 %v6969_v2  ;;  %v8107_v2 = vld [vmem:[%s10838_s5 + $0xa4] ss:$8 sps:$4 sm:$0xff]  }
 0x378   :  { %5231 = vmatpush1.bf16.msra.mxu0 %v7035_v3  ;;  %5125 = vmatprep.subr.bf16.mxu1 %v6978_v4  ;;  %v8105_v3 = vld [vmem:[%s10838_s5 + $0xa0] ss:$8 sps:$4 sm:$0xff]   ;;  %v8110_v4 = vld [vmem:[%s10838_s5 + $0xb4] ss:$8 sps:$4 sm:$0xff]  }
 0x379   :  { %5232 = vmatprep.subr.bf16.mxu0 %v7044_v5  ;;  %v8108_v5 = vld [vmem:[%s10838_s5 + $0xb0] ss:$8 sps:$4 sm:$0xff]  }
 0x37b   :  { %5126 = vmatpush1.bf16.msra.mxu1 %v6977_v11  ;;  %v8116_v11 = vld [vmem:[%s10838_s5 + $0xd4] ss:$8 sps:$4 sm:$0xff]  }
 0x37c   :  { %5233 = vmatpush1.bf16.msra.mxu0 %v7043_v12  ;;  %5136 = vmatprep.subr.bf16.mxu1 %v6986_v13  ;;  %v8114_v12 = vld [vmem:[%s10838_s5 + $0xd0] ss:$8 sps:$4 sm:$0xff]   ;;  %v8119_v13 = vld [vmem:[%s10838_s5 + $0xe4] ss:$8 sps:$4 sm:$0xff]  }
 0x37e   :  { %5128 = vmatmul.mubr.bf16.vlgmr.msra.gmra.mrb[44].mxu1 %v10036_v53  ;;  %v7010_v53 = vcombine.high %v3891_v20, %v3895_v7 }
 0x37f   :  { %5251 = vmatmul.mubr.bf16.vlgmr.msra.gmra.mrb[8].mxu0 %v9704_v45  ;;  %5137 = vmatpush1.bf16.msra.mxu1 %v6985_v17  ;;  %v8120_v17 = vld [vmem:[%s10838_s5 + $0xf0] ss:$8 sps:$4 sm:$0xff]  }
 0x380   :  { %5138 = vmatprep.subr.bf16.mxu1 %v6994_v52  ;;  %5168 = vmatprep.mubr.bf16.mxu1 %v8284_v10  ;;  %v3903_v10 = vld [vmem:[%s10837_s3 + $0x530] sm:$0xff]  ;;  %v8125_v52 = vld [vmem:[%s10838_s5 + $0x104] ss:$8 sps:$4 sm:$0xff]  }
 0x381   :  { %v7018_v23 = vcombine.high %v3899_v8, %v3903_v10  ;;  %v7017_v28 = vcombine.low %v3899_v8, %v3903_v10 }
 0x383   :  { %5139 = vmatpush1.bf16.msra.mxu1 %v6993_v29  ;;  %v3938_v29 = vrot.slane %v10466_v18, %v10015_v35 }
 0x384   :  { %5140 = vmatprep.subr.bf16.mxu1 %v7002_v19 }
 0x387   :  { %5141 = vmatpush1.bf16.msra.mxu1 %v7001_v21 }
 0x388   :  { %5142 = vmatprep.subr.bf16.mxu1 %v7010_v53 }
 0x38b   :  { %5143 = vmatpush1.bf16.msra.mxu1 %v7009_v22 }
 0x38c   :  { %5144 = vmatprep.subr.bf16.mxu1 %v7018_v23 }
 0x38f   :  { %5145 = vmatpush1.bf16.msra.mxu1 %v7017_v28  ;;  %v8123_v28 = vld [vmem:[%s10838_s5 + $0x100] ss:$8 sps:$4 sm:$0xff]  }
 0x390   :  { %5146 = vmatprep.subr.bf16.mxu1 %v7026_v30 }
 0x393   :  { %5147 = vmatpush1.bf16.msra.mxu1 %v7025_v33  ;;  %v8134_v33 = vld [vmem:[%s10838_s5 + $0x134] ss:$8 sps:$4 sm:$0xff]  }
 0x394   :  { %5148 = vmatprep.subr.bf16.mxu1 %v7034_v57  ;;  %v8132_v57 = vld [vmem:[%s10838_s5 + $0x130] ss:$8 sps:$4 sm:$0xff]  }
 0x397   :  { %5149 = vmatpush1.bf16.msra.mxu1 %v7033_v40  ;;  %v8140_v40 = vld [vmem:[%s10838_s5 + $0x154] ss:$8 sps:$4 sm:$0xff]  }
 0x398   :  { %5150 = vmatprep.subr.bf16.mxu1 %v7042_v41  ;;  %v3945_v41 = vsub.s32 3, %v9370_v60 }
 0x39b   :  { %5151 = vmatpush1.bf16.msra.mxu1 %v7041_v42  ;;  %v8138_v42 = vld [vmem:[%s10838_s5 + $0x150] ss:$8 sps:$4 sm:$0xff]  }
 0x39c   :  { %6055 = vmatprep.subr.bf16.mxu1 %v8077_v44  ;;  %v8143_v44 = vld [vmem:[%s10838_s5 + $0x164] ss:$8 sps:$4 sm:$0xff]  }
 0x39e   :  { %5169 = vmatmul.mubr.bf16.vlgmr.msra.gmra.mrb[44].mxu1 %v9704_v45  ;;  %v8086_v45 = vld [vmem:[%s10838_s5 + $0x34] ss:$8 sps:$4 sm:$0xff]  }
 0x39f   :  { %6056 = vmatpush1.bf16.msra.mxu1 %v8075_v46  ;;  %v3946_v46 = vrot.slane %v10466_v18, %v3945_v41 }
 0x3a0   :  { %6057 = vmatprep.subr.bf16.mxu1 %v8080_v26 }
 0x3a3   :  { %6058 = vmatpush1.bf16.msra.mxu1 %v8078_v47  ;;  %v8141_v47 = vld [vmem:[%s10838_s5 + $0x160] ss:$8 sps:$4 sm:$0xff]  }
 0x3a4   :  { %6059 = vmatprep.subr.bf16.mxu1 %v8083_v48 }
 0x3a7   :  { %6060 = vmatpush1.bf16.msra.mxu1 %v8081_v49  ;;  %v8146_v49 = vld [vmem:[%s10838_s5 + $0x174] ss:$8 sps:$4 sm:$0xff]  }
 0x3a8   :  { %6061 = vmatprep.subr.bf16.mxu1 %v8086_v45 }
 0x3ab   :  { %6062 = vmatpush1.bf16.msra.mxu1 %v8084_v36 }
 0x3ac   :  { %6063 = vmatprep.subr.bf16.mxu1 %v8089_v39 }
 0x3af   :  { %6064 = vmatpush1.bf16.msra.mxu1 %v8087_v51 }
 0x3b0   :  { %6065 = vmatprep.subr.bf16.mxu1 %v8092_v54  ;;  %v8144_v54 = vld [vmem:[%s10838_s5 + $0x170] ss:$8 sps:$4 sm:$0xff]  }
 0x3b3   :  { %6066 = vmatpush1.bf16.msra.mxu1 %v8090_v55  ;;  %v8149_v55 = vld [vmem:[%s10838_s5 + $0x184] ss:$8 sps:$4 sm:$0xff]  }
 0x3b4   :  { %6067 = vmatprep.subr.bf16.mxu1 %v8095_v56 }
 0x3b7   :  { %6068 = vmatpush1.bf16.msra.mxu1 %v8093_v58  ;;  %v8147_v58 = vld [vmem:[%s10838_s5 + $0x180] ss:$8 sps:$4 sm:$0xff]  }
 0x3b8   :  { %6069 = vmatprep.subr.bf16.mxu1 %v8098_v59  ;;  %v8152_v59 = vld [vmem:[%s10838_s5 + $0x194] ss:$8 sps:$4 sm:$0xff]  }
 0x3bb   :  { %6070 = vmatpush1.bf16.msra.mxu1 %v8096_v61  ;;  %v8150_v61 = vld [vmem:[%s10838_s5 + $0x190] ss:$8 sps:$4 sm:$0xff]  }
 0x3bc   :  { %6071 = vmatprep.subr.bf16.mxu1 %v8101_v63  ;;  %v8155_v63 = vld [vmem:[%s10838_s5 + $0x1a4] ss:$8 sps:$4 sm:$0xff]  }
 0x3bf   :  { %6072 = vmatpush1.bf16.msra.mxu1 %v8099_v0  ;;  %v8153_v0 = vld [vmem:[%s10838_s5 + $0x1a0] ss:$8 sps:$4 sm:$0xff]  }
 0x3c0   :  { %6073 = vmatprep.subr.bf16.mxu1 %v8104_v1  ;;  %v8158_v1 = vld [vmem:[%s10838_s5 + $0x1b4] ss:$8 sps:$4 sm:$0xff]  }
 0x3c3   :  { %6074 = vmatpush1.bf16.msra.mxu1 %v8102_v62  ;;  %v8156_v62 = vld [vmem:[%s10838_s5 + $0x1b0] ss:$8 sps:$4 sm:$0xff]  }
 0x3c4   :  { %6075 = vmatprep.subr.bf16.mxu1 %v8107_v2  ;;  %v8161_v2 = vld [vmem:[%s10838_s5 + $0x1c4] ss:$8 sps:$4 sm:$0xff]  }
 0x3c7   :  { %6076 = vmatpush1.bf16.msra.mxu1 %v8105_v3  ;;  %v8159_v3 = vld [vmem:[%s10838_s5 + $0x1c0] ss:$8 sps:$4 sm:$0xff]  }
 0x3c8   :  { %6077 = vmatprep.subr.bf16.mxu1 %v8110_v4  ;;  %v8164_v4 = vld [vmem:[%s10838_s5 + $0x1d4] ss:$8 sps:$4 sm:$0xff]  }
 0x3cb   :  { %6078 = vmatpush1.bf16.msra.mxu1 %v8108_v5  ;;  %v8162_v5 = vld [vmem:[%s10838_s5 + $0x1d0] ss:$8 sps:$4 sm:$0xff]  }
 0x3cc   :  { %6079 = vmatprep.subr.bf16.mxu1 %v8113_v6  ;;  %v3942_v6 = vrot.slane %v10466_v18, %v630_v15  ;;  %v8168_v15 = vld [vmem:[%s10838_s5 + $0x1f0] ss:$8 sps:$4 sm:$0xff]  }
 0x3cf   :  { %6080 = vmatpush1.bf16.msra.mxu1 %v8111_v9  ;;  %v8167_v9 = vld [vmem:[%s10838_s5 + $0x1e4] ss:$8 sps:$4 sm:$0xff]  }
 0x3d0   :  { %6081 = vmatprep.subr.bf16.mxu1 %v8116_v11  ;;  %v8165_v11 = vld [vmem:[%s10838_s5 + $0x1e0] ss:$8 sps:$4 sm:$0xff]  }
 0x3d3   :  { %6082 = vmatpush1.bf16.msra.mxu1 %v8114_v12 }
 0x3d4   :  { %6083 = vmatprep.subr.bf16.mxu1 %v8119_v13  ;;  %v8170_v13 = vld [vmem:[%s10838_s5 + $0x1f4] ss:$8 sps:$4 sm:$0xff]  }
 0x3d7   :  { %6084 = vmatpush1.bf16.msra.mxu1 %v8117_v14 }
 0x3d8   :  { %6085 = vmatprep.subr.bf16.mxu1 %v8122_v16  ;;  %v8173_v16 = vld [vmem:[%s10838_s5 + $0x204] ss:$8 sps:$4 sm:$0xff]  }
 0x3db   :  { %6086 = vmatpush1.bf16.msra.mxu1 %v8120_v17  ;;  %v8171_v17 = vld [vmem:[%s10838_s5 + $0x200] ss:$8 sps:$4 sm:$0xff]  }
 0x3dc   :  { %6096 = vmatprep.subr.bf16.mxu1 %v8125_v52 }
 0x3f1   :  { %v4965_v19 = vpop.f32.mrb[4].mxu0 }
 0x3f2   :  { %v4966_v20 = vadd.f32 %v4965_v19, %v3934_v24  ;;  %v4967_v7 = vpop.f32.mrb[5].mxu0  ;;  %v8176_v24 = vld [vmem:[%s10838_s5 + $0x214] ss:$8 sps:$4 sm:$0xff]   ;;  %v8179_v19 = vld [vmem:[%s10838_s5 + $0x224] ss:$8 sps:$4 sm:$0xff]  }
 0x3f3   :  { %v4968_v21 = vadd.f32 %v4967_v7, %v3938_v29  ;;  %v4969_v53 = vpop.f32.mrb[6].mxu0  ;;  %v8174_v29 = vld [vmem:[%s10838_s5 + $0x210] ss:$8 sps:$4 sm:$0xff]   ;;  %v8268_v7 = vld [vmem:[%s10840_s7] sm:$0xff]  }
 0x3f4   :  { %v5007_v8 = vadd.f32 %v10007_v32, %v4966_v20  ;;  %v4970_v10 = vpop.f32.mrb[7].mxu0  ;;  %v8126_v32 = vld [vmem:[%s10838_s5 + $0x110] ss:$8 sps:$4 sm:$0xff]   ;;  %v8267_v20 = vld [vmem:[%s10840_s7 + $0x40] sm:$0xff]   ;;  %v8269_v53 = vld [vmem:[%s10840_s7 + $0x48] sm:$0xff]  }
 0x3f5   :  { %v5009_v22 = vadd.f32 %v10009_v43, %v4968_v21  ;;  %v8131_v43 = vld [vmem:[%s10838_s5 + $0x124] ss:$8 sps:$4 sm:$0xff]   ;;  %v8177_v21 = vld [vmem:[%s10838_s5 + $0x220] ss:$8 sps:$4 sm:$0xff]   ;;  %7388 = vmatprep.subr.bf16.mxu0 %v8267_v20  ;;  %v8271_v10 = vld [vmem:[%s10840_s7 + $0x50] sm:$0xff]  }
 0x3f6   :  { %v5259_v23 = vmax.f32 %v5007_v8, 0.0  ;;  %7389 = vmatpush3.bf16.msra.mxu0 %v8268_v7  ;;  %v8270_v8 = vld [vmem:[%s10840_s7 + $0x8] sm:$0xff]  }
 0x3f7   :  { %v5260_v25 = vmax.f32 %v5009_v22, 0.0  ;;  %7390 = vmatprep.subr.bf16.mxu0 %v8269_v53  ;;  %v8182_v22 = vld [vmem:[%s10838_s5 + $0x234] ss:$8 sps:$4 sm:$0xff]   ;;  %v8219_v7 = vld [vmem:[%s10838_s5 + $0x300] ss:$8 sps:$4 sm:$0xff]  }
 0x3f8   :  { %v5267_v30 = vpack.c.bf16 %v5259_v23, %v5259_v23  ;;  %v8180_v23 = vld [vmem:[%s10838_s5 + $0x230] ss:$8 sps:$4 sm:$0xff]   ;;  %v8224_v53 = vld [vmem:[%s10838_s5 + $0x314] ss:$8 sps:$4 sm:$0xff]  }
 0x3f9   :  { %v5268_v27 = vpack.c.bf16 %v5260_v25, %v5260_v25  ;;  %v8272_v25 = vld [vmem:[%s10840_s7 + $0x10] sm:$0xff]  }
 0x3fa   :  { %7391 = vmatpush3.bf16.msra.mxu0 %v8270_v8 }
 0x3fb   :  { %6087 = vmatprep.mubr.bf16.mxu1 %v5268_v27  ;;  %7392 = vmatprep.subr.bf16.mxu0 %v8271_v10  ;;  %v8273_v27 = vld [vmem:[%s10840_s7 + $0x58] sm:$0xff]  }
 0x3fc   :  { %6088 = vmatmul.mubr.bf16.vlgmr.msra.gmra.mrb[48].mxu1 %v5267_v30  ;;  %v8183_v30 = vld [vmem:[%s10838_s5 + $0x240] ss:$8 sps:$4 sm:$0xff]   ;;  %v8222_v10 = vld [vmem:[%s10838_s5 + $0x310] ss:$8 sps:$4 sm:$0xff]  }
 0x3fd   :  { %6097 = vmatpush1.bf16.msra.mxu1 %v8123_v28  ;;  %v8185_v28 = vld [vmem:[%s10838_s5 + $0x244] ss:$8 sps:$4 sm:$0xff]  }
 0x3fe   :  { %6098 = vmatprep.subr.bf16.mxu1 %v8128_v31  ;;  %v8188_v31 = vld [vmem:[%s10838_s5 + $0x254] ss:$8 sps:$4 sm:$0xff]   ;;  %7393 = vmatpush3.bf16.msra.mxu0 %v8272_v25 }
 0x3ff   :  { %7394 = vmatprep.subr.bf16.mxu0 %v8273_v27  ;;  %v8230_v25 = vld [vmem:[%s10838_s5 + $0x334] ss:$8 sps:$4 sm:$0xff]   ;;  %v8228_v27 = vld [vmem:[%s10838_s5 + $0x330] ss:$8 sps:$4 sm:$0xff]  }
 0x401   :  { %6099 = vmatpush1.bf16.msra.mxu1 %v8126_v32  ;;  %v8274_v32 = vld [vmem:[%s10840_s7 + $0x18] sm:$0xff]  }
 0x402   :  { %6100 = vmatprep.subr.bf16.mxu1 %v8131_v43  ;;  %v8275_v43 = vld [vmem:[%s10840_s7 + $0x60] sm:$0xff]   ;;  %7395 = vmatpush3.bf16.msra.mxu0 %v8274_v32  ;;  %v8234_v32 = vld [vmem:[%s10838_s5 + $0x350] ss:$8 sps:$4 sm:$0xff]  }
 0x403   :  { %7396 = vmatprep.subr.bf16.mxu0 %v8275_v43  ;;  %v8239_v43 = vld [vmem:[%s10838_s5 + $0x364] ss:$8 sps:$4 sm:$0xff]  }
 0x405   :  { %6101 = vmatpush1.bf16.msra.mxu1 %v8129_v50  ;;  %v8276_v50 = vld [vmem:[%s10840_s7 + $0x20] sm:$0xff]  }
 0x406   :  { %6102 = vmatprep.subr.bf16.mxu1 %v8134_v33  ;;  %v8186_v33 = vld [vmem:[%s10838_s5 + $0x250] ss:$8 sps:$4 sm:$0xff]   ;;  %7397 = vmatpush3.bf16.msra.mxu0 %v8276_v50  ;;  %v8237_v50 = vld [vmem:[%s10838_s5 + $0x360] ss:$8 sps:$4 sm:$0xff]  }
 0x409   :  { %6103 = vmatpush1.bf16.msra.mxu1 %v8132_v57  ;;  %v8277_v57 = vld [vmem:[%s10840_s7 + $0x68] sm:$0xff]  }
 0x40a   :  { %6104 = vmatprep.subr.bf16.mxu1 %v8137_v37  ;;  %v8191_v37 = vld [vmem:[%s10838_s5 + $0x264] ss:$8 sps:$4 sm:$0xff]   ;;  %7398 = vmatprep.subr.bf16.mxu0 %v8277_v57  ;;  %v8240_v57 = vld [vmem:[%s10838_s5 + $0x370] ss:$8 sps:$4 sm:$0xff]  }
 0x40d   :  { %6105 = vmatpush1.bf16.msra.mxu1 %v8135_v38  ;;  %v8278_v38 = vld [vmem:[%s10840_s7 + $0x28] sm:$0xff]  }
 0x40e   :  { %6106 = vmatprep.subr.bf16.mxu1 %v8140_v40  ;;  %v8189_v40 = vld [vmem:[%s10838_s5 + $0x260] ss:$8 sps:$4 sm:$0xff]   ;;  %7399 = vmatpush3.bf16.msra.mxu0 %v8278_v38 }
 0x40f   :  { %v8243_v38 = vld [vmem:[%s10838_s5 + $0x380] ss:$8 sps:$4 sm:$0xff]  }
 0x411   :  { %v5088_v26 = vpop.f32.mrb[40].mxu1  ;;  %6107 = vmatpush1.bf16.msra.mxu1 %v8138_v42  ;;  %v8194_v42 = vld [vmem:[%s10838_s5 + $0x274] ss:$8 sps:$4 sm:$0xff]  }
 0x412   :  { %v5090_v48 = vpop.f32.mrb[41].mxu1  ;;  %6108 = vmatprep.subr.bf16.mxu1 %v8143_v44  ;;  %v7416_v12 = vadd.f32 %v5088_v26, %v3942_v6  ;;  %v8213_v6 = vld [vmem:[%s10838_s5 + $0x2e0] ss:$8 sps:$4 sm:$0xff]  }
 0x413   :  { %v7417_v45 = vadd.f32 %v5090_v48, %v3946_v46  ;;  %v5092_v36 = vpop.f32.mrb[42].mxu1  ;;  %v8197_v48 = vld [vmem:[%s10838_s5 + $0x284] ss:$8 sps:$4 sm:$0xff]  }
 0x414   :  { %v5093_v39 = vpop.f32.mrb[43].mxu1  ;;  %v5261_v14 = vmax.f32 %v7416_v12, 0.0  ;;  %v8198_v36 = vld [vmem:[%s10838_s5 + $0x290] ss:$8 sps:$4 sm:$0xff]   ;;  %v8218_v12 = vld [vmem:[%s10838_s5 + $0x2f4] ss:$8 sps:$4 sm:$0xff]  }
 0x415   :  { %v5262_v51 = vmax.f32 %v7417_v45, 0.0  ;;  %6109 = vmatpush1.bf16.msra.mxu1 %v8141_v47  ;;  %v8192_v47 = vld [vmem:[%s10838_s5 + $0x270] ss:$8 sps:$4 sm:$0xff]   ;;  %v8200_v45 = vld [vmem:[%s10838_s5 + $0x294] ss:$8 sps:$4 sm:$0xff]  }
 0x416   :  { %6110 = vmatprep.subr.bf16.mxu1 %v8146_v49  ;;  %v5269_v52 = vpack.c.bf16 %v5261_v14, %v5261_v14  ;;  %v8195_v49 = vld [vmem:[%s10838_s5 + $0x280] ss:$8 sps:$4 sm:$0xff]   ;;  %v8203_v39 = vld [vmem:[%s10838_s5 + $0x2a4] ss:$8 sps:$4 sm:$0xff]  }
 0x417   :  { %v5270_v56 = vpack.c.bf16 %v5262_v51, %v5262_v51  ;;  %v8201_v51 = vld [vmem:[%s10838_s5 + $0x2a0] ss:$8 sps:$4 sm:$0xff]  }
 0x419   :  { %6111 = vmatpush1.bf16.msra.mxu1 %v8144_v54  ;;  %6128 = vmatprep.mubr.bf16.mxu1 %v5270_v56  ;;  %v8206_v54 = vld [vmem:[%s10838_s5 + $0x2b4] ss:$8 sps:$4 sm:$0xff]   ;;  %v8209_v56 = vld [vmem:[%s10838_s5 + $0x2c4] ss:$8 sps:$4 sm:$0xff]  }
 0x41a   :  { %6112 = vmatprep.subr.bf16.mxu1 %v8149_v55  ;;  %v8204_v55 = vld [vmem:[%s10838_s5 + $0x2b0] ss:$8 sps:$4 sm:$0xff]  }
 0x41d   :  { %6113 = vmatpush1.bf16.msra.mxu1 %v8147_v58  ;;  %v8207_v58 = vld [vmem:[%s10838_s5 + $0x2c0] ss:$8 sps:$4 sm:$0xff]  }
 0x41e   :  { %6114 = vmatprep.subr.bf16.mxu1 %v8152_v59  ;;  %v8212_v59 = vld [vmem:[%s10838_s5 + $0x2d4] ss:$8 sps:$4 sm:$0xff]  }
 0x421   :  { %6115 = vmatpush1.bf16.msra.mxu1 %v8150_v61  ;;  %v3949_v61 = vsub.s32 4, %v9370_v60 }
 0x422   :  { %6116 = vmatprep.subr.bf16.mxu1 %v8155_v63  ;;  %v3961_v63 = vsub.s32 7, %v9370_v60 }
 0x425   :  { %6117 = vmatpush1.bf16.msra.mxu1 %v8153_v0  ;;  %v3953_v0 = vsub.s32 5, %v9370_v60 }
 0x426   :  { %6118 = vmatprep.subr.bf16.mxu1 %v8158_v1  ;;  %v8210_v1 = vld [vmem:[%s10838_s5 + $0x2d0] ss:$8 sps:$4 sm:$0xff]  }
 0x429   :  { %6119 = vmatpush1.bf16.msra.mxu1 %v8156_v62  ;;  %v3950_v62 = vrot.slane %v10466_v18, %v3949_v61  ;;  %v8279_v61 = vld [vmem:[%s10840_s7 + $0x70] sm:$0xff]  }
 0x42a   :  { %6120 = vmatprep.subr.bf16.mxu1 %v8161_v2  ;;  %v8215_v2 = vld [vmem:[%s10838_s5 + $0x2e4] ss:$8 sps:$4 sm:$0xff]   ;;  %7400 = vmatprep.subr.bf16.mxu0 %v8279_v61 }
 0x42d   :  { %6121 = vmatpush1.bf16.msra.mxu1 %v8159_v3  ;;  %v3962_v3 = vrot.slane %v10466_v18, %v3961_v63  ;;  %v8281_v63 = vld [vmem:[%s10840_s7 + $0x78] sm:$0xff]  }
 0x42e   :  { %6122 = vmatprep.subr.bf16.mxu1 %v8164_v4  ;;  %v3954_v4 = vrot.slane %v10466_v18, %v3953_v0  ;;  %v8282_v0 = vld [vmem:[%s10840_s7 + $0x38] sm:$0xff]  }
 0x431   :  { %6123 = vmatpush1.bf16.msra.mxu1 %v8162_v5 }
 0x432   :  { %6124 = vmatprep.subr.bf16.mxu1 %v8167_v9 }
 0x435   :  { %6125 = vmatpush1.bf16.msra.mxu1 %v8165_v11 }
 0x436   :  { %6126 = vmatprep.subr.bf16.mxu1 %v8170_v13 }
 0x439   :  { %6127 = vmatpush1.bf16.msra.mxu1 %v8168_v15 }
 0x43a   :  { %6137 = vmatprep.subr.bf16.mxu1 %v8173_v16 }
 0x43c   :  { %6129 = vmatmul.mubr.bf16.vlgmr.msra.gmra.mrb[48].mxu1 %v5269_v52  ;;  %v8216_v52 = vld [vmem:[%s10838_s5 + $0x2f0] ss:$8 sps:$4 sm:$0xff]  }
 0x43d   :  { %6138 = vmatpush1.bf16.msra.mxu1 %v8171_v17 }
 0x43e   :  { %6139 = vmatprep.subr.bf16.mxu1 %v8176_v24 }
 0x441   :  { %6140 = vmatpush1.bf16.msra.mxu1 %v8174_v29  ;;  %v8221_v29 = vld [vmem:[%s10838_s5 + $0x304] ss:$8 sps:$4 sm:$0xff]  }
 0x442   :  { %6141 = vmatprep.subr.bf16.mxu1 %v8179_v19 }
 0x445   :  { %6142 = vmatpush1.bf16.msra.mxu1 %v8177_v21 }
 0x446   :  { %6143 = vmatprep.subr.bf16.mxu1 %v8182_v22  ;;  %v8227_v22 = vld [vmem:[%s10838_s5 + $0x324] ss:$8 sps:$4 sm:$0xff]  }
 0x449   :  { %6144 = vmatpush1.bf16.msra.mxu1 %v8180_v23  ;;  %v8225_v23 = vld [vmem:[%s10838_s5 + $0x320] ss:$8 sps:$4 sm:$0xff]  }
 0x44a   :  { %6145 = vmatprep.subr.bf16.mxu1 %v8185_v28  ;;  %v8233_v28 = vld [vmem:[%s10838_s5 + $0x344] ss:$8 sps:$4 sm:$0xff]  }
 0x44d   :  { %6146 = vmatpush1.bf16.msra.mxu1 %v8183_v30  ;;  %v8231_v30 = vld [vmem:[%s10838_s5 + $0x340] ss:$8 sps:$4 sm:$0xff]  }
 0x44e   :  { %6147 = vmatprep.subr.bf16.mxu1 %v8188_v31  ;;  %v8236_v31 = vld [vmem:[%s10838_s5 + $0x354] ss:$8 sps:$4 sm:$0xff]  }
 0x451   :  { %6148 = vmatpush1.bf16.msra.mxu1 %v8186_v33  ;;  %v8242_v33 = vld [vmem:[%s10838_s5 + $0x374] ss:$8 sps:$4 sm:$0xff]  }
 0x452   :  { %v10650_v41 = vpop.f32.mrb[8].mxu0  ;;  %6149 = vmatprep.subr.bf16.mxu1 %v8191_v37  ;;  %v8245_v37 = vld [vmem:[%s10838_s5 + $0x384] ss:$8 sps:$4 sm:$0xff]  }
 0x453   :  { %v5254_v44 = vpop.f32.mrb[9].mxu0 }
 0x454   :  { %v5256_v46 = vpop.f32.mrb[10].mxu0  ;;  %v7421_v13 = vadd.f32 %v5254_v44, %v3962_v3  ;;  %v8251_v44 = vld [vmem:[%s10838_s5 + $0x3a4] ss:$8 sps:$4 sm:$0xff]  }
 0x455   :  { %v5257_v26 = vpop.f32.mrb[11].mxu0  ;;  %6150 = vmatpush1.bf16.msra.mxu1 %v8189_v40  ;;  %v8248_v40 = vld [vmem:[%s10838_s5 + $0x394] ss:$8 sps:$4 sm:$0xff]   ;;  %v8249_v46 = vld [vmem:[%s10838_s5 + $0x3a0] ss:$8 sps:$4 sm:$0xff]  }
 0x456   :  { %6151 = vmatprep.subr.bf16.mxu1 %v8194_v42  ;;  %v5266_v19 = vmax.f32 %v7421_v13, 0.0  ;;  %v8246_v42 = vld [vmem:[%s10838_s5 + $0x390] ss:$8 sps:$4 sm:$0xff]   ;;  %v8254_v26 = vld [vmem:[%s10838_s5 + $0x3b4] ss:$8 sps:$4 sm:$0xff]  }
 0x458   :  { %v5274_v8 = vpack.c.bf16 %v5266_v19, %v5266_v19 }
 0x459   :  { %6152 = vmatpush1.bf16.msra.mxu1 %v8192_v47  ;;  %v8252_v47 = vld [vmem:[%s10838_s5 + $0x3b0] ss:$8 sps:$4 sm:$0xff]  }
 0x45a   :  { %6153 = vmatprep.subr.bf16.mxu1 %v8197_v48  ;;  %v8257_v48 = vld [vmem:[%s10838_s5 + $0x3c4] ss:$8 sps:$4 sm:$0xff]  }
 0x45d   :  { %6154 = vmatpush1.bf16.msra.mxu1 %v8195_v49  ;;  %v8255_v49 = vld [vmem:[%s10838_s5 + $0x3c0] ss:$8 sps:$4 sm:$0xff]  }
 0x45e   :  { %6155 = vmatprep.subr.bf16.mxu1 %v8200_v45  ;;  %v3957_v45 = vsub.s32 6, %v9370_v60  ;;  %v8261_v60 = vld [vmem:[%s10838_s5 + $0x3e0] ss:$8 sps:$4 sm:$0xff]  }
 0x461   :  { %6156 = vmatpush1.bf16.msra.mxu1 %v8198_v36  ;;  %v8260_v36 = vld [vmem:[%s10838_s5 + $0x3d4] ss:$8 sps:$4 sm:$0xff]  }
 0x462   :  { %6157 = vmatprep.subr.bf16.mxu1 %v8203_v39  ;;  %v8258_v39 = vld [vmem:[%s10838_s5 + $0x3d0] ss:$8 sps:$4 sm:$0xff]  }
 0x465   :  { %6158 = vmatpush1.bf16.msra.mxu1 %v8201_v51  ;;  %v3958_v51 = vrot.slane %v10466_v18, %v3957_v45  ;;  %v8264_v18 = vld [vmem:[%s10838_s5 + $0x3f0] ss:$8 sps:$4 sm:$0xff]  }
 0x466   :  { %6159 = vmatprep.subr.bf16.mxu1 %v8206_v54  ;;  %v8263_v54 = vld [vmem:[%s10838_s5 + $0x3e4] ss:$8 sps:$4 sm:$0xff]  }
 0x469   :  { %6160 = vmatpush1.bf16.msra.mxu1 %v8204_v55  ;;  %v7420_v55 = vadd.f32 %v10650_v41, %v3958_v51  ;;  %v8280_v41 = vld [vmem:[%s10840_s7 + $0x30] sm:$0xff]  }
 0x46a   :  { %6161 = vmatprep.subr.bf16.mxu1 %v8209_v56  ;;  %v8266_v56 = vld [vmem:[%s10838_s5 + $0x3f4] ss:$8 sps:$4 sm:$0xff]   ;;  %7401 = vmatpush3.bf16.msra.mxu0 %v8280_v41 }
 0x46b   :  { %7402 = vmatprep.subr.bf16.mxu0 %v8281_v63 }
 0x46d   :  { %6162 = vmatpush1.bf16.msra.mxu1 %v8207_v58  ;;  %v5265_v58 = vmax.f32 %v7420_v55, 0.0 }
 0x46e   :  { %6163 = vmatprep.subr.bf16.mxu1 %v8212_v59  ;;  %7403 = vmatpush3.bf16.msra.mxu0 %v8282_v0 }
 0x46f   :  { %v5273_v59 = vpack.c.bf16 %v5265_v58, %v5265_v58 }
 0x471   :  { %v5170_v5 = vpop.f32.mrb[44].mxu1  ;;  %6164 = vmatpush1.bf16.msra.mxu1 %v8210_v1  ;;  %v5403_v1 = vld [vmem:[%s10841_s6] sm:$0x3] }
 0x472   :  { %v7418_v9 = vadd.f32 %v5170_v5, %v3950_v62  ;;  %v5172_v11 = vpop.f32.mrb[45].mxu1  ;;  %6165 = vmatprep.subr.bf16.mxu1 %v8215_v2  ;;  %v5408_v62 = vrot.slane %v5403_v1, %v10012_v34  ;;  %v5412_v2 = vrot.slane %v5403_v1, %v10015_v35 }
 0x473   :  { %v7419_v15 = vadd.f32 %v5172_v11, %v3954_v4  ;;  %v5174_v14 = vpop.f32.mrb[46].mxu1 }
 0x474   :  { %v5175_v16 = vpop.f32.mrb[47].mxu1  ;;  %v5263_v24 = vmax.f32 %v7418_v9, 0.0 }
 0x475   :  { %v5264_v17 = vmax.f32 %v7419_v15, 0.0  ;;  %6166 = vmatpush1.bf16.msra.mxu1 %v8213_v6 }
 0x476   :  { %6167 = vmatprep.subr.bf16.mxu1 %v8218_v12  ;;  %v5271_v21 = vpack.c.bf16 %v5263_v24, %v5263_v24 }
 0x477   :  { %v5272_v20 = vpack.c.bf16 %v5264_v17, %v5264_v17  ;;  %v7173_v17 = vld [vmem:[%s10842_s8] ss:$0 sm:$0xff] }
 0x479   :  { %6168 = vmatpush1.bf16.msra.mxu1 %v8216_v52  ;;  %6169 = vmatprep.mubr.bf16.mxu1 %v5272_v20 }
 0x47a   :  { %6178 = vmatprep.subr.bf16.mxu1 %v8221_v29 }
 0x47c   :  { %6170 = vmatmul.mubr.bf16.vlgmr.msra.gmra.mrb[48].mxu1 %v5271_v21 }
 0x47d   :  { %6179 = vmatpush1.bf16.msra.mxu1 %v8219_v7  ;;  %6210 = vmatprep.mubr.bf16.mxu1 %v5274_v8 }
 0x47e   :  { %6180 = vmatprep.subr.bf16.mxu1 %v8224_v53 }
 0x481   :  { %6181 = vmatpush1.bf16.msra.mxu1 %v8222_v10 }
 0x482   :  { %6182 = vmatprep.subr.bf16.mxu1 %v8227_v22 }
 0x485   :  { %6183 = vmatpush1.bf16.msra.mxu1 %v8225_v23 }
 0x486   :  { %6184 = vmatprep.subr.bf16.mxu1 %v8230_v25 }
 0x489   :  { %6185 = vmatpush1.bf16.msra.mxu1 %v8228_v27 }
 0x48a   :  { %6186 = vmatprep.subr.bf16.mxu1 %v8233_v28 }
 0x48d   :  { %6187 = vmatpush1.bf16.msra.mxu1 %v8231_v30 }
 0x48e   :  { %6188 = vmatprep.subr.bf16.mxu1 %v8236_v31 }
 0x491   :  { %6189 = vmatpush1.bf16.msra.mxu1 %v8234_v32 }
 0x492   :  { %6190 = vmatprep.subr.bf16.mxu1 %v8239_v43 }
 0x495   :  { %6191 = vmatpush1.bf16.msra.mxu1 %v8237_v50 }
 0x496   :  { %6192 = vmatprep.subr.bf16.mxu1 %v8242_v33 }
 0x499   :  { %6193 = vmatpush1.bf16.msra.mxu1 %v8240_v57 }
 0x49a   :  { %6194 = vmatprep.subr.bf16.mxu1 %v8245_v37 }
 0x49d   :  { %6195 = vmatpush1.bf16.msra.mxu1 %v8243_v38 }
 0x49e   :  { %6196 = vmatprep.subr.bf16.mxu1 %v8248_v40 }
 0x4a1   :  { %6197 = vmatpush1.bf16.msra.mxu1 %v8246_v42 }
 0x4a2   :  { %6198 = vmatprep.subr.bf16.mxu1 %v8251_v44 }
 0x4a5   :  { %6199 = vmatpush1.bf16.msra.mxu1 %v8249_v46 }
 0x4a6   :  { %6200 = vmatprep.subr.bf16.mxu1 %v8254_v26 }
 0x4a9   :  { %6201 = vmatpush1.bf16.msra.mxu1 %v8252_v47 }
 0x4aa   :  { %6202 = vmatprep.subr.bf16.mxu1 %v8257_v48 }
 0x4ad   :  { %6203 = vmatpush1.bf16.msra.mxu1 %v8255_v49 }
 0x4ae   :  { %6204 = vmatprep.subr.bf16.mxu1 %v8260_v36 }
 0x4b1   :  { %6205 = vmatpush1.bf16.msra.mxu1 %v8258_v39 }
 0x4b2   :  { %6206 = vmatprep.subr.bf16.mxu1 %v8263_v54 }
 0x4b5   :  { %6207 = vmatpush1.bf16.msra.mxu1 %v8261_v60 }
 0x4b6   :  { %6208 = vmatprep.subr.bf16.mxu1 %v8266_v56 }
 0x4b9   :  { %6209 = vmatpush1.bf16.msra.mxu1 %v8264_v18 }
 0x4bc   :  { %6211 = vmatmul.mubr.bf16.vlgmr.msra.gmra.mrb[48].mxu1 %v5273_v59 }
 0x58f   :  { %v6212_v3 = vpop.f32.mrb[48].mxu1 }
 0x590   :  { %v7422_v4 = vadd.f32 %v6212_v3, %v5408_v62  ;;  %v6214_v5 = vpop.f32.mrb[49].mxu1 }
 0x591   :  { %v7423_v6 = vadd.f32 %v6214_v5, %v5412_v2  ;;  %v6216_v9 = vpop.f32.mrb[50].mxu1 }
 0x592   :  { %v6219_v11 = vmax.f32 %v7422_v4, 0.0  ;;  %v6217_v12 = vpop.f32.mrb[51].mxu1 }
 0x593   :  { %v6220_v13 = vmax.f32 %v7423_v6, 0.0 }
 0x594   :  { %v6221_v14 = vpack.c.bf16 %v6219_v11, %v6219_v11 }
 0x595   :  { %v6222_v15 = vpack.c.bf16 %v6220_v13, %v6220_v13 }
 0x597   :  { %6390 = vmatprep.mubr.bf16.mxu0 %v6222_v15 }
 0x598   :  { %6391 = vmatmul.mubr.bf16.vlgmr.msra.gmra.mrb[12].mxu0 %v6221_v14 }
 0x66b   :  { %v7404_v16 = vpop.f32.mrb[12].mxu0 }
 0x66c   :  { %v7405_v34 = vpop.f32.mrb[13].mxu0 }
 0x66d   :  { %v7406_v52 = vadd.f32 %v7405_v34, %v7404_v16  ;;  %v7407_v35 = vpop.f32.mrb[14].mxu0 }
 0x66e   :  { %v7408_v24 = vpop.f32.mrb[15].mxu0 }
 0x66f   :  { %v6393_v29 = vadd.f32 %v7406_v52, %v7173_v17 }
 0x671   :  { %6398 = vst [vmem:[%s10843_s9] sm:$0xff] %v6393_v29 }

</bundles_post_ra>
